<compile_context>
chip_gen: v5e
topology: v5e:2x2
jax: 0.10.0
libtpu: 0.0.40
codegen_flags: <defaults>
</compile_context>

<pallas_src>
import functools
import math

import jax
import jax.numpy as jnp
from jax import lax
from jax.experimental import pallas as pl
from jax.experimental.pallas import tpu as pltpu

F32 = jnp.float32
BF16 = jnp.bfloat16
LRELU_SLOPE = 0.2
IN_EPS = 1e-5                      # nn.InstanceNorm2d default eps (affine=False)


# --------------------------------------------------------------------------
# small helpers
# --------------------------------------------------------------------------
def _round_up(x, m):
    return ((x + m - 1) // m) * m


def _nchw_to_nhwc(x):
    return jnp.transpose(x, (0, 2, 3, 1))


def _nhwc_to_nchw(x):
    return jnp.transpose(x, (0, 3, 1, 2))


def _vmem_limit_bytes():
    cap = 64 * 2**20
    try:
        info = pltpu.get_tpu_info()
        cap = int(getattr(info, "vmem_capacity_bytes", cap)) or cap
    except Exception:
        pass
    limit = int(min(0.75 * cap, 100 * 2**20))       # 48 MiB on v7x, 96 MiB on v5e/v6e
    return max(limit, 32 * 2**20)


def _compiler_params(semantics):
    return pltpu.CompilerParams(dimension_semantics=semantics,
                                vmem_limit_bytes=_vmem_limit_bytes())


def _pick_rt(Wp, Ho, per_row_bytes, const_bytes, rows_cap):
    """Rows of output per grid step, bounded by a VMEM budget and a flat-row cap."""
    budget = int(0.35 * _vmem_limit_bytes())        # ~x2 for double buffering
    rt_mem = max(1, (budget - const_bytes) // max(per_row_bytes, 1))
    rt_cap = max(1, rows_cap // Wp)
    return int(max(1, min(rt_mem, rt_cap, Ho)))


def _halo_tiles(x, pad, KH, Wp, rt, n_m):
    """Zero-pad and cut into per-tile row windows with a KH-row halo.

    x: (B, H, W, C) -> (B, n_m, (rt+KH)*Wp, C) bf16.  Only the small halo
    (KH rows per tile) is duplicated; no KW replication.
    """
    B, H, W, C = x.shape
    rows = n_m * rt + KH
    xp = jnp.pad(x.astype(BF16),
                 ((0, 0), (pad, rows - H - pad), (pad, Wp - W - pad), (0, 0)))
    tiles = [xp[:, m * rt:m * rt + rt + KH] for m in range(n_m)]
    xt = jnp.stack(tiles, axis=1)                           # (B, n_m, rt+KH, Wp, C)
    return xt.reshape(B, n_m, (rt + KH) * Wp, C)


# --------------------------------------------------------------------------
# Pallas kernel 1: tiled conv (stride 1) + bias [+ InstanceNorm] [+ LeakyReLU]
#   Rows are flattened at the padded width Wp; per (i,j) tap one bf16 matmul on
#   a row-window slice.  Columns >= Wo and rows >= Ho are garbage (masked out
#   of the IN statistics, cropped by the wrapper).
# --------------------------------------------------------------------------
def _conv_kernel(KH, KW, Wp, rt, n_valid, norm, act, two_pass, *refs):
    if norm:
        x_ref, w_ref, b_ref, msk_ref = refs[:4]
        outs = refs[4:]
    else:
        x_ref, w_ref, b_ref = refs[:3]
        msk_ref = None
        outs = refs[3:]
    if two_pass:
        y_ref, s_ref = outs
    else:
        (y_ref,) = outs

    Mb = rt * Wp
    tco = y_ref.shape[-1]
    acc = jnp.zeros((Mb, tco), jnp.float32)
    for i in range(KH):                                  # KH*KW taps, K = Cin each
        for j in range(KW):
            xs = x_ref[0, 0, i * Wp + j:i * Wp + j + Mb, :]      # bf16 row window
            acc = acc + jnp.dot(xs, w_ref[i * KW + j],
                                preferred_element_type=jnp.float32)
    y = acc + b_ref[...]

    if norm:
        msk = msk_ref[0]                                 # (Mb, 1) f32, 1 on valid pixels
        ym = y * msk
        s = jnp.sum(ym, axis=0, keepdims=True)           # (1, tco)
        ss = jnp.sum(ym * ym, axis=0, keepdims=True)
        if two_pass:                                     # accumulate stats over M tiles
            m_id = pl.program_id(2)

            @pl.when(m_id == 0)
            def _init():
                s_ref[0, 0:1, :] = s
                s_ref[0, 1:2, :] = ss

            @pl.when(m_id > 0)
            def _accum():
                s_ref[0, 0:1, :] = s_ref[0, 0:1, :] + s
                s_ref[0, 1:2, :] = s_ref[0, 1:2, :] + ss
        else:                                            # single tile: fuse IN here
            mean = s * (1.0 / n_valid)
            var = ss * (1.0 / n_valid) - mean * mean
            y = (y - mean) * lax.rsqrt(jnp.maximum(var, 0.0) + IN_EPS)

    if act and not two_pass:
        y = jnp.where(y >= 0, y, LRELU_SLOPE * y)
    y_ref[0] = y.astype(y_ref.dtype)


# --------------------------------------------------------------------------
# Pallas kernel 2: second pass of the M-tiled InstanceNorm (+ LeakyReLU)
# --------------------------------------------------------------------------
def _in_act_kernel(n_valid, act, y_ref, s_ref, o_ref):
    y = y_ref[0].astype(jnp.float32)
    mean = s_ref[0, 0:1, :] * (1.0 / n_valid)
    var = s_ref[0, 1:2, :] * (1.0 / n_valid) - mean * mean
    y = (y - mean) * lax.rsqrt(jnp.maximum(var, 0.0) + IN_EPS)
    if act:
        y = jnp.where(y >= 0, y, LRELU_SLOPE * y)
    o_ref[0] = y.astype(o_ref.dtype)


# --------------------------------------------------------------------------
# Pallas kernel 3: depthwise 3x3 blur ([1 2 1; 2 4 2; 1 2 1]/16, zero pad 1)
# --------------------------------------------------------------------------
def _blur_kernel(Wp, rt, x_ref, o_ref):
    coef = ((1., 2., 1.), (2., 4., 2.), (1., 2., 1.))
    Mb = rt * Wp
    acc = jnp.zeros((Mb, o_ref.shape[-1]), jnp.float32)
    for i in range(3):
        for j in range(3):
            xs = x_ref[0, 0, i * Wp + j:i * Wp + j + Mb, :].astype(jnp.float32)
            acc = acc + (coef[i][j] / 16.0) * xs
    o_ref[0] = acc.astype(o_ref.dtype)


# --------------------------------------------------------------------------
# wrappers
# --------------------------------------------------------------------------
def _conv2d_block(x, w_oikk, bias, *, w_scale, pad, norm, act, block_rows=None):
    """Stride-1 conv + bias [+IN] [+LReLU]; returns (B, Ho, Wo, Cout_pad) bf16."""
    B, H, W, Cx = x.shape
    O, Ci, KH, KW = w_oikk.shape
    Ho = H + 2 * pad - KH + 1
    Wo = W + 2 * pad - KW + 1
    Wp = _round_up(W + 2 * pad, 8)
    Cop = _round_up(O, 128)                      # lane-dense output stores
    tco = 256 if Cop % 256 == 0 else 128

    # weights: (O, Ci, KH, KW) -> (KH*KW, Cx, Cop) bf16 (Cin padded to input C,
    # Cout padded to a multiple of 128 with zeros)
    wf = w_oikk.astype(F32) * w_scale
    if Cx > Ci:
        wf = jnp.pad(wf, ((0, 0), (0, Cx - Ci), (0, 0), (0, 0)))
    wf = jnp.pad(wf, ((0, Cop - O), (0, 0), (0, 0), (0, 0)))
    wt = jnp.transpose(wf, (2, 3, 1, 0)).reshape(KH * KW, Cx, Cop).astype(BF16)
    bt = jnp.pad(bias.astype(F32), (0, Cop - O)).reshape(1, Cop)

    # row-tile size from the VMEM budget
    cin_l = _round_up(Cx, 128)
    per_row = Wp * (cin_l * 2 + tco * 2 + tco * 4 + tco * 2 + 8)
    const = (KH + 1) * Wp * cin_l * 2 + KH * KW * _round_up(Cx, 8) * tco * 2 + (2 << 20)
    rows_cap = block_rows if block_rows is not None else 1024
    rt = _pick_rt(Wp, Ho, per_row, const, rows_cap)
    n_m = -(-Ho // rt)
    Mb = rt * Wp
    two_pass = norm and n_m > 1

    xt = _halo_tiles(x, pad, KH, Wp, rt, n_m)

    inputs = [xt, wt, bt]
    in_specs = [
        pl.BlockSpec((1, 1, (rt + KH) * Wp, Cx), lambda b, c, m: (b, m, 0, 0)),
        pl.BlockSpec((KH * KW, Cx, tco), lambda b, c, m: (0, 0, c)),
        pl.BlockSpec((1, tco), lambda b, c, m: (0, c)),
    ]
    if norm:
        msk = ((jnp.arange(n_m * rt) < Ho)[:, None]
               & (jnp.arange(Wp) < Wo)[None, :]).astype(F32)
        inputs.append(msk.reshape(n_m, Mb, 1))
        in_specs.append(pl.BlockSpec((1, Mb, 1), lambda b, c, m: (m, 0, 0)))

    out_shape = [jax.ShapeDtypeStruct((B, n_m * Mb, Cop), BF16)]
    out_specs = [pl.BlockSpec((1, Mb, tco), lambda b, c, m: (b, m, c))]
    if two_pass:
        out_shape.append(jax.ShapeDtypeStruct((B, 2, Cop), F32))
        out_specs.append(pl.BlockSpec((1, 2, tco), lambda b, c, m: (b, 0, c)))

    semantics = ("parallel", "parallel", "arbitrary" if two_pass else "parallel")
    res = pl.pallas_call(
        functools.partial(_conv_kernel, KH, KW, Wp, rt, float(Ho * Wo),
                          norm, act, two_pass),
        out_shape=tuple(out_shape),
        grid=(B, Cop // tco, n_m),
        in_specs=in_specs,
        out_specs=tuple(out_specs),
        compiler_params=_compiler_params(semantics),
    )(*inputs)

    if two_pass:
        y, stats = res
        y = pl.pallas_call(
            functools.partial(_in_act_kernel, float(Ho * Wo), act),
            out_shape=jax.ShapeDtypeStruct(y.shape, BF16),
            grid=(B, Cop // tco, n_m),
            in_specs=[pl.BlockSpec((1, Mb, tco), lambda b, c, m: (b, m, c)),
                      pl.BlockSpec((1, 2, tco), lambda b, c, m: (b, 0, c))],
            out_specs=pl.BlockSpec((1, Mb, tco), lambda b, c, m: (b, m, c)),
            compiler_params=_compiler_params(("parallel",) * 3),
        )(y, stats)
    else:
        y = res[0]

    return y.reshape(B, n_m * rt, Wp, Cop)[:, :Ho, :Wo, :]


def _blur_block(x, block_rows=None):
    """Depthwise binomial 3x3 blur, pad 1.  x: (B,H,W,C) bf16, C % 128 == 0."""
    B, H, W, C = x.shape
    KH = 3
    Wp = _round_up(W + 2, 8)
    Ho, Wo = H, W
    tc = 256 if C % 256 == 0 else 128
    per_row = Wp * (tc * 2 + tc * 2 + tc * 4)
    const = (KH + 1) * Wp * tc * 2 + (2 << 20)
    rows_cap = block_rows if block_rows is not None else 1024
    rt = _pick_rt(Wp, Ho, per_row, const, rows_cap)
    n_m = -(-Ho // rt)
    Mb = rt * Wp
    xt = _halo_tiles(x, 1, KH, Wp, rt, n_m)
    y = pl.pallas_call(
        functools.partial(_blur_kernel, Wp, rt),
        out_shape=jax.ShapeDtypeStruct((B, n_m * Mb, C), BF16),
        grid=(B, C // tc, n_m),
        in_specs=[pl.BlockSpec((1, 1, (rt + KH) * Wp, tc),
                               lambda b, c, m: (b, m, 0, c))],
        out_specs=pl.BlockSpec((1, Mb, tc), lambda b, c, m: (b, m, c)),
        compiler_params=_compiler_params(("parallel",) * 3),
    )(xt)
    return y.reshape(B, n_m * rt, Wp, C)[:, :Ho, :Wo, :]


def _downsample_conv(x, w_oikk, bias, *, w_scale, pad, norm, act, block_rows=None):
    """Stride-2 conv with the 2x2-shift-averaged 4x4 kernel (== FusedDownsample ==
    EqualConv2d(3x3) + AvgPool2d(2)), as 4 parity sub-convolutions (2x2 taps,
    stride 1) so it reuses the fused stride-1 kernel with zero strided access."""
    B, H, W, C = x.shape
    O, I, k, _ = w_oikk.shape
    wf = w_oikk.astype(F32) * w_scale
    wp_ = jnp.pad(wf, ((0, 0), (0, 0), (1, 1), (1, 1)))
    k4 = (wp_[:, :, 1:, 1:] + wp_[:, :, :-1, 1:]
          + wp_[:, :, 1:, :-1] + wp_[:, :, :-1, :-1]) / 4.0      # (O, I, k+1, k+1)
    if C > I:
        k4 = jnp.pad(k4, ((0, 0), (0, C - I), (0, 0), (0, 0)))
    ks = k + 1
    ks2 = -(-ks // 2)
    if 2 * ks2 > ks:
        k4 = jnp.pad(k4, ((0, 0), (0, 0), (0, 2 * ks2 - ks), (0, 2 * ks2 - ks)))

    Ho2 = (H + 2 * pad - ks) // 2 + 1
    Wo2 = (W + 2 * pad - ks) // 2 + 1
    Ph, Pw = Ho2 + ks2 - 1, Wo2 + ks2 - 1
    bot = max(pad, 2 * Ph - H - pad)
    right = max(pad, 2 * Pw - W - pad)
    xp = jnp.pad(x.astype(BF16), ((0, 0), (pad, bot), (pad, right), (0, 0)))
    # parity grids: xpar[..., (q*2+r)*C + c] = xpad[2y+q, 2x+r, c]
    xpar = jnp.concatenate(
        [xp[:, q::2, r::2, :][:, :Ph, :Pw, :] for q in range(2) for r in range(2)],
        axis=-1)                                                 # (B, Ph, Pw, 4C)

    w6 = k4.reshape(O, C, ks2, 2, ks2, 2)                        # (o, c, a, q, b, r)
    wpar = jnp.transpose(w6, (0, 3, 5, 1, 2, 4)).reshape(O, 4 * C, ks2, ks2)
    return _conv2d_block(xpar, wpar, bias, w_scale=1.0, pad=0,
                         norm=norm, act=act, block_rows=block_rows)


# --------------------------------------------------------------------------
# ConvBlock forward (public interface is NCHW f32, like PyTorch)
# --------------------------------------------------------------------------
def conv_block_forward(x_nchw, params, *, kernel_size=3, padding=1,
                       kernel_size2=None, padding2=None, downsample=False,
                       fused=False, norm=True, block_rows=None):
    del kernel_size, kernel_size2          # implied by the weight shapes
    del fused                              # both downsample paths are the same op
    pad1 = padding
    pad2 = padding if padding2 is None else padding2

    w1, b1 = params["conv1_w"], params["conv1_b"]
    w2, b2 = params["conv2_w"], params["conv2_b"]
    _, I1, k1, _ = w1.shape
    _, I2, k2, _ = w2.shape
    s1 = math.sqrt(2.0 / (I1 * k1 * k1))   # EqualLR scale, applied in the forward
    s2 = math.sqrt(2.0 / (I2 * k2 * k2))

    x = _nchw_to_nhwc(x_nchw).astype(BF16)
    y = _conv2d_block(x, w1, b1, w_scale=s1, pad=pad1, norm=norm, act=True,
                      block_rows=block_rows)
    if downsample:
        y = _blur_block(y, block_rows=block_rows)
        y = _downsample_conv(y, w2, b2, w_scale=s2, pad=pad2, norm=norm,
                             act=True, block_rows=block_rows)
    else:
        y = _conv2d_block(y, w2, b2, w_scale=s2, pad=pad2, norm=norm, act=True,
                          block_rows=block_rows)
    Cout = w2.shape[0]
    return _nhwc_to_nchw(y[..., :Cout].astype(F32))


# --------------------------------------------------------------------------
# pure-JAX reference (PyTorch semantics, f32 HIGHEST) for the in-script check
# --------------------------------------------------------------------------
def _conv_ref(x_nhwc, w_oikk, bias, stride, pad, groups=1):
    kern = jnp.transpose(w_oikk, (2, 3, 1, 0))
    y = lax.conv_general_dilated(
        x_nhwc, kern, (stride, stride), ((pad, pad), (pad, pad)),
        dimension_numbers=("NHWC", "HWIO", "NHWC"),
        feature_group_count=groups, precision=lax.Precision.HIGHEST)
    return y + bias.reshape(1, 1, 1, -1)


def _in_ref(x):
    mean = x.mean(axis=(1, 2), keepdims=True)
    var = jnp.square(x - mean).mean(axis=(1, 2), keepdims=True)
    return (x - mean) * lax.rsqrt(var + IN_EPS)


def _lrelu_ref(x):
    return jnp.where(x >= 0, x, LRELU_SLOPE * x)


def _blur_ref(x_nhwc):
    C = x_nhwc.shape[-1]
    k = jnp.array([[1., 2., 1.], [2., 4., 2.], [1., 2., 1.]], F32) / 16.0
    kern = jnp.tile(k[:, :, None, None], (1, 1, 1, C))
    return lax.conv_general_dilated(
        x_nhwc, kern, (1, 1), ((1, 1), (1, 1)),
        dimension_numbers=("NHWC", "HWIO", "NHWC"),
        feature_group_count=C, precision=lax.Precision.HIGHEST)


def _avg_pool2_ref(x):
    B, H, W, C = x.shape
    return x.reshape(B, H // 2, 2, W // 2, 2, C).mean(axis=(2, 4))


def conv_block_ref(x_nchw, params, *, padding=1, padding2=None,
                   downsample=False, fused=False, norm=True):
    pad1 = padding
    pad2 = padding if padding2 is None else padding2
    x = _nchw_to_nhwc(x_nchw)

    w1 = params["conv1_w"]
    _, I1, k1, _ = w1.shape
    y = _conv_ref(x, w1 * math.sqrt(2.0 / (I1 * k1 * k1)), params["conv1_b"], 1, pad1)
    if norm:
        y = _in_ref(y)
    y = _lrelu_ref(y)

    w2 = params["conv2_w"]
    _, I2, k2, _ = w2.shape
    if downsample:
        y = _blur_ref(y)
        if fused:
            w = jnp.pad(w2 * math.sqrt(2.0 / (I2 * k2 * k2)),
                        ((0, 0), (0, 0), (1, 1), (1, 1)))
            w4 = (w[:, :, 1:, 1:] + w[:, :, :-1, 1:]
                  + w[:, :, 1:, :-1] + w[:, :, :-1, :-1]) / 4.0
            y = _conv_ref(y, w4, params["conv2_b"], 2, pad2)
        else:
            y = _conv_ref(y, w2 * math.sqrt(2.0 / (I2 * k2 * k2)),
                          params["conv2_b"], 1, pad2)
            y = _avg_pool2_ref(y)
        if norm:
            y = _in_ref(y)
        y = _lrelu_ref(y)
    else:
        y = _conv_ref(y, w2 * math.sqrt(2.0 / (I2 * k2 * k2)),
                      params["conv2_b"], 1, pad2)
        if norm:
            y = _in_ref(y)
        y = _lrelu_ref(y)
    return _nhwc_to_nchw(y)


# --------------------------------------------------------------------------
if __name__ == "__main__":
    key = jax.random.PRNGKey(0)
    k_x, k_w1, k_w2, k_b1, k_b2 = jax.random.split(key, 5)

    B, C_IN, C_OUT, H, W = 2, 4, 8, 16, 16
    x = jax.random.normal(k_x, (B, C_IN, H, W), F32)               # NCHW input
    params = {
        "conv1_w": jax.random.normal(k_w1, (C_OUT, C_IN, 3, 3), F32),
        "conv1_b": 0.1 * jax.random.normal(k_b1, (C_OUT,), F32),
        "conv2_w": jax.random.normal(k_w2, (C_OUT, C_OUT, 3, 3), F32),
        "conv2_b": 0.1 * jax.random.normal(k_b2, (C_OUT,), F32),
    }

    runs = [
        (dict(downsample=False, fused=False, norm=True), None, (B, C_OUT, H, W)),
        (dict(downsample=True, fused=False, norm=True), None, (B, C_OUT, H // 2, W // 2)),
        (dict(downsample=True, fused=True, norm=True), None, (B, C_OUT, H // 2, W // 2)),
        (dict(downsample=False, fused=False, norm=False), None, (B, C_OUT, H, W)),
        # forced small row blocks -> multiple M tiles -> two-pass InstanceNorm path
        (dict(downsample=True, fused=True, norm=True), 72, (B, C_OUT, H // 2, W // 2)),
    ]
    for cfg, br, shp in runs:
        fwd = jax.jit(functools.partial(conv_block_forward, block_rows=br, **cfg))
        out = jax.block_until_ready(fwd(x, params))
        assert out.shape == shp, (out.shape, shp)
        assert bool(jnp.all(jnp.isfinite(out)))
        ref = conv_block_ref(x, params, **cfg)
        err = float(jnp.max(jnp.abs(out - ref)))
        # bf16 MXU operands + bf16 intermediate activations vs f32 HIGHEST ref
        assert err < 0.15, (cfg, br, err)

    print("KERNEL_OK")
</pallas_src>

<mosaic_0001>
module attributes {stable_mosaic.version = 11 : i64} {
  func.func @_conv_kernel(%arg0: i32, %arg1: i32, %arg2: i32, %arg3: memref<1x1x456x4xbf16, #tpu.memory_space<vmem>>, %arg4: memref<9x4x128xbf16, #tpu.memory_space<vmem>>, %arg5: memref<1x128xf32, #tpu.memory_space<vmem>>, %arg6: memref<1x384x1xf32, #tpu.memory_space<vmem>>, %arg7: memref<1x384x128xbf16, #tpu.memory_space<vmem>>) attributes {dimension_semantics = [#tpu.dimension_semantics<parallel>, #tpu.dimension_semantics<parallel>, #tpu.dimension_semantics<parallel>], iteration_bounds = array<i64: 2, 1, 1>, scalar_prefetch = 0 : i64, scratch_operands = 0 : i64, tpu.core_type = #tpu.core_type<tc>, window_params = [{transform_indices = @transform_0, window_bounds = array<i64: 1, 1, 456, 4>}, {transform_indices = @transform_1, window_bounds = array<i64: 9, 4, 128>}, {transform_indices = @transform_2, window_bounds = array<i64: 1, 128>}, {transform_indices = @transform_3, window_bounds = array<i64: 1, 384, 1>}, {transform_indices = @transform_4, window_bounds = array<i64: 1, 384, 128>}]} {
    %cst = arith.constant 0.000000e+00 : f32
    %0 = vector.broadcast %cst : f32 to vector<384x128xf32>
    %c0 = arith.constant 0 : index
    %c0_0 = arith.constant 0 : index
    %c0_1 = arith.constant 0 : index
    %c0_2 = arith.constant 0 : index
    %1 = vector.load %arg3[%c0, %c0_0, %c0_1, %c0_2] : memref<1x1x456x4xbf16, #tpu.memory_space<vmem>>, vector<1x1x384x4xbf16>
    %2 = vector.shape_cast %1 : vector<1x1x384x4xbf16> to vector<384x4xbf16>
    %c0_3 = arith.constant 0 : index
    %c0_4 = arith.constant 0 : index
    %c0_5 = arith.constant 0 : index
    %3 = vector.load %arg4[%c0_3, %c0_4, %c0_5] : memref<9x4x128xbf16, #tpu.memory_space<vmem>>, vector<1x4x128xbf16>
    %4 = vector.shape_cast %3 : vector<1x4x128xbf16> to vector<4x128xbf16>
    %cst_6 = arith.constant dense<0.000000e+00> : vector<384x128xf32>
    %5 = tpu.matmul %2, %4, %cst_6 {dimension_numbers = #tpu.dot_dimension_numbers<[1], [0], [0], [1], [0, 0, 1, 1], [], []>} : vector<384x4xbf16>, vector<4x128xbf16>, vector<384x128xf32> -> vector<384x128xf32>
    %6 = arith.addf %0, %5 : vector<384x128xf32>
    %c0_7 = arith.constant 0 : index
    %c0_8 = arith.constant 0 : index
    %c1 = arith.constant 1 : index
    %c0_9 = arith.constant 0 : index
    %7 = vector.load %arg3[%c0_7, %c0_8, %c1, %c0_9] : memref<1x1x456x4xbf16, #tpu.memory_space<vmem>>, vector<1x1x384x4xbf16>
    %8 = vector.shape_cast %7 : vector<1x1x384x4xbf16> to vector<384x4xbf16>
    %c1_10 = arith.constant 1 : index
    %c0_11 = arith.constant 0 : index
    %c0_12 = arith.constant 0 : index
    %9 = vector.load %arg4[%c1_10, %c0_11, %c0_12] : memref<9x4x128xbf16, #tpu.memory_space<vmem>>, vector<1x4x128xbf16>
    %10 = vector.shape_cast %9 : vector<1x4x128xbf16> to vector<4x128xbf16>
    %cst_13 = arith.constant dense<0.000000e+00> : vector<384x128xf32>
    %11 = tpu.matmul %8, %10, %cst_13 {dimension_numbers = #tpu.dot_dimension_numbers<[1], [0], [0], [1], [0, 0, 1, 1], [], []>} : vector<384x4xbf16>, vector<4x128xbf16>, vector<384x128xf32> -> vector<384x128xf32>
    %12 = arith.addf %6, %11 : vector<384x128xf32>
    %c0_14 = arith.constant 0 : index
    %c0_15 = arith.constant 0 : index
    %c2 = arith.constant 2 : index
    %c0_16 = arith.constant 0 : index
    %13 = vector.load %arg3[%c0_14, %c0_15, %c2, %c0_16] : memref<1x1x456x4xbf16, #tpu.memory_space<vmem>>, vector<1x1x384x4xbf16>
    %14 = vector.shape_cast %13 : vector<1x1x384x4xbf16> to vector<384x4xbf16>
    %c2_17 = arith.constant 2 : index
    %c0_18 = arith.constant 0 : index
    %c0_19 = arith.constant 0 : index
    %15 = vector.load %arg4[%c2_17, %c0_18, %c0_19] : memref<9x4x128xbf16, #tpu.memory_space<vmem>>, vector<1x4x128xbf16>
    %16 = vector.shape_cast %15 : vector<1x4x128xbf16> to vector<4x128xbf16>
    %cst_20 = arith.constant dense<0.000000e+00> : vector<384x128xf32>
    %17 = tpu.matmul %14, %16, %cst_20 {dimension_numbers = #tpu.dot_dimension_numbers<[1], [0], [0], [1], [0, 0, 1, 1], [], []>} : vector<384x4xbf16>, vector<4x128xbf16>, vector<384x128xf32> -> vector<384x128xf32>
    %18 = arith.addf %12, %17 : vector<384x128xf32>
    %c0_21 = arith.constant 0 : index
    %c0_22 = arith.constant 0 : index
    %c24 = arith.constant 24 : index
    %c0_23 = arith.constant 0 : index
    %19 = vector.load %arg3[%c0_21, %c0_22, %c24, %c0_23] : memref<1x1x456x4xbf16, #tpu.memory_space<vmem>>, vector<1x1x384x4xbf16>
    %20 = vector.shape_cast %19 : vector<1x1x384x4xbf16> to vector<384x4xbf16>
    %c3 = arith.constant 3 : index
    %c0_24 = arith.constant 0 : index
    %c0_25 = arith.constant 0 : index
    %21 = vector.load %arg4[%c3, %c0_24, %c0_25] : memref<9x4x128xbf16, #tpu.memory_space<vmem>>, vector<1x4x128xbf16>
    %22 = vector.shape_cast %21 : vector<1x4x128xbf16> to vector<4x128xbf16>
    %cst_26 = arith.constant dense<0.000000e+00> : vector<384x128xf32>
    %23 = tpu.matmul %20, %22, %cst_26 {dimension_numbers = #tpu.dot_dimension_numbers<[1], [0], [0], [1], [0, 0, 1, 1], [], []>} : vector<384x4xbf16>, vector<4x128xbf16>, vector<384x128xf32> -> vector<384x128xf32>
    %24 = arith.addf %18, %23 : vector<384x128xf32>
    %c0_27 = arith.constant 0 : index
    %c0_28 = arith.constant 0 : index
    %c25 = arith.constant 25 : index
    %c0_29 = arith.constant 0 : index
    %25 = vector.load %arg3[%c0_27, %c0_28, %c25, %c0_29] : memref<1x1x456x4xbf16, #tpu.memory_space<vmem>>, vector<1x1x384x4xbf16>
    %26 = vector.shape_cast %25 : vector<1x1x384x4xbf16> to vector<384x4xbf16>
    %c4 = arith.constant 4 : index
    %c0_30 = arith.constant 0 : index
    %c0_31 = arith.constant 0 : index
    %27 = vector.load %arg4[%c4, %c0_30, %c0_31] : memref<9x4x128xbf16, #tpu.memory_space<vmem>>, vector<1x4x128xbf16>
    %28 = vector.shape_cast %27 : vector<1x4x128xbf16> to vector<4x128xbf16>
    %cst_32 = arith.constant dense<0.000000e+00> : vector<384x128xf32>
    %29 = tpu.matmul %26, %28, %cst_32 {dimension_numbers = #tpu.dot_dimension_numbers<[1], [0], [0], [1], [0, 0, 1, 1], [], []>} : vector<384x4xbf16>, vector<4x128xbf16>, vector<384x128xf32> -> vector<384x128xf32>
    %30 = arith.addf %24, %29 : vector<384x128xf32>
    %c0_33 = arith.constant 0 : index
    %c0_34 = arith.constant 0 : index
    %c26 = arith.constant 26 : index
    %c0_35 = arith.constant 0 : index
    %31 = vector.load %arg3[%c0_33, %c0_34, %c26, %c0_35] : memref<1x1x456x4xbf16, #tpu.memory_space<vmem>>, vector<1x1x384x4xbf16>
    %32 = vector.shape_cast %31 : vector<1x1x384x4xbf16> to vector<384x4xbf16>
    %c5 = arith.constant 5 : index
    %c0_36 = arith.constant 0 : index
    %c0_37 = arith.constant 0 : index
    %33 = vector.load %arg4[%c5, %c0_36, %c0_37] : memref<9x4x128xbf16, #tpu.memory_space<vmem>>, vector<1x4x128xbf16>
    %34 = vector.shape_cast %33 : vector<1x4x128xbf16> to vector<4x128xbf16>
    %cst_38 = arith.constant dense<0.000000e+00> : vector<384x128xf32>
    %35 = tpu.matmul %32, %34, %cst_38 {dimension_numbers = #tpu.dot_dimension_numbers<[1], [0], [0], [1], [0, 0, 1, 1], [], []>} : vector<384x4xbf16>, vector<4x128xbf16>, vector<384x128xf32> -> vector<384x128xf32>
    %36 = arith.addf %30, %35 : vector<384x128xf32>
    %c0_39 = arith.constant 0 : index
    %c0_40 = arith.constant 0 : index
    %c48 = arith.constant 48 : index
    %c0_41 = arith.constant 0 : index
    %37 = vector.load %arg3[%c0_39, %c0_40, %c48, %c0_41] : memref<1x1x456x4xbf16, #tpu.memory_space<vmem>>, vector<1x1x384x4xbf16>
    %38 = vector.shape_cast %37 : vector<1x1x384x4xbf16> to vector<384x4xbf16>
    %c6 = arith.constant 6 : index
    %c0_42 = arith.constant 0 : index
    %c0_43 = arith.constant 0 : index
    %39 = vector.load %arg4[%c6, %c0_42, %c0_43] : memref<9x4x128xbf16, #tpu.memory_space<vmem>>, vector<1x4x128xbf16>
    %40 = vector.shape_cast %39 : vector<1x4x128xbf16> to vector<4x128xbf16>
    %cst_44 = arith.constant dense<0.000000e+00> : vector<384x128xf32>
    %41 = tpu.matmul %38, %40, %cst_44 {dimension_numbers = #tpu.dot_dimension_numbers<[1], [0], [0], [1], [0, 0, 1, 1], [], []>} : vector<384x4xbf16>, vector<4x128xbf16>, vector<384x128xf32> -> vector<384x128xf32>
    %42 = arith.addf %36, %41 : vector<384x128xf32>
    %c0_45 = arith.constant 0 : index
    %c0_46 = arith.constant 0 : index
    %c49 = arith.constant 49 : index
    %c0_47 = arith.constant 0 : index
    %43 = vector.load %arg3[%c0_45, %c0_46, %c49, %c0_47] : memref<1x1x456x4xbf16, #tpu.memory_space<vmem>>, vector<1x1x384x4xbf16>
    %44 = vector.shape_cast %43 : vector<1x1x384x4xbf16> to vector<384x4xbf16>
    %c7 = arith.constant 7 : index
    %c0_48 = arith.constant 0 : index
    %c0_49 = arith.constant 0 : index
    %45 = vector.load %arg4[%c7, %c0_48, %c0_49] : memref<9x4x128xbf16, #tpu.memory_space<vmem>>, vector<1x4x128xbf16>
    %46 = vector.shape_cast %45 : vector<1x4x128xbf16> to vector<4x128xbf16>
    %cst_50 = arith.constant dense<0.000000e+00> : vector<384x128xf32>
    %47 = tpu.matmul %44, %46, %cst_50 {dimension_numbers = #tpu.dot_dimension_numbers<[1], [0], [0], [1], [0, 0, 1, 1], [], []>} : vector<384x4xbf16>, vector<4x128xbf16>, vector<384x128xf32> -> vector<384x128xf32>
    %48 = arith.addf %42, %47 : vector<384x128xf32>
    %c0_51 = arith.constant 0 : index
    %c0_52 = arith.constant 0 : index
    %c50 = arith.constant 50 : index
    %c0_53 = arith.constant 0 : index
    %49 = vector.load %arg3[%c0_51, %c0_52, %c50, %c0_53] : memref<1x1x456x4xbf16, #tpu.memory_space<vmem>>, vector<1x1x384x4xbf16>
    %50 = vector.shape_cast %49 : vector<1x1x384x4xbf16> to vector<384x4xbf16>
    %c8 = arith.constant 8 : index
    %c0_54 = arith.constant 0 : index
    %c0_55 = arith.constant 0 : index
    %51 = vector.load %arg4[%c8, %c0_54, %c0_55] : memref<9x4x128xbf16, #tpu.memory_space<vmem>>, vector<1x4x128xbf16>
    %52 = vector.shape_cast %51 : vector<1x4x128xbf16> to vector<4x128xbf16>
    %cst_56 = arith.constant dense<0.000000e+00> : vector<384x128xf32>
    %53 = tpu.matmul %50, %52, %cst_56 {dimension_numbers = #tpu.dot_dimension_numbers<[1], [0], [0], [1], [0, 0, 1, 1], [], []>} : vector<384x4xbf16>, vector<4x128xbf16>, vector<384x128xf32> -> vector<384x128xf32>
    %54 = arith.addf %48, %53 : vector<384x128xf32>
    %c0_57 = arith.constant 0 : index
    %c0_58 = arith.constant 0 : index
    %55 = vector.load %arg5[%c0_57, %c0_58] : memref<1x128xf32, #tpu.memory_space<vmem>>, vector<1x128xf32>
    %56 = vector.broadcast %55 : vector<1x128xf32> to vector<384x128xf32>
    %57 = arith.addf %54, %56 : vector<384x128xf32>
    %c0_59 = arith.constant 0 : index
    %c0_60 = arith.constant 0 : index
    %c0_61 = arith.constant 0 : index
    %58 = vector.load %arg6[%c0_59, %c0_60, %c0_61] : memref<1x384x1xf32, #tpu.memory_space<vmem>>, vector<1x384x1xf32>
    %59 = vector.shape_cast %58 : vector<1x384x1xf32> to vector<384x1xf32>
    %60 = vector.broadcast %59 : vector<384x1xf32> to vector<384x128xf32>
    %61 = arith.mulf %57, %60 : vector<384x128xf32>
    %cst_62 = arith.constant dense<0.000000e+00> : vector<128xf32>
    %62 = vector.multi_reduction <add>, %61, %cst_62 [0] : vector<384x128xf32> to vector<128xf32>
    %63 = vector.shape_cast %62 : vector<128xf32> to vector<1x128xf32>
    %64 = arith.mulf %61, %61 : vector<384x128xf32>
    %cst_63 = arith.constant dense<0.000000e+00> : vector<128xf32>
    %65 = vector.multi_reduction <add>, %64, %cst_63 [0] : vector<384x128xf32> to vector<128xf32>
    %66 = vector.shape_cast %65 : vector<128xf32> to vector<1x128xf32>
    %cst_64 = arith.constant 3.906250e-03 : f32
    %67 = vector.broadcast %cst_64 : f32 to vector<1x128xf32>
    %68 = arith.mulf %63, %67 : vector<1x128xf32>
    %cst_65 = arith.constant 3.906250e-03 : f32
    %69 = vector.broadcast %cst_65 : f32 to vector<1x128xf32>
    %70 = arith.mulf %66, %69 : vector<1x128xf32>
    %71 = arith.mulf %68, %68 : vector<1x128xf32>
    %72 = arith.subf %70, %71 : vector<1x128xf32>
    %73 = vector.broadcast %68 : vector<1x128xf32> to vector<384x128xf32>
    %74 = arith.subf %57, %73 : vector<384x128xf32>
    %cst_66 = arith.constant 0.000000e+00 : f32
    %75 = vector.broadcast %cst_66 : f32 to vector<1x128xf32>
    %76 = arith.maximumf %72, %75 : vector<1x128xf32>
    %cst_67 = arith.constant 9.99999974E-6 : f32
    %77 = vector.broadcast %cst_67 : f32 to vector<1x128xf32>
    %78 = arith.addf %76, %77 : vector<1x128xf32>
    %79 = math.rsqrt %78 : vector<1x128xf32>
    %80 = vector.broadcast %79 : vector<1x128xf32> to vector<384x128xf32>
    %81 = arith.mulf %74, %80 : vector<384x128xf32>
    %cst_68 = arith.constant 0.000000e+00 : f32
    %82 = vector.broadcast %cst_68 : f32 to vector<384x128xf32>
    %83 = arith.cmpf oge, %81, %82 : vector<384x128xf32>
    %cst_69 = arith.constant 2.000000e-01 : f32
    %84 = vector.broadcast %cst_69 : f32 to vector<384x128xf32>
    %85 = arith.mulf %84, %81 : vector<384x128xf32>
    %86 = arith.select %83, %81, %85 : vector<384x128xi1>, vector<384x128xf32>
    %87 = arith.truncf %86 : vector<384x128xf32> to vector<384x128xbf16>
    %c0_70 = arith.constant 0 : index
    %c0_71 = arith.constant 0 : index
    %c0_72 = arith.constant 0 : index
    %88 = vector.load %arg7[%c0_70, %c0_71, %c0_72] : memref<1x384x128xbf16, #tpu.memory_space<vmem>>, vector<1x384x128xbf16>
    %89 = vector.shape_cast %88 : vector<1x384x128xbf16> to vector<384x128xbf16>
    %90 = vector.shape_cast %87 : vector<384x128xbf16> to vector<1x384x128xbf16>
    tpu.vector_store %arg7[%c0_70, %c0_71, %c0_72], %90 {strides = array<i32>} : memref<1x384x128xbf16, #tpu.memory_space<vmem>>, vector<1x384x128xbf16>,
    return
  }
  func.func @transform_0(%arg0: i32, %arg1: i32, %arg2: i32) -> (i32, i32, i32, i32) {
    %c0_i32 = arith.constant 0 : i32
    %c0_i32_0 = arith.constant 0 : i32
    %c0_i32_1 = arith.constant 0 : i32
    return %arg0, %arg2, %c0_i32, %c0_i32_0 : i32, i32, i32, i32
  }
  func.func @transform_1(%arg0: i32, %arg1: i32, %arg2: i32) -> (i32, i32, i32) {
    %c0_i32 = arith.constant 0 : i32
    %c0_i32_0 = arith.constant 0 : i32
    %c0_i32_1 = arith.constant 0 : i32
    return %c0_i32, %c0_i32_0, %arg1 : i32, i32, i32
  }
  func.func @transform_2(%arg0: i32, %arg1: i32, %arg2: i32) -> (i32, i32) {
    %c0_i32 = arith.constant 0 : i32
    %c0_i32_0 = arith.constant 0 : i32
    return %c0_i32, %arg1 : i32, i32
  }
  func.func @transform_3(%arg0: i32, %arg1: i32, %arg2: i32) -> (i32, i32, i32) {
    %c0_i32 = arith.constant 0 : i32
    %c0_i32_0 = arith.constant 0 : i32
    %c0_i32_1 = arith.constant 0 : i32
    return %arg2, %c0_i32, %c0_i32_0 : i32, i32, i32
  }
  func.func @transform_4(%arg0: i32, %arg1: i32, %arg2: i32) -> (i32, i32, i32) {
    %c0_i32 = arith.constant 0 : i32
    return %arg0, %arg2, %arg1 : i32, i32, i32
  }
}

module attributes {stable_mosaic.version = 11 : i64} {
  func.func @_conv_kernel(%arg0: i32, %arg1: i32, %arg2: i32, %arg3: memref<1x1x456x128xbf16, #tpu.memory_space<vmem>>, %arg4: memref<9x128x128xbf16, #tpu.memory_space<vmem>>, %arg5: memref<1x128xf32, #tpu.memory_space<vmem>>, %arg6: memref<1x384x1xf32, #tpu.memory_space<vmem>>, %arg7: memref<1x384x128xbf16, #tpu.memory_space<vmem>>) attributes {dimension_semantics = [#tpu.dimension_semantics<parallel>, #tpu.dimension_semantics<parallel>, #tpu.dimension_semantics<parallel>], iteration_bounds = array<i64: 2, 1, 1>, scalar_prefetch = 0 : i64, scratch_operands = 0 : i64, tpu.core_type = #tpu.core_type<tc>, window_params = [{transform_indices = @transform_0, window_bounds = array<i64: 1, 1, 456, 128>}, {transform_indices = @transform_1, window_bounds = array<i64: 9, 128, 128>}, {transform_indices = @transform_2, window_bounds = array<i64: 1, 128>}, {transform_indices = @transform_3, window_bounds = array<i64: 1, 384, 1>}, {transform_indices = @transform_4, window_bounds = array<i64: 1, 384, 128>}]} {
    %cst = arith.constant 0.000000e+00 : f32
    %0 = vector.broadcast %cst : f32 to vector<384x128xf32>
    %c0 = arith.constant 0 : index
    %c0_0 = arith.constant 0 : index
    %c0_1 = arith.constant 0 : index
    %c0_2 = arith.constant 0 : index
    %1 = vector.load %arg3[%c0, %c0_0, %c0_1, %c0_2] : memref<1x1x456x128xbf16, #tpu.memory_space<vmem>>, vector<1x1x384x128xbf16>
    %2 = vector.shape_cast %1 : vector<1x1x384x128xbf16> to vector<384x128xbf16>
    %c0_3 = arith.constant 0 : index
    %c0_4 = arith.constant 0 : index
    %c0_5 = arith.constant 0 : index
    %3 = vector.load %arg4[%c0_3, %c0_4, %c0_5] : memref<9x128x128xbf16, #tpu.memory_space<vmem>>, vector<1x128x128xbf16>
    %4 = vector.shape_cast %3 : vector<1x128x128xbf16> to vector<128x128xbf16>
    %cst_6 = arith.constant dense<0.000000e+00> : vector<384x128xf32>
    %5 = tpu.matmul %2, %4, %cst_6 {dimension_numbers = #tpu.dot_dimension_numbers<[1], [0], [0], [1], [0, 0, 1, 1], [], []>} : vector<384x128xbf16>, vector<128x128xbf16>, vector<384x128xf32> -> vector<384x128xf32>
    %6 = arith.addf %0, %5 : vector<384x128xf32>
    %c0_7 = arith.constant 0 : index
    %c0_8 = arith.constant 0 : index
    %c1 = arith.constant 1 : index
    %c0_9 = arith.constant 0 : index
    %7 = vector.load %arg3[%c0_7, %c0_8, %c1, %c0_9] : memref<1x1x456x128xbf16, #tpu.memory_space<vmem>>, vector<1x1x384x128xbf16>
    %8 = vector.shape_cast %7 : vector<1x1x384x128xbf16> to vector<384x128xbf16>
    %c1_10 = arith.constant 1 : index
    %c0_11 = arith.constant 0 : index
    %c0_12 = arith.constant 0 : index
    %9 = vector.load %arg4[%c1_10, %c0_11, %c0_12] : memref<9x128x128xbf16, #tpu.memory_space<vmem>>, vector<1x128x128xbf16>
    %10 = vector.shape_cast %9 : vector<1x128x128xbf16> to vector<128x128xbf16>
    %cst_13 = arith.constant dense<0.000000e+00> : vector<384x128xf32>
    %11 = tpu.matmul %8, %10, %cst_13 {dimension_numbers = #tpu.dot_dimension_numbers<[1], [0], [0], [1], [0, 0, 1, 1], [], []>} : vector<384x128xbf16>, vector<128x128xbf16>, vector<384x128xf32> -> vector<384x128xf32>
    %12 = arith.addf %6, %11 : vector<384x128xf32>
    %c0_14 = arith.constant 0 : index
    %c0_15 = arith.constant 0 : index
    %c2 = arith.constant 2 : index
    %c0_16 = arith.constant 0 : index
    %13 = vector.load %arg3[%c0_14, %c0_15, %c2, %c0_16] : memref<1x1x456x128xbf16, #tpu.memory_space<vmem>>, vector<1x1x384x128xbf16>
    %14 = vector.shape_cast %13 : vector<1x1x384x128xbf16> to vector<384x128xbf16>
    %c2_17 = arith.constant 2 : index
    %c0_18 = arith.constant 0 : index
    %c0_19 = arith.constant 0 : index
    %15 = vector.load %arg4[%c2_17, %c0_18, %c0_19] : memref<9x128x128xbf16, #tpu.memory_space<vmem>>, vector<1x128x128xbf16>
    %16 = vector.shape_cast %15 : vector<1x128x128xbf16> to vector<128x128xbf16>
    %cst_20 = arith.constant dense<0.000000e+00> : vector<384x128xf32>
    %17 = tpu.matmul %14, %16, %cst_20 {dimension_numbers = #tpu.dot_dimension_numbers<[1], [0], [0], [1], [0, 0, 1, 1], [], []>} : vector<384x128xbf16>, vector<128x128xbf16>, vector<384x128xf32> -> vector<384x128xf32>
    %18 = arith.addf %12, %17 : vector<384x128xf32>
    %c0_21 = arith.constant 0 : index
    %c0_22 = arith.constant 0 : index
    %c24 = arith.constant 24 : index
    %c0_23 = arith.constant 0 : index
    %19 = vector.load %arg3[%c0_21, %c0_22, %c24, %c0_23] : memref<1x1x456x128xbf16, #tpu.memory_space<vmem>>, vector<1x1x384x128xbf16>
    %20 = vector.shape_cast %19 : vector<1x1x384x128xbf16> to vector<384x128xbf16>
    %c3 = arith.constant 3 : index
    %c0_24 = arith.constant 0 : index
    %c0_25 = arith.constant 0 : index
    %21 = vector.load %arg4[%c3, %c0_24, %c0_25] : memref<9x128x128xbf16, #tpu.memory_space<vmem>>, vector<1x128x128xbf16>
    %22 = vector.shape_cast %21 : vector<1x128x128xbf16> to vector<128x128xbf16>
    %cst_26 = arith.constant dense<0.000000e+00> : vector<384x128xf32>
    %23 = tpu.matmul %20, %22, %cst_26 {dimension_numbers = #tpu.dot_dimension_numbers<[1], [0], [0], [1], [0, 0, 1, 1], [], []>} : vector<384x128xbf16>, vector<128x128xbf16>, vector<384x128xf32> -> vector<384x128xf32>
    %24 = arith.addf %18, %23 : vector<384x128xf32>
    %c0_27 = arith.constant 0 : index
    %c0_28 = arith.constant 0 : index
    %c25 = arith.constant 25 : index
    %c0_29 = arith.constant 0 : index
    %25 = vector.load %arg3[%c0_27, %c0_28, %c25, %c0_29] : memref<1x1x456x128xbf16, #tpu.memory_space<vmem>>, vector<1x1x384x128xbf16>
    %26 = vector.shape_cast %25 : vector<1x1x384x128xbf16> to vector<384x128xbf16>
    %c4 = arith.constant 4 : index
    %c0_30 = arith.constant 0 : index
    %c0_31 = arith.constant 0 : index
    %27 = vector.load %arg4[%c4, %c0_30, %c0_31] : memref<9x128x128xbf16, #tpu.memory_space<vmem>>, vector<1x128x128xbf16>
    %28 = vector.shape_cast %27 : vector<1x128x128xbf16> to vector<128x128xbf16>
    %cst_32 = arith.constant dense<0.000000e+00> : vector<384x128xf32>
    %29 = tpu.matmul %26, %28, %cst_32 {dimension_numbers = #tpu.dot_dimension_numbers<[1], [0], [0], [1], [0, 0, 1, 1], [], []>} : vector<384x128xbf16>, vector<128x128xbf16>, vector<384x128xf32> -> vector<384x128xf32>
    %30 = arith.addf %24, %29 : vector<384x128xf32>
    %c0_33 = arith.constant 0 : index
    %c0_34 = arith.constant 0 : index
    %c26 = arith.constant 26 : index
    %c0_35 = arith.constant 0 : index
    %31 = vector.load %arg3[%c0_33, %c0_34, %c26, %c0_35] : memref<1x1x456x128xbf16, #tpu.memory_space<vmem>>, vector<1x1x384x128xbf16>
    %32 = vector.shape_cast %31 : vector<1x1x384x128xbf16> to vector<384x128xbf16>
    %c5 = arith.constant 5 : index
    %c0_36 = arith.constant 0 : index
    %c0_37 = arith.constant 0 : index
    %33 = vector.load %arg4[%c5, %c0_36, %c0_37] : memref<9x128x128xbf16, #tpu.memory_space<vmem>>, vector<1x128x128xbf16>
    %34 = vector.shape_cast %33 : vector<1x128x128xbf16> to vector<128x128xbf16>
    %cst_38 = arith.constant dense<0.000000e+00> : vector<384x128xf32>
    %35 = tpu.matmul %32, %34, %cst_38 {dimension_numbers = #tpu.dot_dimension_numbers<[1], [0], [0], [1], [0, 0, 1, 1], [], []>} : vector<384x128xbf16>, vector<128x128xbf16>, vector<384x128xf32> -> vector<384x128xf32>
    %36 = arith.addf %30, %35 : vector<384x128xf32>
    %c0_39 = arith.constant 0 : index
    %c0_40 = arith.constant 0 : index
    %c48 = arith.constant 48 : index
    %c0_41 = arith.constant 0 : index
    %37 = vector.load %arg3[%c0_39, %c0_40, %c48, %c0_41] : memref<1x1x456x128xbf16, #tpu.memory_space<vmem>>, vector<1x1x384x128xbf16>
    %38 = vector.shape_cast %37 : vector<1x1x384x128xbf16> to vector<384x128xbf16>
    %c6 = arith.constant 6 : index
    %c0_42 = arith.constant 0 : index
    %c0_43 = arith.constant 0 : index
    %39 = vector.load %arg4[%c6, %c0_42, %c0_43] : memref<9x128x128xbf16, #tpu.memory_space<vmem>>, vector<1x128x128xbf16>
    %40 = vector.shape_cast %39 : vector<1x128x128xbf16> to vector<128x128xbf16>
    %cst_44 = arith.constant dense<0.000000e+00> : vector<384x128xf32>
    %41 = tpu.matmul %38, %40, %cst_44 {dimension_numbers = #tpu.dot_dimension_numbers<[1], [0], [0], [1], [0, 0, 1, 1], [], []>} : vector<384x128xbf16>, vector<128x128xbf16>, vector<384x128xf32> -> vector<384x128xf32>
    %42 = arith.addf %36, %41 : vector<384x128xf32>
    %c0_45 = arith.constant 0 : index
    %c0_46 = arith.constant 0 : index
    %c49 = arith.constant 49 : index
    %c0_47 = arith.constant 0 : index
    %43 = vector.load %arg3[%c0_45, %c0_46, %c49, %c0_47] : memref<1x1x456x128xbf16, #tpu.memory_space<vmem>>, vector<1x1x384x128xbf16>
    %44 = vector.shape_cast %43 : vector<1x1x384x128xbf16> to vector<384x128xbf16>
    %c7 = arith.constant 7 : index
    %c0_48 = arith.constant 0 : index
    %c0_49 = arith.constant 0 : index
    %45 = vector.load %arg4[%c7, %c0_48, %c0_49] : memref<9x128x128xbf16, #tpu.memory_space<vmem>>, vector<1x128x128xbf16>
    %46 = vector.shape_cast %45 : vector<1x128x128xbf16> to vector<128x128xbf16>
    %cst_50 = arith.constant dense<0.000000e+00> : vector<384x128xf32>
    %47 = tpu.matmul %44, %46, %cst_50 {dimension_numbers = #tpu.dot_dimension_numbers<[1], [0], [0], [1], [0, 0, 1, 1], [], []>} : vector<384x128xbf16>, vector<128x128xbf16>, vector<384x128xf32> -> vector<384x128xf32>
    %48 = arith.addf %42, %47 : vector<384x128xf32>
    %c0_51 = arith.constant 0 : index
    %c0_52 = arith.constant 0 : index
    %c50 = arith.constant 50 : index
    %c0_53 = arith.constant 0 : index
    %49 = vector.load %arg3[%c0_51, %c0_52, %c50, %c0_53] : memref<1x1x456x128xbf16, #tpu.memory_space<vmem>>, vector<1x1x384x128xbf16>
    %50 = vector.shape_cast %49 : vector<1x1x384x128xbf16> to vector<384x128xbf16>
    %c8 = arith.constant 8 : index
    %c0_54 = arith.constant 0 : index
    %c0_55 = arith.constant 0 : index
    %51 = vector.load %arg4[%c8, %c0_54, %c0_55] : memref<9x128x128xbf16, #tpu.memory_space<vmem>>, vector<1x128x128xbf16>
    %52 = vector.shape_cast %51 : vector<1x128x128xbf16> to vector<128x128xbf16>
    %cst_56 = arith.constant dense<0.000000e+00> : vector<384x128xf32>
    %53 = tpu.matmul %50, %52, %cst_56 {dimension_numbers = #tpu.dot_dimension_numbers<[1], [0], [0], [1], [0, 0, 1, 1], [], []>} : vector<384x128xbf16>, vector<128x128xbf16>, vector<384x128xf32> -> vector<384x128xf32>
    %54 = arith.addf %48, %53 : vector<384x128xf32>
    %c0_57 = arith.constant 0 : index
    %c0_58 = arith.constant 0 : index
    %55 = vector.load %arg5[%c0_57, %c0_58] : memref<1x128xf32, #tpu.memory_space<vmem>>, vector<1x128xf32>
    %56 = vector.broadcast %55 : vector<1x128xf32> to vector<384x128xf32>
    %57 = arith.addf %54, %56 : vector<384x128xf32>
    %c0_59 = arith.constant 0 : index
    %c0_60 = arith.constant 0 : index
    %c0_61 = arith.constant 0 : index
    %58 = vector.load %arg6[%c0_59, %c0_60, %c0_61] : memref<1x384x1xf32, #tpu.memory_space<vmem>>, vector<1x384x1xf32>
    %59 = vector.shape_cast %58 : vector<1x384x1xf32> to vector<384x1xf32>
    %60 = vector.broadcast %59 : vector<384x1xf32> to vector<384x128xf32>
    %61 = arith.mulf %57, %60 : vector<384x128xf32>
    %cst_62 = arith.constant dense<0.000000e+00> : vector<128xf32>
    %62 = vector.multi_reduction <add>, %61, %cst_62 [0] : vector<384x128xf32> to vector<128xf32>
    %63 = vector.shape_cast %62 : vector<128xf32> to vector<1x128xf32>
    %64 = arith.mulf %61, %61 : vector<384x128xf32>
    %cst_63 = arith.constant dense<0.000000e+00> : vector<128xf32>
    %65 = vector.multi_reduction <add>, %64, %cst_63 [0] : vector<384x128xf32> to vector<128xf32>
    %66 = vector.shape_cast %65 : vector<128xf32> to vector<1x128xf32>
    %cst_64 = arith.constant 3.906250e-03 : f32
    %67 = vector.broadcast %cst_64 : f32 to vector<1x128xf32>
    %68 = arith.mulf %63, %67 : vector<1x128xf32>
    %cst_65 = arith.constant 3.906250e-03 : f32
    %69 = vector.broadcast %cst_65 : f32 to vector<1x128xf32>
    %70 = arith.mulf %66, %69 : vector<1x128xf32>
    %71 = arith.mulf %68, %68 : vector<1x128xf32>
    %72 = arith.subf %70, %71 : vector<1x128xf32>
    %73 = vector.broadcast %68 : vector<1x128xf32> to vector<384x128xf32>
    %74 = arith.subf %57, %73 : vector<384x128xf32>
    %cst_66 = arith.constant 0.000000e+00 : f32
    %75 = vector.broadcast %cst_66 : f32 to vector<1x128xf32>
    %76 = arith.maximumf %72, %75 : vector<1x128xf32>
    %cst_67 = arith.constant 9.99999974E-6 : f32
    %77 = vector.broadcast %cst_67 : f32 to vector<1x128xf32>
    %78 = arith.addf %76, %77 : vector<1x128xf32>
    %79 = math.rsqrt %78 : vector<1x128xf32>
    %80 = vector.broadcast %79 : vector<1x128xf32> to vector<384x128xf32>
    %81 = arith.mulf %74, %80 : vector<384x128xf32>
    %cst_68 = arith.constant 0.000000e+00 : f32
    %82 = vector.broadcast %cst_68 : f32 to vector<384x128xf32>
    %83 = arith.cmpf oge, %81, %82 : vector<384x128xf32>
    %cst_69 = arith.constant 2.000000e-01 : f32
    %84 = vector.broadcast %cst_69 : f32 to vector<384x128xf32>
    %85 = arith.mulf %84, %81 : vector<384x128xf32>
    %86 = arith.select %83, %81, %85 : vector<384x128xi1>, vector<384x128xf32>
    %87 = arith.truncf %86 : vector<384x128xf32> to vector<384x128xbf16>
    %c0_70 = arith.constant 0 : index
    %c0_71 = arith.constant 0 : index
    %c0_72 = arith.constant 0 : index
    %88 = vector.load %arg7[%c0_70, %c0_71, %c0_72] : memref<1x384x128xbf16, #tpu.memory_space<vmem>>, vector<1x384x128xbf16>
    %89 = vector.shape_cast %88 : vector<1x384x128xbf16> to vector<384x128xbf16>
    %90 = vector.shape_cast %87 : vector<384x128xbf16> to vector<1x384x128xbf16>
    tpu.vector_store %arg7[%c0_70, %c0_71, %c0_72], %90 {strides = array<i32>} : memref<1x384x128xbf16, #tpu.memory_space<vmem>>, vector<1x384x128xbf16>,
    return
  }
  func.func @transform_0(%arg0: i32, %arg1: i32, %arg2: i32) -> (i32, i32, i32, i32) {
    %c0_i32 = arith.constant 0 : i32
    %c0_i32_0 = arith.constant 0 : i32
    %c0_i32_1 = arith.constant 0 : i32
    return %arg0, %arg2, %c0_i32, %c0_i32_0 : i32, i32, i32, i32
  }
  func.func @transform_1(%arg0: i32, %arg1: i32, %arg2: i32) -> (i32, i32, i32) {
    %c0_i32 = arith.constant 0 : i32
    %c0_i32_0 = arith.constant 0 : i32
    %c0_i32_1 = arith.constant 0 : i32
    return %c0_i32, %c0_i32_0, %arg1 : i32, i32, i32
  }
  func.func @transform_2(%arg0: i32, %arg1: i32, %arg2: i32) -> (i32, i32) {
    %c0_i32 = arith.constant 0 : i32
    %c0_i32_0 = arith.constant 0 : i32
    return %c0_i32, %arg1 : i32, i32
  }
  func.func @transform_3(%arg0: i32, %arg1: i32, %arg2: i32) -> (i32, i32, i32) {
    %c0_i32 = arith.constant 0 : i32
    %c0_i32_0 = arith.constant 0 : i32
    %c0_i32_1 = arith.constant 0 : i32
    return %arg2, %c0_i32, %c0_i32_0 : i32, i32, i32
  }
  func.func @transform_4(%arg0: i32, %arg1: i32, %arg2: i32) -> (i32, i32, i32) {
    %c0_i32 = arith.constant 0 : i32
    return %arg0, %arg2, %arg1 : i32, i32, i32
  }
}

</mosaic_0001>

<bundles_post_ra>
// kernel: conv_block_forward.2
= control target key start
LH: loop header
LB: loop body
LE: loop exit
PB: predicated region body
PF: predicated region fallthrough
CT: control target
= control target key end

     0   :  { %s6206_s15 = smov 0   ;;  %s6208_s16 = smov 0   ;;  %s8498_s0 = inlined_call_operand.vmem [shape: bf16[2,1,456,4], index: 0, kind: input, shape index: {}]   ;;  %s8499_s1 = inlined_call_operand.vmem [shape: bf16[9,4,128], index: 1, kind: input, shape index: {}]   ;;  %s8500_s2 = inlined_call_operand.vmem [shape: f32[1,128], index: 2, kind: input, shape index: {}]   ;;  %s8501_s3 = inlined_call_operand.vmem [shape: f32[1,384,1], index: 3, kind: input, shape index: {}]   ;;  %s8502_s4 = inlined_call_operand.vmem [shape: bf16[2,384,128], index: 4, kind: output, shape index: {}]  }
   0x1   :  { %s6210_s17 = smov 0  }
   0x2 LB: > { %s33_s18 = sadd.s32 1, %s6174_s16  ;;  %p5116_p0 = scmp.ge.s32.totalorder %s6178_s17, 1  ;;  %s6178_s17 = sphi %s6210_s17, %s14_s17   ;;  %s6174_s16 = sphi %s6208_s16, %s8713_s16   ;;  %s6170_s15 = sphi %s6206_s15, %s8712_s15  }
   0x3   : > { %p35_p1 = scmp.ge.s32.totalorder %s33_s18, 2  ;;  %p218_p2 = scmp.lt.s32.totalorder %s6178_s17, 3 }
   0x5   : > { %s8715_s18 = smov (%p35_p1, %s33_s18), 0  ;;  %p219_p3 = pnand %p5116_p0, %p218_p2 }
   0x7   : > { %222 = sbr.rel (%p219_p3) target bundleno = 1142 (0x476), region = 36 }
   0xc   : > { %v5119_v0 = vld [vmem:[%s8499_s1 + $0x2] sm:$0x3]  ;;  %vm747_vm0 = vcmask 1041408   ;;  %p267_p4 = scmp.lt.s32.totalorder %s6170_s15, 1  ;;  %v5260_v2 = vld [vmem:[%s8499_s1 + $0x4] sm:$0x3] }
   0xd   : > { %v749_v1 = vsel %vm747_vm0, %v5119_v0, 0  ;;  %v5285_v3 = vld [vmem:[%s8499_s1 + $0x6] sm:$0x3]  ;;  %v1189_v4 = vsel %vm747_vm0, %v5260_v2, 0  ;;  %v350_v6 = vld [vmem:[%s8499_s1] sm:$0x3] }
   0xe   : > { %6088 = vmatpush.bf16.msra.mxu1 %v749_v1  ;;  %6089 = vmatpush.bf16.msra.mxu2 %v749_v1  ;;  %s8717_s15 = smov (!%p267_p4, %s6170_s15), 1  ;;  %v1611_v5 = vsel %vm747_vm0, %v5285_v3, 0  ;;  %v929_v7 = vsel %vm747_vm0, %v350_v6, 0  ;;  %v5406_v8 = vld [vmem:[%s8499_s1 + $0x8] sm:$0x3]  ;;  %vm674_vm2 = vcmask 31744  }
   0xf   : > { %6090 = vmatpush.bf16.msra.mxu3 %v749_v1  ;;  %758 = vmatpush.bf16.msra.mxu0 %v749_v1  ;;  %s6091_s29 = smul.u32 228, %s8717_s15  ;;  %v2233_v9 = vsel %vm747_vm0, %v5406_v8, 0  ;;  %vm477_vm1 = vsmask.f32 7424  ;;  %vm1066_vm3 = vcmask 1046528  }
  0x10   : > { %s6092_s7 = smul.u32 192, %s8717_s15 }
  0x11   : > { %s6250_s6 = scalar_lea.vmem %s8498_s0, %s6091_s29 }
  0x12   : > { %1198 = vmatpush.bf16.msrb.mxu2 %v1189_v4  ;;  %938 = vmatpush.bf16.msrb.mxu1 %v929_v7  ;;  %v6253_v10 = vld [vmem:[%s6250_s6 + $0x30] sm:$0xff]  ;;  %v6256_v11 = vld [vmem:[%s6250_s6 + $0x38] sm:$0xff]  ;;  %v6259_v12 = vld [vmem:[%s6250_s6 + $0x60] sm:$0xff]  ;;  %s8422_s9 = scalar_lea.vmem %s8502_s4, %s6092_s7 }
  0x13   : > { %1620 = vmatpush.bf16.msrb.mxu3 %v1611_v5  ;;  %2242 = vmatpush.bf16.msrb.mxu0 %v2233_v9  ;;  %v6262_v13 = vld [vmem:[%s6250_s6 + $0x68] sm:$0xff]  ;;  %v5830_v14 = vld [vmem:[%s6250_s6 + $0x90] sm:$0xff]  ;;  %v5831_v15 = vld [vmem:[%s6250_s6 + $0x98] sm:$0xff]  ;;  %v526_v16 = vshll.u32 %v6253_v10, 16  ;;  %v530_v17 = vshrl.u32 %v6253_v10, 16  ;;  %v534_v18 = vshll.u32 %v6256_v11, 16 }
  0x14   : > { %v574_v19 = vshll.u32 %v6259_v12, 16  ;;  %v6271_v20 = vld [vmem:[%s6250_s6] sm:$0xff]   ;;  %v6274_v21 = vld [vmem:[%s6250_s6 + $0x8] sm:$0xff]  ;;  %v578_v22 = vshrl.u32 %v6259_v12, 16  ;;  %v582_v23 = vshll.u32 %v6262_v13, 16  ;;  %v622_v24 = vshll.u32 %v5830_v14, 16 }
  0x15   : > { %v626_v25 = vshrl.u32 %v5830_v14, 16  ;;  %v6278_v26 = vrot.slane %v526_v16, 1  ;;  %v536_v27 = vrot.slane %v534_v18, 1  ;;  %v630_v29 = vshll.u32 %v5831_v15, 16  ;;  %v6297_v45 = vld [vmem:[%s6250_s6 + $0x40] sm:$0xff]  ;;  %v6300_v46 = vld [vmem:[%s6250_s6 + $0x70] sm:$0xff] }
  0x16   : > { %v6280_v28 = vrot.slane %v574_v19, 1  ;;  %v584_v30 = vrot.slane %v582_v23, 1  ;;  %v6282_v31 = vrot.slane %v622_v24, 1  ;;  %v479_v32 = vshrl.u32 %v6271_v20, 16  ;;  %v5832_v48 = vld [vmem:[%s6250_s6 + $0xa0] sm:$0xff]  ;;  %v6306_v49 = vld [vmem:[%s6250_s6 + $0x10] sm:$0xff] }
  0x17   : > { %v481_v33 = vshll.u32 %v6271_v20, 16  ;;  %v532_v34 = vor.u32 %v530_v17, %v6278_v26  ;;  %v632_v36 = vrot.slane %v630_v29, 1  ;;  %v486_v37 = vshll.u32 %v6274_v21, 16  ;;  %v6322_v6 = vld [vmem:[%s6250_s6 + $0x48] sm:$0xff]  ;;  %v6325_v7 = vld [vmem:[%s6250_s6 + $0x78] sm:$0xff] }
  0x18   : > { %v580_v35 = vor.u32 %v578_v22, %v6280_v28  ;;  %v628_v38 = vor.u32 %v626_v25, %v6282_v31  ;;  %v538_v50 = vshrl.u32 %v6256_v11, 16  ;;  %v542_v51 = vshll.u32 %v6297_v45, 16  ;;  %v5833_v8 = vld [vmem:[%s6250_s6 + $0xa8] sm:$0xff]  ;;  %v6330_v9 = vld [vmem:[%s6250_s6 + $0x18] sm:$0xff] }
  0x19   : > { %v483_v39 = vrot.slane %v481_v33, 1  ;;  %v537_v40 = vsel %vm477_vm1, %v532_v34, %v536_v27  ;;  %v488_v42 = vrot.slane %v486_v37, 1  ;;  %v586_v52 = vshrl.u32 %v6262_v13, 16 }
  0x1a   : > { %v585_v41 = vsel %vm477_vm1, %v580_v35, %v584_v30  ;;  %5218 = vmatmul.msk.bf16.vlgmr.msra.gmra.mxu1 %vm674_vm2, %v537_v40  ;;  %v633_v43 = vsel %vm477_vm1, %v628_v38, %v632_v36  ;;  %v590_v53 = vshll.u32 %v6300_v46, 16  ;;  %v634_v54 = vshrl.u32 %v5831_v15, 16  ;;  %v6349_v40 = vld [vmem:[%s6250_s6 + $0x80] sm:$0xff] }
  0x1b   : > { %5224 = vmatmul.msk.bf16.vlgmr.msra.gmra.mxu2 %vm674_vm2, %v585_v41  ;;  %v484_v44 = vor.u32 %v483_v39, %v479_v32  ;;  %5230 = vmatmul.msk.bf16.vlgmr.msra.gmra.mxu3 %vm674_vm2, %v633_v43  ;;  %v638_v55 = vshll.u32 %v5832_v48, 16  ;;  %v490_v56 = vshrl.u32 %v6274_v21, 16  ;;  %v494_v57 = vshll.u32 %v6306_v49, 16  ;;  %v6346_v39 = vld [vmem:[%s6250_s6 + $0x50] sm:$0xff] }
  0x1c   : > { %v540_v58 = vor.u32 %v538_v50, %v536_v27  ;;  %v544_v59 = vrot.slane %v542_v51, 1  ;;  %v588_v60 = vor.u32 %v586_v52, %v584_v30  ;;  %v592_v61 = vrot.slane %v590_v53, 1  ;;  %v5834_v41 = vld [vmem:[%s6250_s6 + $0xb0] sm:$0xff] }
  0x1d   : > { %v489_v47 = vsel %vm477_vm1, %v484_v44, %v488_v42  ;;  %v636_v62 = vor.u32 %v634_v54, %v632_v36  ;;  %v640_v63 = vrot.slane %v638_v55, 1  ;;  %v492_v0 = vor.u32 %v490_v56, %v488_v42  ;;  %v6354_v42 = vld [vmem:[%s6250_s6 + $0x20] sm:$0xff] }
  0x1e   : > { %5212 = vmatmul.msk.bf16.vlgmr.msra.gmra.mxu0 %vm674_vm2, %v489_v47  ;;  %v496_v1 = vrot.slane %v494_v57, 1  ;;  %v545_v2 = vsel %vm477_vm1, %v540_v58, %v544_v59  ;;  %v593_v3 = vsel %vm477_vm1, %v588_v60, %v592_v61  ;;  %v546_v14 = vshrl.u32 %v6297_v45, 16 }
  0x1f   : > { %v641_v4 = vsel %vm477_vm1, %v636_v62, %v640_v63  ;;  %v550_v15 = vshll.u32 %v6322_v6, 16  ;;  %v594_v16 = vshrl.u32 %v6300_v46, 16  ;;  %v598_v17 = vshll.u32 %v6325_v7, 16 }
  0x20   : > { %v497_v5 = vsel %vm477_vm1, %v492_v0, %v496_v1  ;;  %v642_v18 = vshrl.u32 %v5832_v48, 16  ;;  %v646_v19 = vshll.u32 %v5833_v8, 16  ;;  %v498_v22 = vshrl.u32 %v6306_v49, 16 }
  0x21   : > { %v502_v23 = vshll.u32 %v6330_v9, 16  ;;  %v548_v24 = vor.u32 %v546_v14, %v544_v59  ;;  %v552_v25 = vrot.slane %v550_v15, 1  ;;  %v596_v27 = vor.u32 %v594_v16, %v592_v61 }
  0x22   : > { %v600_v29 = vrot.slane %v598_v17, 1  ;;  %v644_v30 = vor.u32 %v642_v18, %v640_v63  ;;  %v648_v32 = vrot.slane %v646_v19, 1  ;;  %v500_v33 = vor.u32 %v498_v22, %v496_v1 }
  0x23   : > { %v504_v34 = vrot.slane %v502_v23, 1  ;;  %v553_v35 = vsel %vm477_vm1, %v548_v24, %v552_v25  ;;  %v554_v43 = vshrl.u32 %v6322_v6, 16  ;;  %v558_v44 = vshll.u32 %v6346_v39, 16 }
  0x24   : > { %v601_v36 = vsel %vm477_vm1, %v596_v27, %v600_v29  ;;  %v649_v37 = vsel %vm477_vm1, %v644_v30, %v648_v32  ;;  %v602_v47 = vshrl.u32 %v6325_v7, 16  ;;  %v606_v48 = vshll.u32 %v6349_v40, 16 }
  0x25   : > { %v505_v38 = vsel %vm477_vm1, %v500_v33, %v504_v34  ;;  %v650_v50 = vshrl.u32 %v5833_v8, 16  ;;  %v654_v51 = vshll.u32 %v5834_v41, 16  ;;  %v506_v52 = vshrl.u32 %v6330_v9, 16 }
  0x26   : > { %v510_v53 = vshll.u32 %v6354_v42, 16  ;;  %v556_v54 = vor.u32 %v554_v43, %v552_v25  ;;  %v560_v55 = vrot.slane %v558_v44, 1  ;;  %v604_v56 = vor.u32 %v602_v47, %v600_v29  ;;  %v5548_v43 = vld [vmem:[%s8499_s1 + $0xc] sm:$0x3] }
  0x27   : > { %v608_v57 = vrot.slane %v606_v48, 1  ;;  %v652_v58 = vor.u32 %v650_v50, %v648_v32  ;;  %v656_v59 = vrot.slane %v654_v51, 1  ;;  %v508_v60 = vor.u32 %v506_v52, %v504_v34  ;;  %v351_v32 = vld [vmem:[%s6250_s6 + $0xc0] sm:$0x1]  ;;  %v5669_v48 = vld [vmem:[%s8499_s1 + $0xe] sm:$0x3] }
  0x28   : > { %v512_v61 = vrot.slane %v510_v53, 1  ;;  %v561_v62 = vsel %vm477_vm1, %v556_v54, %v560_v55  ;;  %v562_v8 = vshrl.u32 %v6346_v39, 16  ;;  %v610_v15 = vshrl.u32 %v6349_v40, 16  ;;  %v5523_v50 = vld [vmem:[%s8499_s1 + $0xa] sm:$0x3] }
  0x29   : > { %v609_v63 = vsel %vm477_vm1, %v604_v56, %v608_v57  ;;  %v657_v0 = vsel %vm477_vm1, %v652_v58, %v656_v59  ;;  %v658_v17 = vshrl.u32 %v5834_v41, 16  ;;  %v514_v19 = vshrl.u32 %v6354_v42, 16  ;;  %v5786_v51 = vld [vmem:[%s8499_s1 + $0x10] sm:$0x3] }
  0x2a   : > { %5219 = vmatmul.msk.bf16.gmra.mxu1 %vm674_vm2, %v545_v2  ;;  %v513_v1 = vsel %vm477_vm1, %v508_v60, %v512_v61  ;;  %v6370_v2 = vld [vmem:[%s6250_s6 + $0x58] sm:$0xff]  ;;  %v564_v23 = vor.u32 %v562_v8, %v560_v55  ;;  %v612_v25 = vor.u32 %v610_v15, %v608_v57  ;;  %v2962_v47 = vsel %vm747_vm0, %v5548_v43, 0 }
  0x2b   : > { %5225 = vmatmul.msk.bf16.gmra.mxu2 %vm674_vm2, %v593_v3  ;;  %5231 = vmatmul.msk.bf16.gmra.mxu3 %vm674_vm2, %v641_v4  ;;  %v6373_v3 = vld [vmem:[%s6250_s6 + $0x88] sm:$0xff]  ;;  %v5835_v4 = vld [vmem:[%s6250_s6 + $0xb8] sm:$0xff]  ;;  %v566_v14 = vshll.u32 %v6370_v2, 16  ;;  %v660_v29 = vor.u32 %v658_v17, %v656_v59  ;;  %v516_v33 = vor.u32 %v514_v19, %v512_v61  ;;  %v3584_v52 = vsel %vm747_vm0, %v5669_v48, 0  ;;  %v6058_v17 = vld [vmem:[%s6250_s6] sm:$0xf0] }
  0x2c   : > { %v614_v16 = vshll.u32 %v6373_v3, 16  ;;  %v662_v18 = vshll.u32 %v5835_v4, 16  ;;  %2971 = vmatpush.bf16.msra.mxu2 %v2962_v47  ;;  %v2540_v53 = vsel %vm747_vm0, %v5523_v50, 0  ;;  %v3891_v54 = vsel %vm747_vm0, %v5786_v51, 0  ;;  %3593 = vmatpush.bf16.msra.mxu3 %v3584_v52  ;;  %v5862_v48 = vld [vmem:[%s6250_s6 + $0x24] sm:$0xff] }
  0x2d   : > { %v568_v24 = vrot.slane %v566_v14, 1  ;;  %v570_v55 = vshrl.u32 %v6370_v2, 16  ;;  %v618_v56 = vshrl.u32 %v6373_v3, 16  ;;  %2549 = vmatpush.bf16.msra.mxu1 %v2540_v53  ;;  %v666_v57 = vshrl.u32 %v5835_v4, 16  ;;  %3900 = vmatpush.bf16.msra.mxu0 %v3891_v54 }
  0x2e   : > { %5213 = vmatmul.msk.bf16.gmra.mxu0 %vm674_vm2, %v497_v5  ;;  %v6378_v5 = vld [vmem:[%s6250_s6 + $0x28] sm:$0xff]  ;;  %v616_v27 = vrot.slane %v614_v16, 1  ;;  %v664_v30 = vrot.slane %v662_v18, 1  ;;  %v6059_v18 = vld [vmem:[%s6250_s6] sm:$0xe]  ;;  %v1988_v51 = vshll.u32 %v5862_v48, 16 }
  0x2f   : > { %v518_v22 = vshll.u32 %v6378_v5, 16  ;;  %v522_v59 = vshrl.u32 %v6378_v5, 16  ;;  %v572_v60 = vor.u32 %v570_v55, %v568_v24  ;;  %v1072_v52 = vrot.slane %v6330_v9, 1 }
  0x30   : > { %v620_v61 = vor.u32 %v618_v56, %v616_v27  ;;  %v1990_v54 = vrot.slane %v1988_v51, 1  ;;  %v5838_v56 = vld [vmem:[%s6250_s6 + $0x1c] sm:$0xff] }
  0x31   : > { %v520_v34 = vrot.slane %v518_v22, 1  ;;  %v577_v14 = vsel %vm477_vm1, %v572_v60, %v6280_v28  ;;  %v5860_v28 = vld [vmem:[%s6250_s6 + $0x14] sm:$0xff]  ;;  %v6060_v22 = vor.u32 %v6059_v18, %v6058_v17 }
  0x32   : > { %v625_v4 = vsel %vm477_vm1, %v620_v61, %v6282_v31  ;;  %v5863_v61 = vld [vmem:[%s6250_s6 + $0x2c] sm:$0xff] }
  0x33   : > { %v521_v41 = vsel %vm477_vm1, %v516_v33, %v520_v34  ;;  %v524_v8 = vor.u32 %v522_v59, %v520_v34  ;;  %v5861_v34 = vld [vmem:[%s6250_s6 + $0x1c] sm:$0xff] }
  0x34   : > { %v1984_v50 = vshrl.u32 %v5861_v34, 16 }
  0x35   : > { %v529_v16 = vsel %vm477_vm1, %v524_v8, %v6278_v26  ;;  %v1074_v8 = vrot.slane %v6354_v42, 1 }
  0x37   : > { %v1075_v18 = vsel %vm1066_vm3, %v1072_v52, %v1074_v8 }
  0x3a   : > { %5220 = vmatmul.msk.bf16.gmra.mxu1 %vm674_vm2, %v553_v35  ;;  %v569_v35 = vsel %vm477_vm1, %v564_v23, %v568_v24  ;;  %v1972_v24 = vshll.u32 %v5860_v28, 16 }
  0x3b   : > { %5226 = vmatmul.msk.bf16.gmra.mxu2 %vm674_vm2, %v601_v36  ;;  %5232 = vmatmul.msk.bf16.gmra.mxu3 %vm674_vm2, %v649_v37  ;;  %v617_v36 = vsel %vm477_vm1, %v612_v25, %v616_v27  ;;  %v665_v37 = vsel %vm477_vm1, %v660_v29, %v664_v30  ;;  %v1067_v25 = vrot.slane %v6060_v22, 1  ;;  %v1068_v27 = vrot.slane %v6274_v21, 1 }
  0x3c   : > { %v1974_v26 = vrot.slane %v1972_v24, 1  ;;  %v5864_v24 = vld [vmem:[%s6250_s6 + $0x34] sm:$0xff] }
  0x3d   : > { %v2008_v51 = vshrl.u32 %v5864_v24, 16 }
  0x3e   : > { %5214 = vmatmul.msk.bf16.gmra.mxu0 %vm674_vm2, %v505_v38  ;;  %v451_v38 = vunpack.c.l.b16 %v351_v32  ;;  %v5836_v32 = vld [vmem:[%s6250_s6 + $0xc] sm:$0xff] }
  0x40   : > { %v6397_v44 = vpack.c.b16 %v451_v38, %v451_v38 }
  0x42   : > { %v670_v58 = vshll.u32 %v6397_v44, 16 }
  0x4a   : > { %5221 = vmatmul.msk.bf16.gmra.mxu1 %vm674_vm2, %v561_v62  ;;  %v1790_v62 = vld [vmem:[%s6250_s6 + $0xc] sm:$0xff]  }
  0x4b   : > { %5227 = vmatmul.msk.bf16.gmra.mxu2 %vm674_vm2, %v609_v63  ;;  %5233 = vmatmul.msk.bf16.gmra.mxu3 %vm674_vm2, %v657_v0  ;;  %v6419_v63 = vld [vmem:[%s6250_s6 + $0xc] sm:$0xf0]  ;;  %v668_v0 = vor.u32 %v666_v57, %v664_v30  ;;  %v1967_v19 = vshll.u32 %v1790_v62, 16  ;;  %v1965_v31 = vshrl.u32 %v1790_v62, 16  ;;  %v1069_v30 = vsel %vm1066_vm3, %v1067_v25, %v1068_v27 }
  0x4d   : > { %v1969_v23 = vrot.slane %v1967_v19, 1 }
  0x4e   : > { %5215 = vmatmul.msk.bf16.gmra.mxu0 %vm674_vm2, %v513_v1  ;;  %v672_v1 = vrot.slane %v670_v58, 1 }
  0x4f   : > { %v1970_v29 = vor.u32 %v1969_v23, %v1965_v31 }
  0x50   : > { %v673_v15 = vsel %vm477_vm1, %v668_v0, %v672_v1  ;;  %v1992_v1 = vshrl.u32 %v5862_v48, 16 }
  0x51   : > { %v1975_v33 = vsel %vm477_vm1, %v1970_v29, %v1974_v26  ;;  %v2000_v29 = vshrl.u32 %v5863_v61, 16 }
  0x5a   : > { %5222 = vmatmul.msk.bf16.gmra.mxu1 %vm674_vm2, %v569_v35  ;;  %v1976_v35 = vshrl.u32 %v5860_v28, 16  ;;  %v5839_v28 = vld [vmem:[%s6250_s6 + $0x24] sm:$0xff] }
  0x5b   : > { %5228 = vmatmul.msk.bf16.gmra.mxu2 %vm674_vm2, %v617_v36  ;;  %5234 = vmatmul.msk.bf16.gmra.mxu3 %vm674_vm2, %v665_v37  ;;  %v1980_v36 = vshll.u32 %v5861_v34, 16  ;;  %v1070_v37 = vrot.slane %v6306_v49, 1 }
  0x5c   : > { %v1978_v38 = vor.u32 %v1976_v35, %v1974_v26  ;;  %v1076_v26 = vrot.slane %v6378_v5, 1 }
  0x5d   : > { %v1071_v43 = vsel %vm1066_vm3, %v1068_v27, %v1070_v37 }
  0x5e   : > { %5216 = vmatmul.msk.bf16.gmra.mxu0 %vm674_vm2, %v521_v41  ;;  %v1982_v41 = vrot.slane %v1980_v36, 1  ;;  %v1077_v36 = vsel %vm1066_vm3, %v1074_v8, %v1076_v26 }
  0x60   : > { %v1983_v47 = vsel %vm477_vm1, %v1978_v38, %v1982_v41  ;;  %v1986_v53 = vor.u32 %v1984_v50, %v1982_v41 }
  0x62   : > { %v1991_v58 = vsel %vm477_vm1, %v1986_v53, %v1990_v54 }
  0x6a   : > { %5223 = vmatmul.msk.bf16.gmra.mxu1 %vm674_vm2, %v577_v14 }
  0x6b   : > { %5229 = vmatmul.msk.bf16.gmra.mxu2 %vm674_vm2, %v625_v4  ;;  %5235 = vmatmul.msk.bf16.gmra.mxu3 %vm674_vm2, %v673_v15  ;;  %v1994_v15 = vor.u32 %v1992_v1, %v1990_v54  ;;  %v5841_v1 = vld [vmem:[%s6250_s6 + $0x34] sm:$0xff] }
  0x6e   : > { %5217 = vmatmul.msk.bf16.gmra.mxu0 %vm674_vm2, %v529_v16 }
  0x7a   : > { %5236 = vmatmul.msk.bf16.vlgmr.msrb.gmra.mxu1 %vm674_vm2, %v6271_v20  ;;  %v5837_v20 = vld [vmem:[%s6250_s6 + $0x14] sm:$0xff] }
  0x7b   : > { %5261 = vmatmul.msk.bf16.vlgmr.msrb.gmra.mxu2 %vm674_vm2, %v1069_v30  ;;  %5382 = vmatmul.msk.bf16.vlgmr.msrb.gmra.mxu3 %vm674_vm2, %v5836_v32 }
  0x7e   : > { %5499 = vmatmul.msk.bf16.vlgmr.msrb.gmra.mxu0 %vm674_vm2, %v1975_v33 }
  0x8a   : > { %5237 = vmatmul.msk.bf16.gmra.mxu1 %vm674_vm2, %v6274_v21  ;;  %v1073_v21 = vsel %vm1066_vm3, %v1070_v37, %v1072_v52  ;;  %v5840_v37 = vld [vmem:[%s6250_s6 + $0x2c] sm:$0xff]  ;;  %v1078_v52 = vrot.slane %v6253_v10, 1 }
  0x8b   : > { %5262 = vmatmul.msk.bf16.gmra.mxu2 %vm674_vm2, %v1071_v43  ;;  %5383 = vmatmul.msk.bf16.gmra.mxu3 %vm674_vm2, %v5837_v20 }
  0x8e   : > { %5500 = vmatmul.msk.bf16.gmra.mxu0 %vm674_vm2, %v1983_v47  ;;  %v5865_v47 = vld [vmem:[%s6250_s6 + $0x3c] sm:$0xff] }
  0x97   : > { %v6456_v55 = vpop.f32.mrf.mxu1 }
  0x9a   : > { %5238 = vmatmul.msk.bf16.gmra.mxu1 %vm674_vm2, %v6306_v49  ;;  %v1996_v49 = vshll.u32 %v5863_v61, 16  ;;  %v1079_v61 = vsel %vm1066_vm3, %v1076_v26, %v1078_v52 }
  0x9b   : > { %v6460_v57 = vpop.f32.mrf.mxu0  ;;  %5263 = vmatmul.msk.bf16.gmra.mxu2 %vm674_vm2, %v1073_v21  ;;  %5384 = vmatmul.msk.bf16.gmra.mxu3 %vm674_vm2, %v5838_v56 }
  0x9c   : > { %v1998_v16 = vrot.slane %v1996_v49, 1 }
  0x9e   : > { %5501 = vmatmul.msk.bf16.gmra.mxu0 %vm674_vm2, %v1991_v58  ;;  %v6468_v59 = vpop.f32.mrf.mxu2  ;;  %v6470_v60 = vpop.f32.mrf.mxu3  ;;  %v1999_v22 = vsel %vm477_vm1, %v1994_v15, %v1998_v16  ;;  %v2002_v33 = vor.u32 %v2000_v29, %v1998_v16  ;;  %v1080_v29 = vrot.slane %v6256_v11, 1 }
  0x9f   : > { %8541 = vst [vmem:[#allocation2_spill] sm:$0xff] %v6470_v60  ;;  %v6473_v62 = vpop.f32.mrf.mxu1 }
  0xa3   : > { %v6475_v0 = vpop.f32.mrf.mxu0 }
  0xa6   : > { %v6478_v14 = vpop.f32.mrf.mxu2  ;;  %v6480_v4 = vpop.f32.mrf.mxu3 }
  0xa7   : > { %8542 = vst [vmem:[#allocation3_spill] sm:$0xff] %v6480_v4  ;;  %v6482_v17 = vpop.f32.mrf.mxu1 }
  0xaa   : > { %5239 = vmatmul.msk.bf16.gmra.mxu1 %vm674_vm2, %v6330_v9  ;;  %v2004_v9 = vshll.u32 %v5864_v24, 16  ;;  %v2016_v24 = vshrl.u32 %v5865_v47, 16 }
  0xab   : > { %v6486_v19 = vpop.f32.mrf.mxu0  ;;  %5264 = vmatmul.msk.bf16.gmra.mxu2 %vm674_vm2, %v1075_v18  ;;  %5385 = vmatmul.msk.bf16.gmra.mxu3 %vm674_vm2, %v5839_v28  ;;  %v5866_v18 = vld [vmem:[%s6250_s6 + $0x44] sm:$0xff] }
  0xac   : > { %v2006_v34 = vrot.slane %v2004_v9, 1 }
  0xae   : > { %5502 = vmatmul.msk.bf16.gmra.mxu0 %vm674_vm2, %v1999_v22  ;;  %v6494_v31 = vpop.f32.mrf.mxu2  ;;  %v6496_v23 = vpop.f32.mrf.mxu3  ;;  %v2007_v41 = vsel %vm477_vm1, %v2002_v33, %v2006_v34  ;;  %v2010_v21 = vor.u32 %v2008_v51, %v2006_v34 }
  0xaf   : > { %8543 = vst [vmem:[#allocation4_spill] sm:$0xff] %v6496_v23  ;;  %v6499_v25 = vpop.f32.mrf.mxu1 }
  0xb3   : > { %v6501_v27 = vpop.f32.mrf.mxu0 }
  0xb6   : > { %v6504_v30 = vpop.f32.mrf.mxu2  ;;  %v6506_v32 = vpop.f32.mrf.mxu3 }
  0xb7   : > { %8544 = vst [vmem:[#allocation5_spill] sm:$0xff] %v6506_v32  ;;  %v6508_v35 = vpop.f32.mrf.mxu1 }
  0xba   : > { %5240 = vmatmul.msk.bf16.gmra.mxu1 %vm674_vm2, %v6354_v42  ;;  %v2012_v42 = vshll.u32 %v5865_v47, 16 }
  0xbb   : > { %v6512_v38 = vpop.f32.mrf.mxu0  ;;  %5265 = vmatmul.msk.bf16.gmra.mxu2 %vm674_vm2, %v1077_v36  ;;  %5386 = vmatmul.msk.bf16.gmra.mxu3 %vm674_vm2, %v5840_v37  ;;  %v1081_v37 = vsel %vm1066_vm3, %v1078_v52, %v1080_v29  ;;  %v5867_v52 = vld [vmem:[%s6250_s6 + $0x4c] sm:$0xff] }
  0xbc   : > { %v2014_v56 = vrot.slane %v2012_v42, 1 }
  0xbe   : > { %5503 = vmatmul.msk.bf16.gmra.mxu0 %vm674_vm2, %v2007_v41  ;;  %v6520_v43 = vpop.f32.mrf.mxu2  ;;  %v6522_v20 = vpop.f32.mrf.mxu3  ;;  %v2015_v8 = vsel %vm477_vm1, %v2010_v21, %v2014_v56  ;;  %v2018_v33 = vor.u32 %v2016_v24, %v2014_v56  ;;  %v5842_v41 = vld [vmem:[%s6250_s6 + $0x3c] sm:$0xff] }
  0xbf   : > { %8545 = vst [vmem:[#allocation6_spill] sm:$0xff] %v6522_v20  ;;  %v6525_v48 = vpop.f32.mrf.mxu1 }
  0xc3   : > { %v6527_v50 = vpop.f32.mrf.mxu0 }
  0xc6   : > { %v6530_v53 = vpop.f32.mrf.mxu2  ;;  %v6532_v54 = vpop.f32.mrf.mxu3 }
  0xc7   : > { %8546 = vst [vmem:[#allocation7_spill] sm:$0xff] %v6532_v54  ;;  %v6534_v58 = vpop.f32.mrf.mxu1 }
  0xca   : > { %5241 = vmatmul.msk.bf16.gmra.mxu1 %vm674_vm2, %v6378_v5  ;;  %v2020_v5 = vshll.u32 %v5866_v18, 16 }
  0xcb   : > { %v6538_v49 = vpop.f32.mrf.mxu0  ;;  %5266 = vmatmul.msk.bf16.gmra.mxu2 %vm674_vm2, %v1079_v61  ;;  %5387 = vmatmul.msk.bf16.gmra.mxu3 %vm674_vm2, %v5841_v1  ;;  %v2024_v1 = vshrl.u32 %v5866_v18, 16 }
  0xcc   : > { %v2022_v34 = vrot.slane %v2020_v5, 1 }
  0xce   : > { %5504 = vmatmul.msk.bf16.gmra.mxu0 %vm674_vm2, %v2015_v8  ;;  %v6546_v15 = vpop.f32.mrf.mxu2  ;;  %v6548_v16 = vpop.f32.mrf.mxu3  ;;  %v2023_v47 = vsel %vm477_vm1, %v2018_v33, %v2022_v34  ;;  %v1082_v8 = vrot.slane %v6297_v45, 1  ;;  %v2026_v33 = vor.u32 %v2024_v1, %v2022_v34 }
  0xcf   : > { %8547 = vst [vmem:[#allocation8_spill] sm:$0xff] %v6548_v16  ;;  %v6551_v28 = vpop.f32.mrf.mxu1  ;;  %v2032_v16 = vshrl.u32 %v5867_v52, 16 }
  0xd3   : > { %v6553_v22 = vpop.f32.mrf.mxu0 }
  0xd6   : > { %v6556_v9 = vpop.f32.mrf.mxu2  ;;  %v6558_v26 = vpop.f32.mrf.mxu3 }
  0xd7   : > { %8548 = vst [vmem:[#allocation9_spill] sm:$0xff] %v6556_v9  ;;  %v6560_v36 = vpop.f32.mrf.mxu1  ;;  %v5845_v9 = vld [vmem:[%s6250_s6 + $0x54] sm:$0xff] }
  0xd8   : > { %8549 = vst [vmem:[#allocation10_spill] sm:$0xff] %v6558_v26 }
  0xda   : > { %5242 = vmatmul.msk.bf16.gmra.mxu1 %vm674_vm2, %v6253_v10  ;;  %v2028_v10 = vshll.u32 %v5867_v52, 16 }
  0xdb   : > { %v6564_v51 = vpop.f32.mrf.mxu0  ;;  %5267 = vmatmul.msk.bf16.gmra.mxu2 %vm674_vm2, %v1081_v37  ;;  %5388 = vmatmul.msk.bf16.gmra.mxu3 %vm674_vm2, %v5842_v41 }
  0xdc   : > { %v2030_v37 = vrot.slane %v2028_v10, 1 }
  0xde   : > { %5505 = vmatmul.msk.bf16.gmra.mxu0 %vm674_vm2, %v2023_v47  ;;  %v6572_v42 = vpop.f32.mrf.mxu2  ;;  %v6574_v21 = vpop.f32.mrf.mxu3  ;;  %v1083_v47 = vsel %vm1066_vm3, %v1080_v29, %v1082_v8  ;;  %v2031_v18 = vsel %vm477_vm1, %v2026_v33, %v2030_v37  ;;  %v5868_v29 = vld [vmem:[%s6250_s6 + $0x54] sm:$0xff] }
  0xdf   : > { %8550 = vst [vmem:[#allocation11_spill] sm:$0xff] %v6572_v42  ;;  %v6577_v56 = vpop.f32.mrf.mxu1 }
  0xe0   : > { %8551 = vst [vmem:[#allocation12_spill] sm:$0xff] %v6574_v21  ;;  %v5843_v21 = vld [vmem:[%s6250_s6 + $0x44] sm:$0xff] }
  0xe3   : > { %v6579_v61 = vpop.f32.mrf.mxu0 }
  0xe6   : > { %v6582_v24 = vpop.f32.mrf.mxu2  ;;  %v6584_v5 = vpop.f32.mrf.mxu3 }
  0xe7   : > { %8552 = vst [vmem:[#allocation13_spill] sm:$0xff] %v6582_v24  ;;  %v6586_v41 = vpop.f32.mrf.mxu1 }
  0xe8   : > { %8553 = vst [vmem:[#allocation14_spill] sm:$0xff] %v6584_v5 }
  0xea   : > { %5243 = vmatmul.msk.bf16.gmra.mxu1 %vm674_vm2, %v6256_v11  ;;  %v2036_v11 = vshll.u32 %v5868_v29, 16 }
  0xeb   : > { %v6590_v26 = vpop.f32.mrf.mxu0  ;;  %5268 = vmatmul.msk.bf16.gmra.mxu2 %vm674_vm2, %v1083_v47  ;;  %5389 = vmatmul.msk.bf16.gmra.mxu3 %vm674_vm2, %v5843_v21  ;;  %v1084_v47 = vrot.slane %v6322_v6, 1  ;;  %v2034_v21 = vor.u32 %v2032_v16, %v2030_v37 }
  0xed   : > { %v1085_v32 = vsel %vm1066_vm3, %v1082_v8, %v1084_v47 }
  0xee   : > { %5506 = vmatmul.msk.bf16.gmra.mxu0 %vm674_vm2, %v2031_v18  ;;  %v6598_v34 = vpop.f32.mrf.mxu2  ;;  %v6600_v1 = vpop.f32.mrf.mxu3  ;;  %v2038_v18 = vrot.slane %v2036_v11, 1 }
  0xef   : > { %8554 = vst [vmem:[#allocation15_spill] sm:$0xff] %v6598_v34  ;;  %v6603_v10 = vpop.f32.mrf.mxu1  ;;  %v2040_v34 = vshrl.u32 %v5868_v29, 16 }
  0xf0   : > { %8555 = vst [vmem:[#allocation16_spill] sm:$0xff] %v6600_v1  ;;  %v5844_v1 = vld [vmem:[%s6250_s6 + $0x4c] sm:$0xff]  ;;  %v2039_v52 = vsel %vm477_vm1, %v2034_v21, %v2038_v18 }
  0xf3   : > { %v6605_v5 = vpop.f32.mrf.mxu0 }
  0xf6   : > { %v6608_v54 = vpop.f32.mrf.mxu2  ;;  %v6610_v33 = vpop.f32.mrf.mxu3 }
  0xf7   : > { %8556 = vst [vmem:[#allocation17_spill] sm:$0xff] %v6608_v54  ;;  %v940_v20 = vpop.f32.mrf.mxu1 }
  0xf8   : > { %8557 = vst [vmem:[#allocation18_spill] sm:$0xff] %v6610_v33  ;;  %v941_v4 = vadd.f32 %v940_v20, %v6460_v57  ;;  %v5869_v33 = vld [vmem:[%s6250_s6 + $0x5c] sm:$0xff] }
  0xfa   : > { %5244 = vmatmul.msk.bf16.gmra.mxu1 %vm674_vm2, %v6297_v45  ;;  %v2044_v45 = vshll.u32 %v5869_v33, 16 }
  0xfb   : > { %v2244_v23 = vpop.f32.mrf.mxu0  ;;  %5269 = vmatmul.msk.bf16.gmra.mxu2 %vm674_vm2, %v1085_v32  ;;  %5390 = vmatmul.msk.bf16.gmra.mxu3 %vm674_vm2, %v5844_v1  ;;  %v1086_v32 = vrot.slane %v6346_v39, 1 }
  0xfc   : > { %v2046_v42 = vrot.slane %v2044_v45, 1 }
  0xfe   : > { %5507 = vmatmul.msk.bf16.gmra.mxu0 %vm674_vm2, %v2039_v52  ;;  %v1200_v16 = vpop.f32.mrf.mxu2  ;;  %v1622_v11 = vpop.f32.mrf.mxu3  ;;  %v2042_v52 = vor.u32 %v2040_v34, %v2038_v18  ;;  %v5870_v18 = vld [vmem:[%s6250_s6 + $0x64] sm:$0xff] }
  0xff   : > { %v1320_v37 = vadd.f32 %v1200_v16, %v941_v4  ;;  %v942_v8 = vpop.f32.mrf.mxu1  ;;  %v1087_v16 = vsel %vm1066_vm3, %v1084_v47, %v1086_v32 }
 0x100   : > { %v943_v1 = vadd.f32 %v942_v8, %v6475_v0 }
 0x101   : > { %v1742_v60 = vadd.f32 %v1622_v11, %v1320_v37 }
 0x103   : > { %v2246_v54 = vpop.f32.mrf.mxu0  ;;  %v6622_v24 = vadd.f32 %v2244_v23, %v1742_v60  ;;  %v2047_v60 = vsel %vm477_vm1, %v2042_v52, %v2046_v42 }
 0x106   : > { %v1202_v21 = vpop.f32.mrf.mxu2  ;;  %v1624_v20 = vpop.f32.mrf.mxu3 }
 0x107   : > { %v1321_v57 = vadd.f32 %v1202_v21, %v943_v1  ;;  %v945_v4 = vpop.f32.mrf.mxu1  ;;  %v2048_v1 = vshrl.u32 %v5869_v33, 16  ;;  %v2052_v21 = vshll.u32 %v5870_v18, 16 }
 0x108   : > { %v946_v23 = vadd.f32 %v945_v4, %v6486_v19 }
 0x109   : > { %v1743_v37 = vadd.f32 %v1624_v20, %v1321_v57  ;;  %v2050_v4 = vor.u32 %v2048_v1, %v2046_v42 }
 0x10a   : > { %5245 = vmatmul.msk.bf16.gmra.mxu1 %vm674_vm2, %v6322_v6 }
 0x10b   : > { %v2249_v11 = vpop.f32.mrf.mxu0  ;;  %5270 = vmatmul.msk.bf16.gmra.mxu2 %vm674_vm2, %v1087_v16  ;;  %v6632_v0 = vadd.f32 %v2246_v54, %v1743_v37  ;;  %5391 = vmatmul.msk.bf16.gmra.mxu3 %vm674_vm2, %v5845_v9  ;;  %v1088_v54 = vrot.slane %v6370_v2, 1  ;;  %v2054_v16 = vrot.slane %v2052_v21, 1  ;;  %v2056_v21 = vshrl.u32 %v5870_v18, 16 }
 0x10d   : > { %v2055_v33 = vsel %vm477_vm1, %v2050_v4, %v2054_v16 }
 0x10e   : > { %5508 = vmatmul.msk.bf16.gmra.mxu0 %vm674_vm2, %v2047_v60  ;;  %v1205_v34 = vpop.f32.mrf.mxu2  ;;  %v1627_v47 = vpop.f32.mrf.mxu3  ;;  %v1089_v60 = vsel %vm1066_vm3, %v1086_v32, %v1088_v54 }
 0x10f   : > { %v1322_v29 = vadd.f32 %v1205_v34, %v946_v23  ;;  %v947_v8 = vpop.f32.mrf.mxu1  ;;  %v5846_v23 = vld [vmem:[%s6250_s6 + $0x5c] sm:$0xff] }
 0x110   : > { %v948_v9 = vadd.f32 %v947_v8, %v6501_v27  ;;  %v5871_v8 = vld [vmem:[%s6250_s6 + $0x6c] sm:$0xff] }
 0x111   : > { %v1744_v45 = vadd.f32 %v1627_v47, %v1322_v29 }
 0x113   : > { %v2251_v6 = vpop.f32.mrf.mxu0  ;;  %v6638_v57 = vadd.f32 %v2249_v11, %v1744_v45 }
 0x116   : > { %v1207_v20 = vpop.f32.mrf.mxu2  ;;  %v1629_v52 = vpop.f32.mrf.mxu3 }
 0x117   : > { %v1323_v19 = vadd.f32 %v1207_v20, %v948_v9  ;;  %v950_v37 = vpop.f32.mrf.mxu1  ;;  %v2060_v9 = vshll.u32 %v5871_v8, 16 }
 0x118   : > { %v951_v42 = vadd.f32 %v950_v37, %v6512_v38  ;;  %v2058_v37 = vor.u32 %v2056_v21, %v2054_v16  ;;  %v2064_v21 = vshrl.u32 %v5871_v8, 16 }
 0x119   : > { %v1745_v34 = vadd.f32 %v1629_v52, %v1323_v19 }
 0x11a   : > { %5246 = vmatmul.msk.bf16.gmra.mxu1 %vm674_vm2, %v6346_v39 }
 0x11b   : > { %v2254_v29 = vpop.f32.mrf.mxu0  ;;  %5271 = vmatmul.msk.bf16.gmra.mxu2 %vm674_vm2, %v1089_v60  ;;  %v6648_v27 = vadd.f32 %v2251_v6, %v1745_v34  ;;  %5392 = vmatmul.msk.bf16.gmra.mxu3 %vm674_vm2, %v5846_v23  ;;  %v1090_v6 = vrot.slane %v6259_v12, 1  ;;  %v2062_v60 = vrot.slane %v2060_v9, 1 }
 0x11d   : > { %v1091_v34 = vsel %vm1066_vm3, %v1088_v54, %v1090_v6  ;;  %v2063_v18 = vsel %vm477_vm1, %v2058_v37, %v2062_v60  ;;  %v2066_v37 = vor.u32 %v2064_v21, %v2062_v60 }
 0x11e   : > { %5509 = vmatmul.msk.bf16.gmra.mxu0 %vm674_vm2, %v2055_v33  ;;  %v1210_v11 = vpop.f32.mrf.mxu2  ;;  %v1632_v47 = vpop.f32.mrf.mxu3  ;;  %v5847_v33 = vld [vmem:[%s6250_s6 + $0x64] sm:$0xff] }
 0x11f   : > { %v1324_v32 = vadd.f32 %v1210_v11, %v951_v42  ;;  %v952_v45 = vpop.f32.mrf.mxu1 }
 0x120   : > { %v953_v19 = vadd.f32 %v952_v45, %v6527_v50 }
 0x121   : > { %v1746_v1 = vadd.f32 %v1632_v47, %v1324_v32  ;;  %v5872_v47 = vld [vmem:[%s6250_s6 + $0x74] sm:$0xff] }
 0x122   : > { %v2068_v9 = vshll.u32 %v5872_v47, 16 }
 0x123   : > { %v2256_v39 = vpop.f32.mrf.mxu0  ;;  %v6654_v20 = vadd.f32 %v2254_v29, %v1746_v1 }
 0x126   : > { %v1212_v52 = vpop.f32.mrf.mxu2  ;;  %v1634_v4 = vpop.f32.mrf.mxu3 }
 0x127   : > { %v1325_v38 = vadd.f32 %v1212_v52, %v953_v19  ;;  %v955_v23 = vpop.f32.mrf.mxu1 }
 0x128   : > { %v956_v16 = vadd.f32 %v955_v23, %v6538_v49  ;;  %v2070_v23 = vrot.slane %v2068_v9, 1 }
 0x129   : > { %v1747_v42 = vadd.f32 %v1634_v4, %v1325_v38 }
 0x12a   : > { %5247 = vmatmul.msk.bf16.gmra.mxu1 %vm674_vm2, %v6370_v2  ;;  %v2071_v8 = vsel %vm477_vm1, %v2066_v37, %v2070_v23 }
 0x12b   : > { %v2259_v11 = vpop.f32.mrf.mxu0  ;;  %5272 = vmatmul.msk.bf16.gmra.mxu2 %vm674_vm2, %v1091_v34  ;;  %v6664_v50 = vadd.f32 %v2256_v39, %v1747_v42  ;;  %5393 = vmatmul.msk.bf16.gmra.mxu3 %vm674_vm2, %v5847_v33  ;;  %v1092_v39 = vrot.slane %v6262_v13, 1  ;;  %v5848_v42 = vld [vmem:[%s6250_s6 + $0x6c] sm:$0xff] }
 0x12d   : > { %v1093_v33 = vsel %vm1066_vm3, %v1090_v6, %v1092_v39 }
 0x12e   : > { %5510 = vmatmul.msk.bf16.gmra.mxu0 %vm674_vm2, %v2063_v18  ;;  %v1215_v29 = vpop.f32.mrf.mxu2  ;;  %v1637_v32 = vpop.f32.mrf.mxu3 }
 0x12f   : > { %v1326_v54 = vadd.f32 %v1215_v29, %v956_v16  ;;  %v957_v45 = vpop.f32.mrf.mxu1 }
 0x130   : > { %v958_v52 = vadd.f32 %v957_v45, %v6553_v22 }
 0x131   : > { %v1748_v1 = vadd.f32 %v1637_v32, %v1326_v54  ;;  %v5873_v54 = vld [vmem:[%s6250_s6 + $0x7c] sm:$0xff] }
 0x132   : > { %v2076_v21 = vshll.u32 %v5873_v54, 16 }
 0x133   : > { %v2261_v2 = vpop.f32.mrf.mxu0  ;;  %v6670_v19 = vadd.f32 %v2259_v11, %v1748_v1  ;;  %v2072_v1 = vshrl.u32 %v5872_v47, 16 }
 0x134   : > { %v2078_v37 = vrot.slane %v2076_v21, 1 }
 0x136   : > { %v1217_v38 = vpop.f32.mrf.mxu2  ;;  %v1639_v4 = vpop.f32.mrf.mxu3 }
 0x137   : > { %v1327_v49 = vadd.f32 %v1217_v38, %v958_v52  ;;  %v960_v34 = vpop.f32.mrf.mxu1 }
 0x138   : > { %v961_v60 = vadd.f32 %v960_v34, %v6564_v51 }
 0x139   : > { %v1749_v18 = vadd.f32 %v1639_v4, %v1327_v49  ;;  %v2074_v4 = vor.u32 %v2072_v1, %v2070_v23 }
 0x13a   : > { %5248 = vmatmul.msk.bf16.gmra.mxu1 %vm674_vm2, %v6259_v12 }
 0x13b   : > { %v2264_v16 = vpop.f32.mrf.mxu0  ;;  %5273 = vmatmul.msk.bf16.gmra.mxu2 %vm674_vm2, %v1093_v33  ;;  %v6680_v22 = vadd.f32 %v2261_v2, %v1749_v18  ;;  %5394 = vmatmul.msk.bf16.gmra.mxu3 %vm674_vm2, %v5848_v42  ;;  %v1094_v2 = vrot.slane %v6300_v46, 1  ;;  %v5849_v42 = vld [vmem:[%s6250_s6 + $0x74] sm:$0xff]  ;;  %v2079_v47 = vsel %vm477_vm1, %v2074_v4, %v2078_v37 }
 0x13d   : > { %v1095_v33 = vsel %vm1066_vm3, %v1092_v39, %v1094_v2 }
 0x13e   : > { %5511 = vmatmul.msk.bf16.gmra.mxu0 %vm674_vm2, %v2071_v8  ;;  %v1220_v11 = vpop.f32.mrf.mxu2  ;;  %v1642_v29 = vpop.f32.mrf.mxu3 }
 0x13f   : > { %v1328_v6 = vadd.f32 %v1220_v11, %v961_v60  ;;  %v962_v32 = vpop.f32.mrf.mxu1  ;;  %v5874_v11 = vld [vmem:[%s6250_s6 + $0x84] sm:$0xff] }
 0x140   : > { %v963_v52 = vadd.f32 %v962_v32, %v6579_v61  ;;  %v2080_v32 = vshrl.u32 %v5873_v54, 16 }
 0x141   : > { %v1750_v45 = vadd.f32 %v1642_v29, %v1328_v6 }
 0x143   : > { %v2266_v12 = vpop.f32.mrf.mxu0  ;;  %v6686_v9 = vadd.f32 %v2264_v16, %v1750_v45  ;;  %v2084_v45 = vshll.u32 %v5874_v11, 16 }
 0x146   : > { %v1222_v38 = vpop.f32.mrf.mxu2  ;;  %v1644_v49 = vpop.f32.mrf.mxu3 }
 0x147   : > { %v1329_v51 = vadd.f32 %v1222_v38, %v963_v52  ;;  %v965_v34 = vpop.f32.mrf.mxu1 }
 0x148   : > { %v966_v23 = vadd.f32 %v965_v34, %v6590_v26 }
 0x149   : > { %v1751_v18 = vadd.f32 %v1644_v49, %v1329_v51  ;;  %v2082_v51 = vor.u32 %v2080_v32, %v2078_v37  ;;  %v2086_v49 = vrot.slane %v2084_v45, 1 }
 0x14a   : > { %5249 = vmatmul.msk.bf16.gmra.mxu1 %vm674_vm2, %v6262_v13 }
 0x14b   : > { %v2269_v8 = vpop.f32.mrf.mxu0  ;;  %5274 = vmatmul.msk.bf16.gmra.mxu2 %vm674_vm2, %v1095_v33  ;;  %v6696_v61 = vadd.f32 %v2266_v12, %v1751_v18  ;;  %5395 = vmatmul.msk.bf16.gmra.mxu3 %vm674_vm2, %v5849_v42  ;;  %v1096_v12 = vrot.slane %v6325_v7, 1  ;;  %v5850_v33 = vld [vmem:[%s6250_s6 + $0x7c] sm:$0xff]  ;;  %v2087_v54 = vsel %vm477_vm1, %v2082_v51, %v2086_v49 }
 0x14d   : > { %v1097_v34 = vsel %vm1066_vm3, %v1094_v2, %v1096_v12 }
 0x14e   : > { %5512 = vmatmul.msk.bf16.gmra.mxu0 %vm674_vm2, %v2079_v47  ;;  %v1225_v16 = vpop.f32.mrf.mxu2  ;;  %v1647_v60 = vpop.f32.mrf.mxu3 }
 0x14f   : > { %v1330_v39 = vadd.f32 %v1225_v16, %v966_v23  ;;  %v967_v6 = vpop.f32.mrf.mxu1  ;;  %v5875_v23 = vld [vmem:[%s6250_s6 + $0x8c] sm:$0xff] }
 0x150   : > { %v968_v21 = vadd.f32 %v967_v6, %v6605_v5  ;;  %v2092_v6 = vshll.u32 %v5875_v23, 16 }
 0x151   : > { %v1752_v29 = vadd.f32 %v1647_v60, %v1330_v39  ;;  %v2088_v60 = vshrl.u32 %v5874_v11, 16 }
 0x153   : > { %v2271_v13 = vpop.f32.mrf.mxu0  ;;  %v6702_v1 = vadd.f32 %v2269_v8, %v1752_v29 }
 0x156   : > { %v1227_v52 = vpop.f32.mrf.mxu2  ;;  %v1649_v38 = vpop.f32.mrf.mxu3 }
 0x157   : > { %v1331_v26 = vadd.f32 %v1227_v52, %v968_v21  ;;  %v970_v4 = vpop.f32.mrf.mxu1  ;;  %v2090_v52 = vor.u32 %v2088_v60, %v2086_v49 }
 0x158   : > { %v971_v37 = vadd.f32 %v970_v4, %v6456_v55  ;;  %v5851_v4 = vld [vmem:[%s6250_s6 + $0x84] sm:$0xff] }
 0x159   : > { %v1753_v42 = vadd.f32 %v1649_v38, %v1331_v26  ;;  %v2094_v26 = vrot.slane %v2092_v6, 1 }
 0x15a   : > { %5250 = vmatmul.msk.bf16.gmra.mxu1 %vm674_vm2, %v6300_v46 }
 0x15b   : > { %v2274_v18 = vpop.f32.mrf.mxu0  ;;  %5275 = vmatmul.msk.bf16.gmra.mxu2 %vm674_vm2, %v1097_v34  ;;  %v6712_v5 = vadd.f32 %v2271_v13, %v1753_v42  ;;  %5396 = vmatmul.msk.bf16.gmra.mxu3 %vm674_vm2, %v5850_v33  ;;  %v1098_v13 = vrot.slane %v6349_v40, 1  ;;  %v2095_v11 = vsel %vm477_vm1, %v2090_v52, %v2094_v26  ;;  %v5852_v52 = vld [vmem:[%s6250_s6 + $0x8c] sm:$0xff] }
 0x15d   : > { %v1099_v51 = vsel %vm1066_vm3, %v1096_v12, %v1098_v13 }
 0x15e   : > { %5513 = vmatmul.msk.bf16.gmra.mxu0 %vm674_vm2, %v2087_v54  ;;  %v1230_v8 = vpop.f32.mrf.mxu2  ;;  %v1652_v47 = vpop.f32.mrf.mxu3  ;;  %v5876_v54 = vld [vmem:[%s6250_s6 + $0x94] sm:$0xff] }
 0x15f   : > { %v1332_v2 = vadd.f32 %v1230_v8, %v971_v37  ;;  %v972_v16 = vpop.f32.mrf.mxu1 }
 0x160   : > { %v973_v32 = vadd.f32 %v972_v16, %v6473_v62 }
 0x161   : > { %v1754_v39 = vadd.f32 %v1652_v47, %v1332_v2  ;;  %v2096_v2 = vshrl.u32 %v5875_v23, 16  ;;  %v2100_v47 = vshll.u32 %v5876_v54, 16 }
 0x163   : > { %v2276_v46 = vpop.f32.mrf.mxu0  ;;  %v6718_v29 = vadd.f32 %v2274_v18, %v1754_v39  ;;  %v1100_v39 = vrot.slane %v6373_v3, 1 }
 0x166   : > { %v1232_v45 = vpop.f32.mrf.mxu2  ;;  %v1654_v21 = vpop.f32.mrf.mxu3 }
 0x167   : > { %v1333_v55 = vadd.f32 %v1232_v45, %v973_v32  ;;  %v975_v38 = vpop.f32.mrf.mxu1  ;;  %v2098_v32 = vor.u32 %v2096_v2, %v2094_v26  ;;  %v2102_v45 = vrot.slane %v2100_v47, 1 }
 0x168   : > { %v976_v49 = vadd.f32 %v975_v38, %v6482_v17 }
 0x169   : > { %v1755_v34 = vadd.f32 %v1654_v21, %v1333_v55  ;;  %v1101_v21 = vsel %vm1066_vm3, %v1098_v13, %v1100_v39 }
 0x16a   : > { %5251 = vmatmul.msk.bf16.gmra.mxu1 %vm674_vm2, %v6325_v7 }
 0x16b   : > { %v2279_v33 = vpop.f32.mrf.mxu0  ;;  %5276 = vmatmul.msk.bf16.gmra.mxu2 %vm674_vm2, %v1099_v51  ;;  %v6728_v62 = vadd.f32 %v2276_v46, %v1755_v34  ;;  %5397 = vmatmul.msk.bf16.gmra.mxu3 %vm674_vm2, %v5851_v4 }
 0x16e   : > { %5514 = vmatmul.msk.bf16.gmra.mxu0 %vm674_vm2, %v2095_v11  ;;  %v1235_v42 = vpop.f32.mrf.mxu2  ;;  %v1657_v18 = vpop.f32.mrf.mxu3 }
 0x16f   : > { %v1334_v12 = vadd.f32 %v1235_v42, %v976_v49  ;;  %v977_v37 = vpop.f32.mrf.mxu1  ;;  %v2104_v42 = vshrl.u32 %v5876_v54, 16 }
 0x170   : > { %v978_v46 = vadd.f32 %v977_v37, %v6499_v25  ;;  %v2103_v25 = vsel %vm477_vm1, %v2098_v32, %v2102_v45  ;;  %v6124_v37 = vld [vmem:[%s6250_s6 + $0x90] sm:$0xff] }
 0x171   : > { %v1756_v8 = vadd.f32 %v1657_v18, %v1334_v12  ;;  %v5853_v32 = vld [vmem:[%s6250_s6 + $0x94] sm:$0xff] }
 0x173   : > { %v2281_v7 = vpop.f32.mrf.mxu0  ;;  %v6734_v16 = vadd.f32 %v2279_v33, %v1756_v8  ;;  %v5877_v33 = vld [vmem:[%s6250_s6 + $0x9c] sm:$0xff]  ;;  %v1102_v8 = vrot.slane %v6124_v37, 1 }
 0x174   : > { %v2108_v12 = vshll.u32 %v5877_v33, 16 }
 0x176   : > { %v1237_v60 = vpop.f32.mrf.mxu2  ;;  %v1659_v6 = vpop.f32.mrf.mxu3 }
 0x177   : > { %v1335_v17 = vadd.f32 %v1237_v60, %v978_v46  ;;  %v980_v55 = vpop.f32.mrf.mxu1  ;;  %v2106_v46 = vor.u32 %v2104_v42, %v2102_v45  ;;  %v2110_v60 = vrot.slane %v2108_v12, 1 }
 0x178   : > { %v981_v26 = vadd.f32 %v980_v55, %v6508_v35 }
 0x179   : > { %v1757_v38 = vadd.f32 %v1659_v6, %v1335_v17  ;;  %v1103_v6 = vsel %vm1066_vm3, %v1100_v39, %v1102_v8 }
 0x17a   : > { %5252 = vmatmul.msk.bf16.gmra.mxu1 %vm674_vm2, %v6349_v40 }
 0x17b   : > { %v2284_v51 = vpop.f32.mrf.mxu0  ;;  %5277 = vmatmul.msk.bf16.gmra.mxu2 %vm674_vm2, %v1101_v21  ;;  %v6744_v23 = vadd.f32 %v2281_v7, %v1757_v38  ;;  %5398 = vmatmul.msk.bf16.gmra.mxu3 %vm674_vm2, %v5852_v52 }
 0x17e   : > { %5515 = vmatmul.msk.bf16.gmra.mxu0 %vm674_vm2, %v2103_v25  ;;  %v1240_v13 = vpop.f32.mrf.mxu2  ;;  %v1662_v34 = vpop.f32.mrf.mxu3 }
 0x17f   : > { %v1336_v4 = vadd.f32 %v1240_v13, %v981_v26  ;;  %v982_v11 = vpop.f32.mrf.mxu1  ;;  %v2112_v13 = vshrl.u32 %v5877_v33, 16 }
 0x180   : > { %v983_v7 = vadd.f32 %v982_v11, %v6525_v48  ;;  %v2111_v48 = vsel %vm477_vm1, %v2106_v46, %v2110_v60  ;;  %v6125_v11 = vld [vmem:[%s6250_s6 + $0x98] sm:$0xff] }
 0x181   : > { %v1758_v40 = vadd.f32 %v1662_v34, %v1336_v4  ;;  %v5854_v46 = vld [vmem:[%s6250_s6 + $0x9c] sm:$0xff] }
 0x183   : > { %v2286_v49 = vpop.f32.mrf.mxu0  ;;  %v6750_v18 = vadd.f32 %v2284_v51, %v1758_v40  ;;  %v5878_v51 = vld [vmem:[%s6250_s6 + $0xa4] sm:$0xff]  ;;  %v1104_v40 = vrot.slane %v6125_v11, 1 }
 0x184   : > { %v2116_v4 = vshll.u32 %v5878_v51, 16 }
 0x186   : > { %v1242_v2 = vpop.f32.mrf.mxu2  ;;  %v1664_v47 = vpop.f32.mrf.mxu3 }
 0x187   : > { %v1337_v35 = vadd.f32 %v1242_v2, %v983_v7  ;;  %v985_v17 = vpop.f32.mrf.mxu1  ;;  %v2114_v7 = vor.u32 %v2112_v13, %v2110_v60  ;;  %v2118_v2 = vrot.slane %v2116_v4, 1 }
 0x188   : > { %v986_v45 = vadd.f32 %v985_v17, %v6534_v58 }
 0x189   : > { %v1759_v55 = vadd.f32 %v1664_v47, %v1337_v35  ;;  %v1105_v47 = vsel %vm1066_vm3, %v1102_v8, %v1104_v40  ;;  %v2119_v33 = vsel %vm477_vm1, %v2114_v7, %v2118_v2  ;;  %v5855_v7 = vld [vmem:[%s6250_s6 + $0xa4] sm:$0xff] }
 0x18a   : > { %5253 = vmatmul.msk.bf16.gmra.mxu1 %vm674_vm2, %v6373_v3 }
 0x18b   : > { %v2289_v21 = vpop.f32.mrf.mxu0  ;;  %5278 = vmatmul.msk.bf16.gmra.mxu2 %vm674_vm2, %v1103_v6  ;;  %v6760_v54 = vadd.f32 %v2286_v49, %v1759_v55  ;;  %5399 = vmatmul.msk.bf16.gmra.mxu3 %vm674_vm2, %v5853_v32 }
 0x18e   : > { %5516 = vmatmul.msk.bf16.gmra.mxu0 %vm674_vm2, %v2111_v48  ;;  %v1245_v39 = vpop.f32.mrf.mxu2  ;;  %v1667_v38 = vpop.f32.mrf.mxu3 }
 0x18f   : > { %v1338_v52 = vadd.f32 %v1245_v39, %v986_v45  ;;  %v987_v25 = vpop.f32.mrf.mxu1  ;;  %v2120_v39 = vshrl.u32 %v5878_v51, 16 }
 0x190   : > { %v988_v49 = vadd.f32 %v987_v25, %v6551_v28  ;;  %v6126_v25 = vld [vmem:[%s6250_s6 + $0xa0] sm:$0xff] }
 0x191   : > { %v1760_v3 = vadd.f32 %v1667_v38, %v1338_v52 }
 0x193   : > { %v2291_v26 = vpop.f32.mrf.mxu0  ;;  %v6766_v34 = vadd.f32 %v2289_v21, %v1760_v3  ;;  %v5879_v21 = vld [vmem:[%s6250_s6 + $0xac] sm:$0xff]  ;;  %v1106_v3 = vrot.slane %v6126_v25, 1 }
 0x194   : > { %v2124_v52 = vshll.u32 %v5879_v21, 16 }
 0x196   : > { %v1247_v42 = vpop.f32.mrf.mxu2  ;;  %v1669_v12 = vpop.f32.mrf.mxu3 }
 0x197   : > { %v1339_v58 = vadd.f32 %v1247_v42, %v988_v49  ;;  %v990_v35 = vpop.f32.mrf.mxu1  ;;  %v2122_v49 = vor.u32 %v2120_v39, %v2118_v2  ;;  %v2126_v42 = vrot.slane %v2124_v52, 1 }
 0x198   : > { %v991_v60 = vadd.f32 %v990_v35, %v6560_v36 }
 0x199   : > { %v1761_v17 = vadd.f32 %v1669_v12, %v1339_v58  ;;  %v1107_v12 = vsel %vm1066_vm3, %v1104_v40, %v1106_v3  ;;  %v2127_v51 = vsel %vm477_vm1, %v2122_v49, %v2126_v42  ;;  %v5856_v49 = vld [vmem:[%s6250_s6 + $0xac] sm:$0xff] }
 0x19a   : > { %5254 = vmatmul.msk.bf16.gmra.mxu1 %vm674_vm2, %v6124_v37 }
 0x19b   : > { %v2294_v6 = vpop.f32.mrf.mxu0  ;;  %5279 = vmatmul.msk.bf16.gmra.mxu2 %vm674_vm2, %v1105_v47  ;;  %v6775_v28 = vadd.f32 %v2291_v26, %v1761_v17  ;;  %5400 = vmatmul.msk.bf16.gmra.mxu3 %vm674_vm2, %v5854_v46 }
 0x19e   : > { %5517 = vmatmul.msk.bf16.gmra.mxu0 %vm674_vm2, %v2119_v33  ;;  %v1250_v32 = vpop.f32.mrf.mxu2  ;;  %v1672_v55 = vpop.f32.mrf.mxu3 }
 0x19f   : > { %v1340_v8 = vadd.f32 %v1250_v32, %v991_v60  ;;  %v992_v48 = vpop.f32.mrf.mxu1  ;;  %v2128_v32 = vshrl.u32 %v5879_v21, 16 }
 0x1a0   : > { %v993_v26 = vadd.f32 %v992_v48, %v6577_v56  ;;  %v6127_v48 = vld [vmem:[%s6250_s6 + $0xa8] sm:$0xff] }
 0x1a1   : > { %v1762_v37 = vadd.f32 %v1672_v55, %v1340_v8 }
 0x1a3   : > { %v2296_v45 = vpop.f32.mrf.mxu0  ;;  %v6781_v38 = vadd.f32 %v2294_v6, %v1762_v37  ;;  %v5880_v6 = vld [vmem:[%s6250_s6 + $0xb4] sm:$0xff]  ;;  %v1108_v37 = vrot.slane %v6127_v48, 1 }
 0x1a4   : > { %v2132_v8 = vshll.u32 %v5880_v6, 16 }
 0x1a6   : > { %v1252_v13 = vpop.f32.mrf.mxu2  ;;  %v1674_v4 = vpop.f32.mrf.mxu3 }
 0x1a7   : > { %v1341_v36 = vadd.f32 %v1252_v13, %v993_v26  ;;  %v995_v58 = vpop.f32.mrf.mxu1  ;;  %v2130_v26 = vor.u32 %v2128_v32, %v2126_v42  ;;  %v2134_v13 = vrot.slane %v2132_v8, 1 }
 0x1a8   : > { %v996_v2 = vadd.f32 %v995_v58, %v6586_v41 }
 0x1a9   : > { %v1763_v35 = vadd.f32 %v1674_v4, %v1341_v36  ;;  %v1109_v4 = vsel %vm1066_vm3, %v1106_v3, %v1108_v37  ;;  %v2135_v21 = vsel %vm477_vm1, %v2130_v26, %v2134_v13  ;;  %v5857_v26 = vld [vmem:[%s6250_s6 + $0xb4] sm:$0xff] }
 0x1aa   : > { %5255 = vmatmul.msk.bf16.gmra.mxu1 %vm674_vm2, %v6125_v11 }
 0x1ab   : > { %v2299_v47 = vpop.f32.mrf.mxu0  ;;  %5280 = vmatmul.msk.bf16.gmra.mxu2 %vm674_vm2, %v1107_v12  ;;  %v6790_v56 = vadd.f32 %v2296_v45, %v1763_v35  ;;  %5401 = vmatmul.msk.bf16.gmra.mxu3 %vm674_vm2, %v5855_v7 }
 0x1ae   : > { %5518 = vmatmul.msk.bf16.gmra.mxu0 %vm674_vm2, %v2127_v51  ;;  %v1255_v46 = vpop.f32.mrf.mxu2  ;;  %v1677_v17 = vpop.f32.mrf.mxu3 }
 0x1af   : > { %v1342_v40 = vadd.f32 %v1255_v46, %v996_v2  ;;  %v997_v33 = vpop.f32.mrf.mxu1  ;;  %v2136_v46 = vshrl.u32 %v5880_v6, 16 }
 0x1b0   : > { %v998_v45 = vadd.f32 %v997_v33, %v6603_v10  ;;  %v6128_v33 = vld [vmem:[%s6250_s6 + $0xb0] sm:$0xff] }
 0x1b1   : > { %v1764_v11 = vadd.f32 %v1677_v17, %v1342_v40 }
 0x1b3   : > { %v2301_v60 = vpop.f32.mrf.mxu0  ;;  %v6796_v55 = vadd.f32 %v2299_v47, %v1764_v11  ;;  %v5881_v47 = vld [vmem:[%s6250_s6 + $0xbc] sm:$0xff]  ;;  %v1110_v11 = vrot.slane %v6128_v33, 1 }
 0x1b4   : > { %v2140_v40 = vshll.u32 %v5881_v47, 16 }
 0x1b6   : > { %v1257_v39 = vpop.f32.mrf.mxu2  ;;  %v1679_v52 = vpop.f32.mrf.mxu3 }
 0x1b7   : > { %v1343_v41 = vadd.f32 %v1257_v39, %v998_v45  ;;  %v1000_v36 = vpop.f32.mrf.mxu1  ;;  %v2138_v45 = vor.u32 %v2136_v46, %v2134_v13  ;;  %v2142_v39 = vrot.slane %v2140_v40, 1 }
 0x1b8   : > { %v1001_v42 = vadd.f32 %v1000_v36, %v6468_v59 }
 0x1b9   : > { %v1765_v58 = vadd.f32 %v1679_v52, %v1343_v41  ;;  %v1111_v52 = vsel %vm1066_vm3, %v1108_v37, %v1110_v11  ;;  %v2143_v6 = vsel %vm477_vm1, %v2138_v45, %v2142_v39  ;;  %v5858_v45 = vld [vmem:[%s6250_s6 + $0xbc] sm:$0xff] }
 0x1ba   : > { %5256 = vmatmul.msk.bf16.gmra.mxu1 %vm674_vm2, %v6126_v25 }
 0x1bb   : > { %v2304_v12 = vpop.f32.mrf.mxu0  ;;  %5281 = vmatmul.msk.bf16.gmra.mxu2 %vm674_vm2, %v1109_v4  ;;  %v6805_v10 = vadd.f32 %v2301_v60, %v1765_v58  ;;  %5402 = vmatmul.msk.bf16.gmra.mxu3 %vm674_vm2, %v5856_v49 }
 0x1be   : > { %5519 = vmatmul.msk.bf16.gmra.mxu0 %vm674_vm2, %v2135_v21  ;;  %v1260_v7 = vpop.f32.mrf.mxu2  ;;  %v1682_v35 = vpop.f32.mrf.mxu3 }
 0x1bf   : > { %v1344_v3 = vadd.f32 %v1260_v7, %v1001_v42  ;;  %v1002_v51 = vpop.f32.mrf.mxu1  ;;  %v2144_v7 = vshrl.u32 %v5881_v47, 16 }
 0x1c0   : > { %v1003_v60 = vadd.f32 %v1002_v51, %v6478_v14  ;;  %v6129_v51 = vld [vmem:[%s6250_s6 + $0xb8] sm:$0xff] }
 0x1c1   : > { %v1766_v25 = vadd.f32 %v1682_v35, %v1344_v3 }
 0x1c3   : > { %v2306_v2 = vpop.f32.mrf.mxu0  ;;  %v6811_v17 = vadd.f32 %v2304_v12, %v1766_v25  ;;  %v5882_v12 = vld [vmem:[%s6250_s6 + $0xc4] sm:$0xff]  ;;  %v1112_v25 = vrot.slane %v6129_v51, 1 }
 0x1c4   : > { %v2148_v3 = vshll.u32 %v5882_v12, 16 }
 0x1c6   : > { %v1262_v32 = vpop.f32.mrf.mxu2  ;;  %v1684_v8 = vpop.f32.mrf.mxu3 }
 0x1c7   : > { %v1345_v59 = vadd.f32 %v1262_v32, %v1003_v60  ;;  %v1005_v41 = vpop.f32.mrf.mxu1  ;;  %v2146_v60 = vor.u32 %v2144_v7, %v2142_v39  ;;  %v2150_v32 = vrot.slane %v2148_v3, 1 }
 0x1c8   : > { %v1006_v13 = vadd.f32 %v1005_v41, %v6494_v31  ;;  %v1838_v41 = vld [vmem:[%s6250_s6 + $0xcc] sm:$0x1] }
 0x1c9   : > { %v1767_v36 = vadd.f32 %v1684_v8, %v1345_v59  ;;  %v1113_v8 = vsel %vm1066_vm3, %v1110_v11, %v1112_v25  ;;  %v2151_v47 = vsel %vm477_vm1, %v2146_v60, %v2150_v32 }
 0x1ca   : > { %5257 = vmatmul.msk.bf16.gmra.mxu1 %vm674_vm2, %v6127_v48 }
 0x1cb   : > { %v2309_v4 = vpop.f32.mrf.mxu0  ;;  %5282 = vmatmul.msk.bf16.gmra.mxu2 %vm674_vm2, %v1111_v52  ;;  %v6820_v14 = vadd.f32 %v2306_v2, %v1767_v36  ;;  %5403 = vmatmul.msk.bf16.gmra.mxu3 %vm674_vm2, %v5857_v26  ;;  %v1938_v36 = vunpack.c.l.b16 %v1838_v41 }
 0x1ce   : > { %5520 = vmatmul.msk.bf16.gmra.mxu0 %vm674_vm2, %v2143_v6  ;;  %v1265_v49 = vpop.f32.mrf.mxu2  ;;  %v1687_v58 = vpop.f32.mrf.mxu3 }
 0x1cf   : > { %v1346_v37 = vadd.f32 %v1265_v49, %v1006_v13  ;;  %v1007_v21 = vpop.f32.mrf.mxu1  ;;  %v6841_v13 = vpack.c.b16 %v1938_v36, %v1938_v36 }
 0x1d0   : > { %v1008_v2 = vadd.f32 %v1007_v21, %v6504_v30 }
 0x1d1   : > { %v1768_v48 = vadd.f32 %v1687_v58, %v1346_v37  ;;  %v2152_v58 = vshrl.u32 %v5882_v12, 16  ;;  %v2156_v21 = vshll.u32 %v6841_v13, 16  ;;  %v6154_v12 = vld [vmem:[%s6250_s6 + $0xc] sm:$0xe] }
 0x1d3   : > { %v2311_v42 = vpop.f32.mrf.mxu0  ;;  %v6826_v35 = vadd.f32 %v2309_v4, %v1768_v48 }
 0x1d6   : > { %v1267_v31 = vpop.f32.mrf.mxu2  ;;  %v1689_v40 = vpop.f32.mrf.mxu3 }
 0x1d7   : > { %v1347_v46 = vadd.f32 %v1267_v31, %v1008_v2  ;;  %v1010_v59 = vpop.f32.mrf.mxu1  ;;  %v2154_v31 = vor.u32 %v2152_v58, %v2150_v32 }
 0x1d8   : > { %v1011_v39 = vadd.f32 %v1010_v59, %v6520_v43  ;;  %v1114_v43 = vrot.slane %v6397_v44, 1  ;;  %v5859_v59 = vld [vmem:[%s6250_s6 + $0xc4] sm:$0xff] }
 0x1d9   : > { %v1769_v52 = vadd.f32 %v1689_v40, %v1347_v46  ;;  %v2158_v46 = vrot.slane %v2156_v21, 1  ;;  %v4122_v21 = vld [vmem:[%s8501_s3] sm:$0xff] }
 0x1da   : > { %5258 = vmatmul.msk.bf16.gmra.mxu1 %vm674_vm2, %v6128_v33  ;;  %v1115_v60 = vsel %vm1066_vm3, %v1112_v25, %v1114_v43  ;;  %v6860_v25 = vld [vmem:[%s6250_s6 + $0x20] sm:$0xff] }
 0x1db   : > { %v2314_v26 = vpop.f32.mrf.mxu0  ;;  %5283 = vmatmul.msk.bf16.gmra.mxu2 %vm674_vm2, %v1113_v8  ;;  %v6836_v30 = vadd.f32 %v2311_v42, %v1769_v52  ;;  %5404 = vmatmul.msk.bf16.gmra.mxu3 %vm674_vm2, %v5858_v45  ;;  %v6061_v45 = vld [vmem:[%s6250_s6 + $0x18] sm:$0xff]   ;;  %v2159_v44 = vsel %vm477_vm1, %v2154_v31, %v2158_v46 }
 0x1dc   : > { %v3318_v52 = vshll.u32 %v6061_v45, 16 }
 0x1de   : > { %5521 = vmatmul.msk.bf16.gmra.mxu0 %vm674_vm2, %v2151_v47  ;;  %v1270_v11 = vpop.f32.mrf.mxu2  ;;  %v1692_v6 = vpop.f32.mrf.mxu3 }
 0x1df   : > { %v1348_v4 = vadd.f32 %v1270_v11, %v1011_v39  ;;  %v1012_v33 = vpop.f32.mrf.mxu1  ;;  %v6155_v39 = vor.u32 %v6154_v12, %v6419_v63  ;;  %v6062_v11 = vld [vmem:[%s6250_s6 + $0x18] sm:$0xf0]  ;;  %v6180_v63 = vmov 0  }
 0x1e0   : > { %v1013_v42 = vadd.f32 %v1012_v33, %v6530_v53  ;;  %v3316_v33 = vshrl.u32 %v6061_v45, 16  ;;  %6118 = vset.pattern.permute.xlu0 %v6180_v63  ;;  %6119 = vset.pattern.permute.xlu1 %v6180_v63  ;;  %v5883_v12 = vld [vmem:[%s6250_s6 + $0x18] sm:$0xff] }
 0x1e1   : > { %v1770_v49 = vadd.f32 %v1692_v6, %v1348_v4  ;;  %v6063_v4 = vld [vmem:[%s6250_s6 + $0x18] sm:$0xe]  ;;  %4172 = vperm.xlu0 %6118, %v4122_v21   ;;  %6120 = vset.pattern.permute.xlu2 %v6180_v63  ;;  %v3327_v21 = vshrl.u32 %v6860_v25, 16  ;;  %v4124_v63 = vld [vmem:[%s8501_s3 + $0x10] sm:$0xff] }
 0x1e2   : > { %v6064_v58 = vor.u32 %v6063_v4, %v6062_v11  ;;  %v8559_v11 = vld [vmem:[#allocation11_spill] sm:$0xff]  ;;  %4182 = vperm.xlu1 %6119, %v4124_v63  }
 0x1e3   : > { %v2316_v37 = vpop.f32.mrf.mxu0  ;;  %v6844_v48 = vadd.f32 %v2314_v26, %v1770_v49  ;;  %v3320_v49 = vrot.slane %v3318_v52, 1 }
 0x1e4   : > { %v3769_v45 = vrot.slane %v6064_v58, 1 }
 0x1e5   : > { %v3321_v46 = vor.u32 %v3320_v49, %v3316_v33 }
 0x1e6   : > { %v1272_v7 = vpop.f32.mrf.mxu2  ;;  %v1694_v2 = vpop.f32.mrf.mxu3 }
 0x1e7   : > { %v1349_v3 = vadd.f32 %v1272_v7, %v1013_v42  ;;  %v1015_v40 = vpop.f32.mrf.mxu1  ;;  %v2418_v42 = vrot.slane %v6155_v39, 1  ;;  %v6130_v7 = vld [vmem:[%s6250_s6 + $0x14] sm:$0xff]  ;;  %v4123_v39 = vld [vmem:[%s8501_s3 + $0x8] sm:$0xff] }
 0x1e8   : > { %v1016_v32 = vadd.f32 %v1015_v40, %v6546_v15 }
 0x1e9   : > { %v1771_v8 = vadd.f32 %v1694_v2, %v1349_v3  ;;  %v2419_v3 = vrot.slane %v6130_v7, 1  ;;  %v8558_v2 = vld [vmem:[#allocation9_spill] sm:$0xff]  ;;  %4177 = vperm.xlu0 %6118, %v4123_v39  }
 0x1ea   : > { %5259 = vmatmul.msk.bf16.gmra.mxu1 %vm674_vm2, %v6129_v51 }
 0x1eb   : > { %v2319_v41 = vpop.f32.mrf.mxu0  ;;  %5284 = vmatmul.msk.bf16.gmra.mxu2 %vm674_vm2, %v1115_v60  ;;  %v6855_v53 = vadd.f32 %v2316_v37, %v1771_v8  ;;  %5405 = vmatmul.msk.bf16.gmra.mxu3 %vm674_vm2, %v5859_v59  ;;  %v3323_v37 = vshll.u32 %v6860_v25, 16 }
 0x1ed   : > { %v3325_v40 = vrot.slane %v3323_v37, 1 }
 0x1ee   : > { %5522 = vmatmul.msk.bf16.gmra.mxu0 %vm674_vm2, %v2159_v44  ;;  %v1275_v26 = vpop.f32.mrf.mxu2  ;;  %v1697_v36 = vpop.f32.mrf.mxu3 }
 0x1ef   : > { %v1350_v47 = vadd.f32 %v1275_v26, %v1016_v32  ;;  %v1017_v51 = vpop.f32.mrf.mxu1  ;;  %v2420_v32 = vsel %vm1066_vm3, %v2418_v42, %v2419_v3  ;;  %v3326_v26 = vsel %vm477_vm1, %v3321_v46, %v3325_v40 }
 0x1f0   : > { %v1018_v31 = vadd.f32 %v1017_v51, %v8558_v2 }
 0x1f1   : > { %v1772_v6 = vadd.f32 %v1697_v36, %v1350_v47 }
 0x1f3   : > { %v2321_v15 = vpop.f32.mrf.mxu0  ;;  %v6870_v43 = vadd.f32 %v2319_v41, %v1772_v6  ;;  %v3770_v41 = vrot.slane %v6860_v25, 1  ;;  %v6889_v6 = vld [vmem:[%s6250_s6 + $0x28] sm:$0xff] }
 0x1f4   : > { %v3331_v42 = vshll.u32 %v6889_v6, 16 }
 0x1f5   : > { %v3771_v36 = vsel %vm1066_vm3, %v3769_v45, %v3770_v41 }
 0x1f6   : > { %v1277_v60 = vpop.f32.mrf.mxu2  ;;  %v1699_v8 = vpop.f32.mrf.mxu3 }
 0x1f7   : > { %v1351_v59 = vadd.f32 %v1277_v60, %v1018_v31  ;;  %v1020_v44 = vpop.f32.mrf.mxu1  ;;  %v6131_v31 = vld [vmem:[%s6250_s6 + $0x1c] sm:$0xff] }
 0x1f8   : > { %v1021_v4 = vadd.f32 %v1020_v44, %v8559_v11  ;;  %v2421_v46 = vrot.slane %v6131_v31, 1  ;;  %v8560_v60 = vld [vmem:[#allocation13_spill] sm:$0xff] }
 0x1f9   : > { %v1773_v52 = vadd.f32 %v1699_v8, %v1351_v59  ;;  %v3329_v8 = vor.u32 %v3327_v21, %v3325_v40 }
 0x1fa   : > { %5524 = vmatmul.msk.bf16.vlgmr.msra.gmra.mxu1 %vm674_vm2, %v2420_v32  ;;  %v5884_v32 = vld [vmem:[%s6250_s6 + $0x20] sm:$0xff] }
 0x1fb   : > { %v2324_v47 = vpop.f32.mrf.mxu0  ;;  %5645 = vmatmul.msk.bf16.vlgmr.msra.gmra.mxu2 %vm674_vm2, %v5883_v12  ;;  %v6881_v51 = vadd.f32 %v2321_v15, %v1773_v52  ;;  %5762 = vmatmul.msk.bf16.vlgmr.msra.gmra.mxu3 %vm674_vm2, %v3326_v26  ;;  %v3333_v12 = vrot.slane %v3331_v42, 1  ;;  %v3772_v52 = vrot.slane %v6889_v6, 1 }
 0x1fd   : > { %v3773_v40 = vsel %vm1066_vm3, %v3770_v41, %v3772_v52 }
 0x1fe   : > { %5787 = vmatmul.msk.bf16.vlgmr.msra.gmra.mxu0 %vm674_vm2, %v3771_v36  ;;  %v1280_v33 = vpop.f32.mrf.mxu2  ;;  %v1702_v37 = vpop.f32.mrf.mxu3  ;;  %v2422_v36 = vsel %vm1066_vm3, %v2419_v3, %v2421_v46  ;;  %v8561_v3 = vld [vmem:[#allocation15_spill] sm:$0xff] }
 0x1ff   : > { %v1352_v49 = vadd.f32 %v1280_v33, %v1021_v4  ;;  %v1022_v58 = vpop.f32.mrf.mxu1  ;;  %v4125_v33 = vld [vmem:[%s8501_s3 + $0x18] sm:$0xff] }
 0x200   : > { %v1023_v59 = vadd.f32 %v1022_v58, %v8560_v60  ;;  %4187 = vperm.xlu1 %6119, %v4125_v33  }
 0x201   : > { %v1774_v15 = vadd.f32 %v1702_v37, %v1352_v49  ;;  %v6916_v37 = vld [vmem:[%s6250_s6 + $0x30] sm:$0xff] }
 0x202   : > { %v3339_v63 = vshll.u32 %v6916_v37, 16 }
 0x203   : > { %v2326_v7 = vpop.f32.mrf.mxu0  ;;  %v6897_v2 = vadd.f32 %v2324_v47, %v1774_v15  ;;  %v3334_v47 = vsel %vm477_vm1, %v3329_v8, %v3333_v12 }
 0x206   : > { %v1282_v45 = vpop.f32.mrf.mxu2  ;;  %v1704_v25 = vpop.f32.mrf.mxu3 }
 0x207   : > { %v1353_v44 = vadd.f32 %v1282_v45, %v1023_v59  ;;  %v1025_v26 = vpop.f32.mrf.mxu1  ;;  %v6132_v59 = vld [vmem:[%s6250_s6 + $0x24] sm:$0xff]  ;;  %v8562_v45 = vld [vmem:[#allocation17_spill] sm:$0xff] }
 0x208   : > { %v1026_v49 = vadd.f32 %v1025_v26, %v8561_v3  ;;  %v2423_v8 = vrot.slane %v6132_v59, 1 }
 0x209   : > { %v1775_v39 = vadd.f32 %v1704_v25, %v1353_v44 }
 0x20a   : > { %5525 = vmatmul.msk.bf16.gmra.mxu1 %vm674_vm2, %v2422_v36 }
 0x20b   : > { %v2329_v11 = vpop.f32.mrf.mxu0  ;;  %5646 = vmatmul.msk.bf16.gmra.mxu2 %vm674_vm2, %v5884_v32  ;;  %v6908_v4 = vadd.f32 %v2326_v7, %v1775_v39  ;;  %5763 = vmatmul.msk.bf16.gmra.mxu3 %vm674_vm2, %v3334_v47  ;;  %v3335_v7 = vshrl.u32 %v6889_v6, 16  ;;  %v3341_v32 = vrot.slane %v3339_v63, 1  ;;  %v5885_v47 = vld [vmem:[%s6250_s6 + $0x28] sm:$0xff]  ;;  %v2424_v6 = vsel %vm1066_vm3, %v2421_v46, %v2423_v8 }
 0x20d   : > { %v3337_v25 = vor.u32 %v3335_v7, %v3333_v12 }
 0x20e   : > { %5788 = vmatmul.msk.bf16.gmra.mxu0 %vm674_vm2, %v3773_v40  ;;  %v1285_v58 = vpop.f32.mrf.mxu2  ;;  %v1707_v41 = vpop.f32.mrf.mxu3  ;;  %v3774_v40 = vrot.slane %v6916_v37, 1 }
 0x20f   : > { %v1354_v15 = vadd.f32 %v1285_v58, %v1026_v49  ;;  %v1027_v21 = vpop.f32.mrf.mxu1 }
 0x210   : > { %v1028_v44 = vadd.f32 %v1027_v21, %v8562_v45  ;;  %v3775_v12 = vsel %vm1066_vm3, %v3772_v52, %v3774_v40  ;;  %v6937_v21 = vld [vmem:[%s6250_s6 + $0x38] sm:$0xff]  ;;  %v3343_v45 = vshrl.u32 %v6916_v37, 16  ;;  %v5886_v37 = vld [vmem:[%s6250_s6 + $0x30] sm:$0xff] }
 0x211   : > { %v1776_v42 = vadd.f32 %v1707_v41, %v1354_v15  ;;  %v8563_v15 = vld [vmem:[#allocation2_spill] sm:$0xff]  ;;  %v3347_v52 = vshll.u32 %v6937_v21, 16 }
 0x213   : > { %v2331_v31 = vpop.f32.mrf.mxu0  ;;  %v6921_v60 = vadd.f32 %v2329_v11, %v1776_v42  ;;  %v3342_v11 = vsel %vm477_vm1, %v3337_v25, %v3341_v32 }
 0x216   : > { %v1287_v26 = vpop.f32.mrf.mxu2  ;;  %v1709_v39 = vpop.f32.mrf.mxu3 }
 0x217   : > { %v1355_v36 = vadd.f32 %v1287_v26, %v1028_v44  ;;  %v1030_v33 = vpop.f32.mrf.mxu1  ;;  %v4128_v44 = vld [vmem:[%s8501_s3 + $0x30] sm:$0xff] }
 0x218   : > { %v1031_v41 = vadd.f32 %v1030_v33, %v8563_v15  ;;  %v6133_v26 = vld [vmem:[%s6250_s6 + $0x2c] sm:$0xff]  ;;  %4202 = vperm.xlu0 %6118, %v4128_v44   ;;  %v3345_v33 = vor.u32 %v3343_v45, %v3341_v32  ;;  %v3776_v15 = vrot.slane %v6937_v21, 1  ;;  %v6967_v44 = vld [vmem:[%s6250_s6 + $0x40] sm:$0xff] }
 0x219   : > { %v1777_v3 = vadd.f32 %v1709_v39, %v1355_v36  ;;  %v2425_v36 = vrot.slane %v6133_v26, 1  ;;  %v8564_v39 = vld [vmem:[#allocation3_spill] sm:$0xff]  ;;  %v8566_v45 = vld [vmem:[#allocation4_spill] sm:$0xff] }
 0x21a   : > { %5526 = vmatmul.msk.bf16.gmra.mxu1 %vm674_vm2, %v2424_v6  ;;  %v3349_v6 = vrot.slane %v3347_v52, 1  ;;  %v3777_v32 = vsel %vm1066_vm3, %v3774_v40, %v3776_v15 }
 0x21b   : > { %v2334_v49 = vpop.f32.mrf.mxu0  ;;  %5647 = vmatmul.msk.bf16.gmra.mxu2 %vm674_vm2, %v5885_v47  ;;  %v6932_v58 = vadd.f32 %v2331_v31, %v1777_v3  ;;  %5764 = vmatmul.msk.bf16.gmra.mxu3 %vm674_vm2, %v3342_v11 }
 0x21e   : > { %5789 = vmatmul.msk.bf16.gmra.mxu0 %vm674_vm2, %v3775_v12  ;;  %v1290_v46 = vpop.f32.mrf.mxu2  ;;  %v1712_v7 = vpop.f32.mrf.mxu3 }
 0x21f   : > { %v1356_v42 = vadd.f32 %v1290_v46, %v1031_v41  ;;  %v1032_v63 = vpop.f32.mrf.mxu1  ;;  %v2426_v46 = vsel %vm1066_vm3, %v2423_v8, %v2425_v36  ;;  %v4129_v8 = vld [vmem:[%s8501_s3 + $0x38] sm:$0xff] }
 0x220   : > { %v1033_v47 = vadd.f32 %v1032_v63, %v8564_v39  ;;  %4207 = vperm.xlu1 %6119, %v4129_v8  }
 0x221   : > { %v1778_v59 = vadd.f32 %v1712_v7, %v1356_v42 }
 0x223   : > { %v2336_v31 = vpop.f32.mrf.mxu0  ;;  %v6945_v25 = vadd.f32 %v2334_v49, %v1778_v59  ;;  %v3350_v49 = vsel %vm477_vm1, %v3345_v33, %v3349_v6  ;;  %v4126_v59 = vld [vmem:[%s8501_s3 + $0x20] sm:$0xff]  ;;  %v3351_v33 = vshrl.u32 %v6937_v21, 16 }
 0x224   : > { %4192 = vperm.xlu2 %6120, %v4126_v59  }
 0x226   : > { %v1292_v3 = vpop.f32.mrf.mxu2  ;;  %v1714_v12 = vpop.f32.mrf.mxu3 }
 0x227   : > { %v1357_v11 = vadd.f32 %v1292_v3, %v1033_v47  ;;  %v1035_v41 = vpop.f32.mrf.mxu1  ;;  %v3355_v3 = vshll.u32 %v6967_v44, 16 }
 0x228   : > { %v1036_v52 = vadd.f32 %v1035_v41, %v8566_v45  ;;  %v6134_v41 = vld [vmem:[%s6250_s6 + $0x34] sm:$0xff] }
 0x229   : > { %v1779_v42 = vadd.f32 %v1714_v12, %v1357_v11  ;;  %v4127_v12 = vld [vmem:[%s8501_s3 + $0x28] sm:$0xff]  ;;  %v3357_v59 = vrot.slane %v3355_v3, 1 }
 0x22a   : > { %5527 = vmatmul.msk.bf16.gmra.mxu1 %vm674_vm2, %v2426_v46  ;;  %v2427_v46 = vrot.slane %v6134_v41, 1 }
 0x22b   : > { %v2339_v7 = vpop.f32.mrf.mxu0  ;;  %5648 = vmatmul.msk.bf16.gmra.mxu2 %vm674_vm2, %v5886_v37  ;;  %v6956_v63 = vadd.f32 %v2336_v31, %v1779_v42  ;;  %5765 = vmatmul.msk.bf16.gmra.mxu3 %vm674_vm2, %v3350_v49  ;;  %v8568_v42 = vld [vmem:[#allocation5_spill] sm:$0xff] }
 0x22c   : > { %4197 = vperm.xlu2 %6120, %v4127_v12   ;;  %v6994_v12 = vld [vmem:[%s6250_s6 + $0x48] sm:$0xff] }
 0x22d   : > { %8565 = vst [vmem:[#allocation9_spill] sm:$0xff] %v6956_v63 }
 0x22e   : > { %5790 = vmatmul.msk.bf16.gmra.mxu0 %vm674_vm2, %v3777_v32  ;;  %v1295_v40 = vpop.f32.mrf.mxu2  ;;  %v1717_v26 = vpop.f32.mrf.mxu3  ;;  %v3353_v32 = vor.u32 %v3351_v33, %v3349_v6  ;;  %v4131_v33 = vld [vmem:[%s8501_s3 + $0x48] sm:$0xff] }
 0x22f   : > { %v1358_v31 = vadd.f32 %v1295_v40, %v1036_v52  ;;  %v1037_v39 = vpop.f32.mrf.mxu1  ;;  %v5887_v52 = vld [vmem:[%s6250_s6 + $0x38] sm:$0xff]  ;;  %v3778_v40 = vrot.slane %v6967_v44, 1  ;;  %4217 = vperm.xlu0 %6118, %v4131_v33  }
 0x230   : > { %v1038_v49 = vadd.f32 %v1037_v39, %v8568_v42 }
 0x231   : > { %v1780_v47 = vadd.f32 %v1717_v26, %v1358_v31  ;;  %v2428_v26 = vsel %vm1066_vm3, %v2425_v36, %v2427_v46  ;;  %v3779_v6 = vsel %vm1066_vm3, %v3776_v15, %v3778_v40  ;;  %v8570_v36 = vld [vmem:[#allocation6_spill] sm:$0xff] }
 0x233   : > { %v2341_v11 = vpop.f32.mrf.mxu0  ;;  %v6975_v37 = vadd.f32 %v2339_v7, %v1780_v47  ;;  %v3358_v7 = vsel %vm477_vm1, %v3353_v32, %v3357_v59  ;;  %v3363_v32 = vshll.u32 %v6994_v12, 16 }
 0x235   : > { %8567 = vst [vmem:[#allocation11_spill] sm:$0xff] %v6975_v37  ;;  %v3365_v33 = vrot.slane %v3363_v32, 1 }
 0x236   : > { %v1297_v8 = vpop.f32.mrf.mxu2  ;;  %v1719_v21 = vpop.f32.mrf.mxu3 }
 0x237   : > { %v1359_v45 = vadd.f32 %v1297_v8, %v1038_v49  ;;  %v1040_v31 = vpop.f32.mrf.mxu1 }
 0x238   : > { %v1041_v3 = vadd.f32 %v1040_v31, %v8570_v36 }
 0x239   : > { %v1781_v63 = vadd.f32 %v1719_v21, %v1359_v45  ;;  %v4132_v45 = vld [vmem:[%s8501_s3 + $0x50] sm:$0xff] }
 0x23a   : > { %5528 = vmatmul.msk.bf16.gmra.mxu1 %vm674_vm2, %v2428_v26  ;;  %4222 = vperm.xlu1 %6119, %v4132_v45   ;;  %v8572_v26 = vld [vmem:[#allocation7_spill] sm:$0xff]  ;;  %v7021_v45 = vld [vmem:[%s6250_s6 + $0x50] sm:$0xff] }
 0x23b   : > { %v2344_v47 = vpop.f32.mrf.mxu0  ;;  %5649 = vmatmul.msk.bf16.gmra.mxu2 %vm674_vm2, %v5887_v52  ;;  %v6986_v39 = vadd.f32 %v2341_v11, %v1781_v63  ;;  %5766 = vmatmul.msk.bf16.gmra.mxu3 %vm674_vm2, %v3358_v7  ;;  %v3359_v11 = vshrl.u32 %v6967_v44, 16  ;;  %v6135_v52 = vld [vmem:[%s6250_s6 + $0x3c] sm:$0xff] }
 0x23c   : > { %v2429_v31 = vrot.slane %v6135_v52, 1 }
 0x23d   : > { %8569 = vst [vmem:[#allocation13_spill] sm:$0xff] %v6986_v39 }
 0x23e   : > { %5791 = vmatmul.msk.bf16.gmra.mxu0 %vm674_vm2, %v3779_v6  ;;  %v1300_v41 = vpop.f32.mrf.mxu2  ;;  %v1722_v49 = vpop.f32.mrf.mxu3  ;;  %v3361_v6 = vor.u32 %v3359_v11, %v3357_v59  ;;  %v2430_v39 = vsel %vm1066_vm3, %v2427_v46, %v2429_v31  ;;  %v4130_v11 = vld [vmem:[%s8501_s3 + $0x40] sm:$0xff]  ;;  %v8574_v46 = vld [vmem:[#allocation8_spill] sm:$0xff] }
 0x23f   : > { %v1360_v42 = vadd.f32 %v1300_v41, %v1041_v3  ;;  %v1042_v15 = vpop.f32.mrf.mxu1  ;;  %v5888_v41 = vld [vmem:[%s6250_s6 + $0x40] sm:$0xff]  ;;  %4212 = vperm.xlu2 %6120, %v4130_v11  }
 0x240   : > { %v1043_v7 = vadd.f32 %v1042_v15, %v8572_v26 }
 0x241   : > { %v1782_v63 = vadd.f32 %v1722_v49, %v1360_v42  ;;  %v3780_v42 = vrot.slane %v6994_v12, 1 }
 0x243   : > { %v2346_v8 = vpop.f32.mrf.mxu0  ;;  %v7002_v21 = vadd.f32 %v2344_v47, %v1782_v63  ;;  %v3366_v47 = vsel %vm477_vm1, %v3361_v6, %v3365_v33  ;;  %v3781_v59 = vsel %vm1066_vm3, %v3778_v40, %v3780_v42 }
 0x245   : > { %8571 = vst [vmem:[#allocation15_spill] sm:$0xff] %v7002_v21 }
 0x246   : > { %v1302_v36 = vpop.f32.mrf.mxu2  ;;  %v1724_v44 = vpop.f32.mrf.mxu3 }
 0x247   : > { %v1361_v3 = vadd.f32 %v1302_v36, %v1043_v7  ;;  %v1045_v49 = vpop.f32.mrf.mxu1  ;;  %v3371_v7 = vshll.u32 %v7021_v45, 16  ;;  %v4134_v36 = vld [vmem:[%s8501_s3 + $0x60] sm:$0xff] }
 0x248   : > { %v1046_v32 = vadd.f32 %v1045_v49, %v8574_v46  ;;  %4232 = vperm.xlu0 %6118, %v4134_v36   ;;  %v8576_v49 = vld [vmem:[#allocation10_spill] sm:$0xff]  ;;  %v7048_v36 = vld [vmem:[%s6250_s6 + $0x58] sm:$0xff] }
 0x249   : > { %v1783_v37 = vadd.f32 %v1724_v44, %v1361_v3  ;;  %v6136_v44 = vld [vmem:[%s6250_s6 + $0x44] sm:$0xff]  ;;  %v3373_v11 = vrot.slane %v3371_v7, 1 }
 0x24a   : > { %5529 = vmatmul.msk.bf16.gmra.mxu1 %vm674_vm2, %v2430_v39 }
 0x24b   : > { %v2349_v63 = vpop.f32.mrf.mxu0  ;;  %5650 = vmatmul.msk.bf16.gmra.mxu2 %vm674_vm2, %v5888_v41  ;;  %v7013_v15 = vadd.f32 %v2346_v8, %v1783_v37  ;;  %5767 = vmatmul.msk.bf16.gmra.mxu3 %vm674_vm2, %v3366_v47  ;;  %v3367_v8 = vshrl.u32 %v6994_v12, 16  ;;  %v2431_v41 = vrot.slane %v6136_v44, 1 }
 0x24d   : > { %8573 = vst [vmem:[#allocation17_spill] sm:$0xff] %v7013_v15  ;;  %v2432_v15 = vsel %vm1066_vm3, %v2429_v31, %v2431_v41  ;;  %v8578_v31 = vld [vmem:[#allocation12_spill] sm:$0xff] }
 0x24e   : > { %5792 = vmatmul.msk.bf16.gmra.mxu0 %vm674_vm2, %v3781_v59  ;;  %v1305_v39 = vpop.f32.mrf.mxu2  ;;  %v1727_v26 = vpop.f32.mrf.mxu3  ;;  %v3369_v59 = vor.u32 %v3367_v8, %v3365_v33  ;;  %v4135_v8 = vld [vmem:[%s8501_s3 + $0x68] sm:$0xff] }
 0x24f   : > { %v1362_v52 = vadd.f32 %v1305_v39, %v1046_v32  ;;  %v1047_v40 = vpop.f32.mrf.mxu1  ;;  %v5889_v39 = vld [vmem:[%s6250_s6 + $0x48] sm:$0xff]  ;;  %4237 = vperm.xlu1 %6119, %v4135_v8  }
 0x250   : > { %v1048_v47 = vadd.f32 %v1047_v40, %v8576_v49 }
 0x251   : > { %v1784_v37 = vadd.f32 %v1727_v26, %v1362_v52  ;;  %v3782_v52 = vrot.slane %v7021_v45, 1 }
 0x253   : > { %v2351_v6 = vpop.f32.mrf.mxu0  ;;  %v7029_v3 = vadd.f32 %v2349_v63, %v1784_v37  ;;  %v3374_v63 = vsel %vm477_vm1, %v3369_v59, %v3373_v11  ;;  %v3783_v33 = vsel %vm1066_vm3, %v3780_v42, %v3782_v52 }
 0x255   : > { %8575 = vst [vmem:[#allocation2_spill] sm:$0xff] %v7029_v3 }
 0x256   : > { %v1307_v46 = vpop.f32.mrf.mxu2  ;;  %v1729_v12 = vpop.f32.mrf.mxu3 }
 0x257   : > { %v1363_v32 = vadd.f32 %v1307_v46, %v1048_v47  ;;  %v1050_v26 = vpop.f32.mrf.mxu1  ;;  %v3379_v47 = vshll.u32 %v7048_v36, 16  ;;  %v4133_v46 = vld [vmem:[%s8501_s3 + $0x58] sm:$0xff] }
 0x258   : > { %v1051_v7 = vadd.f32 %v1050_v26, %v8578_v31  ;;  %4227 = vperm.xlu2 %6120, %v4133_v46   ;;  %v8580_v26 = vld [vmem:[#allocation14_spill] sm:$0xff] }
 0x259   : > { %v1785_v21 = vadd.f32 %v1729_v12, %v1363_v32  ;;  %v6137_v12 = vld [vmem:[%s6250_s6 + $0x4c] sm:$0xff]  ;;  %v3381_v8 = vrot.slane %v3379_v47, 1  ;;  %v7075_v46 = vld [vmem:[%s6250_s6 + $0x60] sm:$0xff] }
 0x25a   : > { %5530 = vmatmul.msk.bf16.gmra.mxu1 %vm674_vm2, %v2432_v15 }
 0x25b   : > { %v2354_v37 = vpop.f32.mrf.mxu0  ;;  %5651 = vmatmul.msk.bf16.gmra.mxu2 %vm674_vm2, %v5889_v39  ;;  %v7040_v40 = vadd.f32 %v2351_v6, %v1785_v21  ;;  %5768 = vmatmul.msk.bf16.gmra.mxu3 %vm674_vm2, %v3374_v63  ;;  %v3375_v6 = vshrl.u32 %v7021_v45, 16  ;;  %v2433_v39 = vrot.slane %v6137_v12, 1 }
 0x25d   : > { %8577 = vst [vmem:[#allocation3_spill] sm:$0xff] %v7040_v40  ;;  %v2434_v40 = vsel %vm1066_vm3, %v2431_v41, %v2433_v39  ;;  %v8582_v41 = vld [vmem:[#allocation16_spill] sm:$0xff] }
 0x25e   : > { %5793 = vmatmul.msk.bf16.gmra.mxu0 %vm674_vm2, %v3783_v33  ;;  %v1310_v15 = vpop.f32.mrf.mxu2  ;;  %v1732_v49 = vpop.f32.mrf.mxu3  ;;  %v3377_v33 = vor.u32 %v3375_v6, %v3373_v11  ;;  %v4137_v6 = vld [vmem:[%s8501_s3 + $0x78] sm:$0xff] }
 0x25f   : > { %v1364_v44 = vadd.f32 %v1310_v15, %v1051_v7  ;;  %v1052_v42 = vpop.f32.mrf.mxu1  ;;  %v5890_v15 = vld [vmem:[%s6250_s6 + $0x50] sm:$0xff]  ;;  %4247 = vperm.xlu0 %6118, %v4137_v6  }
 0x260   : > { %v1053_v63 = vadd.f32 %v1052_v42, %v8580_v26 }
 0x261   : > { %v1786_v21 = vadd.f32 %v1732_v49, %v1364_v44  ;;  %v3784_v44 = vrot.slane %v7048_v36, 1 }
 0x263   : > { %v2356_v59 = vpop.f32.mrf.mxu0  ;;  %v7056_v32 = vadd.f32 %v2354_v37, %v1786_v21  ;;  %v3382_v37 = vsel %vm477_vm1, %v3377_v33, %v3381_v8  ;;  %v3785_v11 = vsel %vm1066_vm3, %v3782_v52, %v3784_v44 }
 0x265   : > { %8579 = vst [vmem:[#allocation4_spill] sm:$0xff] %v7056_v32 }
 0x266   : > { %v1312_v31 = vpop.f32.mrf.mxu2  ;;  %v1734_v45 = vpop.f32.mrf.mxu3 }
 0x267   : > { %v1365_v7 = vadd.f32 %v1312_v31, %v1053_v63  ;;  %v1055_v49 = vpop.f32.mrf.mxu1  ;;  %v3387_v63 = vshll.u32 %v7075_v46, 16  ;;  %v4138_v31 = vld [vmem:[%s8501_s3 + $0x80] sm:$0xff] }
 0x268   : > { %v1056_v47 = vadd.f32 %v1055_v49, %v8582_v41  ;;  %4252 = vperm.xlu1 %6119, %v4138_v31   ;;  %v8584_v49 = vld [vmem:[#allocation18_spill] sm:$0xff] }
 0x269   : > { %v1787_v3 = vadd.f32 %v1734_v45, %v1365_v7  ;;  %v6138_v45 = vld [vmem:[%s6250_s6 + $0x54] sm:$0xff]  ;;  %v3389_v6 = vrot.slane %v3387_v63, 1 }
 0x26a   : > { %5531 = vmatmul.msk.bf16.gmra.mxu1 %vm674_vm2, %v2434_v40 }
 0x26b   : > { %v2359_v21 = vpop.f32.mrf.mxu0  ;;  %5652 = vmatmul.msk.bf16.gmra.mxu2 %vm674_vm2, %v5890_v15  ;;  %v7067_v42 = vadd.f32 %v2356_v59, %v1787_v3  ;;  %5769 = vmatmul.msk.bf16.gmra.mxu3 %vm674_vm2, %v3382_v37  ;;  %v3383_v59 = vshrl.u32 %v7048_v36, 16  ;;  %v2435_v15 = vrot.slane %v6138_v45, 1 }
 0x26d   : > { %8581 = vst [vmem:[#allocation5_spill] sm:$0xff] %v7067_v42  ;;  %v2436_v42 = vsel %vm1066_vm3, %v2433_v39, %v2435_v15  ;;  %v4136_v39 = vld [vmem:[%s8501_s3 + $0x70] sm:$0xff] }
 0x26e   : > { %5794 = vmatmul.msk.bf16.gmra.mxu0 %vm674_vm2, %v3785_v11  ;;  %v1315_v40 = vpop.f32.mrf.mxu2  ;;  %v1737_v26 = vpop.f32.mrf.mxu3  ;;  %v3385_v11 = vor.u32 %v3383_v59, %v3381_v8  ;;  %v7102_v59 = vld [vmem:[%s6250_s6 + $0x68] sm:$0xff]  ;;  %4242 = vperm.xlu2 %6120, %v4136_v39  }
 0x26f   : > { %v1366_v12 = vadd.f32 %v1315_v40, %v1056_v47  ;;  %v1057_v52 = vpop.f32.mrf.mxu1  ;;  %v5891_v40 = vld [vmem:[%s6250_s6 + $0x58] sm:$0xff] }
 0x270   : > { %v1058_v37 = vadd.f32 %v1057_v52, %v8584_v49  ;;  %v3395_v49 = vshll.u32 %v7102_v59, 16 }
 0x271   : > { %v1788_v3 = vadd.f32 %v1737_v26, %v1366_v12  ;;  %v3786_v12 = vrot.slane %v7075_v46, 1 }
 0x273   : > { %v2361_v33 = vpop.f32.mrf.mxu0  ;;  %v7083_v7 = vadd.f32 %v2359_v21, %v1788_v3  ;;  %v3390_v3 = vsel %vm477_vm1, %v3385_v11, %v3389_v6  ;;  %v3787_v8 = vsel %vm1066_vm3, %v3784_v44, %v3786_v12 }
 0x275   : > { %8583 = vst [vmem:[#allocation6_spill] sm:$0xff] %v7083_v7 }
 0x276   : > { %v1317_v41 = vpop.f32.mrf.mxu2  ;;  %v1739_v36 = vpop.f32.mrf.mxu3 }
 0x277   : > { %v1367_v47 = vadd.f32 %v1317_v41, %v1058_v37  ;;  %v2551_v26 = vpop.f32.mrf.mxu1  ;;  %v4140_v41 = vld [vmem:[%s8501_s3 + $0x90] sm:$0xff] }
 0x278   : > { %v2671_v21 = vadd.f32 %v2551_v26, %v6622_v24  ;;  %4262 = vperm.xlu0 %6118, %v4140_v41   ;;  %v3397_v26 = vrot.slane %v3395_v49, 1 }
 0x279   : > { %v1789_v32 = vadd.f32 %v1739_v36, %v1367_v47  ;;  %v6139_v47 = vld [vmem:[%s6250_s6 + $0x5c] sm:$0xff] }
 0x27a   : > { %5532 = vmatmul.msk.bf16.gmra.mxu1 %vm674_vm2, %v2436_v42  ;;  %v2437_v36 = vrot.slane %v6139_v47, 1  ;;  %v3399_v47 = vshrl.u32 %v7102_v59, 16 }
 0x27b   : > { %v3902_v31 = vpop.f32.mrf.mxu0  ;;  %5653 = vmatmul.msk.bf16.gmra.mxu2 %vm674_vm2, %v5891_v40  ;;  %v7095_v52 = vadd.f32 %v2361_v33, %v1789_v32  ;;  %5770 = vmatmul.msk.bf16.gmra.mxu3 %vm674_vm2, %v3390_v3  ;;  %v3391_v33 = vshrl.u32 %v7075_v46, 16  ;;  %v3788_v46 = vrot.slane %v7102_v59, 1 }
 0x27d   : > { %8585 = vst [vmem:[#allocation7_spill] sm:$0xff] %v7095_v52  ;;  %v3393_v40 = vor.u32 %v3391_v33, %v3389_v6  ;;  %v3789_v6 = vsel %vm1066_vm3, %v3786_v12, %v3788_v46 }
 0x27e   : > { %5795 = vmatmul.msk.bf16.gmra.mxu0 %vm674_vm2, %v3787_v8  ;;  %v2973_v24 = vpop.f32.mrf.mxu2  ;;  %v3595_v63 = vpop.f32.mrf.mxu3  ;;  %v5892_v8 = vld [vmem:[%s6250_s6 + $0x60] sm:$0xff] }
 0x27f   : > { %v3093_v42 = vadd.f32 %v2973_v24, %v2671_v21  ;;  %v2553_v45 = vpop.f32.mrf.mxu1 }
 0x280   : > { %v2672_v32 = vadd.f32 %v2553_v45, %v6632_v0 }
 0x281   : > { %v3715_v44 = vadd.f32 %v3595_v63, %v3093_v42  ;;  %v3398_v63 = vsel %vm477_vm1, %v3393_v40, %v3397_v26 }
 0x283   : > { %v7108_v37 = vadd.f32 %v3902_v31, %v3715_v44  ;;  %v3904_v11 = vpop.f32.mrf.mxu0  ;;  %v2438_v31 = vsel %vm1066_vm3, %v2435_v15, %v2437_v36  ;;  %v4141_v15 = vld [vmem:[%s8501_s3 + $0x98] sm:$0xff] }
 0x284   : > { %4267 = vperm.xlu1 %6119, %v4141_v15  }
 0x286   : > { %v2975_v21 = vpop.f32.mrf.mxu2  ;;  %v3597_v0 = vpop.f32.mrf.mxu3 }
 0x287   : > { %v3094_v3 = vadd.f32 %v2975_v21, %v2672_v32  ;;  %v2556_v39 = vpop.f32.mrf.mxu1  ;;  %v7129_v32 = vld [vmem:[%s6250_s6 + $0x70] sm:$0xff] }
 0x288   : > { %v2673_v42 = vadd.f32 %v2556_v39, %v6638_v57  ;;  %v3403_v40 = vshll.u32 %v7129_v32, 16  ;;  %v3790_v59 = vrot.slane %v7129_v32, 1 }
 0x289   : > { %v3716_v24 = vadd.f32 %v3597_v0, %v3094_v3  ;;  %v4139_v0 = vld [vmem:[%s8501_s3 + $0x88] sm:$0xff] }
 0x28a   : > { %5533 = vmatmul.msk.bf16.gmra.mxu1 %vm674_vm2, %v2438_v31  ;;  %4257 = vperm.xlu2 %6120, %v4139_v0   ;;  %v3401_v31 = vor.u32 %v3399_v47, %v3397_v26  ;;  %v3791_v26 = vsel %vm1066_vm3, %v3788_v46, %v3790_v59 }
 0x28b   : > { %v7119_v45 = vadd.f32 %v3904_v11, %v3716_v24  ;;  %v3907_v44 = vpop.f32.mrf.mxu0  ;;  %5654 = vmatmul.msk.bf16.gmra.mxu2 %vm674_vm2, %v5892_v8  ;;  %5771 = vmatmul.msk.bf16.gmra.mxu3 %vm674_vm2, %v3398_v63  ;;  %v6140_v8 = vld [vmem:[%s6250_s6 + $0x64] sm:$0xff]  ;;  %v3405_v24 = vrot.slane %v3403_v40, 1 }
 0x28c   : > { %v2439_v39 = vrot.slane %v6140_v8, 1  ;;  %v3407_v8 = vshrl.u32 %v7129_v32, 16 }
 0x28e   : > { %5796 = vmatmul.msk.bf16.gmra.mxu0 %vm674_vm2, %v3789_v6  ;;  %v2978_v57 = vpop.f32.mrf.mxu2  ;;  %v3600_v49 = vpop.f32.mrf.mxu3  ;;  %v5893_v6 = vld [vmem:[%s6250_s6 + $0x68] sm:$0xff] }
 0x28f   : > { %v3095_v33 = vadd.f32 %v2978_v57, %v2673_v42  ;;  %v2558_v11 = vpop.f32.mrf.mxu1 }
 0x290   : > { %v2674_v12 = vadd.f32 %v2558_v11, %v6648_v27 }
 0x291   : > { %v3717_v41 = vadd.f32 %v3600_v49, %v3095_v33  ;;  %v3406_v49 = vsel %vm477_vm1, %v3401_v31, %v3405_v24 }
 0x293   : > { %v7135_v21 = vadd.f32 %v3907_v44, %v3717_v41  ;;  %v3909_v3 = vpop.f32.mrf.mxu0  ;;  %v2440_v44 = vsel %vm1066_vm3, %v2437_v36, %v2439_v39  ;;  %v4143_v36 = vld [vmem:[%s8501_s3 + $0xa8] sm:$0xff] }
 0x294   : > { %4277 = vperm.xlu0 %6118, %v4143_v36  }
 0x296   : > { %v2980_v42 = vpop.f32.mrf.mxu2  ;;  %v3602_v27 = vpop.f32.mrf.mxu3 }
 0x297   : > { %v3096_v63 = vadd.f32 %v2980_v42, %v2674_v12  ;;  %v2561_v15 = vpop.f32.mrf.mxu1  ;;  %v7156_v12 = vld [vmem:[%s6250_s6 + $0x78] sm:$0xff] }
 0x298   : > { %v2675_v33 = vadd.f32 %v2561_v15, %v6654_v20  ;;  %v3411_v31 = vshll.u32 %v7156_v12, 16  ;;  %v3792_v32 = vrot.slane %v7156_v12, 1 }
 0x299   : > { %v3718_v57 = vadd.f32 %v3602_v27, %v3096_v63  ;;  %v4144_v27 = vld [vmem:[%s8501_s3 + $0xb0] sm:$0xff] }
 0x29a   : > { %5534 = vmatmul.msk.bf16.gmra.mxu1 %vm674_vm2, %v2440_v44  ;;  %4282 = vperm.xlu1 %6119, %v4144_v27   ;;  %v3409_v44 = vor.u32 %v3407_v8, %v3405_v24  ;;  %v3793_v24 = vsel %vm1066_vm3, %v3790_v59, %v3792_v32 }
 0x29b   : > { %v7146_v11 = vadd.f32 %v3909_v3, %v3718_v57  ;;  %v3912_v41 = vpop.f32.mrf.mxu0  ;;  %5655 = vmatmul.msk.bf16.gmra.mxu2 %vm674_vm2, %v5893_v6  ;;  %5772 = vmatmul.msk.bf16.gmra.mxu3 %vm674_vm2, %v3406_v49  ;;  %v6141_v6 = vld [vmem:[%s6250_s6 + $0x6c] sm:$0xff]  ;;  %v3413_v57 = vrot.slane %v3411_v31, 1 }
 0x29c   : > { %v2441_v15 = vrot.slane %v6141_v6, 1  ;;  %v3415_v6 = vshrl.u32 %v7156_v12, 16 }
 0x29e   : > { %5797 = vmatmul.msk.bf16.gmra.mxu0 %vm674_vm2, %v3791_v26  ;;  %v2983_v20 = vpop.f32.mrf.mxu2  ;;  %v3605_v40 = vpop.f32.mrf.mxu3  ;;  %v5894_v26 = vld [vmem:[%s6250_s6 + $0x70] sm:$0xff] }
 0x29f   : > { %v3097_v47 = vadd.f32 %v2983_v20, %v2675_v33  ;;  %v2563_v3 = vpop.f32.mrf.mxu1 }
 0x2a0   : > { %v2676_v46 = vadd.f32 %v2563_v3, %v6664_v50 }
 0x2a1   : > { %v3719_v0 = vadd.f32 %v3605_v40, %v3097_v47  ;;  %v3414_v40 = vsel %vm477_vm1, %v3409_v44, %v3413_v57 }
 0x2a3   : > { %v7162_v42 = vadd.f32 %v3912_v41, %v3719_v0  ;;  %v3914_v63 = vpop.f32.mrf.mxu0  ;;  %v2442_v41 = vsel %vm1066_vm3, %v2439_v39, %v2441_v15  ;;  %v4142_v39 = vld [vmem:[%s8501_s3 + $0xa0] sm:$0xff] }
 0x2a4   : > { %4272 = vperm.xlu2 %6120, %v4142_v39  }
 0x2a6   : > { %v2985_v33 = vpop.f32.mrf.mxu2  ;;  %v3607_v50 = vpop.f32.mrf.mxu3 }
 0x2a7   : > { %v3098_v49 = vadd.f32 %v2985_v33, %v2676_v46  ;;  %v2566_v36 = vpop.f32.mrf.mxu1  ;;  %v7183_v46 = vld [vmem:[%s6250_s6 + $0x80] sm:$0xff] }
 0x2a8   : > { %v2677_v47 = vadd.f32 %v2566_v36, %v6670_v19  ;;  %v3419_v44 = vshll.u32 %v7183_v46, 16  ;;  %v3794_v12 = vrot.slane %v7183_v46, 1 }
 0x2a9   : > { %v3720_v20 = vadd.f32 %v3607_v50, %v3098_v49  ;;  %v4146_v50 = vld [vmem:[%s8501_s3 + $0xc0] sm:$0xff] }
 0x2aa   : > { %5535 = vmatmul.msk.bf16.gmra.mxu1 %vm674_vm2, %v2442_v41  ;;  %4292 = vperm.xlu0 %6118, %v4146_v50   ;;  %v3417_v41 = vor.u32 %v3415_v6, %v3413_v57  ;;  %v4147_v57 = vld [vmem:[%s8501_s3 + $0xc8] sm:$0xff]  ;;  %v4149_v50 = vld [vmem:[%s8501_s3 + $0xd8] sm:$0xff] }
 0x2ab   : > { %v7173_v3 = vadd.f32 %v3914_v63, %v3720_v20  ;;  %v3917_v0 = vpop.f32.mrf.mxu0  ;;  %5656 = vmatmul.msk.bf16.gmra.mxu2 %vm674_vm2, %v5894_v26  ;;  %5773 = vmatmul.msk.bf16.gmra.mxu3 %vm674_vm2, %v3414_v40  ;;  %v6142_v26 = vld [vmem:[%s6250_s6 + $0x74] sm:$0xff]  ;;  %v3421_v20 = vrot.slane %v3419_v44, 1 }
 0x2ac   : > { %v2443_v36 = vrot.slane %v6142_v26, 1  ;;  %4297 = vperm.xlu1 %6119, %v4147_v57  }
 0x2ae   : > { %5798 = vmatmul.msk.bf16.gmra.mxu0 %vm674_vm2, %v3793_v24  ;;  %v2988_v19 = vpop.f32.mrf.mxu2  ;;  %v3610_v31 = vpop.f32.mrf.mxu3 }
 0x2af   : > { %v3099_v8 = vadd.f32 %v2988_v19, %v2677_v47  ;;  %v2568_v63 = vpop.f32.mrf.mxu1 }
 0x2b0   : > { %v2678_v59 = vadd.f32 %v2568_v63, %v6680_v22  ;;  %v5895_v22 = vld [vmem:[%s6250_s6 + $0x78] sm:$0xff] }
 0x2b1   : > { %v3721_v27 = vadd.f32 %v3610_v31, %v3099_v8  ;;  %v3422_v31 = vsel %vm477_vm1, %v3417_v41, %v3421_v20 }
 0x2b2   : > { %4307 = vperm.xlu0 %6118, %v4149_v50  }
 0x2b3   : > { %v7189_v33 = vadd.f32 %v3917_v0, %v3721_v27  ;;  %v3919_v49 = vpop.f32.mrf.mxu0  ;;  %v2444_v0 = vsel %vm1066_vm3, %v2441_v15, %v2443_v36  ;;  %v7210_v15 = vld [vmem:[%s6250_s6 + $0x88] sm:$0xff] }
 0x2b6   : > { %v2990_v47 = vpop.f32.mrf.mxu2  ;;  %v3612_v24 = vpop.f32.mrf.mxu3 }
 0x2b7   : > { %v3100_v40 = vadd.f32 %v2990_v47, %v2678_v59  ;;  %v2571_v39 = vpop.f32.mrf.mxu1  ;;  %v3795_v59 = vsel %vm1066_vm3, %v3792_v32, %v3794_v12  ;;  %v3423_v32 = vshrl.u32 %v7183_v46, 16  ;;  %v3427_v47 = vshll.u32 %v7210_v15, 16 }
 0x2b8   : > { %v2679_v8 = vadd.f32 %v2571_v39, %v6686_v9  ;;  %v4145_v39 = vld [vmem:[%s8501_s3 + $0xb8] sm:$0xff] }
 0x2b9   : > { %v3722_v19 = vadd.f32 %v3612_v24, %v3100_v40  ;;  %v4150_v40 = vld [vmem:[%s8501_s3 + $0xe0] sm:$0xff]  ;;  %4287 = vperm.xlu2 %6120, %v4145_v39   ;;  %v3429_v46 = vrot.slane %v3427_v47, 1 }
 0x2ba   : > { %5536 = vmatmul.msk.bf16.gmra.mxu1 %vm674_vm2, %v2444_v0  ;;  %v6143_v0 = vld [vmem:[%s6250_s6 + $0x7c] sm:$0xff]  ;;  %4312 = vperm.xlu1 %6119, %v4150_v40  }
 0x2bb   : > { %v7203_v63 = vadd.f32 %v3919_v49, %v3722_v19  ;;  %v3922_v27 = vpop.f32.mrf.mxu0  ;;  %5657 = vmatmul.msk.bf16.gmra.mxu2 %vm674_vm2, %v5895_v22  ;;  %5774 = vmatmul.msk.bf16.gmra.mxu3 %vm674_vm2, %v3422_v31  ;;  %v2445_v19 = vrot.slane %v6143_v0, 1  ;;  %v4155_v0 = vld [vmem:[%s8501_s3 + $0x108] sm:$0xff] }
 0x2be   : > { %5799 = vmatmul.msk.bf16.gmra.mxu0 %vm674_vm2, %v3795_v59  ;;  %v2993_v9 = vpop.f32.mrf.mxu2  ;;  %v3615_v44 = vpop.f32.mrf.mxu3  ;;  %v5896_v59 = vld [vmem:[%s6250_s6 + $0x80] sm:$0xff] }
 0x2bf   : > { %v3101_v6 = vadd.f32 %v2993_v9, %v2679_v8  ;;  %v2573_v49 = vpop.f32.mrf.mxu1  ;;  %v3796_v9 = vrot.slane %v7210_v15, 1 }
 0x2c0   : > { %v2680_v41 = vadd.f32 %v2573_v49, %v6696_v61  ;;  %v3425_v61 = vor.u32 %v3423_v32, %v3421_v20 }
 0x2c1   : > { %v3723_v26 = vadd.f32 %v3615_v44, %v3101_v6  ;;  %v2446_v6 = vsel %vm1066_vm3, %v2443_v36, %v2445_v19  ;;  %v4152_v44 = vld [vmem:[%s8501_s3 + $0xf0] sm:$0xff]  ;;  %v3797_v36 = vsel %vm1066_vm3, %v3794_v12, %v3796_v9  ;;  %v3431_v12 = vshrl.u32 %v7210_v15, 16 }
 0x2c2   : > { %v3430_v20 = vsel %vm477_vm1, %v3425_v61, %v3429_v46  ;;  %4322 = vperm.xlu0 %6118, %v4152_v44   ;;  %v6144_v44 = vld [vmem:[%s6250_s6 + $0x84] sm:$0xff] }
 0x2c3   : > { %v7222_v24 = vadd.f32 %v3922_v27, %v3723_v26  ;;  %v3924_v22 = vpop.f32.mrf.mxu0  ;;  %v4153_v26 = vld [vmem:[%s8501_s3 + $0xf8] sm:$0xff] }
 0x2c4   : > { %4327 = vperm.xlu1 %6119, %v4153_v26  }
 0x2c6   : > { %v2995_v8 = vpop.f32.mrf.mxu2  ;;  %v3617_v57 = vpop.f32.mrf.mxu3 }
 0x2c7   : > { %v3102_v31 = vadd.f32 %v2995_v8, %v2680_v41  ;;  %v2576_v27 = vpop.f32.mrf.mxu1 }
 0x2c8   : > { %v2681_v50 = vadd.f32 %v2576_v27, %v6702_v1  ;;  %v7246_v1 = vld [vmem:[%s6250_s6 + $0x90] sm:$0xff] }
 0x2c9   : > { %v3724_v49 = vadd.f32 %v3617_v57, %v3102_v31  ;;  %v3435_v31 = vshll.u32 %v7246_v1, 16  ;;  %v4156_v57 = vld [vmem:[%s8501_s3 + $0x110] sm:$0xff] }
 0x2ca   : > { %5537 = vmatmul.msk.bf16.gmra.mxu1 %vm674_vm2, %v2446_v6  ;;  %4337 = vperm.xlu0 %6118, %v4155_v0   ;;  %v4148_v6 = vld [vmem:[%s8501_s3 + $0xd0] sm:$0xff] }
 0x2cb   : > { %v7239_v41 = vadd.f32 %v3924_v22, %v3724_v49  ;;  %v3927_v32 = vpop.f32.mrf.mxu0  ;;  %5658 = vmatmul.msk.bf16.gmra.mxu2 %vm674_vm2, %v5896_v59  ;;  %5775 = vmatmul.msk.bf16.gmra.mxu3 %vm674_vm2, %v3430_v20  ;;  %v2447_v49 = vrot.slane %v6144_v44, 1  ;;  %v3437_v15 = vrot.slane %v3435_v31, 1  ;;  %v7285_v31 = vld [vmem:[%s6250_s6 + $0x98] sm:$0xff] }
 0x2cc   : > { %4342 = vperm.xlu1 %6119, %v4156_v57   ;;  %4302 = vperm.xlu2 %6120, %v4148_v6  }
 0x2ce   : > { %5800 = vmatmul.msk.bf16.gmra.mxu0 %vm674_vm2, %v3797_v36  ;;  %v2998_v47 = vpop.f32.mrf.mxu2  ;;  %v3620_v39 = vpop.f32.mrf.mxu3  ;;  %v5897_v36 = vld [vmem:[%s6250_s6 + $0x88] sm:$0xff] }
 0x2cf   : > { %v3103_v40 = vadd.f32 %v2998_v47, %v2681_v50  ;;  %v2578_v22 = vpop.f32.mrf.mxu1  ;;  %v3798_v47 = vrot.slane %v7246_v1, 1 }
 0x2d0   : > { %v2682_v8 = vadd.f32 %v2578_v22, %v6712_v5  ;;  %v3433_v5 = vor.u32 %v3431_v12, %v3429_v46 }
 0x2d1   : > { %v3725_v61 = vadd.f32 %v3620_v39, %v3103_v40  ;;  %v4158_v39 = vld [vmem:[%s8501_s3 + $0x120] sm:$0xff] }
 0x2d2   : > { %v3438_v46 = vsel %vm477_vm1, %v3433_v5, %v3437_v15  ;;  %4352 = vperm.xlu0 %6118, %v4158_v39   ;;  %v4154_v39 = vld [vmem:[%s8501_s3 + $0x100] sm:$0xff] }
 0x2d3   : > { %v7258_v59 = vadd.f32 %v3927_v32, %v3725_v61  ;;  %v3929_v27 = vpop.f32.mrf.mxu0  ;;  %v2448_v32 = vsel %vm1066_vm3, %v2445_v19, %v2447_v49  ;;  %v4159_v61 = vld [vmem:[%s8501_s3 + $0x128] sm:$0xff]  ;;  %v3799_v19 = vsel %vm1066_vm3, %v3796_v9, %v3798_v47  ;;  %v4161_v9 = vld [vmem:[%s8501_s3 + $0x138] sm:$0xff] }
 0x2d4   : > { %4357 = vperm.xlu1 %6119, %v4159_v61  }
 0x2d6   : > { %v3000_v50 = vpop.f32.mrf.mxu2  ;;  %v3622_v26 = vpop.f32.mrf.mxu3 }
 0x2d7   : > { %v3104_v20 = vadd.f32 %v3000_v50, %v2682_v8  ;;  %v2581_v40 = vpop.f32.mrf.mxu1 }
 0x2d8   : > { %v2683_v0 = vadd.f32 %v2581_v40, %v6718_v29  ;;  %v4151_v29 = vld [vmem:[%s8501_s3 + $0xe8] sm:$0xff] }
 0x2d9   : > { %v3726_v22 = vadd.f32 %v3622_v26, %v3104_v20  ;;  %4317 = vperm.xlu2 %6120, %v4151_v29   ;;  %v3439_v20 = vshrl.u32 %v7246_v1, 16  ;;  %v3443_v26 = vshll.u32 %v7285_v31, 16  ;;  %v5898_v29 = vld [vmem:[%s6250_s6 + $0x90] sm:$0xff] }
 0x2da   : > { %5538 = vmatmul.msk.bf16.gmra.mxu1 %vm674_vm2, %v2448_v32  ;;  %4367 = vperm.xlu0 %6118, %v4161_v9  }
 0x2db   : > { %v7275_v8 = vadd.f32 %v3929_v27, %v3726_v22  ;;  %v3932_v12 = vpop.f32.mrf.mxu0  ;;  %5659 = vmatmul.msk.bf16.gmra.mxu2 %vm674_vm2, %v5897_v36  ;;  %5776 = vmatmul.msk.bf16.gmra.mxu3 %vm674_vm2, %v3438_v46  ;;  %v4162_v36 = vld [vmem:[%s8501_s3 + $0x140] sm:$0xff]  ;;  %v6145_v22 = vld [vmem:[%s6250_s6 + $0x8c] sm:$0xff]  ;;  %v3445_v1 = vrot.slane %v3443_v26, 1 }
 0x2dc   : > { %4372 = vperm.xlu1 %6119, %v4162_v36   ;;  %v7324_v26 = vld [vmem:[%s6250_s6 + $0xa0] sm:$0xff] }
 0x2de   : > { %5801 = vmatmul.msk.bf16.gmra.mxu0 %vm674_vm2, %v3799_v19  ;;  %v3003_v57 = vpop.f32.mrf.mxu2  ;;  %v3625_v6 = vpop.f32.mrf.mxu3 }
 0x2df   : > { %v3105_v27 = vadd.f32 %v3003_v57, %v2683_v0  ;;  %v2583_v44 = vpop.f32.mrf.mxu1  ;;  %v2449_v0 = vrot.slane %v6145_v22, 1  ;;  %v3800_v57 = vrot.slane %v7285_v31, 1 }
 0x2e0   : > { %v2684_v50 = vadd.f32 %v2583_v44, %v6728_v62  ;;  %v3441_v62 = vor.u32 %v3439_v20, %v3437_v15 }
 0x2e1   : > { %v3727_v5 = vadd.f32 %v3625_v6, %v3105_v27  ;;  %4332 = vperm.xlu2 %6120, %v4154_v39   ;;  %v4164_v6 = vld [vmem:[%s8501_s3 + $0x150] sm:$0xff] }
 0x2e2   : > { %v3446_v15 = vsel %vm477_vm1, %v3441_v62, %v3445_v1  ;;  %4382 = vperm.xlu0 %6118, %v4164_v6   ;;  %v4160_v6 = vld [vmem:[%s8501_s3 + $0x130] sm:$0xff] }
 0x2e3   : > { %v7297_v40 = vadd.f32 %v3932_v12, %v3727_v5  ;;  %v3934_v32 = vpop.f32.mrf.mxu0  ;;  %v2450_v12 = vsel %vm1066_vm3, %v2447_v49, %v2449_v0  ;;  %v4165_v5 = vld [vmem:[%s8501_s3 + $0x158] sm:$0xff]  ;;  %v3801_v49 = vsel %vm1066_vm3, %v3798_v47, %v3800_v57  ;;  %v4167_v47 = vld [vmem:[%s8501_s3 + $0x168] sm:$0xff] }
 0x2e4   : > { %4387 = vperm.xlu1 %6119, %v4165_v5  }
 0x2e6   : > { %v3005_v46 = vpop.f32.mrf.mxu2  ;;  %v3627_v19 = vpop.f32.mrf.mxu3 }
 0x2e7   : > { %v3106_v61 = vadd.f32 %v3005_v46, %v2684_v50  ;;  %v2586_v27 = vpop.f32.mrf.mxu1 }
 0x2e8   : > { %v2685_v9 = vadd.f32 %v2586_v27, %v6734_v16  ;;  %v4157_v16 = vld [vmem:[%s8501_s3 + $0x118] sm:$0xff] }
 0x2e9   : > { %v3728_v44 = vadd.f32 %v3627_v19, %v3106_v61  ;;  %4347 = vperm.xlu2 %6120, %v4157_v16   ;;  %v3447_v61 = vshrl.u32 %v7285_v31, 16  ;;  %v3451_v19 = vshll.u32 %v7324_v26, 16  ;;  %v5899_v16 = vld [vmem:[%s6250_s6 + $0x98] sm:$0xff] }
 0x2ea   : > { %5539 = vmatmul.msk.bf16.gmra.mxu1 %vm674_vm2, %v2450_v12  ;;  %4397 = vperm.xlu0 %6118, %v4167_v47  }
 0x2eb   : > { %v7314_v50 = vadd.f32 %v3934_v32, %v3728_v44  ;;  %v3937_v20 = vpop.f32.mrf.mxu0  ;;  %5660 = vmatmul.msk.bf16.gmra.mxu2 %vm674_vm2, %v5898_v29  ;;  %5777 = vmatmul.msk.bf16.gmra.mxu3 %vm674_vm2, %v3446_v15  ;;  %v4168_v29 = vld [vmem:[%s8501_s3 + $0x170] sm:$0xff]  ;;  %v3453_v31 = vrot.slane %v3451_v19, 1 }
 0x2ec   : > { %v6146_v44 = vld [vmem:[%s6250_s6 + $0x94] sm:$0xff]  ;;  %4402 = vperm.xlu1 %6119, %v4168_v29  }
 0x2ee   : > { %5802 = vmatmul.msk.bf16.gmra.mxu0 %vm674_vm2, %v3801_v49  ;;  %v3008_v36 = vpop.f32.mrf.mxu2  ;;  %v3630_v39 = vpop.f32.mrf.mxu3 }
 0x2ef   : > { %v3107_v32 = vadd.f32 %v3008_v36, %v2685_v9  ;;  %v2588_v22 = vpop.f32.mrf.mxu1  ;;  %v2451_v9 = vrot.slane %v6146_v44, 1  ;;  %v3802_v36 = vrot.slane %v7324_v26, 1  ;;  %v3455_v44 = vshrl.u32 %v7324_v26, 16 }
 0x2f0   : > { %v2686_v46 = vadd.f32 %v2588_v22, %v6744_v23  ;;  %v3449_v23 = vor.u32 %v3447_v61, %v3445_v1  ;;  %v7357_v61 = vld [vmem:[%s6250_s6 + $0xa8] sm:$0xff] }
 0x2f1   : > { %v3729_v62 = vadd.f32 %v3630_v39, %v3107_v32  ;;  %4362 = vperm.xlu2 %6120, %v4160_v6   ;;  %v2452_v32 = vsel %vm1066_vm3, %v2449_v0, %v2451_v9  ;;  %v4163_v0 = vld [vmem:[%s8501_s3 + $0x148] sm:$0xff]  ;;  %v3804_v26 = vrot.slane %v7357_v61, 1 }
 0x2f2   : > { %v3454_v47 = vsel %vm477_vm1, %v3449_v23, %v3453_v31  ;;  %v3459_v23 = vshll.u32 %v7357_v61, 16 }
 0x2f3   : > { %v7336_v27 = vadd.f32 %v3937_v20, %v3729_v62  ;;  %v3939_v12 = vpop.f32.mrf.mxu0 }
 0x2f6   : > { %v3010_v15 = vpop.f32.mrf.mxu2  ;;  %v3632_v49 = vpop.f32.mrf.mxu3 }
 0x2f7   : > { %v3108_v5 = vadd.f32 %v3010_v15, %v2686_v46  ;;  %v2591_v20 = vpop.f32.mrf.mxu1  ;;  %v3803_v46 = vsel %vm1066_vm3, %v3800_v57, %v3802_v36 }
 0x2f8   : > { %v2687_v22 = vadd.f32 %v2591_v20, %v6750_v18 }
 0x2f9   : > { %v3730_v39 = vadd.f32 %v3632_v49, %v3108_v5  ;;  %4377 = vperm.xlu2 %6120, %v4163_v0   ;;  %v4166_v49 = vld [vmem:[%s8501_s3 + $0x160] sm:$0xff] }
 0x2fa   : > { %5540 = vmatmul.msk.bf16.gmra.mxu1 %vm674_vm2, %v2452_v32  ;;  %v3457_v32 = vor.u32 %v3455_v44, %v3453_v31 }
 0x2fb   : > { %v7347_v62 = vadd.f32 %v3939_v12, %v3730_v39  ;;  %v3942_v1 = vpop.f32.mrf.mxu0  ;;  %5661 = vmatmul.msk.bf16.gmra.mxu2 %vm674_vm2, %v5899_v16  ;;  %5778 = vmatmul.msk.bf16.gmra.mxu3 %vm674_vm2, %v3454_v47  ;;  %v6147_v16 = vld [vmem:[%s6250_s6 + $0x9c] sm:$0xff]  ;;  %v3461_v39 = vrot.slane %v3459_v23, 1 }
 0x2fc   : > { %v2453_v20 = vrot.slane %v6147_v16, 1  ;;  %v3463_v16 = vshrl.u32 %v7357_v61, 16 }
 0x2fe   : > { %5803 = vmatmul.msk.bf16.gmra.mxu0 %vm674_vm2, %v3803_v46  ;;  %v3013_v18 = vpop.f32.mrf.mxu2  ;;  %v3635_v29 = vpop.f32.mrf.mxu3  ;;  %v5900_v46 = vld [vmem:[%s6250_s6 + $0xa0] sm:$0xff] }
 0x2ff   : > { %v3109_v19 = vadd.f32 %v3013_v18, %v2687_v22  ;;  %v2593_v12 = vpop.f32.mrf.mxu1 }
 0x300   : > { %v2688_v57 = vadd.f32 %v2593_v12, %v6760_v54 }
 0x301   : > { %v3731_v6 = vadd.f32 %v3635_v29, %v3109_v19  ;;  %4392 = vperm.xlu2 %6120, %v4166_v49   ;;  %v3462_v29 = vsel %vm477_vm1, %v3457_v32, %v3461_v39 }
 0x303   : > { %v7363_v15 = vadd.f32 %v3942_v1, %v3731_v6  ;;  %v3944_v5 = vpop.f32.mrf.mxu0  ;;  %v2454_v1 = vsel %vm1066_vm3, %v2451_v9, %v2453_v20  ;;  %v3805_v6 = vsel %vm1066_vm3, %v3802_v36, %v3804_v26  ;;  %v4169_v9 = vld [vmem:[%s8501_s3 + $0x178] sm:$0xff] }
 0x306   : > { %v3015_v22 = vpop.f32.mrf.mxu2  ;;  %v3637_v54 = vpop.f32.mrf.mxu3 }
 0x307   : > { %v3110_v47 = vadd.f32 %v3015_v22, %v2688_v57  ;;  %v2596_v0 = vpop.f32.mrf.mxu1  ;;  %v7384_v57 = vld [vmem:[%s6250_s6 + $0xb0] sm:$0xff] }
 0x308   : > { %v2689_v19 = vadd.f32 %v2596_v0, %v6766_v34  ;;  %v3467_v32 = vshll.u32 %v7384_v57, 16  ;;  %v3465_v0 = vor.u32 %v3463_v16, %v3461_v39 }
 0x309   : > { %v3732_v18 = vadd.f32 %v3637_v54, %v3110_v47  ;;  %4407 = vperm.xlu2 %6120, %v4169_v9   ;;  %v6148_v54 = vld [vmem:[%s6250_s6 + $0xa4] sm:$0xff]  ;;  %v3806_v9 = vrot.slane %v7384_v57, 1 }
 0x30a   : > { %5541 = vmatmul.msk.bf16.gmra.mxu1 %vm674_vm2, %v2454_v1  ;;  %v3469_v1 = vrot.slane %v3467_v32, 1 }
 0x30b   : > { %v7374_v12 = vadd.f32 %v3944_v5, %v3732_v18  ;;  %v3947_v31 = vpop.f32.mrf.mxu0  ;;  %5662 = vmatmul.msk.bf16.gmra.mxu2 %vm674_vm2, %v5900_v46  ;;  %5779 = vmatmul.msk.bf16.gmra.mxu3 %vm674_vm2, %v3462_v29  ;;  %v2455_v46 = vrot.slane %v6148_v54, 1  ;;  %v3807_v39 = vsel %vm1066_vm3, %v3804_v26, %v3806_v9  ;;  %v3471_v54 = vshrl.u32 %v7384_v57, 16 }
 0x30e   : > { %5804 = vmatmul.msk.bf16.gmra.mxu0 %vm674_vm2, %v3805_v6  ;;  %v3018_v34 = vpop.f32.mrf.mxu2  ;;  %v3640_v23 = vpop.f32.mrf.mxu3  ;;  %v5901_v6 = vld [vmem:[%s6250_s6 + $0xa8] sm:$0xff] }
 0x30f   : > { %v3111_v44 = vadd.f32 %v3018_v34, %v2689_v19  ;;  %v2598_v5 = vpop.f32.mrf.mxu1 }
 0x310   : > { %v2690_v36 = vadd.f32 %v2598_v5, %v6775_v28  ;;  %v2456_v28 = vsel %vm1066_vm3, %v2453_v20, %v2455_v46 }
 0x311   : > { %v3733_v49 = vadd.f32 %v3640_v23, %v3111_v44 }
 0x313   : > { %v7390_v22 = vadd.f32 %v3947_v31, %v3733_v49  ;;  %v3949_v47 = vpop.f32.mrf.mxu0  ;;  %v3470_v31 = vsel %vm477_vm1, %v3465_v0, %v3469_v1  ;;  %v7405_v49 = vld [vmem:[%s6250_s6 + $0xb8] sm:$0xff] }
 0x314   : > { %v3475_v0 = vshll.u32 %v7405_v49, 16 }
 0x316   : > { %v3020_v18 = vpop.f32.mrf.mxu2  ;;  %v3642_v29 = vpop.f32.mrf.mxu3 }
 0x317   : > { %v3112_v19 = vadd.f32 %v3020_v18, %v2690_v36  ;;  %v2601_v34 = vpop.f32.mrf.mxu1 }
 0x318   : > { %v2691_v44 = vadd.f32 %v2601_v34, %v6781_v38  ;;  %v3477_v34 = vrot.slane %v3475_v0, 1 }
 0x319   : > { %v3734_v61 = vadd.f32 %v3642_v29, %v3112_v19  ;;  %v6149_v19 = vld [vmem:[%s6250_s6 + $0xac] sm:$0xff] }
 0x31a   : > { %5542 = vmatmul.msk.bf16.gmra.mxu1 %vm674_vm2, %v2456_v28  ;;  %v2457_v29 = vrot.slane %v6149_v19, 1  ;;  %v3479_v19 = vshrl.u32 %v7405_v49, 16 }
 0x31b   : > { %v7398_v23 = vadd.f32 %v3949_v47, %v3734_v61  ;;  %v3952_v5 = vpop.f32.mrf.mxu0  ;;  %5663 = vmatmul.msk.bf16.gmra.mxu2 %vm674_vm2, %v5901_v6  ;;  %5780 = vmatmul.msk.bf16.gmra.mxu3 %vm674_vm2, %v3470_v31  ;;  %v3473_v6 = vor.u32 %v3471_v54, %v3469_v1  ;;  %v5902_v31 = vld [vmem:[%s6250_s6 + $0xb0] sm:$0xff] }
 0x31e   : > { %5805 = vmatmul.msk.bf16.gmra.mxu0 %vm674_vm2, %v3807_v39  ;;  %v3023_v20 = vpop.f32.mrf.mxu2  ;;  %v3645_v36 = vpop.f32.mrf.mxu3  ;;  %v3808_v39 = vrot.slane %v7405_v49, 1 }
 0x31f   : > { %v3113_v38 = vadd.f32 %v3023_v20, %v2691_v44  ;;  %v2603_v16 = vpop.f32.mrf.mxu1 }
 0x320   : > { %v2692_v47 = vadd.f32 %v2603_v16, %v6790_v56  ;;  %v2458_v56 = vsel %vm1066_vm3, %v2455_v46, %v2457_v29  ;;  %v3809_v1 = vsel %vm1066_vm3, %v3806_v9, %v3808_v39 }
 0x321   : > { %v3735_v32 = vadd.f32 %v3645_v36, %v3113_v38 }
 0x323   : > { %v7411_v18 = vadd.f32 %v3952_v5, %v3735_v32  ;;  %v3954_v26 = vpop.f32.mrf.mxu0  ;;  %v3478_v5 = vsel %vm477_vm1, %v3473_v6, %v3477_v34  ;;  %v7426_v32 = vld [vmem:[%s6250_s6 + $0xc0] sm:$0xff] }
 0x324   : > { %v3483_v6 = vshll.u32 %v7426_v32, 16 }
 0x326   : > { %v3025_v28 = vpop.f32.mrf.mxu2  ;;  %v3647_v44 = vpop.f32.mrf.mxu3 }
 0x327   : > { %v3114_v61 = vadd.f32 %v3025_v28, %v2692_v47  ;;  %v2606_v20 = vpop.f32.mrf.mxu1 }
 0x328   : > { %v2693_v38 = vadd.f32 %v2606_v20, %v6796_v55  ;;  %v3485_v20 = vrot.slane %v3483_v6, 1 }
 0x329   : > { %v3736_v57 = vadd.f32 %v3647_v44, %v3114_v61  ;;  %v6150_v61 = vld [vmem:[%s6250_s6 + $0xb4] sm:$0xff] }
 0x32a   : > { %5543 = vmatmul.msk.bf16.gmra.mxu1 %vm674_vm2, %v2458_v56  ;;  %v2459_v44 = vrot.slane %v6150_v61, 1  ;;  %v3487_v61 = vshrl.u32 %v7426_v32, 16 }
 0x32b   : > { %v7419_v36 = vadd.f32 %v3954_v26, %v3736_v57  ;;  %v3957_v16 = vpop.f32.mrf.mxu0  ;;  %5664 = vmatmul.msk.bf16.gmra.mxu2 %vm674_vm2, %v5902_v31  ;;  %5781 = vmatmul.msk.bf16.gmra.mxu3 %vm674_vm2, %v3478_v5  ;;  %v3481_v31 = vor.u32 %v3479_v19, %v3477_v34  ;;  %v5903_v5 = vld [vmem:[%s6250_s6 + $0xb8] sm:$0xff] }
 0x32e   : > { %5806 = vmatmul.msk.bf16.gmra.mxu0 %vm674_vm2, %v3809_v1  ;;  %v3028_v46 = vpop.f32.mrf.mxu2  ;;  %v3650_v47 = vpop.f32.mrf.mxu3  ;;  %v3810_v1 = vrot.slane %v7426_v32, 1 }
 0x32f   : > { %v3115_v55 = vadd.f32 %v3028_v46, %v2693_v38  ;;  %v2608_v54 = vpop.f32.mrf.mxu1 }
 0x330   : > { %v2694_v26 = vadd.f32 %v2608_v54, %v6805_v10  ;;  %v2460_v10 = vsel %vm1066_vm3, %v2457_v29, %v2459_v44  ;;  %v3811_v34 = vsel %vm1066_vm3, %v3808_v39, %v3810_v1 }
 0x331   : > { %v3737_v0 = vadd.f32 %v3650_v47, %v3115_v55 }
 0x333   : > { %v7432_v28 = vadd.f32 %v3957_v16, %v3737_v0  ;;  %v3959_v9 = vpop.f32.mrf.mxu0  ;;  %v3486_v16 = vsel %vm477_vm1, %v3481_v31, %v3485_v20  ;;  %v7447_v0 = vld [vmem:[%s6250_s6 + $0xc8] sm:$0xff] }
 0x334   : > { %v3491_v31 = vshll.u32 %v7447_v0, 16 }
 0x336   : > { %v3030_v56 = vpop.f32.mrf.mxu2  ;;  %v3652_v38 = vpop.f32.mrf.mxu3 }
 0x337   : > { %v3116_v57 = vadd.f32 %v3030_v56, %v2694_v26  ;;  %v2611_v46 = vpop.f32.mrf.mxu1 }
 0x338   : > { %v2695_v55 = vadd.f32 %v2611_v46, %v6811_v17  ;;  %v3493_v46 = vrot.slane %v3491_v31, 1 }
 0x339   : > { %v3738_v49 = vadd.f32 %v3652_v38, %v3116_v57  ;;  %v6151_v57 = vld [vmem:[%s6250_s6 + $0xbc] sm:$0xff] }
 0x33a   : > { %5544 = vmatmul.msk.bf16.gmra.mxu1 %vm674_vm2, %v2460_v10  ;;  %v2461_v38 = vrot.slane %v6151_v57, 1  ;;  %v3495_v57 = vshrl.u32 %v7447_v0, 16 }
 0x33b   : > { %v7440_v47 = vadd.f32 %v3959_v9, %v3738_v49  ;;  %v3962_v54 = vpop.f32.mrf.mxu0  ;;  %5665 = vmatmul.msk.bf16.gmra.mxu2 %vm674_vm2, %v5903_v5  ;;  %5782 = vmatmul.msk.bf16.gmra.mxu3 %vm674_vm2, %v3486_v16  ;;  %v3489_v5 = vor.u32 %v3487_v61, %v3485_v20  ;;  %v5904_v16 = vld [vmem:[%s6250_s6 + $0xc0] sm:$0xff] }
 0x33e   : > { %5807 = vmatmul.msk.bf16.gmra.mxu0 %vm674_vm2, %v3811_v34  ;;  %v3033_v29 = vpop.f32.mrf.mxu2  ;;  %v3655_v26 = vpop.f32.mrf.mxu3  ;;  %v3812_v34 = vrot.slane %v7447_v0, 1 }
 0x33f   : > { %v3117_v17 = vadd.f32 %v3033_v29, %v2695_v55  ;;  %v2613_v19 = vpop.f32.mrf.mxu1 }
 0x340   : > { %v2696_v9 = vadd.f32 %v2613_v19, %v6820_v14  ;;  %v2462_v14 = vsel %vm1066_vm3, %v2459_v44, %v2461_v38  ;;  %v3813_v20 = vsel %vm1066_vm3, %v3810_v1, %v3812_v34 }
 0x341   : > { %v3739_v6 = vadd.f32 %v3655_v26, %v3117_v17 }
 0x343   : > { %v7453_v56 = vadd.f32 %v3962_v54, %v3739_v6  ;;  %v3964_v39 = vpop.f32.mrf.mxu0  ;;  %v3494_v54 = vsel %vm477_vm1, %v3489_v5, %v3493_v46  ;;  %v7468_v6 = vld [vmem:[%s6250_s6 + $0xd0] sm:$0xff] }
 0x344   : > { %v3499_v5 = vshll.u32 %v7468_v6, 16 }
 0x346   : > { %v3035_v10 = vpop.f32.mrf.mxu2  ;;  %v3657_v55 = vpop.f32.mrf.mxu3 }
 0x347   : > { %v3118_v49 = vadd.f32 %v3035_v10, %v2696_v9  ;;  %v2616_v29 = vpop.f32.mrf.mxu1 }
 0x348   : > { %v2697_v17 = vadd.f32 %v2616_v29, %v6826_v35  ;;  %v3501_v29 = vrot.slane %v3499_v5, 1 }
 0x349   : > { %v3740_v32 = vadd.f32 %v3657_v55, %v3118_v49  ;;  %v6152_v49 = vld [vmem:[%s6250_s6 + $0xc4] sm:$0xff] }
 0x34a   : > { %5545 = vmatmul.msk.bf16.gmra.mxu1 %vm674_vm2, %v2462_v14  ;;  %v2463_v55 = vrot.slane %v6152_v49, 1 }
 0x34b   : > { %v7461_v26 = vadd.f32 %v3964_v39, %v3740_v32  ;;  %v3967_v19 = vpop.f32.mrf.mxu0  ;;  %5666 = vmatmul.msk.bf16.gmra.mxu2 %vm674_vm2, %v5904_v16  ;;  %5783 = vmatmul.msk.bf16.gmra.mxu3 %vm674_vm2, %v3494_v54  ;;  %v3497_v16 = vor.u32 %v3495_v57, %v3493_v46  ;;  %v3189_v32 = vld [vmem:[%s6250_s6 + $0xd8] sm:$0x1] }
 0x34e   : > { %5808 = vmatmul.msk.bf16.gmra.mxu0 %vm674_vm2, %v3813_v20  ;;  %v3038_v35 = vpop.f32.mrf.mxu2  ;;  %v3660_v9 = vpop.f32.mrf.mxu3  ;;  %v5905_v20 = vld [vmem:[%s6250_s6 + $0xc8] sm:$0xff] }
 0x34f   : > { %v3119_v44 = vadd.f32 %v3038_v35, %v2697_v17  ;;  %v2618_v61 = vpop.f32.mrf.mxu1  ;;  %v3814_v35 = vrot.slane %v7468_v6, 1 }
 0x350   : > { %v2698_v39 = vadd.f32 %v2618_v61, %v6836_v30  ;;  %v2464_v30 = vsel %vm1066_vm3, %v2461_v38, %v2463_v55  ;;  %v3289_v61 = vunpack.c.l.b16 %v3189_v32 }
 0x351   : > { %v3741_v31 = vadd.f32 %v3660_v9, %v3119_v44 }
 0x352   : > { %v3314_v57 = vpack.c.b16 %v3289_v61, %v3289_v61 }
 0x353   : > { %v7474_v1 = vadd.f32 %v3967_v19, %v3741_v31  ;;  %v3969_v10 = vpop.f32.mrf.mxu0  ;;  %v3502_v19 = vsel %vm477_vm1, %v3497_v16, %v3501_v29 }
 0x354   : > { %v3507_v32 = vshll.u32 %v3314_v57, 16 }
 0x356   : > { %v3040_v14 = vpop.f32.mrf.mxu2  ;;  %v3662_v54 = vpop.f32.mrf.mxu3 }
 0x357   : > { %v3120_v17 = vadd.f32 %v3040_v14, %v2698_v39  ;;  %v2621_v44 = vpop.f32.mrf.mxu1  ;;  %v3815_v39 = vsel %vm1066_vm3, %v3812_v34, %v3814_v35  ;;  %v3503_v14 = vshrl.u32 %v7468_v6, 16 }
 0x358   : > { %v2699_v9 = vadd.f32 %v2621_v44, %v6844_v48  ;;  %v2465_v44 = vrot.slane %v6841_v13, 1 }
 0x359   : > { %v3742_v0 = vadd.f32 %v3662_v54, %v3120_v17  ;;  %v7492_v17 = vpop.permute.xlu0 %4172  ;;  %v7494_v54 = vpop.permute.xlu1 %4182 }
 0x35a   : > { %5546 = vmatmul.msk.bf16.gmra.mxu1 %vm674_vm2, %v2464_v30  ;;  %v3505_v30 = vor.u32 %v3503_v14, %v3501_v29 }
 0x35b   : > { %v7483_v31 = vadd.f32 %v3969_v10, %v3742_v0  ;;  %v3972_v46 = vpop.f32.mrf.mxu0  ;;  %5667 = vmatmul.msk.bf16.gmra.mxu2 %vm674_vm2, %v5905_v20  ;;  %5784 = vmatmul.msk.bf16.gmra.mxu3 %vm674_vm2, %v3502_v19  ;;  %v3509_v0 = vrot.slane %v3507_v32, 1  ;;  %v7499_v19 = vpop.permute.xlu2 %4192 }
 0x35e   : > { %5809 = vmatmul.msk.bf16.gmra.mxu0 %vm674_vm2, %v3815_v39  ;;  %v3043_v38 = vpop.f32.mrf.mxu2  ;;  %v3665_v48 = vpop.f32.mrf.mxu3 }
 0x35f   : > { %v3121_v5 = vadd.f32 %v3043_v38, %v2699_v9  ;;  %v2623_v49 = vpop.f32.mrf.mxu1  ;;  %v3816_v38 = vrot.slane %v3314_v57, 1 }
 0x360   : > { %v2700_v10 = vadd.f32 %v2623_v49, %v6855_v53  ;;  %v5906_v53 = vld [vmem:[%s6250_s6 + $0xd0] sm:$0xff] }
 0x361   : > { %v3743_v16 = vadd.f32 %v3665_v48, %v3121_v5  ;;  %v2466_v5 = vsel %vm1066_vm3, %v2463_v55, %v2465_v44  ;;  %v3817_v29 = vsel %vm1066_vm3, %v3814_v35, %v3816_v38  ;;  %v4188_v14 = vpop.permute.xlu1 %4187 }
 0x363   : > { %v7496_v34 = vadd.f32 %v3972_v46, %v3743_v16  ;;  %v3974_v20 = vpop.f32.mrf.mxu0  ;;  %v3510_v46 = vsel %vm477_vm1, %v3505_v30, %v3509_v0  ;;  %v7512_v44 = vpop.permute.xlu2 %4197 }
 0x366   : > { %v3045_v9 = vpop.f32.mrf.mxu2  ;;  %v3667_v39 = vpop.f32.mrf.mxu3 }
 0x367   : > { %v3122_v61 = vadd.f32 %v3045_v9, %v2700_v10  ;;  %v2626_v6 = vpop.f32.mrf.mxu1  ;;  %v4178_v10 = vpop.permute.xlu0 %4177 }
 0x368   : > { %v2701_v49 = vadd.f32 %v2626_v6, %v6870_v43 }
 0x369   : > { %v3744_v48 = vadd.f32 %v3667_v39, %v3122_v61  ;;  %v7519_v35 = vpop.permute.xlu1 %4207 }
 0x36a   : > { %5547 = vmatmul.msk.bf16.gmra.mxu1 %vm674_vm2, %v2466_v5 }
 0x36b   : > { %v7505_v16 = vadd.f32 %v3974_v20, %v3744_v48  ;;  %v3977_v13 = vpop.f32.mrf.mxu0  ;;  %5668 = vmatmul.msk.bf16.gmra.mxu2 %vm674_vm2, %v5906_v53  ;;  %5785 = vmatmul.msk.bf16.gmra.mxu3 %vm674_vm2, %v3510_v46  ;;  %v7521_v5 = vpop.permute.xlu2 %4212 }
 0x36e   : > { %5810 = vmatmul.msk.bf16.gmra.mxu0 %vm674_vm2, %v3817_v29  ;;  %v3048_v55 = vpop.f32.mrf.mxu2  ;;  %v3670_v43 = vpop.f32.mrf.mxu3 }
 0x36f   : > { %v3123_v57 = vadd.f32 %v3048_v55, %v2701_v49  ;;  %v2628_v32 = vpop.f32.mrf.mxu1  ;;  %v7517_v61 = vpop.permute.xlu0 %4202 }
 0x370   : > { %v2702_v30 = vadd.f32 %v2628_v32, %v6881_v51 }
 0x371   : > { %v3745_v20 = vadd.f32 %v3670_v43, %v3123_v57 }
 0x373   : > { %v7515_v0 = vadd.f32 %v3977_v13, %v3745_v20  ;;  %v3979_v9 = vpop.f32.mrf.mxu0  ;;  %v7528_v13 = vpop.permute.xlu1 %4222 }
 0x374   : > { %v7530_v20 = vpop.permute.xlu2 %4227 }
 0x375   : > { %8586 = vst [vmem:[#allocation8_spill] sm:$0xff] %v7515_v0 }
 0x376   : > { %v3050_v39 = vpop.f32.mrf.mxu2  ;;  %v3672_v38 = vpop.f32.mrf.mxu3 }
 0x377   : > { %v3124_v53 = vadd.f32 %v3050_v39, %v2702_v30  ;;  %v2631_v6 = vpop.f32.mrf.mxu1  ;;  %v7526_v51 = vpop.permute.xlu0 %4217 }
 0x378   : > { %v2703_v49 = vadd.f32 %v2631_v6, %v6897_v2  ;;  %v7538_v2 = vld [vmem:[%s8500_s2] ss:$0 sm:$0xff] }
 0x379   : > { %v3746_v48 = vadd.f32 %v3672_v38, %v3124_v53  ;;  %v7546_v6 = vadd.f32 %v7538_v2, %v7119_v45 }
 0x37b   : > { %v7524_v46 = vadd.f32 %v3979_v9, %v3746_v48  ;;  %v3982_v29 = vpop.f32.mrf.mxu0  ;;  %v7542_v38 = vpop.permute.xlu1 %4237  ;;  %8589 = vst [vmem:[#allocation14_spill] sm:$0xff] %v7546_v6  ;;  %v4411_v45 = vmul.f32 %v4178_v10, %v7546_v6 }
 0x37d   : > { %8587 = vst [vmem:[#allocation10_spill] sm:$0xff] %v7524_v46 }
 0x37e   : > { %v3053_v55 = vpop.f32.mrf.mxu2  ;;  %v3675_v43 = vpop.f32.mrf.mxu3 }
 0x37f   : > { %v3125_v57 = vadd.f32 %v3053_v55, %v2703_v49  ;;  %v2633_v32 = vpop.f32.mrf.mxu1  ;;  %v7540_v9 = vpop.permute.xlu0 %4232 }
 0x380   : > { %v2704_v39 = vadd.f32 %v2633_v32, %v6908_v4  ;;  %v7550_v4 = vadd.f32 %v7538_v2, %v7108_v37 }
 0x381   : > { %v3747_v30 = vadd.f32 %v3675_v43, %v3125_v57  ;;  %v7556_v43 = vpop.permute.xlu2 %4242 }
 0x382   : > { %8590 = vst [vmem:[#allocation16_spill] sm:$0xff] %v7550_v4  ;;  %v4410_v7 = vmul.f32 %v7492_v17, %v7550_v4 }
 0x383   : > { %v7533_v52 = vadd.f32 %v3982_v29, %v3747_v30  ;;  %v3984_v53 = vpop.f32.mrf.mxu0  ;;  %v7554_v29 = vadd.f32 %v7538_v2, %v7135_v21  ;;  %v7576_v10 = vpop.permute.xlu1 %4252 }
 0x384   : > { %v4511_v6 = vmul.f32 %v4410_v7, %v4410_v7 }
 0x385   : > { %8588 = vst [vmem:[#allocation12_spill] sm:$0xff] %v7533_v52  ;;  %v4412_v21 = vmul.f32 %v7494_v54, %v7554_v29 }
 0x386   : > { %v3055_v48 = vpop.f32.mrf.mxu2  ;;  %v3677_v55 = vpop.f32.mrf.mxu3  ;;  %8591 = vst [vmem:[#allocation18_spill] sm:$0xff] %v7554_v29  ;;  %v7587_v29 = vadd.f32 %v7538_v2, %v7189_v33 }
 0x387   : > { %v3126_v49 = vadd.f32 %v3055_v48, %v2704_v39  ;;  %v2636_v57 = vpop.f32.mrf.mxu1  ;;  %v7562_v39 = vadd.f32 %v7538_v2, %v7146_v11  ;;  %v4513_v54 = vmul.f32 %v4412_v21, %v4412_v21 }
 0x388   : > { %v2705_v30 = vadd.f32 %v2636_v57, %v6921_v60  ;;  %v7574_v60 = vpop.permute.xlu0 %4247 }
 0x389   : > { %v3748_v32 = vadd.f32 %v3677_v55, %v3126_v49  ;;  %8592 = vst [vmem:[#allocation19_spill] sm:$0xff] %v7562_v39  ;;  %v7572_v49 = vadd.f32 %v7538_v2, %v7162_v42  ;;  %v4512_v55 = vmul.f32 %v4411_v45, %v4411_v45  ;;  %v4413_v11 = vmul.f32 %v4188_v14, %v7562_v39  ;;  %v7589_v52 = vpop.permute.xlu2 %4257 }
 0x38b   : > { %v7564_v48 = vadd.f32 %v3984_v53, %v3748_v32  ;;  %v3987_v37 = vpop.f32.mrf.mxu0  ;;  %8594 = vst [vmem:[#allocation21_spill] sm:$0xff] %v7572_v49  ;;  %v7581_v53 = vadd.f32 %v7538_v2, %v7173_v3  ;;  %v4414_v42 = vmul.f32 %v7499_v19, %v7572_v49  ;;  %v4559_v39 = vadd.f32 %v4512_v55, %v4511_v6 }
 0x38c   : > { %v4514_v46 = vmul.f32 %v4413_v11, %v4413_v11 }
 0x38d   : > { %8593 = vst [vmem:[#allocation20_spill] sm:$0xff] %v7564_v48  ;;  %v4458_v48 = vadd.f32 %v4411_v45, %v4410_v7  ;;  %v4560_v0 = vadd.f32 %v4559_v39, %v4513_v54  ;;  %v4515_v7 = vmul.f32 %v4414_v42, %v4414_v42  ;;  %v4416_v45 = vmul.f32 %v7517_v61, %v7587_v29 }
 0x38e   : > { %v3058_v57 = vpop.f32.mrf.mxu2  ;;  %v3680_v32 = vpop.f32.mrf.mxu3  ;;  %v7614_v39 = vadd.f32 %v7538_v2, %v7239_v41 }
 0x38f   : > { %v3127_v17 = vadd.f32 %v3058_v57, %v2705_v30  ;;  %v2638_v4 = vpop.f32.mrf.mxu1  ;;  %v4415_v30 = vmul.f32 %v7512_v44, %v7581_v53  ;;  %v7596_v57 = vadd.f32 %v7538_v2, %v7203_v63  ;;  %v4459_v19 = vadd.f32 %v4458_v48, %v4412_v21  ;;  %v7608_v44 = vpop.permute.xlu1 %4267 }
 0x390   : > { %v2706_v3 = vadd.f32 %v2638_v4, %v6932_v58  ;;  %v7604_v58 = vadd.f32 %v7538_v2, %v7222_v24  ;;  %v7606_v6 = vpop.permute.xlu0 %4262  ;;  %v4561_v63 = vadd.f32 %v4560_v0, %v4514_v46  ;;  %v7620_v0 = vadd.f32 %v7538_v2, %v7258_v59 }
 0x391   : > { %v3749_v14 = vadd.f32 %v3680_v32, %v3127_v17  ;;  %v4460_v4 = vadd.f32 %v4459_v19, %v4413_v11  ;;  %v4516_v55 = vmul.f32 %v4415_v30, %v4415_v30  ;;  %v4417_v48 = vmul.f32 %v7519_v35, %v7596_v57  ;;  %v7622_v46 = vpop.permute.xlu2 %4272 }
 0x392   : > { %8595 = vst [vmem:[#allocation22_spill] sm:$0xff] %v7604_v58  ;;  %v4562_v24 = vadd.f32 %v4561_v63, %v4515_v7  ;;  %v4517_v32 = vmul.f32 %v4416_v45, %v4416_v45  ;;  %v4418_v54 = vmul.f32 %v7521_v5, %v7604_v58  ;;  %v7629_v7 = vadd.f32 %v7538_v2, %v7275_v8 }
 0x393   : > { %v7598_v49 = vadd.f32 %v3987_v37, %v3749_v14  ;;  %v3989_v33 = vpop.f32.mrf.mxu0  ;;  %v4461_v17 = vadd.f32 %v4460_v4, %v4414_v42  ;;  %v4419_v42 = vmul.f32 %v7526_v51, %v7614_v39  ;;  %v7641_v51 = vadd.f32 %v7538_v2, %v7297_v40 }
 0x394   : > { %v4563_v19 = vadd.f32 %v4562_v24, %v4516_v55 }
 0x395   : > { %v4462_v11 = vadd.f32 %v4461_v17, %v4415_v30  ;;  %v4520_v55 = vmul.f32 %v4419_v42, %v4419_v42  ;;  %v4422_v40 = vmul.f32 %v7540_v9, %v7641_v51 }
 0x396   : > { %v3060_v37 = vpop.f32.mrf.mxu2  ;;  %v3682_v21 = vpop.f32.mrf.mxu3  ;;  %v4564_v63 = vadd.f32 %v4563_v19, %v4517_v32 }
 0x397   : > { %v3128_v61 = vadd.f32 %v3060_v37, %v2706_v3  ;;  %v2641_v14 = vpop.f32.mrf.mxu1  ;;  %v4518_v3 = vmul.f32 %v4417_v48, %v4417_v48  ;;  %v4463_v59 = vadd.f32 %v4462_v11, %v4416_v45  ;;  %v4519_v37 = vmul.f32 %v4418_v54, %v4418_v54 }
 0x398   : > { %v2707_v41 = vadd.f32 %v2641_v14, %v6945_v25  ;;  %v7633_v58 = vpop.permute.xlu0 %4277  ;;  %v4420_v25 = vmul.f32 %v7528_v13, %v7620_v0  ;;  %v4421_v45 = vmul.f32 %v7530_v20, %v7629_v7 }
 0x399   : > { %v3750_v35 = vadd.f32 %v3682_v21, %v3128_v61  ;;  %v7635_v61 = vpop.permute.xlu1 %4282  ;;  %v4464_v30 = vadd.f32 %v4463_v59, %v4417_v48  ;;  %v4565_v8 = vadd.f32 %v4564_v63, %v4518_v3  ;;  %v7647_v21 = vadd.f32 %v7538_v2, %v7314_v50  ;;  %v7657_v11 = vpop.permute.xlu2 %4287 }
 0x39a   : > { %v7655_v48 = vadd.f32 %v7538_v2, %v7336_v27  ;;  %v4522_v3 = vmul.f32 %v4421_v45, %v4421_v45 }
 0x39b   : > { %v7631_v5 = vadd.f32 %v3989_v33, %v3750_v35  ;;  %v3992_v4 = vpop.f32.mrf.mxu0  ;;  %v4465_v32 = vadd.f32 %v4464_v30, %v4418_v54  ;;  %v4566_v14 = vadd.f32 %v4565_v8, %v4519_v37  ;;  %v4521_v35 = vmul.f32 %v4420_v25, %v4420_v25 }
 0x39c   : > { %v4423_v54 = vmul.f32 %v7542_v38, %v7647_v21  ;;  %v4424_v8 = vmul.f32 %v7556_v43, %v7655_v48  ;;  %v7677_v38 = vadd.f32 %v7538_v2, %v7363_v15 }
 0x39d   : > { %v4466_v19 = vadd.f32 %v4465_v32, %v4419_v42  ;;  %v4567_v50 = vadd.f32 %v4566_v14, %v4520_v55  ;;  %v4523_v42 = vmul.f32 %v4422_v40, %v4422_v40 }
 0x39e   : > { %v3063_v33 = vpop.f32.mrf.mxu2  ;;  %v3685_v24 = vpop.f32.mrf.mxu3  ;;  %v4525_v15 = vmul.f32 %v4424_v8, %v4424_v8 }
 0x39f   : > { %v3129_v17 = vadd.f32 %v3063_v33, %v2707_v41  ;;  %v7649_v13 = vpop.f32.mrf.mxu1  ;;  %v7663_v41 = vadd.f32 %v7538_v2, %v7347_v62  ;;  %v4467_v63 = vadd.f32 %v4466_v19, %v4420_v25  ;;  %v4568_v30 = vadd.f32 %v4567_v50, %v4521_v35 }
 0x3a0   : > { %v7669_v27 = vpop.permute.xlu0 %4292  ;;  %v4524_v33 = vmul.f32 %v4423_v54, %v4423_v54  ;;  %v7695_v35 = vadd.f32 %v7538_v2, %v7390_v22 }
 0x3a1   : > { %v3751_v20 = vadd.f32 %v3685_v24, %v3129_v17  ;;  %v7671_v37 = vpop.permute.xlu1 %4297  ;;  %v4468_v62 = vadd.f32 %v4467_v63, %v4421_v45  ;;  %v4425_v25 = vmul.f32 %v7574_v60, %v7663_v41  ;;  %v7685_v17 = vadd.f32 %v7538_v2, %v7374_v12 }
 0x3a2   : > { %v4426_v45 = vmul.f32 %v7576_v10, %v7677_v38  ;;  %v4428_v22 = vmul.f32 %v7606_v6, %v7695_v35 }
 0x3a3   : > { %v7665_v59 = vadd.f32 %v3992_v4, %v3751_v20  ;;  %v7667_v9 = vpop.f32.mrf.mxu0  ;;  %v4569_v4 = vadd.f32 %v4568_v30, %v4522_v3  ;;  %v4469_v32 = vadd.f32 %v4468_v62, %v4422_v40  ;;  %v7697_v20 = vpop.permute.xlu2 %4302  ;;  %v4526_v12 = vmul.f32 %v4425_v25, %v4425_v25 }
 0x3a4   : > { %v4427_v50 = vmul.f32 %v7589_v52, %v7685_v17  ;;  %v7703_v40 = vadd.f32 %v7538_v2, %v7398_v23 }
 0x3a5   : > { %v4570_v14 = vadd.f32 %v4569_v4, %v4523_v42  ;;  %v4470_v60 = vadd.f32 %v4469_v32, %v4423_v54  ;;  %v4527_v42 = vmul.f32 %v4426_v45, %v4426_v45  ;;  %v7711_v54 = vadd.f32 %v7538_v2, %v7411_v18 }
 0x3a6   : > { %v7679_v55 = vpop.f32.mrf.mxu2  ;;  %v7687_v24 = vpop.f32.mrf.mxu3  ;;  %v7721_v32 = vadd.f32 %v7538_v2, %v7419_v36 }
 0x3a7   : > { %v7689_v43 = vpop.f32.mrf.mxu1  ;;  %v4571_v19 = vadd.f32 %v4570_v14, %v4524_v33  ;;  %v4471_v63 = vadd.f32 %v4470_v60, %v4424_v8  ;;  %8596 = vst [vmem:[#allocation23_spill] sm:$0xff] %v7711_v54  ;;  %v4528_v33 = vmul.f32 %v4427_v50, %v4427_v50  ;;  %v4429_v8 = vmul.f32 %v7608_v44, %v7703_v40 }
 0x3a8   : > { %v4308_v10 = vpop.permute.xlu0 %4307  ;;  %8597 = vst [vmem:[#allocation24_spill] sm:$0xff] %v7721_v32  ;;  %v4430_v60 = vmul.f32 %v7622_v46, %v7711_v54  ;;  %v4431_v36 = vmul.f32 %v7633_v58, %v7721_v32 }
 0x3a9   : > { %v4572_v30 = vadd.f32 %v4571_v19, %v4525_v15  ;;  %v4472_v62 = vadd.f32 %v4471_v63, %v4425_v25  ;;  %v7713_v4 = vpop.permute.xlu1 %4312  ;;  %v4529_v25 = vmul.f32 %v4428_v22, %v4428_v22  ;;  %v7731_v19 = vadd.f32 %v7538_v2, %v7432_v28 }
 0x3aa   : > { %v4530_v63 = vmul.f32 %v4429_v8, %v4429_v8  ;;  %v4531_v46 = vmul.f32 %v4430_v60, %v4430_v60 }
 0x3ab   : > { %v7705_v3 = vpop.f32.mrf.mxu0  ;;  %v4573_v23 = vadd.f32 %v4572_v30, %v4526_v12  ;;  %v4473_v6 = vadd.f32 %v4472_v62, %v4426_v45  ;;  %8598 = vst [vmem:[#allocation25_spill] sm:$0xff] %v7731_v19  ;;  %v7737_v45 = vadd.f32 %v7538_v2, %v7440_v47  ;;  %v4318_v30 = vpop.permute.xlu2 %4317  ;;  %v4432_v28 = vmul.f32 %v7635_v61, %v7731_v19 }
 0x3ac   : > { %v4532_v47 = vmul.f32 %v4431_v36, %v4431_v36 }
 0x3ad   : > { %v4574_v18 = vadd.f32 %v4573_v23, %v4527_v42  ;;  %v4474_v12 = vadd.f32 %v4473_v6, %v4427_v50  ;;  %8599 = vst [vmem:[#allocation26_spill] sm:$0xff] %v7737_v45  ;;  %v7745_v50 = vadd.f32 %v7538_v2, %v7453_v56  ;;  %v4433_v32 = vmul.f32 %v7657_v11, %v7737_v45 }
 0x3ae   : > { %v7715_v52 = vpop.f32.mrf.mxu2  ;;  %v7723_v14 = vpop.f32.mrf.mxu3  ;;  %v4533_v19 = vmul.f32 %v4432_v28, %v4432_v28 }
 0x3af   : > { %v7725_v15 = vpop.f32.mrf.mxu1  ;;  %v4575_v44 = vadd.f32 %v4574_v18, %v4528_v33  ;;  %v4475_v62 = vadd.f32 %v4474_v12, %v4428_v22  ;;  %8600 = vst [vmem:[#allocation27_spill] sm:$0xff] %v7745_v50  ;;  %v7753_v22 = vadd.f32 %v7538_v2, %v7461_v26 }
 0x3b0   : > { %v4323_v6 = vpop.permute.xlu0 %4322 }
 0x3b1   : > { %v4576_v23 = vadd.f32 %v4575_v44, %v4529_v25  ;;  %v4476_v33 = vadd.f32 %v4475_v62, %v4429_v8  ;;  %8601 = vst [vmem:[#allocation28_spill] sm:$0xff] %v7753_v22  ;;  %v4328_v12 = vpop.permute.xlu1 %4327  ;;  %v4434_v8 = vmul.f32 %v7669_v27, %v7745_v50  ;;  %v4435_v26 = vmul.f32 %v7671_v37, %v7753_v22 }
 0x3b2   : > { %v7780_v22 = vadd.f32 %v7538_v2, %v7505_v16 }
 0x3b3   : > { %v7739_v42 = vpop.f32.mrf.mxu0  ;;  %v4577_v18 = vadd.f32 %v4576_v23, %v4530_v63  ;;  %v4477_v61 = vadd.f32 %v4476_v33, %v4430_v60  ;;  %v7761_v63 = vadd.f32 %v7538_v2, %v7474_v1  ;;  %v4534_v23 = vmul.f32 %v4433_v32, %v4433_v32  ;;  %v4333_v1 = vpop.permute.xlu2 %4332 }
 0x3b4   : > { %v7767_v60 = vadd.f32 %v7538_v2, %v7483_v31  ;;  %v4535_v45 = vmul.f32 %v4434_v8, %v4434_v8  ;;  %8605 = vst [vmem:[#allocation32_spill] sm:$0xff] %v7780_v22 }
 0x3b5   : > { %v4578_v56 = vadd.f32 %v4577_v18, %v4531_v46  ;;  %8602 = vst [vmem:[#allocation29_spill] sm:$0xff] %v7761_v63  ;;  %v4478_v62 = vadd.f32 %v4477_v61, %v4431_v36  ;;  %v4436_v27 = vmul.f32 %v7697_v20, %v7761_v63  ;;  %v7775_v36 = vadd.f32 %v7538_v2, %v7496_v34 }
 0x3b6   : > { %v7747_v58 = vpop.f32.mrf.mxu2  ;;  %v7755_v25 = vpop.f32.mrf.mxu3  ;;  %8603 = vst [vmem:[#allocation30_spill] sm:$0xff] %v7767_v60  ;;  %v4437_v31 = vmul.f32 %v4308_v10, %v7767_v60 }
 0x3b7   : > { %v2651_v44 = vpop.f32.mrf.mxu1  ;;  %v4579_v11 = vadd.f32 %v4578_v56, %v4532_v47  ;;  %v4479_v46 = vadd.f32 %v4478_v62, %v4432_v28  ;;  %8604 = vst [vmem:[#allocation31_spill] sm:$0xff] %v7775_v36  ;;  %v4536_v56 = vmul.f32 %v4435_v26, %v4435_v26  ;;  %v4537_v63 = vmul.f32 %v4436_v27, %v4436_v27 }
 0x3b8   : > { %v4338_v62 = vpop.permute.xlu0 %4337  ;;  %v4438_v34 = vmul.f32 %v7713_v4, %v7775_v36  ;;  %v4538_v50 = vmul.f32 %v4437_v31, %v4437_v31 }
 0x3b9   : > { %v4580_v18 = vadd.f32 %v4579_v11, %v4533_v19  ;;  %v4480_v47 = vadd.f32 %v4479_v46, %v4433_v32  ;;  %v8606_v32 = vld [vmem:[#allocation8_spill] sm:$0xff]  ;;  %v4343_v10 = vpop.permute.xlu1 %4342 }
 0x3ba   : > { %v4539_v54 = vmul.f32 %v4438_v34, %v4438_v34 }
 0x3bb   : > { %v7769_v33 = vpop.f32.mrf.mxu0  ;;  %v4581_v37 = vadd.f32 %v4580_v18, %v4534_v23  ;;  %v4481_v28 = vadd.f32 %v4480_v47, %v4434_v8  ;;  %v7788_v23 = vadd.f32 %v7538_v2, %v8606_v32  ;;  %v8608_v18 = vld [vmem:[#allocation9_spill] sm:$0xff]  ;;  %v4439_v8 = vmul.f32 %v4318_v30, %v7780_v22  ;;  %v8609_v47 = vld [vmem:[#allocation10_spill] sm:$0xff]  ;;  %v8611_v32 = vld [vmem:[#allocation11_spill] sm:$0xff] }
 0x3bc   : > { %v2708_v16 = vadd.f32 %v7649_v13, %v8608_v18 }
 0x3bd   : > { %v4582_v11 = vadd.f32 %v4581_v37, %v4535_v45  ;;  %8607 = vst [vmem:[#allocation8_spill] sm:$0xff] %v7788_v23  ;;  %v4482_v46 = vadd.f32 %v4481_v28, %v4435_v26  ;;  %v7795_v45 = vadd.f32 %v7538_v2, %v8609_v47  ;;  %v2709_v26 = vadd.f32 %v7689_v43, %v8611_v32  ;;  %v8613_v47 = vld [vmem:[#allocation13_spill] sm:$0xff] }
 0x3be   : > { %v3073_v61 = vpop.f32.mrf.mxu2  ;;  %v7782_v19 = vpop.f32.mrf.mxu3  ;;  %v3130_v36 = vadd.f32 %v7679_v55, %v2708_v16  ;;  %v4440_v13 = vmul.f32 %v4323_v6, %v7788_v23  ;;  %v2710_v22 = vadd.f32 %v7725_v15, %v8613_v47  ;;  %v4540_v16 = vmul.f32 %v4439_v8, %v4439_v8  ;;  %v8616_v23 = vld [vmem:[#allocation17_spill] sm:$0xff] }
 0x3bf   : > { %v2653_v20 = vpop.f32.mrf.mxu1  ;;  %v4583_v60 = vadd.f32 %v4582_v11, %v4536_v56  ;;  %8610 = vst [vmem:[#allocation9_spill] sm:$0xff] %v7795_v45  ;;  %v4483_v4 = vadd.f32 %v4482_v46, %v4436_v27  ;;  %v8612_v56 = vld [vmem:[#allocation12_spill] sm:$0xff]  ;;  %v3131_v18 = vadd.f32 %v7715_v52, %v2709_v26  ;;  %v4348_v55 = vpop.permute.xlu2 %4347  ;;  %v4441_v43 = vmul.f32 %v4328_v12, %v7795_v45 }
 0x3c0   : > { %v7805_v11 = vadd.f32 %v7538_v2, %v8612_v56  ;;  %v3752_v32 = vadd.f32 %v7687_v24, %v3130_v36  ;;  %v4541_v47 = vmul.f32 %v4440_v13, %v4440_v13  ;;  %v7821_v12 = vadd.f32 %v7538_v2, %v7598_v49 }
 0x3c1   : > { %v4584_v28 = vadd.f32 %v4583_v60, %v4537_v63  ;;  %v4484_v30 = vadd.f32 %v4483_v4, %v4437_v31  ;;  %v8614_v63 = vld [vmem:[#allocation20_spill] sm:$0xff]  ;;  %v3132_v31 = vadd.f32 %v7747_v58, %v2710_v22  ;;  %v8615_v4 = vld [vmem:[#allocation15_spill] sm:$0xff]  ;;  %v2712_v24 = vadd.f32 %v2653_v20, %v8616_v23  ;;  %v8617_v20 = vld [vmem:[#allocation2_spill] sm:$0xff] }
 0x3c2   : > { %v7813_v60 = vadd.f32 %v7538_v2, %v8614_v63  ;;  %v2711_v52 = vadd.f32 %v2651_v44, %v8615_v4  ;;  %v3753_v63 = vadd.f32 %v7723_v14, %v3131_v18  ;;  %v4542_v22 = vmul.f32 %v4441_v43, %v4441_v43 }
 0x3c3   : > { %v7797_v37 = vpop.f32.mrf.mxu0  ;;  %v4585_v46 = vadd.f32 %v4584_v28, %v4538_v50  ;;  %v4485_v56 = vadd.f32 %v4484_v30, %v4438_v34  ;;  %v4442_v50 = vmul.f32 %v4333_v1, %v7805_v11  ;;  %v4353_v28 = vpop.permute.xlu0 %4352  ;;  %v7828_v1 = vadd.f32 %v7538_v2, %v7631_v5 }
 0x3c4   : > { %v3133_v45 = vadd.f32 %v3073_v61, %v2711_v52  ;;  %v4443_v44 = vmul.f32 %v4338_v62, %v7813_v60  ;;  %v4059_v30 = vadd.f32 %v7667_v9, %v3752_v32  ;;  %v3754_v49 = vadd.f32 %v7755_v25, %v3132_v31 }
 0x3c5   : > { %v4586_v15 = vadd.f32 %v4585_v46, %v4539_v54  ;;  %v4486_v36 = vadd.f32 %v4485_v56, %v4439_v8  ;;  %v4358_v54 = vpop.permute.xlu1 %4357  ;;  %v4543_v18 = vmul.f32 %v4442_v50, %v4442_v50  ;;  %v4444_v8 = vmul.f32 %v4343_v10, %v7821_v12 }
 0x3c6   : > { %v3075_v27 = vpop.f32.mrf.mxu2  ;;  %v3697_v6 = vpop.f32.mrf.mxu3  ;;  %v7836_v62 = vadd.f32 %v7538_v2, %v7665_v59  ;;  %v3755_v5 = vadd.f32 %v7782_v19, %v3133_v45  ;;  %v4544_v25 = vmul.f32 %v4443_v44, %v4443_v44  ;;  %v4445_v31 = vmul.f32 %v4348_v55, %v7828_v1 }
 0x3c7   : > { %v2656_v26 = vpop.f32.mrf.mxu1  ;;  %v4587_v58 = vadd.f32 %v4586_v15, %v4540_v16  ;;  %v3134_v46 = vadd.f32 %v3075_v27, %v2712_v24  ;;  %v4487_v14 = vadd.f32 %v4486_v36, %v4440_v13  ;;  %v4060_v16 = vadd.f32 %v7705_v3, %v3753_v63  ;;  %v4363_v56 = vpop.permute.xlu2 %4362 }
 0x3c8   : > { %v2713_v23 = vadd.f32 %v2656_v26, %v8617_v20  ;;  %v7842_v52 = vadd.f32 %v7538_v2, %v4059_v30  ;;  %v4061_v10 = vadd.f32 %v7739_v42, %v3754_v49  ;;  %v4446_v19 = vmul.f32 %v4353_v28, %v7836_v62  ;;  %v8618_v28 = vld [vmem:[#allocation3_spill] sm:$0xff] }
 0x3c9   : > { %v4588_v61 = vadd.f32 %v4587_v58, %v4541_v47  ;;  %v4488_v9 = vadd.f32 %v4487_v14, %v4441_v43  ;;  %v3756_v26 = vadd.f32 %v3697_v6, %v3134_v46  ;;  %v4545_v47 = vmul.f32 %v4444_v8, %v4444_v8 }
 0x3ca   : > { %v7847_v45 = vadd.f32 %v7538_v2, %v4060_v16  ;;  %v4062_v43 = vadd.f32 %v7769_v33, %v3755_v5  ;;  %v4447_v42 = vmul.f32 %v4358_v54, %v7842_v52  ;;  %v7852_v6 = vadd.f32 %v7538_v2, %v4061_v10 }
 0x3cb   : > { %v4007_v34 = vpop.f32.mrf.mxu0  ;;  %v4589_v32 = vadd.f32 %v4588_v61, %v4542_v22  ;;  %v4489_v15 = vadd.f32 %v4488_v9, %v4442_v50  ;;  %v4368_v58 = vpop.permute.xlu0 %4367  ;;  %v4546_v22 = vmul.f32 %v4445_v31, %v4445_v31  ;;  %v4063_v50 = vadd.f32 %v7797_v37, %v3756_v26 }
 0x3cc   : > { %v4547_v61 = vmul.f32 %v4446_v19, %v4446_v19  ;;  %v4448_v33 = vmul.f32 %v4363_v56, %v7847_v45  ;;  %v4449_v37 = vmul.f32 %v4368_v58, %v7852_v6 }
 0x3cd   : > { %v4590_v3 = vadd.f32 %v4589_v32, %v4543_v18  ;;  %v4490_v63 = vadd.f32 %v4489_v15, %v4443_v44  ;;  %v4373_v46 = vpop.permute.xlu1 %4372  ;;  %v7858_v44 = vadd.f32 %v7538_v2, %v4062_v43 }
 0x3ce   : > { %v3078_v4 = vpop.f32.mrf.mxu2  ;;  %v3700_v13 = vpop.f32.mrf.mxu3  ;;  %v4550_v15 = vmul.f32 %v4449_v37, %v4449_v37 }
 0x3cf   : > { %v3135_v27 = vadd.f32 %v3078_v4, %v2713_v23  ;;  %v2658_v59 = vpop.f32.mrf.mxu1  ;;  %v4591_v55 = vadd.f32 %v4590_v3, %v4544_v25  ;;  %v4491_v30 = vadd.f32 %v4490_v63, %v4444_v8  ;;  %v4548_v4 = vmul.f32 %v4447_v42, %v4447_v42  ;;  %v4378_v26 = vpop.permute.xlu2 %4377 }
 0x3d0   : > { %v2714_v49 = vadd.f32 %v2658_v59, %v8618_v28  ;;  %v7862_v8 = vadd.f32 %v7538_v2, %v4063_v50  ;;  %v4450_v10 = vmul.f32 %v4373_v46, %v7858_v44 }
 0x3d1   : > { %v3757_v24 = vadd.f32 %v3700_v13, %v3135_v27  ;;  %v4592_v14 = vadd.f32 %v4591_v55, %v4545_v47  ;;  %v4492_v20 = vadd.f32 %v4491_v30, %v4445_v31  ;;  %v4549_v13 = vmul.f32 %v4448_v33, %v4448_v33 }
 0x3d2   : > { %v4451_v3 = vmul.f32 %v4378_v26, %v7862_v8 }
 0x3d3   : > { %v4009_v36 = vpop.f32.mrf.mxu0  ;;  %v4064_v23 = vadd.f32 %v4007_v34, %v3757_v24  ;;  %v4593_v5 = vadd.f32 %v4592_v14, %v4546_v22  ;;  %v4493_v32 = vadd.f32 %v4492_v20, %v4446_v19  ;;  %v8619_v19 = vld [vmem:[#allocation4_spill] sm:$0xff]  ;;  %v4383_v24 = vpop.permute.xlu0 %4382  ;;  %v4551_v22 = vmul.f32 %v4450_v10, %v4450_v10 }
 0x3d4   : > { %v4552_v14 = vmul.f32 %v4451_v3, %v4451_v3 }
 0x3d5   : > { %v4594_v27 = vadd.f32 %v4593_v5, %v4547_v61  ;;  %v4494_v59 = vadd.f32 %v4493_v32, %v4447_v42  ;;  %v7866_v34 = vadd.f32 %v7538_v2, %v4064_v23 }
 0x3d6   : > { %v3080_v18 = vpop.f32.mrf.mxu2  ;;  %v3702_v16 = vpop.f32.mrf.mxu3 }
 0x3d7   : > { %v3136_v54 = vadd.f32 %v3080_v18, %v2714_v49  ;;  %v2661_v9 = vpop.f32.mrf.mxu1  ;;  %v4595_v56 = vadd.f32 %v4594_v27, %v4548_v4  ;;  %v4495_v43 = vadd.f32 %v4494_v59, %v4448_v33  ;;  %v4452_v30 = vmul.f32 %v4383_v24, %v7866_v34  ;;  %v4388_v49 = vpop.permute.xlu1 %4387  ;;  %v8620_v27 = vld [vmem:[#allocation5_spill] sm:$0xff] }
 0x3d8   : > { %v2715_v55 = vadd.f32 %v2661_v9, %v8619_v19  ;;  %v4393_v9 = vpop.permute.xlu2 %4392 }
 0x3d9   : > { %v3758_v25 = vadd.f32 %v3702_v16, %v3136_v54  ;;  %v4596_v58 = vadd.f32 %v4595_v56, %v4549_v13  ;;  %v4496_v42 = vadd.f32 %v4495_v43, %v4449_v37  ;;  %v4553_v16 = vmul.f32 %v4452_v30, %v4452_v30 }
 0x3db   : > { %v4065_v31 = vadd.f32 %v4009_v36, %v3758_v25  ;;  %v4012_v47 = vpop.f32.mrf.mxu0  ;;  %v4597_v46 = vadd.f32 %v4596_v58, %v4550_v15  ;;  %v4497_v18 = vadd.f32 %v4496_v42, %v4450_v10  ;;  %v8621_v42 = vld [vmem:[#allocation6_spill] sm:$0xff] }
 0x3dd   : > { %v7870_v63 = vadd.f32 %v7538_v2, %v4065_v31  ;;  %v4598_v23 = vadd.f32 %v4597_v46, %v4551_v22  ;;  %v4498_v54 = vadd.f32 %v4497_v18, %v4451_v3 }
 0x3de   : > { %v3083_v50 = vpop.f32.mrf.mxu2  ;;  %v3705_v36 = vpop.f32.mrf.mxu3 }
 0x3df   : > { %v3137_v28 = vadd.f32 %v3083_v50, %v2715_v55  ;;  %v2663_v61 = vpop.f32.mrf.mxu1  ;;  %v4453_v33 = vmul.f32 %v4388_v49, %v7870_v63  ;;  %v4599_v4 = vadd.f32 %v4598_v23, %v4552_v14  ;;  %v4499_v32 = vadd.f32 %v4498_v54, %v4452_v30 }
 0x3e0   : > { %v2716_v13 = vadd.f32 %v2663_v61, %v8620_v27 }
 0x3e1   : > { %v3759_v20 = vadd.f32 %v3705_v36, %v3137_v28  ;;  %v4554_v37 = vmul.f32 %v4453_v33, %v4453_v33  ;;  %v4600_v31 = vadd.f32 %v4599_v4, %v4553_v16  ;;  %v4500_v10 = vadd.f32 %v4499_v32, %v4453_v33  ;;  %v4398_v28 = vpop.permute.xlu0 %4397  ;;  %v8622_v4 = vld [vmem:[#allocation7_spill] sm:$0xff]  ;;  %v4403_v32 = vpop.permute.xlu1 %4402 }
 0x3e3   : > { %v4066_v5 = vadd.f32 %v4012_v47, %v3759_v20  ;;  %v4014_v26 = vpop.f32.mrf.mxu0  ;;  %v4601_v19 = vadd.f32 %v4600_v31, %v4554_v37 }
 0x3e5   : > { %v7876_v25 = vadd.f32 %v7538_v2, %v4066_v5 }
 0x3e6   : > { %v3085_v59 = vpop.f32.mrf.mxu2  ;;  %v3707_v43 = vpop.f32.mrf.mxu3 }
 0x3e7   : > { %v4454_v56 = vmul.f32 %v4393_v9, %v7876_v25  ;;  %v3138_v15 = vadd.f32 %v3085_v59, %v2716_v13  ;;  %v2666_v3 = vpop.f32.mrf.mxu1 }
 0x3e8   : > { %v2717_v30 = vadd.f32 %v2666_v3, %v8621_v42 }
 0x3e9   : > { %v4501_v47 = vadd.f32 %v4500_v10, %v4454_v56  ;;  %v4555_v55 = vmul.f32 %v4454_v56, %v4454_v56  ;;  %v3760_v24 = vadd.f32 %v3707_v43, %v3138_v15 }
 0x3eb   : > { %v4602_v58 = vadd.f32 %v4601_v19, %v4555_v55  ;;  %v4067_v22 = vadd.f32 %v4014_v26, %v3760_v24  ;;  %v4017_v61 = vpop.f32.mrf.mxu0  ;;  %v4408_v19 = vpop.permute.xlu2 %4407 }
 0x3ed   : > { %v7881_v50 = vadd.f32 %v7538_v2, %v4067_v22 }
 0x3ee   : > { %v3088_v36 = vpop.f32.mrf.mxu2  ;;  %v3710_v14 = vpop.f32.mrf.mxu3 }
 0x3ef   : > { %v4455_v49 = vmul.f32 %v4398_v28, %v7881_v50  ;;  %v3139_v46 = vadd.f32 %v3088_v36, %v2717_v30  ;;  %v2668_v23 = vpop.f32.mrf.mxu1 }
 0x3f0   : > { %v2718_v9 = vadd.f32 %v2668_v23, %v8622_v4 }
 0x3f1   : > { %v4502_v18 = vadd.f32 %v4501_v47, %v4455_v49  ;;  %v4556_v33 = vmul.f32 %v4455_v49, %v4455_v49  ;;  %v3761_v20 = vadd.f32 %v3710_v14, %v3139_v46 }
 0x3f3   : > { %v4603_v54 = vadd.f32 %v4602_v58, %v4556_v33  ;;  %v4068_v16 = vadd.f32 %v4017_v61, %v3761_v20  ;;  %v4019_v56 = vpop.f32.mrf.mxu0 }
 0x3f5   : > { %v7886_v5 = vadd.f32 %v7538_v2, %v4068_v16 }
 0x3f6   : > { %v3090_v37 = vpop.f32.mrf.mxu2  ;;  %v3712_v26 = vpop.f32.mrf.mxu3 }
 0x3f7   : > { %v4456_v27 = vmul.f32 %v4403_v32, %v7886_v5  ;;  %v3140_v13 = vadd.f32 %v3090_v37, %v2718_v9 }
 0x3f9   : > { %v4503_v59 = vadd.f32 %v4502_v18, %v4456_v27  ;;  %v4557_v31 = vmul.f32 %v4456_v27, %v4456_v27  ;;  %v3762_v10 = vadd.f32 %v3712_v26, %v3140_v13 }
 0x3fb   : > { %v4604_v15 = vadd.f32 %v4603_v54, %v4557_v31  ;;  %v4069_v43 = vadd.f32 %v4019_v56, %v3762_v10  ;;  %v8624_v10 = vld [vmem:[#allocation14_spill] sm:$0xff] }
 0x3fd   : > { %v7891_v3 = vadd.f32 %v7538_v2, %v4069_v43 }
 0x3ff   : > { %v4457_v47 = vmul.f32 %v4408_v19, %v7891_v3 }
 0x401   : > { %v4504_v55 = vadd.f32 %v4503_v59, %v4457_v47  ;;  %v4558_v24 = vmul.f32 %v4457_v47, %v4457_v47  ;;  %v8623_v59 = vld [vmem:[#allocation16_spill] sm:$0xff]  ;;  %v8626_v47 = vld [vmem:[#allocation19_spill] sm:$0xff] }
 0x403   : > { %v4505_v58 = vrot.slane %v4504_v55, 4  ;;  %v4605_v22 = vadd.f32 %v4604_v15, %v4558_v24  ;;  %v8625_v15 = vld [vmem:[#allocation18_spill] sm:$0xff]  ;;  %v8627_v24 = vld [vmem:[#allocation21_spill] sm:$0xff] }
 0x405   : > { %v4506_v42 = vadd.f32 %v4505_v58, %v4504_v55  ;;  %v4606_v30 = vrot.slane %v4605_v22, 4 }
 0x407   : > { %v4507_v28 = vrot.slane %v4506_v42, 2  ;;  %v4607_v36 = vadd.f32 %v4606_v30, %v4605_v22 }
 0x409   : > { %v4508_v49 = vadd.f32 %v4507_v28, %v4506_v42  ;;  %v4608_v46 = vrot.slane %v4607_v36, 2  ;;  %v8628_v28 = vld [vmem:[#allocation22_spill] sm:$0xff] }
 0x40b   : > { %v4509_v14 = vrot.slane %v4508_v49, 1  ;;  %v4609_v61 = vadd.f32 %v4608_v46, %v4607_v36 }
 0x40d   : > { %v4510_v18 = vadd.f32 %v4509_v14, %v4508_v49  ;;  %v4610_v33 = vrot.slane %v4609_v61, 1 }
 0x40f   : > { %v4611_v20 = vadd.f32 %v4610_v33, %v4609_v61  ;;  %v7894_v2 = vmul.f32 0.00390625, %v4510_v18 }
 0x411   : > { %v4613_v23 = vmul.f32 0.00390625, %v4611_v20  ;;  %v4614_v54 = vmul.f32 %v7894_v2, %v7894_v2  ;;  %v4659_v4 = vsub.f32 %v7870_v63, %v7894_v2  ;;  %v4660_v9 = vsub.f32 %v7876_v25, %v7894_v2 }
 0x412   : > { %v4616_v31 = vsub.f32 %v8623_v59, %v7894_v2  ;;  %v4617_v56 = vsub.f32 %v8624_v10, %v7894_v2  ;;  %v4618_v43 = vsub.f32 %v8625_v15, %v7894_v2  ;;  %v4619_v55 = vsub.f32 %v8626_v47, %v7894_v2  ;;  %v8636_v47 = vld [vmem:[#allocation30_spill] sm:$0xff] }
 0x413   : > { %v4615_v16 = vsub.f32 %v4613_v23, %v4614_v54  ;;  %v4620_v58 = vsub.f32 %v8627_v24, %v7894_v2  ;;  %v4621_v22 = vsub.f32 %v7581_v53, %v7894_v2  ;;  %v4622_v42 = vsub.f32 %v7587_v29, %v7894_v2 }
 0x414   : > { %v4623_v30 = vsub.f32 %v7596_v57, %v7894_v2  ;;  %v4624_v36 = vsub.f32 %v8628_v28, %v7894_v2  ;;  %v4625_v49 = vsub.f32 %v7614_v39, %v7894_v2  ;;  %v4626_v14 = vsub.f32 %v7620_v0, %v7894_v2  ;;  %v8637_v28 = vld [vmem:[#allocation31_spill] sm:$0xff] }
 0x415   : > { %v4664_v13 = vmax.f32 %v4615_v16, 0.0  ;;  %v4627_v61 = vsub.f32 %v7629_v7, %v7894_v2  ;;  %v4628_v53 = vsub.f32 %v7641_v51, %v7894_v2  ;;  %v4629_v29 = vsub.f32 %v7647_v21, %v7894_v2  ;;  %v8629_v21 = vld [vmem:[#allocation23_spill] sm:$0xff] }
 0x416   : > { %v4630_v57 = vsub.f32 %v7655_v48, %v7894_v2  ;;  %v4631_v18 = vsub.f32 %v7663_v41, %v7894_v2  ;;  %v4632_v39 = vsub.f32 %v7677_v38, %v7894_v2  ;;  %v4633_v0 = vsub.f32 %v7685_v17, %v7894_v2  ;;  %v8630_v48 = vld [vmem:[#allocation24_spill] sm:$0xff]  ;;  %v8631_v41 = vld [vmem:[#allocation25_spill] sm:$0xff]  ;;  %v8632_v38 = vld [vmem:[#allocation26_spill] sm:$0xff] }
 0x417   : > { %v4665_v26 = vadd.f32 1e-05, %v4664_v13  ;;  %v4634_v7 = vsub.f32 %v7695_v35, %v7894_v2  ;;  %v4635_v51 = vsub.f32 %v7703_v40, %v7894_v2  ;;  %v4636_v20 = vsub.f32 %v8629_v21, %v7894_v2  ;;  %v8633_v17 = vld [vmem:[#allocation27_spill] sm:$0xff]  ;;  %v8634_v35 = vld [vmem:[#allocation28_spill] sm:$0xff]  ;;  %v8635_v40 = vld [vmem:[#allocation29_spill] sm:$0xff] }
 0x418   : > { %v4637_v23 = vsub.f32 %v8630_v48, %v7894_v2  ;;  %v4638_v54 = vsub.f32 %v8631_v41, %v7894_v2  ;;  %v4639_v16 = vsub.f32 %v8632_v38, %v7894_v2  ;;  %v4640_v59 = vsub.f32 %v8633_v17, %v7894_v2  ;;  %v8638_v21 = vld [vmem:[#allocation32_spill] sm:$0xff]  ;;  %v8640_v17 = vld [vmem:[#allocation9_spill] sm:$0xff] }
 0x419   : > { %6122 = vrsqrt.f32 %v4665_v26  ;;  %v4641_v10 = vsub.f32 %v8634_v35, %v7894_v2  ;;  %v4642_v15 = vsub.f32 %v8635_v40, %v7894_v2  ;;  %v4643_v24 = vsub.f32 %v8636_v47, %v7894_v2 }
 0x41a   : > { %v4645_v48 = vsub.f32 %v8638_v21, %v7894_v2  ;;  %v4647_v35 = vsub.f32 %v8640_v17, %v7894_v2  ;;  %v4648_v40 = vsub.f32 %v7805_v11, %v7894_v2  ;;  %v4649_v47 = vsub.f32 %v7813_v60, %v7894_v2 }
 0x41b   : > { %v4651_v21 = vsub.f32 %v7828_v1, %v7894_v2  ;;  %vm4672_vm5 = vweird.f32 %v4665_v26  ;;  %v4653_v17 = vsub.f32 %v7842_v52, %v7894_v2  ;;  %v4654_v11 = vsub.f32 %v7847_v45, %v7894_v2 }
 0x41c   : > { %v4655_v60 = vsub.f32 %v7852_v6, %v7894_v2  ;;  %v4657_v1 = vsub.f32 %v7862_v8, %v7894_v2  ;;  %v8653_v63 = vsub.f32 %v7891_v3, %v7894_v2 }
 0x41f   : > { %v6123_v19 = vpop.eup %6122 }
 0x420   : > { %v4667_v46 = vmul.f32 %v6123_v19, %v4665_v26  ;;  %vm4673_vm4 = vweird.f32 %v6123_v19  ;;  %v4658_v26 = vsub.f32 %v7866_v34, %v7894_v2 }
 0x421   : > { %vm4674_vm6 = vmor %vm4672_vm5, %vm4673_vm4 }
 0x422   : > { %v4668_v33 = vmul.f32 %v6123_v19, %v4667_v46  ;;  %v4644_v46 = vsub.f32 %v8637_v28, %v7894_v2  ;;  %v4650_v28 = vsub.f32 %v7821_v12, %v7894_v2  ;;  %v4656_v12 = vsub.f32 %v7858_v44, %v7894_v2 }
 0x424   : > { %v4669_v13 = vmul.f32 0.5, %v4668_v33  ;;  %v8639_v33 = vld [vmem:[#allocation8_spill] sm:$0xff] }
 0x425   : > { %v4646_v38 = vsub.f32 %v8639_v33, %v7894_v2  ;;  %v4652_v33 = vsub.f32 %v7836_v62, %v7894_v2 }
 0x426   : > { %v4670_v41 = vsub.f32 1.5, %v4669_v13 }
 0x428   : > { %v4671_v13 = vmul.f32 %v6123_v19, %v4670_v41 }
 0x42a   : > { %v4675_v62 = vsel %vm4674_vm6, %v6123_v19, %v4671_v13  ;;  %v8652_v13 = vsub.f32 %v7886_v5, %v7894_v2 }
 0x42b   : > { %v7994_v41 = vmul.f32 %v4675_v62, %v4616_v31  ;;  %v7996_v52 = vmul.f32 %v4675_v62, %v4617_v56  ;;  %v7998_v27 = vmul.f32 %v4675_v62, %v4618_v43  ;;  %v8000_v45 = vmul.f32 %v4675_v62, %v4619_v55 }
 0x42c   : > { %v8002_v6 = vmul.f32 %v4675_v62, %v4620_v58  ;;  %v8004_v37 = vmul.f32 %v4675_v62, %v4621_v22  ;;  %v8006_v44 = vmul.f32 %v4675_v62, %v4622_v42  ;;  %v8008_v32 = vmul.f32 %v4675_v62, %v4623_v30 }
 0x42d   : > { %v8010_v8 = vmul.f32 %v4675_v62, %v4624_v36  ;;  %v8012_v34 = vmul.f32 %v4675_v62, %v4625_v49  ;;  %v8014_v31 = vmul.f32 %v4675_v62, %v4626_v14  ;;  %v8016_v56 = vmul.f32 %v4675_v62, %v4627_v61 }
 0x42e   : > { %v8018_v43 = vmul.f32 %v4675_v62, %v4628_v53  ;;  %v8020_v19 = vmul.f32 %v4675_v62, %v4629_v29  ;;  %v8022_v55 = vmul.f32 %v4675_v62, %v4630_v57  ;;  %v8024_v58 = vmul.f32 %v4675_v62, %v4631_v18 }
 0x42f   : > { %v8026_v22 = vmul.f32 %v4675_v62, %v4632_v39  ;;  %v8028_v42 = vmul.f32 %v4675_v62, %v4633_v0  ;;  %v8030_v30 = vmul.f32 %v4675_v62, %v4634_v7  ;;  %v8032_v36 = vmul.f32 %v4675_v62, %v4635_v51 }
 0x430   : > { %v8034_v49 = vmul.f32 %v4675_v62, %v4636_v20  ;;  %v8036_v14 = vmul.f32 %v4675_v62, %v4637_v23  ;;  %v8038_v61 = vmul.f32 %v4675_v62, %v4638_v54  ;;  %v8040_v53 = vmul.f32 %v4675_v62, %v4639_v16 }
 0x431   : > { %v8042_v29 = vmul.f32 %v4675_v62, %v4640_v59  ;;  %v8044_v57 = vmul.f32 %v4675_v62, %v4641_v10  ;;  %v8046_v18 = vmul.f32 %v4675_v62, %v4642_v15  ;;  %v8048_v39 = vmul.f32 %v4675_v62, %v4643_v24 }
 0x432   : > { %8641 = vst [vmem:[#allocation10_spill] sm:$0xff] %v8034_v49  ;;  %v8050_v0 = vmul.f32 %v4675_v62, %v4644_v46  ;;  %v8052_v7 = vmul.f32 %v4675_v62, %v4645_v48  ;;  %v8054_v51 = vmul.f32 %v4675_v62, %v4646_v38  ;;  %v8056_v20 = vmul.f32 %v4675_v62, %v4647_v35 }
 0x433   : > { %8642 = vst [vmem:[#allocation11_spill] sm:$0xff] %v8040_v53  ;;  %v8058_v23 = vmul.f32 %v4675_v62, %v4648_v40  ;;  %v8060_v54 = vmul.f32 %v4675_v62, %v4649_v47  ;;  %v8062_v16 = vmul.f32 %v4675_v62, %v4650_v28  ;;  %v8064_v59 = vmul.f32 %v4675_v62, %v4651_v21 }
 0x434   : > { %8643 = vst [vmem:[#allocation12_spill] sm:$0xff] %v8046_v18  ;;  %v8066_v10 = vmul.f32 %v4675_v62, %v4652_v33  ;;  %v8068_v15 = vmul.f32 %v4675_v62, %v4653_v17  ;;  %v8070_v24 = vmul.f32 %v4675_v62, %v4654_v11  ;;  %v8072_v46 = vmul.f32 %v4675_v62, %v4655_v60 }
 0x435   : > { %8644 = vst [vmem:[#allocation13_spill] sm:$0xff] %v8052_v7  ;;  %v8074_v48 = vmul.f32 %v4675_v62, %v4656_v12  ;;  %v8076_v38 = vmul.f32 %v4675_v62, %v4657_v1  ;;  %v8078_v35 = vmul.f32 %v4675_v62, %v4658_v26  ;;  %v8083_v40 = vmul.f32 %v4675_v62, %v4659_v4 }
 0x436   : > { %8645 = vst [vmem:[#allocation20_spill] sm:$0xff] %v8064_v59  ;;  %v8088_v47 = vmul.f32 %v4675_v62, %v4660_v9  ;;  %v8651_v28 = vsub.f32 %v7881_v50, %v7894_v2  ;;  %v8098_v33 = vmul.f32 %v4675_v62, %v8652_v13  ;;  %v8103_v4 = vmul.f32 %v4675_v62, %v8653_v63 }
 0x437   : > { %8646 = vst [vmem:[#allocation15_spill] sm:$0xff] %v8066_v10  ;;  %vm4724_vm7 = vcmp.ge.f32.partialorder %v7994_v41, 0.0  ;;  %vm4725_vm8 = vcmp.ge.f32.partialorder %v7996_v52, 0.0  ;;  %vm4726_vm9 = vcmp.ge.f32.partialorder %v7998_v27, 0.0  ;;  %vm4727_vm10 = vcmp.ge.f32.partialorder %v8000_v45, 0.0 }
 0x438   : > { %8647 = vst [vmem:[#allocation17_spill] sm:$0xff] %v8068_v15  ;;  %v8093_v21 = vmul.f32 %v4675_v62, %v8651_v28  ;;  %vm4728_vm11 = vcmp.ge.f32.partialorder %v8002_v6, 0.0  ;;  %vm4729_vm12 = vcmp.ge.f32.partialorder %v8004_v37, 0.0  ;;  %vm4730_vm13 = vcmp.ge.f32.partialorder %v8006_v44, 0.0 }
 0x439   : > { %8648 = vst [vmem:[#allocation2_spill] sm:$0xff] %v8070_v24  ;;  %vm4731_vm14 = vcmp.ge.f32.partialorder %v8008_v32, 0.0  ;;  %vm4732_vm15 = vcmp.ge.f32.partialorder %v8010_v8, 0.0  ;;  %vm4733_vm0 = vcmp.ge.f32.partialorder %v8012_v34, 0.0  ;;  %v4772_v25 = vmul.f32 0.2, %v7994_v41 }
 0x43a   : > { %8649 = vst [vmem:[#allocation3_spill] sm:$0xff] %v8074_v48  ;;  %v4773_v50 = vmul.f32 0.2, %v7996_v52  ;;  %v4774_v5 = vmul.f32 0.2, %v7998_v27  ;;  %vm4734_vm1 = vcmp.ge.f32.partialorder %v8014_v31, 0.0 }
 0x43b   : > { %8650 = vst [vmem:[#allocation4_spill] sm:$0xff] %v8076_v38  ;;  %v4775_v3 = vmul.f32 0.2, %v8000_v45  ;;  %v4776_v2 = vmul.f32 0.2, %v8002_v6  ;;  %vm4735_vm2 = vcmp.ge.f32.partialorder %v8016_v56, 0.0  ;;  %v8129_v12 = vsel %vm4724_vm7, %v7994_v41, %v4772_v25 }
 0x43c   : > { %v4777_v9 = vmul.f32 0.2, %v8004_v37  ;;  %v4778_v17 = vmul.f32 0.2, %v8006_v44  ;;  %v4779_v11 = vmul.f32 0.2, %v8008_v32  ;;  %v8144_v28 = vsel %vm4725_vm8, %v7996_v52, %v4773_v50 }
 0x43d   : > { %v4780_v60 = vmul.f32 0.2, %v8010_v8  ;;  %8654 = vst [vmem:[#allocation5_spill] sm:$0xff] %v8129_v12  ;;  %vm4736_vm3 = vcmp.ge.f32.partialorder %v8018_v43, 0.0  ;;  %v8133_v1 = vmul.f32 0.2, %v8012_v34  ;;  %v8159_v25 = vsel %vm4726_vm9, %v7998_v27, %v4774_v5 }
 0x43e   : > { %v8136_v26 = vmul.f32 0.2, %v8014_v31  ;;  %v8139_v62 = vmul.f32 0.2, %v8016_v56  ;;  %8655 = vst [vmem:[#allocation6_spill] sm:$0xff] %v8144_v28  ;;  %vm4737_vm4 = vcmp.ge.f32.partialorder %v8020_v19, 0.0  ;;  %v8177_v27 = vsel %vm4727_vm10, %v8000_v45, %v4775_v3 }
 0x43f   : > { %v8148_v41 = vmul.f32 0.2, %v8018_v43  ;;  %v8151_v13 = vmul.f32 0.2, %v8020_v19  ;;  %v8154_v63 = vmul.f32 0.2, %v8022_v55  ;;  %v8195_v45 = vsel %vm4728_vm11, %v8002_v6, %v4776_v2 }
 0x440   : > { %8656 = vst [vmem:[#allocation7_spill] sm:$0xff] %v8159_v25  ;;  %vm4738_vm5 = vcmp.ge.f32.partialorder %v8022_v55, 0.0  ;;  %v8166_v52 = vmul.f32 0.2, %v8024_v58  ;;  %v8169_v50 = vmul.f32 0.2, %v8026_v22  ;;  %v8213_v6 = vsel %vm4729_vm12, %v8004_v37, %v4777_v9 }
 0x441   : > { %v8172_v28 = vmul.f32 0.2, %v8028_v42  ;;  %8657 = vst [vmem:[#allocation16_spill] sm:$0xff] %v8177_v27  ;;  %vm4742_vm9 = vcmp.ge.f32.partialorder %v8030_v30, 0.0  ;;  %v8184_v5 = vmul.f32 0.2, %v8030_v30 }
 0x442   : > { %v8187_v25 = vmul.f32 0.2, %v8032_v36  ;;  %v8190_v12 = vmul.f32 0.2, %v8034_v49  ;;  %8658 = vst [vmem:[#allocation14_spill] sm:$0xff] %v8195_v45  ;;  %vm4746_vm10 = vcmp.ge.f32.partialorder %v8038_v61, 0.0 }
 0x443   : > { %v8202_v3 = vmul.f32 0.2, %v8036_v14  ;;  %v8205_v27 = vmul.f32 0.2, %v8038_v61  ;;  %v8208_v49 = vmul.f32 0.2, %v8040_v53 }
 0x444   : > { %8660 = vst [vmem:[#allocation19_spill] sm:$0xff] %v8213_v6  ;;  %vm4753_vm8 = vcmp.ge.f32.partialorder %v8052_v7, 0.0  ;;  %v4796_v2 = vmul.f32 0.2, %v8042_v29  ;;  %v4797_v45 = vmul.f32 0.2, %v8044_v57 }
 0x445   : > { %8659 = vst [vmem:[#allocation18_spill] sm:$0xff] %v8208_v49  ;;  %v4798_v53 = vmul.f32 0.2, %v8046_v18  ;;  %v8225_v49 = vsel %vm4730_vm13, %v8006_v44, %v4778_v17  ;;  %vm4757_vm7 = vcmp.ge.f32.partialorder %v8060_v54, 0.0  ;;  %v4799_v37 = vmul.f32 0.2, %v8048_v39 }
 0x446   : > { %8661 = vst [vmem:[#allocation21_spill] sm:$0xff] %v8225_v49  ;;  %v4800_v9 = vmul.f32 0.2, %v8050_v0  ;;  %v4801_v6 = vmul.f32 0.2, %v8052_v7  ;;  %v8237_v18 = vsel %vm4731_vm14, %v8008_v32, %v4779_v11  ;;  %vm4761_vm6 = vcmp.ge.f32.partialorder %v8068_v15, 0.0 }
 0x447   : > { %8662 = vst [vmem:[#allocation22_spill] sm:$0xff] %v8237_v18  ;;  %v4802_v44 = vmul.f32 0.2, %v8054_v51  ;;  %v4803_v17 = vmul.f32 0.2, %v8056_v20  ;;  %v8249_v7 = vsel %vm4732_vm15, %v8010_v8, %v4780_v60  ;;  %vm4762_vm14 = vcmp.ge.f32.partialorder %v8070_v24, 0.0 }
 0x448   : > { %v4804_v49 = vmul.f32 0.2, %v8058_v23  ;;  %8663 = vst [vmem:[#allocation23_spill] sm:$0xff] %v8249_v7  ;;  %v4805_v32 = vmul.f32 0.2, %v8060_v54  ;;  %v8262_v8 = vsel %vm4733_vm0, %v8012_v34, %v8133_v1  ;;  %vm4766_vm15 = vcmp.ge.f32.partialorder %v8078_v35, 0.0 }
 0x449   : > { %v4806_v11 = vmul.f32 0.2, %v8062_v16  ;;  %v4807_v18 = vmul.f32 0.2, %v8064_v59  ;;  %8664 = vst [vmem:[#allocation24_spill] sm:$0xff] %v8262_v8  ;;  %vm4768_vm12 = vcmp.ge.f32.partialorder %v8088_v47, 0.0  ;;  %v8275_v34 = vsel %vm4734_vm1, %v8014_v31, %v8136_v26 }
 0x44a   : > { %vm4769_vm11 = vcmp.ge.f32.partialorder %v8093_v21, 0.0  ;;  %v4808_v60 = vmul.f32 0.2, %v8066_v10  ;;  %v4809_v7 = vmul.f32 0.2, %v8068_v15  ;;  %8665 = vst [vmem:[#allocation25_spill] sm:$0xff] %v8275_v34  ;;  %v8295_v34 = vsel %vm4736_vm3, %v8018_v43, %v8148_v41 }
 0x44b   : > { %v4810_v59 = vmul.f32 0.2, %v8070_v24  ;;  %vm4770_vm0 = vcmp.ge.f32.partialorder %v8098_v33, 0.0  ;;  %vm4771_vm13 = vcmp.ge.f32.partialorder %v8103_v4, 0.0  ;;  %v4811_v1 = vmul.f32 0.2, %v8072_v46 }
 0x44c   : > { %v4812_v8 = vmul.f32 0.2, %v8074_v48  ;;  %v4813_v10 = vmul.f32 0.2, %v8076_v38  ;;  %v8286_v24 = vsel %vm4735_vm2, %v8016_v56, %v8139_v62  ;;  %v4814_v15 = vmul.f32 0.2, %v8078_v35 }
 0x44d   : > { %8666 = vst [vmem:[#allocation26_spill] sm:$0xff] %v8286_v24  ;;  %v4815_v31 = vmul.f32 0.2, %v8083_v40  ;;  %v4816_v26 = vmul.f32 0.2, %v8088_v47  ;;  %v8304_v62 = vsel %vm4737_vm4, %v8020_v19, %v8151_v13  ;;  %v8310_v24 = vsel %vm4738_vm5, %v8022_v55, %v8154_v63 }
 0x44e   : > { %v4817_v38 = vmul.f32 0.2, %v8093_v21  ;;  %v4818_v48 = vmul.f32 0.2, %v8098_v33  ;;  %v4819_v56 = vmul.f32 0.2, %v8103_v4  ;;  %v8334_v55 = vsel %vm4742_vm9, %v8030_v30, %v8184_v5 }
 0x44f   : > { %vm8667_vm1 = vcmp.ge.f32.partialorder %v8024_v58, 0.0  ;;  %vm8668_vm2 = vcmp.ge.f32.partialorder %v8026_v22, 0.0  ;;  %vm8669_vm3 = vcmp.ge.f32.partialorder %v8028_v42, 0.0  ;;  %vm8670_vm4 = vcmp.ge.f32.partialorder %v8032_v36, 0.0 }
 0x450   : > { %v8316_v43 = vsel %vm8667_vm1, %v8024_v58, %v8166_v52  ;;  %v8322_v41 = vsel %vm8668_vm2, %v8026_v22, %v8169_v50  ;;  %v8328_v19 = vsel %vm8669_vm3, %v8028_v42, %v8172_v28  ;;  %v8340_v58 = vsel %vm8670_vm4, %v8032_v36, %v8187_v25  ;;  %v8671_v22 = vld [vmem:[#allocation10_spill] sm:$0xff]  ;;  %v8675_v28 = vld [vmem:[#allocation11_spill] sm:$0xff]  ;;  %v8679_v25 = vld [vmem:[#allocation12_spill] sm:$0xff] }
 0x451   : > { %vm8672_vm5 = vcmp.ge.f32.partialorder %v8671_v22, 0.0  ;;  %vm8673_vm1 = vcmp.ge.f32.partialorder %v8036_v14, 0.0  ;;  %v8358_v30 = vsel %vm4746_vm10, %v8038_v61, %v8205_v27  ;;  %v8674_v36 = vld [vmem:[#allocation18_spill] sm:$0xff]  ;;  %vm8676_vm9 = vcmp.ge.f32.partialorder %v8675_v28, 0.0  ;;  %v8683_v27 = vld [vmem:[#allocation13_spill] sm:$0xff] }
 0x452   : > { %v8346_v13 = vsel %vm8672_vm5, %v8671_v22, %v8190_v12  ;;  %v8352_v42 = vsel %vm8673_vm1, %v8036_v14, %v8202_v3  ;;  %v4843_v63 = vsel %vm8676_vm9, %v8675_v28, %v8674_v36  ;;  %vm8677_vm2 = vcmp.ge.f32.partialorder %v8042_v29, 0.0  ;;  %v8690_v3 = vld [vmem:[#allocation15_spill] sm:$0xff]  ;;  %v8709_v22 = vld [vmem:[#allocation24_spill] sm:$0xff] }
 0x453   : > { %v4844_v12 = vsel %vm8677_vm2, %v8042_v29, %v4796_v2  ;;  %vm8678_vm3 = vcmp.ge.f32.partialorder %v8044_v57, 0.0  ;;  %vm8680_vm4 = vcmp.ge.f32.partialorder %v8679_v25, 0.0  ;;  %vm8681_vm10 = vcmp.ge.f32.partialorder %v8048_v39, 0.0  ;;  %v8695_v2 = vld [vmem:[#allocation3_spill] sm:$0xff] }
 0x454   : > { %v4845_v14 = vsel %vm8678_vm3, %v8044_v57, %v4797_v45  ;;  %v4846_v52 = vsel %vm8680_vm4, %v8679_v25, %v4798_v53  ;;  %v4847_v61 = vsel %vm8681_vm10, %v8048_v39, %v4799_v37  ;;  %vm8682_vm5 = vcmp.ge.f32.partialorder %v8050_v0, 0.0  ;;  %v8688_v45 = vld [vmem:[#allocation20_spill] sm:$0xff]  ;;  %v8711_v36 = vld [vmem:[#allocation26_spill] sm:$0xff] }
 0x455   : > { %v4848_v50 = vsel %vm8682_vm5, %v8050_v0, %v4800_v9  ;;  %v4849_v29 = vsel %vm4753_vm8, %v8683_v27, %v4801_v6  ;;  %vm8684_vm1 = vcmp.ge.f32.partialorder %v8054_v51, 0.0  ;;  %vm8685_vm9 = vcmp.ge.f32.partialorder %v8056_v20, 0.0  ;;  %v8692_v6 = vld [vmem:[#allocation17_spill] sm:$0xff]  ;;  %v8697_v37 = vld [vmem:[#allocation4_spill] sm:$0xff] }
 0x456   : > { %v4850_v57 = vsel %vm8684_vm1, %v8054_v51, %v4802_v44  ;;  %v4851_v53 = vsel %vm8685_vm9, %v8056_v20, %v4803_v17  ;;  %vm8686_vm2 = vcmp.ge.f32.partialorder %v8058_v23, 0.0  ;;  %v4853_v0 = vsel %vm4757_vm7, %v8060_v54, %v4805_v32  ;;  %v8701_v17 = vld [vmem:[#allocation6_spill] sm:$0xff]  ;;  %v8702_v32 = vld [vmem:[#allocation7_spill] sm:$0xff] }
 0x457   : > { %v4852_v39 = vsel %vm8686_vm2, %v8058_v23, %v4804_v49  ;;  %vm8687_vm3 = vcmp.ge.f32.partialorder %v8062_v16, 0.0  ;;  %vm8689_vm8 = vcmp.ge.f32.partialorder %v8688_v45, 0.0  ;;  %vm8691_vm4 = vcmp.ge.f32.partialorder %v8690_v3, 0.0  ;;  %v8693_v23 = vld [vmem:[#allocation2_spill] sm:$0xff] }
 0x458   : > { %v4854_v5 = vsel %vm8687_vm3, %v8062_v16, %v4806_v11  ;;  %v4855_v51 = vsel %vm8689_vm8, %v8688_v45, %v4807_v18  ;;  %v4856_v20 = vsel %vm8691_vm4, %v8690_v3, %v4808_v60  ;;  %v4857_v49 = vsel %vm4761_vm6, %v8692_v6, %v4809_v7  ;;  %v8703_v11 = vld [vmem:[#allocation16_spill] sm:$0xff]  ;;  %v8705_v60 = vld [vmem:[#allocation19_spill] sm:$0xff] }
 0x459   : > { %v4858_v54 = vsel %vm4762_vm14, %v8693_v23, %v4810_v59  ;;  %vm8694_vm7 = vcmp.ge.f32.partialorder %v8072_v46, 0.0  ;;  %vm8696_vm10 = vcmp.ge.f32.partialorder %v8695_v2, 0.0  ;;  %vm8698_vm5 = vcmp.ge.f32.partialorder %v8697_v37, 0.0 }
 0x45a   : > { %v4859_v16 = vsel %vm8694_vm7, %v8072_v46, %v4811_v1  ;;  %v4860_v18 = vsel %vm8696_vm10, %v8695_v2, %v4812_v8  ;;  %v4861_v9 = vsel %vm8698_vm5, %v8697_v37, %v4813_v10  ;;  %v4862_v7 = vsel %vm4766_vm15, %v8078_v35, %v4814_v15  ;;  %v8700_v35 = vld [vmem:[#allocation5_spill] sm:$0xff] }
 0x45b   : > { %vm8699_vm6 = vcmp.ge.f32.partialorder %v8083_v40, 0.0  ;;  %v4864_v46 = vsel %vm4768_vm12, %v8088_v47, %v4816_v26  ;;  %v4865_v10 = vsel %vm4769_vm11, %v8093_v21, %v4817_v38  ;;  %v4866_v44 = vsel %vm4770_vm0, %v8098_v33, %v4818_v48  ;;  %v8704_v47 = vld [vmem:[#allocation14_spill] sm:$0xff]  ;;  %v8708_v26 = vld [vmem:[#allocation23_spill] sm:$0xff]  ;;  %v8710_v33 = vld [vmem:[#allocation25_spill] sm:$0xff] }
 0x45c   : > { %v4863_v59 = vsel %vm8699_vm6, %v8083_v40, %v4815_v31  ;;  %v4867_v15 = vsel %vm4771_vm13, %v8103_v4, %v4819_v56  ;;  %v5941_v40 = vpack.c.bf16 %v8701_v17, %v8700_v35  ;;  %v5946_v8 = vpack.c.bf16 %v8703_v11, %v8702_v32  ;;  %v8706_v31 = vld [vmem:[#allocation21_spill] sm:$0xff]  ;;  %v8707_v38 = vld [vmem:[#allocation22_spill] sm:$0xff] }
 0x45d   : > { %v5951_v1 = vpack.c.bf16 %v8705_v60, %v8704_v47  ;;  %v5956_v21 = vpack.c.bf16 %v8707_v38, %v8706_v31  ;;  %v5961_v48 = vpack.c.bf16 %v8709_v22, %v8708_v26  ;;  %v5966_v28 = vpack.c.bf16 %v8711_v36, %v8710_v33 }
 0x45e   : > { %5942 = vst [vmem:[%s8422_s9] sm:$0xff] %v5941_v40   ;;  %v5971_v4 = vpack.c.bf16 %v8304_v62, %v8295_v34  ;;  %v5976_v56 = vpack.c.bf16 %v8316_v43, %v8310_v24  ;;  %v5981_v25 = vpack.c.bf16 %v8328_v19, %v8322_v41  ;;  %v5986_v27 = vpack.c.bf16 %v8340_v58, %v8334_v55 }
 0x45f   : > { %6065 = vst [vmem:[%s8422_s9 + $0x8] sm:$0xff] %v5946_v8   ;;  %v5991_v45 = vpack.c.bf16 %v8352_v42, %v8346_v13  ;;  %v5996_v3 = vpack.c.bf16 %v4843_v63, %v8358_v30  ;;  %v6001_v6 = vpack.c.bf16 %v4845_v14, %v4844_v12  ;;  %v6006_v34 = vpack.c.bf16 %v4847_v61, %v4846_v52 }
 0x460   : > { %6066 = vst [vmem:[%s8422_s9 + $0x10] sm:$0xff] %v5951_v1   ;;  %v6011_v24 = vpack.c.bf16 %v4849_v29, %v4848_v50  ;;  %v6016_v62 = vpack.c.bf16 %v4851_v53, %v4850_v57  ;;  %v6021_v43 = vpack.c.bf16 %v4853_v0, %v4852_v39  ;;  %v6026_v41 = vpack.c.bf16 %v4855_v51, %v4854_v5 }
 0x461   : > { %6067 = vst [vmem:[%s8422_s9 + $0x18] sm:$0xff] %v5956_v21   ;;  %v6031_v19 = vpack.c.bf16 %v4857_v49, %v4856_v20  ;;  %v6036_v55 = vpack.c.bf16 %v4859_v16, %v4858_v54  ;;  %v6041_v58 = vpack.c.bf16 %v4861_v9, %v4860_v18  ;;  %v6046_v13 = vpack.c.bf16 %v4863_v59, %v4862_v7 }
 0x462   : > { %6068 = vst [vmem:[%s8422_s9 + $0x20] sm:$0xff] %v5961_v48   ;;  %v6051_v42 = vpack.c.bf16 %v4865_v10, %v4864_v46  ;;  %v6056_v30 = vpack.c.bf16 %v4867_v15, %v4866_v44 }
 0x463   : > { %6069 = vst [vmem:[%s8422_s9 + $0x28] sm:$0xff] %v5966_v28  }
 0x464   : > { %6070 = vst [vmem:[%s8422_s9 + $0x30] sm:$0xff] %v5971_v4  }
 0x465   : > { %6071 = vst [vmem:[%s8422_s9 + $0x38] sm:$0xff] %v5976_v56  }
 0x466   : > { %6072 = vst [vmem:[%s8422_s9 + $0x40] sm:$0xff] %v5981_v25  }
 0x467   : > { %6073 = vst [vmem:[%s8422_s9 + $0x48] sm:$0xff] %v5986_v27  }
 0x468   : > { %6074 = vst [vmem:[%s8422_s9 + $0x50] sm:$0xff] %v5991_v45  }
 0x469   : > { %6075 = vst [vmem:[%s8422_s9 + $0x58] sm:$0xff] %v5996_v3  }
 0x46a   : > { %6076 = vst [vmem:[%s8422_s9 + $0x60] sm:$0xff] %v6001_v6  }
 0x46b   : > { %6077 = vst [vmem:[%s8422_s9 + $0x68] sm:$0xff] %v6006_v34  }
 0x46c   : > { %6078 = vst [vmem:[%s8422_s9 + $0x70] sm:$0xff] %v6011_v24  }
 0x46d   : > { %6079 = vst [vmem:[%s8422_s9 + $0x78] sm:$0xff] %v6016_v62  }
 0x46e   : > { %6080 = vst [vmem:[%s8422_s9 + $0x80] sm:$0xff] %v6021_v43  }
 0x46f   : > { %6081 = vst [vmem:[%s8422_s9 + $0x88] sm:$0xff] %v6026_v41  }
 0x470   : > { %6082 = vst [vmem:[%s8422_s9 + $0x90] sm:$0xff] %v6031_v19  }
 0x471   : > { %6083 = vst [vmem:[%s8422_s9 + $0x98] sm:$0xff] %v6036_v55  }
 0x472   : > { %6084 = vst [vmem:[%s8422_s9 + $0xa0] sm:$0xff] %v6041_v58  }
 0x473   : > { %6085 = vst [vmem:[%s8422_s9 + $0xa8] sm:$0xff] %v6046_v13  }
 0x474   : > { %6086 = vst [vmem:[%s8422_s9 + $0xb0] sm:$0xff] %v6051_v42  }
 0x475   : > { %6087 = vst [vmem:[%s8422_s9 + $0xb8] sm:$0xff] %v6056_v30  }
 0x476 PF: > { %s14_s17 = sadd.s32 1, %s6178_s17   ;;  %s8712_s15 = smov %s6174_s16 }
 0x477   : > { %p11_p5 = scmp.ge.s32.totalorder %s14_s17, 4   ;;  %s8713_s16 = smov %s8715_s18 }
 0x479   :  { %13 = sbr.rel (!%p11_p5) target bundleno = 2 (0x2), region = 83 }

// kernel: conv_block_forward.3
= control target key start
LH: loop header
LB: loop body
LE: loop exit
PB: predicated region body
PF: predicated region fallthrough
CT: control target
= control target key end

     0   :  { %s6626_s15 = smov 0   ;;  %s6628_s16 = smov 0   ;;  %s8857_s0 = inlined_call_operand.vmem [shape: bf16[2,1,456,128], index: 0, kind: input, shape index: {}]   ;;  %s8858_s1 = inlined_call_operand.vmem [shape: bf16[9,128,128], index: 1, kind: input, shape index: {}]   ;;  %s8859_s2 = inlined_call_operand.vmem [shape: f32[1,128], index: 2, kind: input, shape index: {}]   ;;  %s8860_s3 = inlined_call_operand.vmem [shape: f32[1,384,1], index: 3, kind: input, shape index: {}]   ;;  %s8861_s4 = inlined_call_operand.vmem [shape: bf16[2,384,128], index: 4, kind: output, shape index: {}]  }
   0x1   :  { %s6630_s17 = smov 0  }
   0x2 LB: > { %s33_s18 = sadd.s32 1, %s6594_s16  ;;  %p5245_p0 = scmp.ge.s32.totalorder %s6598_s17, 1  ;;  %s6598_s17 = sphi %s6630_s17, %s14_s17   ;;  %s6594_s16 = sphi %s6628_s16, %s9064_s16   ;;  %s6590_s15 = sphi %s6626_s15, %s9063_s15  }
   0x3   : > { %p35_p1 = scmp.ge.s32.totalorder %s33_s18, 2  ;;  %p218_p2 = scmp.lt.s32.totalorder %s6598_s17, 3 }
   0x5   : > { %s9066_s18 = smov (%p35_p1, %s33_s18), 0  ;;  %p219_p3 = pnand %p5245_p0, %p218_p2 }
   0x7   : > { %222 = sbr.rel (%p219_p3) target bundleno = 1159 (0x487), region = 36 }
   0xc   : > { %v6172_v0 = vld [vmem:[%s8858_s1 + $0x78] sm:$0xff]  ;;  %p267_p4 = scmp.lt.s32.totalorder %s6590_s15, 1  ;;  %v6171_v1 = vld [vmem:[%s8858_s1 + $0x70] sm:$0xff]  ;;  %v6170_v2 = vld [vmem:[%s8858_s1 + $0x68] sm:$0xff]  ;;  %vm506_vm0 = vsmask.f32 7424 }
   0xd   : > { %6481 = vmatpush.bf16.msra.mxu1 %v6172_v0  ;;  %6482 = vmatpush.bf16.msra.mxu2 %v6172_v0  ;;  %v6169_v3 = vld [vmem:[%s8858_s1 + $0x60] sm:$0xff]  ;;  %v6168_v4 = vld [vmem:[%s8858_s1 + $0x58] sm:$0xff]  ;;  %v6167_v11 = vld [vmem:[%s8858_s1 + $0x50] sm:$0xff]  ;;  %vm1126_vm1 = vcmask 1046528  }
   0xe   : > { %6483 = vmatpush.bf16.msra.mxu3 %v6172_v0  ;;  %775 = vmatpush.bf16.msra.mxu0 %v6172_v0  ;;  %s9068_s15 = smov (!%p267_p4, %s6590_s15), 1  ;;  %v6166_v22 = vld [vmem:[%s8858_s1 + $0x48] sm:$0xff]  ;;  %v6165_v31 = vld [vmem:[%s8858_s1 + $0x40] sm:$0xff]  ;;  %v6180_v40 = vld [vmem:[%s8858_s1 + $0xb8] sm:$0xff] }
   0xf   : > { %s6505_s25 = smul.u32 228, %s9068_s15  ;;  %v6212_v41 = vld [vmem:[%s8858_s1 + $0xf8] sm:$0xff]  ;;  %v6179_v48 = vld [vmem:[%s8858_s1 + $0xb0] sm:$0xff]  ;;  %v6178_v56 = vld [vmem:[%s8858_s1 + $0xa8] sm:$0xff] }
  0x10   : > { %v6164_v46 = vld [vmem:[%s8858_s1 + $0x38] sm:$0xff]  ;;  %v6211_v49 = vld [vmem:[%s8858_s1 + $0xf0] sm:$0xff]  ;;  %v6210_v57 = vld [vmem:[%s8858_s1 + $0xe8] sm:$0xff]  ;;  %s6506_s7 = smul.u32 192, %s9068_s15 }
  0x11   : > { %6484 = vmatpush.bf16.msra.mxu1 %v6171_v1  ;;  %6485 = vmatpush.bf16.msra.mxu2 %v6171_v1  ;;  %s6662_s30 = scalar_lea.vmem %s8857_s0, %s6505_s25  ;;  %v6243_v47 = vld [vmem:[%s8858_s1 + $0x138] sm:$0xff]  ;;  %v6163_v53 = vld [vmem:[%s8858_s1 + $0x30] sm:$0xff] }
  0x12   : > { %6486 = vmatpush.bf16.msra.mxu3 %v6171_v1  ;;  %776 = vmatpush.bf16.msra.mxu0 %v6171_v1  ;;  %v6668_v5 = vld [vmem:[%s6662_s30 + $0x30] sm:$0xff]  ;;  %v6145_v6 = vld [vmem:[%s6662_s30 + $0x60] sm:$0xff]  ;;  %v6676_v9 = vld [vmem:[%s6662_s30 + $0x38] sm:$0xff]  ;;  %s8781_s9 = scalar_lea.vmem %s8861_s4, %s6506_s7 }
  0x13   : > { %v6151_v7 = vld [vmem:[%s6662_s30 + $0x90] sm:$0xff]  ;;  %v6673_v8 = vld [vmem:[%s6662_s30] sm:$0xff]   ;;  %v6679_v10 = vld [vmem:[%s6662_s30 + $0x68] sm:$0xff]  ;;  %v555_v12 = vshll.u32 %v6668_v5, 16  ;;  %v603_v13 = vshll.u32 %v6145_v6, 16  ;;  %v559_v18 = vshrl.u32 %v6668_v5, 16 }
  0x14   : > { %v6686_v14 = vld [vmem:[%s6662_s30 + $0x98] sm:$0xff]  ;;  %v651_v15 = vshll.u32 %v6151_v7, 16  ;;  %v6689_v16 = vld [vmem:[%s6662_s30 + $0x8] sm:$0xff]  ;;  %v510_v17 = vshll.u32 %v6673_v8, 16  ;;  %v563_v19 = vshll.u32 %v6676_v9, 16  ;;  %v607_v20 = vshrl.u32 %v6145_v6, 16 }
  0x15   : > { %6487 = vmatpush.bf16.msra.mxu1 %v6170_v2  ;;  %6488 = vmatpush.bf16.msra.mxu2 %v6170_v2  ;;  %v611_v21 = vshll.u32 %v6679_v10, 16  ;;  %v6698_v23 = vrot.slane %v555_v12, 1  ;;  %v6700_v24 = vrot.slane %v603_v13, 1  ;;  %v655_v25 = vshrl.u32 %v6151_v7, 16  ;;  %v6736_v50 = vld [vmem:[%s6662_s30 + $0x40] sm:$0xff]  ;;  %v6739_v51 = vld [vmem:[%s6662_s30 + $0x70] sm:$0xff] }
  0x16   : > { %6489 = vmatpush.bf16.msra.mxu3 %v6170_v2  ;;  %777 = vmatpush.bf16.msra.mxu0 %v6170_v2  ;;  %v659_v26 = vshll.u32 %v6686_v14, 16  ;;  %v6703_v27 = vrot.slane %v651_v15, 1  ;;  %v508_v28 = vshrl.u32 %v6673_v8, 16  ;;  %v512_v29 = vrot.slane %v510_v17, 1  ;;  %v6742_v52 = vld [vmem:[%s6662_s30 + $0xa0] sm:$0xff]  ;;  %v6748_v54 = vld [vmem:[%s6662_s30 + $0x10] sm:$0xff] }
  0x17   : > { %v515_v30 = vshll.u32 %v6689_v16, 16  ;;  %v561_v32 = vor.u32 %v559_v18, %v6698_v23  ;;  %v565_v33 = vrot.slane %v563_v19, 1  ;;  %v609_v34 = vor.u32 %v607_v20, %v6700_v24  ;;  %v6242_v55 = vld [vmem:[%s8858_s1 + $0x130] sm:$0xff]  ;;  %v6162_v2 = vld [vmem:[%s8858_s1 + $0x28] sm:$0xff]  ;;  %v6209_v6 = vld [vmem:[%s8858_s1 + $0xe0] sm:$0xff] }
  0x18   : > { %v613_v35 = vrot.slane %v611_v21, 1  ;;  %v657_v36 = vor.u32 %v655_v25, %v6703_v27  ;;  %v661_v37 = vrot.slane %v659_v26, 1  ;;  %v513_v38 = vor.u32 %v512_v29, %v508_v28  ;;  %v6161_v18 = vld [vmem:[%s8858_s1 + $0x20] sm:$0xff]  ;;  %v6790_v26 = vld [vmem:[%s6662_s30 + $0x48] sm:$0xff]  ;;  %v6793_v28 = vld [vmem:[%s6662_s30 + $0x78] sm:$0xff] }
  0x19   : > { %6490 = vmatpush.bf16.msra.mxu1 %v6169_v3  ;;  %6491 = vmatpush.bf16.msra.mxu2 %v6169_v3  ;;  %v517_v39 = vrot.slane %v515_v30, 1  ;;  %v566_v42 = vsel %vm506_vm0, %v561_v32, %v565_v33  ;;  %v567_v58 = vshrl.u32 %v6676_v9, 16  ;;  %v571_v59 = vshll.u32 %v6736_v50, 16  ;;  %v6240_v19 = vld [vmem:[%s8858_s1 + $0x120] sm:$0xff]  ;;  %v6176_v29 = vld [vmem:[%s8858_s1 + $0x98] sm:$0xff]  ;;  %v6154_v32 = vld [vmem:[%s6662_s30 + $0xa8] sm:$0xff] }
  0x1a   : > { %6492 = vmatpush.bf16.msra.mxu3 %v6169_v3  ;;  %778 = vmatpush.bf16.msra.mxu0 %v6169_v3  ;;  %v614_v43 = vsel %vm506_vm0, %v609_v34, %v613_v35  ;;  %v662_v44 = vsel %vm506_vm0, %v657_v36, %v661_v37  ;;  %v615_v60 = vshrl.u32 %v6679_v10, 16  ;;  %v619_v61 = vshll.u32 %v6739_v51, 16  ;;  %v6241_v3 = vld [vmem:[%s8858_s1 + $0x128] sm:$0xff]  ;;  %v6208_v30 = vld [vmem:[%s8858_s1 + $0xd8] sm:$0xff]  ;;  %v6207_v36 = vld [vmem:[%s8858_s1 + $0xd0] sm:$0xff] }
  0x1b   : > { %v518_v45 = vsel %vm506_vm0, %v513_v38, %v517_v39  ;;  %v663_v62 = vshrl.u32 %v6686_v14, 16  ;;  %v667_v63 = vshll.u32 %v6742_v52, 16  ;;  %v519_v0 = vshrl.u32 %v6689_v16, 16  ;;  %v6239_v34 = vld [vmem:[%s8858_s1 + $0x118] sm:$0xff] }
  0x1c   : > { %v523_v1 = vshll.u32 %v6748_v54, 16  ;;  %v569_v7 = vor.u32 %v567_v58, %v565_v33  ;;  %v573_v10 = vrot.slane %v571_v59, 1  ;;  %v621_v12 = vrot.slane %v619_v61, 1  ;;  %v6806_v33 = vld [vmem:[%s6662_s30 + $0x18] sm:$0xff]  ;;  %v6829_v59 = vld [vmem:[%s6662_s30 + $0x50] sm:$0xff] }
  0x1d   : > { %6493 = vmatpush.bf16.msra.mxu1 %v6168_v4  ;;  %6494 = vmatpush.bf16.msra.mxu2 %v6168_v4  ;;  %v665_v13 = vor.u32 %v663_v62, %v661_v37  ;;  %v669_v14 = vrot.slane %v667_v63, 1  ;;  %v521_v15 = vor.u32 %v519_v0, %v517_v39  ;;  %v575_v37 = vshrl.u32 %v6736_v50, 16  ;;  %v6159_v61 = vld [vmem:[%s8858_s1 + $0x10] sm:$0xff]  ;;  %v6174_v63 = vld [vmem:[%s8858_s1 + $0x88] sm:$0xff] }
  0x1e   : > { %6495 = vmatpush.bf16.msra.mxu3 %v6168_v4  ;;  %779 = vmatpush.bf16.msra.mxu0 %v6168_v4  ;;  %v6177_v4 = vld [vmem:[%s8858_s1 + $0xa0] sm:$0xff]  ;;  %v525_v17 = vrot.slane %v523_v1, 1  ;;  %v574_v20 = vsel %vm506_vm0, %v569_v7, %v573_v10  ;;  %v579_v38 = vshll.u32 %v6790_v26, 16  ;;  %v623_v39 = vshrl.u32 %v6739_v51, 16  ;;  %v6238_v62 = vld [vmem:[%s8858_s1 + $0x110] sm:$0xff] }
  0x1f   : > { %v6155_v0 = vld [vmem:[%s6662_s30 + $0xb0] sm:$0xff]  ;;  %v6845_v1 = vld [vmem:[%s6662_s30 + $0x20] sm:$0xff]  ;;  %v631_v7 = vshrl.u32 %v6793_v28, 16 }
  0x20   : > { %v526_v25 = vsel %vm506_vm0, %v521_v15, %v525_v17 }
  0x21   : > { %6496 = vmatpush.bf16.msra.mxu1 %v6167_v11  ;;  %6497 = vmatpush.bf16.msra.mxu2 %v6167_v11 }
  0x22   : > { %6498 = vmatpush.bf16.msra.mxu3 %v6167_v11  ;;  %780 = vmatpush.bf16.msra.mxu0 %v6167_v11  ;;  %v617_v11 = vor.u32 %v615_v60, %v613_v35  ;;  %v6175_v35 = vld [vmem:[%s8858_s1 + $0x90] sm:$0xff]  ;;  %v6832_v60 = vld [vmem:[%s6662_s30 + $0x80] sm:$0xff] }
  0x24   : > { %v622_v21 = vsel %vm506_vm0, %v617_v11, %v621_v12  ;;  %v679_v11 = vshrl.u32 %v6154_v32, 16 }
  0x25   : > { %6499 = vmatpush.bf16.msra.mxu1 %v6166_v22  ;;  %6500 = vmatpush.bf16.msra.mxu2 %v6166_v22 }
  0x26   : > { %6501 = vmatpush.bf16.msra.mxu3 %v6166_v22  ;;  %781 = vmatpush.bf16.msra.mxu0 %v6166_v22  ;;  %v670_v22 = vsel %vm506_vm0, %v665_v13, %v669_v14  ;;  %v535_v13 = vshrl.u32 %v6806_v33, 16 }
  0x29   : > { %6502 = vmatpush.bf16.msra.mxu1 %v6165_v31  ;;  %6503 = vmatpush.bf16.msra.mxu2 %v6165_v31 }
  0x2a   : > { %6504 = vmatpush.bf16.msra.mxu3 %v6165_v31  ;;  %782 = vmatpush.bf16.msra.mxu0 %v6165_v31  ;;  %v6160_v31 = vld [vmem:[%s8858_s1 + $0x18] sm:$0xff] }
  0x2c   : > { %813 = vmatmul.bf16.vlgmr.msra.gmra.mxu1 %v566_v42  ;;  %843 = vmatmul.bf16.vlgmr.msra.gmra.mxu2 %v614_v43  ;;  %v675_v42 = vshll.u32 %v6154_v32, 16  ;;  %v527_v43 = vshrl.u32 %v6748_v54, 16  ;;  %v6864_v32 = vld [vmem:[%s6662_s30 + $0x58] sm:$0xff] }
  0x2d   : > { %1248 = vmatpush.bf16.msrb.mxu2 %v6180_v40  ;;  %873 = vmatmul.bf16.vlgmr.msra.gmra.mxu3 %v662_v44  ;;  %v627_v40 = vshll.u32 %v6793_v28, 16  ;;  %v531_v44 = vshll.u32 %v6806_v33, 16 }
  0x2e   : > { %1682 = vmatpush.bf16.msrb.mxu3 %v6212_v41  ;;  %783 = vmatmul.bf16.vlgmr.msra.gmra.mxu0 %v518_v45  ;;  %v671_v41 = vshrl.u32 %v6742_v52, 16  ;;  %v577_v45 = vor.u32 %v575_v37, %v573_v10  ;;  %v529_v51 = vor.u32 %v527_v43, %v525_v17  ;;  %v635_v10 = vshll.u32 %v6832_v60, 16  ;;  %v6205_v37 = vld [vmem:[%s8858_s1 + $0xc0] sm:$0xff] }
  0x2f   : > { %976 = vmatpush.bf16.msrb.mxu1 %v6164_v46  ;;  %2316 = vmatpush.bf16.msrb.mxu0 %v6243_v47  ;;  %v581_v46 = vrot.slane %v579_v38, 1  ;;  %v625_v47 = vor.u32 %v623_v39, %v621_v12  ;;  %v683_v12 = vshll.u32 %v6155_v0, 16  ;;  %v6156_v38 = vld [vmem:[%s6662_s30 + $0xb8] sm:$0xff]  ;;  %v6880_v39 = vld [vmem:[%s6662_s30 + $0x28] sm:$0xff]  ;;  %v595_v43 = vshll.u32 %v6864_v32, 16 }
  0x31   : > { %1249 = vmatpush.bf16.msrb.mxu2 %v6179_v48  ;;  %v629_v48 = vrot.slane %v627_v40, 1  ;;  %v582_v52 = vsel %vm506_vm0, %v577_v45, %v581_v46  ;;  %v6157_v40 = vld [vmem:[%s8858_s1] sm:$0xff] }
  0x32   : > { %1683 = vmatpush.bf16.msrb.mxu3 %v6211_v49  ;;  %v673_v49 = vor.u32 %v671_v41, %v669_v14  ;;  %v539_v14 = vshll.u32 %v6845_v1, 16  ;;  %v6236_v41 = vld [vmem:[%s8858_s1 + $0x100] sm:$0xff] }
  0x33   : > { %977 = vmatpush.bf16.msrb.mxu1 %v6163_v53  ;;  %2317 = vmatpush.bf16.msrb.mxu0 %v6242_v55  ;;  %v677_v53 = vrot.slane %v675_v42, 1  ;;  %v533_v55 = vrot.slane %v531_v44, 1  ;;  %v591_v42 = vshrl.u32 %v6829_v59, 16  ;;  %v639_v44 = vshrl.u32 %v6832_v60, 16 }
  0x35   : > { %1250 = vmatpush.bf16.msrb.mxu2 %v6178_v56  ;;  %v630_v56 = vsel %vm506_vm0, %v625_v47, %v629_v48  ;;  %v534_v58 = vsel %vm506_vm0, %v529_v51, %v533_v55  ;;  %v691_v47 = vshll.u32 %v6156_v38, 16  ;;  %v597_v51 = vrot.slane %v595_v43, 1 }
  0x36   : > { %1684 = vmatpush.bf16.msrb.mxu3 %v6210_v57  ;;  %v678_v57 = vsel %vm506_vm0, %v673_v49, %v677_v53  ;;  %v547_v49 = vshll.u32 %v6880_v39, 16 }
  0x37   : > { %978 = vmatpush.bf16.msrb.mxu1 %v6162_v2  ;;  %2318 = vmatpush.bf16.msrb.mxu0 %v6241_v3  ;;  %v6206_v2 = vld [vmem:[%s8858_s1 + $0xc8] sm:$0xff] }
  0x38   : > { %v6158_v3 = vld [vmem:[%s8858_s1 + $0x8] sm:$0xff] }
  0x39   : > { %1251 = vmatpush.bf16.msrb.mxu2 %v6177_v4  ;;  %v583_v4 = vshrl.u32 %v6790_v26, 16 }
  0x3a   : > { %1685 = vmatpush.bf16.msrb.mxu3 %v6209_v6  ;;  %v587_v6 = vshll.u32 %v6829_v59, 16 }
  0x3b   : > { %979 = vmatpush.bf16.msrb.mxu1 %v6161_v18  ;;  %2319 = vmatpush.bf16.msrb.mxu0 %v6240_v19  ;;  %v585_v15 = vor.u32 %v583_v4, %v581_v46  ;;  %v633_v18 = vor.u32 %v631_v7, %v629_v48  ;;  %v637_v19 = vrot.slane %v635_v10, 1  ;;  %v687_v46 = vshrl.u32 %v6155_v0, 16  ;;  %v6314_v7 = vld [vmem:[%s8858_s1 + $0x1f8] sm:$0xff] }
  0x3c   : > { %818 = vmatmul.bf16.gmra.mxu1 %v574_v20  ;;  %848 = vmatmul.bf16.gmra.mxu2 %v622_v21  ;;  %v589_v17 = vrot.slane %v587_v6, 1  ;;  %v681_v20 = vor.u32 %v679_v11, %v677_v53  ;;  %v685_v21 = vrot.slane %v683_v12, 1  ;;  %v543_v48 = vshrl.u32 %v6845_v1, 16  ;;  %v6283_v6 = vld [vmem:[%s8858_s1 + $0x1b8] sm:$0xff] }
  0x3d   : > { %878 = vmatmul.bf16.gmra.mxu3 %v670_v22  ;;  %1252 = vmatpush.bf16.msrb.mxu2 %v6176_v29  ;;  %v537_v22 = vor.u32 %v535_v13, %v533_v55  ;;  %v638_v29 = vsel %vm506_vm0, %v633_v18, %v637_v19  ;;  %v641_v55 = vor.u32 %v639_v44, %v637_v19  ;;  %v6251_v10 = vld [vmem:[%s8858_s1 + $0x178] sm:$0xff]  ;;  %v599_v13 = vshrl.u32 %v6864_v32, 16  ;;  %v1859_v19 = vld [vmem:[%s6662_s30 + $0xc] sm:$0xff]  }
  0x3e   : > { %788 = vmatmul.bf16.gmra.mxu0 %v526_v25  ;;  %1686 = vmatpush.bf16.msrb.mxu3 %v6208_v30  ;;  %v541_v25 = vrot.slane %v539_v14, 1  ;;  %v590_v28 = vsel %vm506_vm0, %v585_v15, %v589_v17  ;;  %v686_v30 = vsel %vm506_vm0, %v681_v20, %v685_v21  ;;  %v593_v53 = vor.u32 %v591_v42, %v589_v17  ;;  %v6322_v12 = vld [vmem:[%s8858_s1 + $0x238] sm:$0xff]  ;;  %v6919_v20 = vld [vmem:[%s6662_s30 + $0xc] sm:$0xf0] }
  0x3f   : > { %980 = vmatpush.bf16.msrb.mxu1 %v6160_v31  ;;  %2320 = vmatpush.bf16.msrb.mxu0 %v6239_v34  ;;  %v6867_v34 = vld [vmem:[%s6662_s30 + $0x88] sm:$0xff]  ;;  %v695_v15 = vshrl.u32 %v6156_v38, 16  ;;  %v551_v18 = vshrl.u32 %v6880_v39, 16  ;;  %v6452_v38 = vld [vmem:[%s6662_s30] sm:$0xe] }
  0x40   : > { %v542_v31 = vsel %vm506_vm0, %v537_v22, %v541_v25  ;;  %v643_v45 = vshll.u32 %v6867_v34, 16  ;;  %v647_v14 = vshrl.u32 %v6867_v34, 16 }
  0x41   : > { %1253 = vmatpush.bf16.msrb.mxu2 %v6175_v35  ;;  %v6237_v35 = vld [vmem:[%s8858_s1 + $0x108] sm:$0xff] }
  0x42   : > { %1687 = vmatpush.bf16.msrb.mxu3 %v6207_v36  ;;  %v6173_v36 = vld [vmem:[%s8858_s1 + $0x80] sm:$0xff] }
  0x43   : > { %981 = vmatpush.bf16.msrb.mxu1 %v6159_v61  ;;  %2321 = vmatpush.bf16.msrb.mxu0 %v6238_v62  ;;  %v549_v61 = vrot.slane %v547_v49, 1  ;;  %v365_v62 = vld [vmem:[%s6662_s30 + $0xc0] sm:$0x1] }
  0x44   : > { %v480_v4 = vunpack.c.l.b16 %v365_v62 }
  0x45   : > { %1254 = vmatpush.bf16.msrb.mxu2 %v6174_v63  ;;  %v598_v63 = vsel %vm506_vm0, %v593_v53, %v597_v51  ;;  %v6214_v53 = vld [vmem:[%s6662_s30 + $0x1c] sm:$0xff] }
  0x46   : > { %1688 = vmatpush.bf16.msrb.mxu3 %v6206_v2  ;;  %v6908_v11 = vpack.c.b16 %v480_v4, %v480_v4  ;;  %v6321_v4 = vld [vmem:[%s8858_s1 + $0x230] sm:$0xff] }
  0x47   : > { %982 = vmatpush.bf16.msrb.mxu1 %v6158_v3  ;;  %2322 = vmatpush.bf16.msrb.mxu0 %v6237_v35 }
  0x48   : > { %v699_v17 = vshll.u32 %v6908_v11, 16 }
  0x49   : > { %1255 = vmatpush.bf16.msrb.mxu2 %v6173_v36 }
  0x4a   : > { %1689 = vmatpush.bf16.msrb.mxu3 %v6205_v37  ;;  %v6451_v37 = vld [vmem:[%s6662_s30] sm:$0xf0] }
  0x4b   : > { %983 = vmatpush.bf16.msrb.mxu1 %v6157_v40  ;;  %2323 = vmatpush.bf16.msrb.mxu0 %v6236_v41  ;;  %v6213_v40 = vld [vmem:[%s6662_s30 + $0x14] sm:$0xff]  ;;  %v2051_v41 = vshll.u32 %v1859_v19, 16  ;;  %v6453_v42 = vor.u32 %v6452_v38, %v6451_v37 }
  0x4c   : > { %823 = vmatmul.bf16.gmra.mxu1 %v582_v52  ;;  %853 = vmatmul.bf16.gmra.mxu2 %v630_v56  ;;  %v645_v52 = vrot.slane %v643_v45, 1  ;;  %v689_v56 = vor.u32 %v687_v46, %v685_v21  ;;  %v601_v21 = vor.u32 %v599_v13, %v597_v51  ;;  %v2056_v44 = vshll.u32 %v6213_v40, 16 }
  0x4d   : > { %883 = vmatmul.bf16.gmra.mxu3 %v678_v57  ;;  %v693_v57 = vrot.slane %v691_v47, 1  ;;  %3069 = vmatpush.bf16.msra.mxu2 %v6283_v6  ;;  %v2053_v43 = vrot.slane %v2051_v41, 1  ;;  %v1128_v45 = vrot.slane %v6689_v16, 1  ;;  %v2060_v51 = vshrl.u32 %v6213_v40, 16  ;;  %v6184_v40 = vld [vmem:[%s6662_s30 + $0x24] sm:$0xff] }
  0x4e   : > { %793 = vmatmul.bf16.gmra.mxu0 %v534_v58  ;;  %v545_v58 = vor.u32 %v543_v48, %v541_v25  ;;  %v646_v2 = vsel %vm506_vm0, %v641_v55, %v645_v52  ;;  %3703 = vmatpush.bf16.msra.mxu3 %v6314_v7  ;;  %v649_v22 = vor.u32 %v647_v14, %v645_v52  ;;  %v6181_v48 = vld [vmem:[%s6662_s30 + $0xc] sm:$0xff]  ;;  %v2064_v55 = vshll.u32 %v6214_v53, 16  ;;  %v6183_v14 = vld [vmem:[%s6662_s30 + $0x1c] sm:$0xff] }
  0x4f   : > { %v694_v0 = vsel %vm506_vm0, %v689_v56, %v693_v57  ;;  %2635 = vmatpush.bf16.msra.mxu1 %v6251_v10  ;;  %4022 = vmatpush.bf16.msra.mxu0 %v6322_v12  ;;  %v697_v25 = vor.u32 %v695_v15, %v693_v57  ;;  %v1130_v52 = vrot.slane %v6748_v54, 1  ;;  %v1132_v6 = vrot.slane %v6806_v33, 1 }
  0x50   : > { %v550_v3 = vsel %vm506_vm0, %v545_v58, %v549_v61  ;;  %v2066_v57 = vrot.slane %v2064_v55, 1 }
  0x51   : > { %v1131_v58 = vsel %vm1126_vm1, %v1128_v45, %v1130_v52  ;;  %v1133_v13 = vsel %vm1126_vm1, %v1130_v52, %v1132_v6  ;;  %v6185_v52 = vld [vmem:[%s6662_s30 + $0x2c] sm:$0xff] }
  0x53   : > { %4023 = vmatpush.bf16.msra.mxu0 %v6321_v4  ;;  %v6320_v4 = vld [vmem:[%s8858_s1 + $0x228] sm:$0xff] }
  0x57   : > { %4024 = vmatpush.bf16.msra.mxu0 %v6320_v4 }
  0x5c   : > { %828 = vmatmul.bf16.gmra.mxu1 %v590_v28  ;;  %858 = vmatmul.bf16.gmra.mxu2 %v638_v29  ;;  %v701_v28 = vrot.slane %v699_v17, 1  ;;  %v553_v29 = vor.u32 %v551_v18, %v549_v61  ;;  %v6182_v61 = vld [vmem:[%s6662_s30 + $0x14] sm:$0xff]  ;;  %v6216_v18 = vld [vmem:[%s6662_s30 + $0x2c] sm:$0xff] }
  0x5d   : > { %888 = vmatmul.bf16.gmra.mxu3 %v686_v30  ;;  %v606_v30 = vsel %vm506_vm0, %v601_v21, %v6700_v24  ;;  %v2049_v24 = vshrl.u32 %v1859_v19, 16 }
  0x5e   : > { %798 = vmatmul.bf16.gmra.mxu0 %v542_v31  ;;  %v654_v31 = vsel %vm506_vm0, %v649_v22, %v6703_v27  ;;  %v702_v35 = vsel %vm506_vm0, %v697_v25, %v701_v28  ;;  %v558_v36 = vsel %vm506_vm0, %v553_v29, %v6698_v23  ;;  %v1127_v27 = vrot.slane %v6453_v42, 1 }
  0x5f   : > { %v2054_v46 = vor.u32 %v2053_v43, %v2049_v24  ;;  %v2058_v23 = vrot.slane %v2056_v44, 1  ;;  %v2080_v29 = vshll.u32 %v6216_v18, 16  ;;  %v6217_v24 = vld [vmem:[%s6662_s30 + $0x34] sm:$0xff] }
  0x60   : > { %v1129_v47 = vsel %vm1126_vm1, %v1127_v27, %v1128_v45 }
  0x61   : > { %v2059_v49 = vsel %vm506_vm0, %v2054_v46, %v2058_v23  ;;  %v2062_v56 = vor.u32 %v2060_v51, %v2058_v23  ;;  %v2084_v46 = vshrl.u32 %v6216_v18, 16  ;;  %v2088_v23 = vshll.u32 %v6217_v24, 16 }
  0x63   : > { %v2067_v62 = vsel %vm506_vm0, %v2062_v56, %v2066_v57 }
  0x6c   : > { %833 = vmatmul.bf16.gmra.mxu1 %v598_v63  ;;  %863 = vmatmul.bf16.gmra.mxu2 %v646_v2  ;;  %v6313_v63 = vld [vmem:[%s8858_s1 + $0x1f0] sm:$0xff]  ;;  %v6215_v2 = vld [vmem:[%s6662_s30 + $0x24] sm:$0xff] }
  0x6d   : > { %893 = vmatmul.bf16.gmra.mxu3 %v694_v0  ;;  %v6250_v0 = vld [vmem:[%s8858_s1 + $0x170] sm:$0xff]  ;;  %v2076_v28 = vshrl.u32 %v6215_v2, 16 }
  0x6e   : > { %803 = vmatmul.bf16.gmra.mxu0 %v550_v3  ;;  %3704 = vmatpush.bf16.msra.mxu3 %v6313_v63  ;;  %v2072_v3 = vshll.u32 %v6215_v2, 16 }
  0x6f   : > { %2636 = vmatpush.bf16.msra.mxu1 %v6250_v0 }
  0x70   : > { %v2074_v10 = vrot.slane %v2072_v3, 1 }
  0x7c   : > { %838 = vmatmul.bf16.gmra.mxu1 %v606_v30  ;;  %868 = vmatmul.bf16.gmra.mxu2 %v654_v31  ;;  %v1134_v30 = vrot.slane %v6845_v1, 1  ;;  %v2078_v31 = vor.u32 %v2076_v28, %v2074_v10  ;;  %v6186_v28 = vld [vmem:[%s6662_s30 + $0x34] sm:$0xff] }
  0x7d   : > { %898 = vmatmul.bf16.gmra.mxu3 %v702_v35 }
  0x7e   : > { %808 = vmatmul.bf16.gmra.mxu0 %v558_v36  ;;  %v1135_v38 = vsel %vm1126_vm1, %v1132_v6, %v1134_v30  ;;  %v1138_v6 = vrot.slane %v6668_v5, 1 }
  0x8c   : > { %984 = vmatmul.bf16.vlgmr.msrb.gmra.mxu1 %v6673_v8  ;;  %1256 = vmatmul.bf16.vlgmr.msrb.gmra.mxu2 %v1129_v47  ;;  %v6282_v8 = vld [vmem:[%s8858_s1 + $0x1b0] sm:$0xff]  ;;  %v1136_v47 = vrot.slane %v6880_v39, 1 }
  0x8d   : > { %1690 = vmatmul.bf16.vlgmr.msrb.gmra.mxu3 %v6181_v48  ;;  %3070 = vmatpush.bf16.msra.mxu2 %v6282_v8 }
  0x8e   : > { %2324 = vmatmul.bf16.vlgmr.msrb.gmra.mxu0 %v2059_v49  ;;  %v1137_v55 = vsel %vm1126_vm1, %v1134_v30, %v1136_v47  ;;  %v1139_v18 = vsel %vm1126_vm1, %v1136_v47, %v1138_v6 }
  0x9c   : > { %989 = vmatmul.bf16.gmra.mxu1 %v6689_v16  ;;  %1261 = vmatmul.bf16.gmra.mxu2 %v1131_v58  ;;  %v2068_v16 = vshrl.u32 %v6214_v53, 16  ;;  %v6281_v58 = vld [vmem:[%s8858_s1 + $0x1a8] sm:$0xff] }
  0x9d   : > { %1695 = vmatmul.bf16.gmra.mxu3 %v6182_v61  ;;  %v6312_v61 = vld [vmem:[%s8858_s1 + $0x1e8] sm:$0xff]  ;;  %3071 = vmatpush.bf16.msra.mxu2 %v6281_v58 }
  0x9e   : > { %2329 = vmatmul.bf16.gmra.mxu0 %v2067_v62  ;;  %v2070_v7 = vor.u32 %v2068_v16, %v2066_v57  ;;  %v6218_v62 = vld [vmem:[%s6662_s30 + $0x3c] sm:$0xff]  ;;  %3705 = vmatpush.bf16.msra.mxu3 %v6312_v61  ;;  %v2092_v16 = vshrl.u32 %v6217_v24, 16 }
  0x9f   : > { %v2096_v3 = vshll.u32 %v6218_v62, 16  ;;  %v2100_v24 = vshrl.u32 %v6218_v62, 16  ;;  %v6220_v62 = vld [vmem:[%s6662_s30 + $0x4c] sm:$0xff] }
  0xa0   : > { %v2075_v17 = vsel %vm506_vm0, %v2070_v7, %v2074_v10 }
  0xa1   : > { %v2098_v10 = vrot.slane %v2096_v3, 1 }
  0xa3   : > { %v2102_v47 = vor.u32 %v2100_v24, %v2098_v10 }
  0xa9   : > { %v6956_v12 = vpop.f32.mrf.mxu1 }
  0xab   : > { %v6960_v15 = vpop.f32.mrf.mxu0 }
  0xac   : > { %994 = vmatmul.bf16.gmra.mxu1 %v6748_v54  ;;  %1266 = vmatmul.bf16.gmra.mxu2 %v1133_v13  ;;  %v2082_v54 = vrot.slane %v2080_v29, 1 }
  0xad   : > { %1700 = vmatmul.bf16.gmra.mxu3 %v6183_v14 }
  0xae   : > { %2334 = vmatmul.bf16.gmra.mxu0 %v2075_v17  ;;  %v2083_v42 = vsel %vm506_vm0, %v2078_v31, %v2082_v54  ;;  %v2086_v48 = vor.u32 %v2084_v46, %v2082_v54  ;;  %v6219_v31 = vld [vmem:[%s6662_s30 + $0x44] sm:$0xff] }
  0xaf   : > { %v6965_v19 = vpop.f32.mrf.mxu2  ;;  %v2104_v46 = vshll.u32 %v6219_v31, 16 }
  0xb0   : > { %v6967_v21 = vpop.f32.mrf.mxu3 }
  0xb1   : > { %8900 = vst [vmem:[#allocation2_spill] sm:$0xff] %v6967_v21  ;;  %v6969_v22 = vpop.f32.mrf.mxu1 }
  0xb3   : > { %v6971_v25 = vpop.f32.mrf.mxu0 }
  0xb7   : > { %v6974_v35 = vpop.f32.mrf.mxu2 }
  0xb8   : > { %v6976_v36 = vpop.f32.mrf.mxu3 }
  0xb9   : > { %8901 = vst [vmem:[#allocation3_spill] sm:$0xff] %v6976_v36  ;;  %v6978_v37 = vpop.f32.mrf.mxu1 }
  0xbb   : > { %v6982_v41 = vpop.f32.mrf.mxu0 }
  0xbc   : > { %999 = vmatmul.bf16.gmra.mxu1 %v6806_v33  ;;  %1271 = vmatmul.bf16.gmra.mxu2 %v1135_v38  ;;  %v2090_v33 = vrot.slane %v2088_v23, 1  ;;  %v1140_v23 = vrot.slane %v6676_v9, 1 }
  0xbd   : > { %1705 = vmatmul.bf16.gmra.mxu3 %v6184_v40 }
  0xbe   : > { %2339 = vmatmul.bf16.gmra.mxu0 %v2083_v42  ;;  %v2091_v57 = vsel %vm506_vm0, %v2086_v48, %v2090_v33  ;;  %v2094_v7 = vor.u32 %v2092_v16, %v2090_v33 }
  0xbf   : > { %v6987_v43 = vpop.f32.mrf.mxu2 }
  0xc0   : > { %v6989_v44 = vpop.f32.mrf.mxu3  ;;  %v2099_v30 = vsel %vm506_vm0, %v2094_v7, %v2098_v10  ;;  %v2112_v7 = vshll.u32 %v6220_v62, 16  ;;  %v1142_v10 = vrot.slane %v6736_v50, 1 }
  0xc1   : > { %8902 = vst [vmem:[#allocation4_spill] sm:$0xff] %v6989_v44  ;;  %v6991_v27 = vpop.f32.mrf.mxu1 }
  0xc3   : > { %v6993_v45 = vpop.f32.mrf.mxu0 }
  0xc7   : > { %v6996_v49 = vpop.f32.mrf.mxu2 }
  0xc8   : > { %v6998_v53 = vpop.f32.mrf.mxu3 }
  0xc9   : > { %8903 = vst [vmem:[#allocation5_spill] sm:$0xff] %v6998_v53  ;;  %v7000_v51 = vpop.f32.mrf.mxu1 }
  0xcb   : > { %v7004_v56 = vpop.f32.mrf.mxu0 }
  0xcc   : > { %1004 = vmatmul.bf16.gmra.mxu1 %v6845_v1  ;;  %1276 = vmatmul.bf16.gmra.mxu2 %v1137_v55  ;;  %v6249_v1 = vld [vmem:[%s8858_s1 + $0x168] sm:$0xff] }
  0xcd   : > { %1710 = vmatmul.bf16.gmra.mxu3 %v6185_v52  ;;  %2637 = vmatpush.bf16.msra.mxu1 %v6249_v1  ;;  %v1141_v52 = vsel %vm1126_vm1, %v1138_v6, %v1140_v23  ;;  %v2108_v6 = vshrl.u32 %v6219_v31, 16  ;;  %v6280_v31 = vld [vmem:[%s8858_s1 + $0x1a0] sm:$0xff] }
  0xce   : > { %2344 = vmatmul.bf16.gmra.mxu0 %v2091_v57  ;;  %v6187_v57 = vld [vmem:[%s6662_s30 + $0x3c] sm:$0xff]  ;;  %3072 = vmatpush.bf16.msra.mxu2 %v6280_v31  ;;  %v1144_v31 = vrot.slane %v6790_v26, 1 }
  0xcf   : > { %v7015_v8 = vpop.f32.mrf.mxu2 }
  0xd0   : > { %v7017_v63 = vpop.f32.mrf.mxu3 }
  0xd1   : > { %8904 = vst [vmem:[#allocation6_spill] sm:$0xff] %v7017_v63  ;;  %v7022_v2 = vpop.f32.mrf.mxu1 }
  0xd3   : > { %v7024_v0 = vpop.f32.mrf.mxu0 }
  0xd7   : > { %v7030_v13 = vpop.f32.mrf.mxu2 }
  0xd8   : > { %v7032_v14 = vpop.f32.mrf.mxu3 }
  0xd9   : > { %8905 = vst [vmem:[#allocation7_spill] sm:$0xff] %v7032_v14  ;;  %v7034_v17 = vpop.f32.mrf.mxu1 }
  0xdb   : > { %v7038_v29 = vpop.f32.mrf.mxu0 }
  0xdc   : > { %1009 = vmatmul.bf16.gmra.mxu1 %v6880_v39  ;;  %1281 = vmatmul.bf16.gmra.mxu2 %v1139_v18  ;;  %v2106_v39 = vrot.slane %v2104_v46, 1  ;;  %v1143_v46 = vsel %vm1126_vm1, %v1140_v23, %v1142_v10 }
  0xdd   : > { %1715 = vmatmul.bf16.gmra.mxu3 %v6186_v28 }
  0xde   : > { %2349 = vmatmul.bf16.gmra.mxu0 %v2099_v30  ;;  %v2107_v61 = vsel %vm506_vm0, %v2102_v47, %v2106_v39  ;;  %v2110_v18 = vor.u32 %v2108_v6, %v2106_v39  ;;  %v6188_v47 = vld [vmem:[%s6662_s30 + $0x44] sm:$0xff] }
  0xdf   : > { %v7043_v54 = vpop.f32.mrf.mxu2  ;;  %v6311_v39 = vld [vmem:[%s8858_s1 + $0x1e0] sm:$0xff] }
  0xe0   : > { %v7045_v38 = vpop.f32.mrf.mxu3  ;;  %3706 = vmatpush.bf16.msra.mxu3 %v6311_v39 }
  0xe1   : > { %8906 = vst [vmem:[#allocation8_spill] sm:$0xff] %v7045_v38  ;;  %v7047_v40 = vpop.f32.mrf.mxu1  ;;  %v6189_v38 = vld [vmem:[%s6662_s30 + $0x4c] sm:$0xff] }
  0xe3   : > { %v7049_v42 = vpop.f32.mrf.mxu0 }
  0xe7   : > { %v7052_v48 = vpop.f32.mrf.mxu2 }
  0xe8   : > { %v7054_v33 = vpop.f32.mrf.mxu3 }
  0xe9   : > { %8907 = vst [vmem:[#allocation9_spill] sm:$0xff] %v7054_v33  ;;  %v7056_v55 = vpop.f32.mrf.mxu1  ;;  %v1145_v33 = vsel %vm1126_vm1, %v1142_v10, %v1144_v31 }
  0xeb   : > { %v7060_v58 = vpop.f32.mrf.mxu0 }
  0xec   : > { %1014 = vmatmul.bf16.gmra.mxu1 %v6668_v5  ;;  %1286 = vmatmul.bf16.gmra.mxu2 %v1141_v52  ;;  %v2114_v5 = vrot.slane %v2112_v7, 1 }
  0xed   : > { %1720 = vmatmul.bf16.gmra.mxu3 %v6187_v57 }
  0xee   : > { %2354 = vmatmul.bf16.gmra.mxu0 %v2107_v61  ;;  %v2115_v57 = vsel %vm506_vm0, %v2110_v18, %v2114_v5  ;;  %v6221_v61 = vld [vmem:[%s6662_s30 + $0x54] sm:$0xff]  ;;  %v2116_v18 = vshrl.u32 %v6220_v62, 16 }
  0xef   : > { %v7065_v1 = vpop.f32.mrf.mxu2  ;;  %v2124_v10 = vshrl.u32 %v6221_v61, 16 }
  0xf0   : > { %v7067_v16 = vpop.f32.mrf.mxu3  ;;  %v2118_v39 = vor.u32 %v2116_v18, %v2114_v5  ;;  %v6222_v5 = vld [vmem:[%s6662_s30 + $0x5c] sm:$0xff] }
  0xf1   : > { %8908 = vst [vmem:[#allocation10_spill] sm:$0xff] %v7067_v16  ;;  %v7069_v3 = vpop.f32.mrf.mxu1  ;;  %v2128_v36 = vshll.u32 %v6222_v5, 16 }
  0xf3   : > { %v7071_v4 = vpop.f32.mrf.mxu0 }
  0xf7   : > { %v7074_v28 = vpop.f32.mrf.mxu2 }
  0xf8   : > { %v7076_v30 = vpop.f32.mrf.mxu3 }
  0xf9   : > { %8909 = vst [vmem:[#allocation11_spill] sm:$0xff] %v7076_v30  ;;  %v7078_v24 = vpop.f32.mrf.mxu1 }
  0xfb   : > { %v7082_v52 = vpop.f32.mrf.mxu0 }
  0xfc   : > { %1019 = vmatmul.bf16.gmra.mxu1 %v6676_v9  ;;  %1291 = vmatmul.bf16.gmra.mxu2 %v1143_v46  ;;  %v2120_v46 = vshll.u32 %v6221_v61, 16 }
  0xfd   : > { %1725 = vmatmul.bf16.gmra.mxu3 %v6188_v47  ;;  %v6248_v47 = vld [vmem:[%s8858_s1 + $0x160] sm:$0xff] }
  0xfe   : > { %2359 = vmatmul.bf16.gmra.mxu0 %v2115_v57  ;;  %v6319_v57 = vld [vmem:[%s8858_s1 + $0x220] sm:$0xff]  ;;  %2638 = vmatpush.bf16.msra.mxu1 %v6248_v47 }
  0xff   : > { %v7093_v23 = vpop.f32.mrf.mxu2  ;;  %4025 = vmatpush.bf16.msra.mxu0 %v6319_v57 }
 0x100   : > { %v7095_v6 = vpop.f32.mrf.mxu3 }
 0x101   : > { %8910 = vst [vmem:[#allocation12_spill] sm:$0xff] %v7095_v6  ;;  %v7097_v9 = vpop.f32.mrf.mxu1  ;;  %v2122_v6 = vrot.slane %v2120_v46, 1 }
 0x103   : > { %v7099_v7 = vpop.f32.mrf.mxu0  ;;  %v2123_v63 = vsel %vm506_vm0, %v2118_v39, %v2122_v6  ;;  %v1146_v39 = vrot.slane %v6829_v59, 1 }
 0x107   : > { %v7108_v30 = vpop.f32.mrf.mxu2 }
 0x108   : > { %8911 = vst [vmem:[#allocation13_spill] sm:$0xff] %v7108_v30  ;;  %v7110_v16 = vpop.f32.mrf.mxu3  ;;  %v6190_v30 = vld [vmem:[%s6662_s30 + $0x54] sm:$0xff] }
 0x109   : > { %8912 = vst [vmem:[#allocation14_spill] sm:$0xff] %v7110_v16  ;;  %v985_v62 = vpop.f32.mrf.mxu1 }
 0x10a   : > { %v986_v47 = vadd.f32 %v985_v62, %v6960_v15 }
 0x10b   : > { %v2325_v14 = vpop.f32.mrf.mxu0 }
 0x10c   : > { %1024 = vmatmul.bf16.gmra.mxu1 %v6736_v50  ;;  %1296 = vmatmul.bf16.gmra.mxu2 %v1145_v33 }
 0x10d   : > { %1730 = vmatmul.bf16.gmra.mxu3 %v6189_v38  ;;  %v2126_v38 = vor.u32 %v2124_v10, %v2122_v6 }
 0x10e   : > { %2364 = vmatmul.bf16.gmra.mxu0 %v2123_v63  ;;  %v2130_v63 = vrot.slane %v2128_v36, 1  ;;  %v6223_v36 = vld [vmem:[%s6662_s30 + $0x64] sm:$0xff] }
 0x10f   : > { %v1257_v18 = vpop.f32.mrf.mxu2 }
 0x110   : > { %v1377_v46 = vadd.f32 %v1257_v18, %v986_v47  ;;  %v1691_v57 = vpop.f32.mrf.mxu3  ;;  %v1147_v18 = vsel %vm1126_vm1, %v1144_v31, %v1146_v39  ;;  %v2131_v61 = vsel %vm506_vm0, %v2126_v38, %v2130_v63 }
 0x111   : > { %v987_v16 = vpop.f32.mrf.mxu1 }
 0x112   : > { %v1811_v53 = vadd.f32 %v1691_v57, %v1377_v46  ;;  %v988_v50 = vadd.f32 %v987_v16, %v6971_v25 }
 0x113   : > { %v2327_v44 = vpop.f32.mrf.mxu0 }
 0x114   : > { %v7118_v21 = vadd.f32 %v2325_v14, %v1811_v53 }
 0x117   : > { %v1259_v15 = vpop.f32.mrf.mxu2 }
 0x118   : > { %v1378_v33 = vadd.f32 %v1259_v15, %v988_v50  ;;  %v1693_v62 = vpop.f32.mrf.mxu3  ;;  %v2132_v15 = vshrl.u32 %v6222_v5, 16 }
 0x119   : > { %v990_v47 = vpop.f32.mrf.mxu1 }
 0x11a   : > { %v1812_v46 = vadd.f32 %v1693_v62, %v1378_v33  ;;  %v991_v25 = vadd.f32 %v990_v47, %v6982_v41  ;;  %v2136_v33 = vshll.u32 %v6223_v36, 16 }
 0x11b   : > { %v2330_v57 = vpop.f32.mrf.mxu0 }
 0x11c   : > { %1029 = vmatmul.bf16.gmra.mxu1 %v6790_v26  ;;  %1301 = vmatmul.bf16.gmra.mxu2 %v1147_v18  ;;  %v7126_v53 = vadd.f32 %v2327_v44, %v1812_v46  ;;  %v1148_v26 = vrot.slane %v6864_v32, 1  ;;  %v2138_v62 = vrot.slane %v2136_v33, 1 }
 0x11d   : > { %1735 = vmatmul.bf16.gmra.mxu3 %v6190_v30  ;;  %v2134_v30 = vor.u32 %v2132_v15, %v2130_v63 }
 0x11e   : > { %2369 = vmatmul.bf16.gmra.mxu0 %v2131_v61  ;;  %v1149_v61 = vsel %vm1126_vm1, %v1146_v39, %v1148_v26  ;;  %v6310_v39 = vld [vmem:[%s8858_s1 + $0x1d8] sm:$0xff] }
 0x11f   : > { %v1262_v14 = vpop.f32.mrf.mxu2  ;;  %v2139_v5 = vsel %vm506_vm0, %v2134_v30, %v2138_v62  ;;  %3707 = vmatpush.bf16.msra.mxu3 %v6310_v39 }
 0x120   : > { %v1379_v16 = vadd.f32 %v1262_v14, %v991_v25  ;;  %v1696_v6 = vpop.f32.mrf.mxu3  ;;  %v6191_v25 = vld [vmem:[%s6662_s30 + $0x5c] sm:$0xff] }
 0x121   : > { %v992_v31 = vpop.f32.mrf.mxu1 }
 0x122   : > { %v1813_v10 = vadd.f32 %v1696_v6, %v1379_v16  ;;  %v993_v44 = vadd.f32 %v992_v31, %v6993_v45  ;;  %v6279_v45 = vld [vmem:[%s8858_s1 + $0x198] sm:$0xff]  ;;  %v6224_v6 = vld [vmem:[%s6662_s30 + $0x6c] sm:$0xff] }
 0x123   : > { %v2332_v50 = vpop.f32.mrf.mxu0  ;;  %3073 = vmatpush.bf16.msra.mxu2 %v6279_v45  ;;  %v2144_v30 = vshll.u32 %v6224_v6, 16 }
 0x124   : > { %v7130_v38 = vadd.f32 %v2330_v57, %v1813_v10 }
 0x127   : > { %v1264_v18 = vpop.f32.mrf.mxu2 }
 0x128   : > { %v1380_v41 = vadd.f32 %v1264_v18, %v993_v44  ;;  %v1698_v47 = vpop.f32.mrf.mxu3  ;;  %v2140_v44 = vshrl.u32 %v6223_v36, 16  ;;  %v6247_v18 = vld [vmem:[%s8858_s1 + $0x158] sm:$0xff]  ;;  %v2146_v36 = vrot.slane %v2144_v30, 1 }
 0x129   : > { %v995_v46 = vpop.f32.mrf.mxu1  ;;  %2639 = vmatpush.bf16.msra.mxu1 %v6247_v18 }
 0x12a   : > { %v1814_v14 = vadd.f32 %v1698_v47, %v1380_v41  ;;  %v996_v63 = vadd.f32 %v995_v46, %v7004_v56  ;;  %v6318_v56 = vld [vmem:[%s8858_s1 + $0x218] sm:$0xff]  ;;  %v6538_v47 = vld [vmem:[%s6662_s30 + $0x60] sm:$0xff] }
 0x12b   : > { %v2335_v16 = vpop.f32.mrf.mxu0  ;;  %4026 = vmatpush.bf16.msra.mxu0 %v6318_v56  ;;  %v1150_v46 = vrot.slane %v6538_v47, 1 }
 0x12c   : > { %1034 = vmatmul.bf16.gmra.mxu1 %v6829_v59  ;;  %1306 = vmatmul.bf16.gmra.mxu2 %v1149_v61  ;;  %v7138_v57 = vadd.f32 %v2332_v50, %v1814_v14 }
 0x12d   : > { %1740 = vmatmul.bf16.gmra.mxu3 %v6191_v25  ;;  %v2142_v25 = vor.u32 %v2140_v44, %v2138_v62  ;;  %v6225_v62 = vld [vmem:[%s6662_s30 + $0x74] sm:$0xff] }
 0x12e   : > { %2374 = vmatmul.bf16.gmra.mxu0 %v2139_v5 }
 0x12f   : > { %v1267_v31 = vpop.f32.mrf.mxu2  ;;  %v2147_v18 = vsel %vm506_vm0, %v2142_v25, %v2146_v36  ;;  %v2152_v25 = vshll.u32 %v6225_v62, 16 }
 0x130   : > { %v1381_v59 = vadd.f32 %v1267_v31, %v996_v63  ;;  %v1701_v10 = vpop.f32.mrf.mxu3  ;;  %v1151_v63 = vsel %vm1126_vm1, %v1148_v26, %v1150_v46  ;;  %v6192_v31 = vld [vmem:[%s6662_s30 + $0x64] sm:$0xff] }
 0x131   : > { %v997_v50 = vpop.f32.mrf.mxu1 }
 0x132   : > { %v1815_v15 = vadd.f32 %v1701_v10, %v1381_v59  ;;  %v998_v61 = vadd.f32 %v997_v50, %v7024_v0 }
 0x133   : > { %v2337_v33 = vpop.f32.mrf.mxu0 }
 0x134   : > { %v7154_v41 = vadd.f32 %v2335_v16, %v1815_v15 }
 0x137   : > { %v1269_v14 = vpop.f32.mrf.mxu2 }
 0x138   : > { %v1382_v5 = vadd.f32 %v1269_v14, %v998_v61  ;;  %v1703_v45 = vpop.f32.mrf.mxu3  ;;  %v2148_v61 = vshrl.u32 %v6224_v6, 16 }
 0x139   : > { %v1000_v39 = vpop.f32.mrf.mxu1 }
 0x13a   : > { %v1816_v59 = vadd.f32 %v1703_v45, %v1382_v5  ;;  %v1001_v0 = vadd.f32 %v1000_v39, %v7038_v29  ;;  %v2150_v45 = vor.u32 %v2148_v61, %v2146_v36  ;;  %v6226_v36 = vld [vmem:[%s6662_s30 + $0x7c] sm:$0xff] }
 0x13b   : > { %v2340_v10 = vpop.f32.mrf.mxu0 }
 0x13c   : > { %1039 = vmatmul.bf16.gmra.mxu1 %v6864_v32  ;;  %1311 = vmatmul.bf16.gmra.mxu2 %v1151_v63  ;;  %v7162_v16 = vadd.f32 %v2337_v33, %v1816_v59  ;;  %v6539_v32 = vld [vmem:[%s6662_s30 + $0x68] sm:$0xff]  ;;  %v2154_v63 = vrot.slane %v2152_v25, 1 }
 0x13d   : > { %1745 = vmatmul.bf16.gmra.mxu3 %v6192_v31  ;;  %v1152_v5 = vrot.slane %v6539_v32, 1 }
 0x13e   : > { %2379 = vmatmul.bf16.gmra.mxu0 %v2147_v18  ;;  %v2155_v6 = vsel %vm506_vm0, %v2150_v45, %v2154_v63 }
 0x13f   : > { %v1272_v50 = vpop.f32.mrf.mxu2  ;;  %v1153_v18 = vsel %vm1126_vm1, %v1150_v46, %v1152_v5 }
 0x140   : > { %v1383_v15 = vadd.f32 %v1272_v50, %v1001_v0  ;;  %v1706_v44 = vpop.f32.mrf.mxu3  ;;  %v6193_v0 = vld [vmem:[%s6662_s30 + $0x6c] sm:$0xff] }
 0x141   : > { %v1002_v26 = vpop.f32.mrf.mxu1 }
 0x142   : > { %v1817_v30 = vadd.f32 %v1706_v44, %v1383_v15  ;;  %v1003_v33 = vadd.f32 %v1002_v26, %v7049_v42 }
 0x143   : > { %v2342_v56 = vpop.f32.mrf.mxu0 }
 0x144   : > { %v7166_v14 = vadd.f32 %v2340_v10, %v1817_v30 }
 0x147   : > { %v1274_v29 = vpop.f32.mrf.mxu2 }
 0x148   : > { %v1384_v39 = vadd.f32 %v1274_v29, %v1003_v33  ;;  %v1708_v31 = vpop.f32.mrf.mxu3  ;;  %v2156_v33 = vshrl.u32 %v6225_v62, 16  ;;  %v2160_v29 = vshll.u32 %v6226_v36, 16 }
 0x149   : > { %v1005_v59 = vpop.f32.mrf.mxu1 }
 0x14a   : > { %v1818_v50 = vadd.f32 %v1708_v31, %v1384_v39  ;;  %v1006_v42 = vadd.f32 %v1005_v59, %v7060_v58  ;;  %v2158_v31 = vor.u32 %v2156_v33, %v2154_v63  ;;  %v6309_v63 = vld [vmem:[%s8858_s1 + $0x1d0] sm:$0xff] }
 0x14b   : > { %v2345_v15 = vpop.f32.mrf.mxu0  ;;  %3708 = vmatpush.bf16.msra.mxu3 %v6309_v63 }
 0x14c   : > { %1044 = vmatmul.bf16.gmra.mxu1 %v6538_v47  ;;  %1316 = vmatmul.bf16.gmra.mxu2 %v1153_v18  ;;  %v7173_v10 = vadd.f32 %v2342_v56, %v1818_v50  ;;  %v6540_v47 = vld [vmem:[%s6662_s30 + $0x70] sm:$0xff]  ;;  %v2162_v18 = vrot.slane %v2160_v29, 1 }
 0x14d   : > { %1750 = vmatmul.bf16.gmra.mxu3 %v6193_v0  ;;  %v1154_v39 = vrot.slane %v6540_v47, 1 }
 0x14e   : > { %2384 = vmatmul.bf16.gmra.mxu0 %v2155_v6  ;;  %v2163_v62 = vsel %vm506_vm0, %v2158_v31, %v2162_v18 }
 0x14f   : > { %v1277_v44 = vpop.f32.mrf.mxu2  ;;  %v1155_v6 = vsel %vm1126_vm1, %v1152_v5, %v1154_v39 }
 0x150   : > { %v1385_v26 = vadd.f32 %v1277_v44, %v1006_v42  ;;  %v1711_v30 = vpop.f32.mrf.mxu3  ;;  %v6194_v42 = vld [vmem:[%s6662_s30 + $0x74] sm:$0xff] }
 0x151   : > { %v1007_v61 = vpop.f32.mrf.mxu1 }
 0x152   : > { %v1819_v46 = vadd.f32 %v1711_v30, %v1385_v26  ;;  %v1008_v56 = vadd.f32 %v1007_v61, %v7071_v4  ;;  %v6278_v4 = vld [vmem:[%s8858_s1 + $0x190] sm:$0xff]  ;;  %v6227_v30 = vld [vmem:[%s6662_s30 + $0x84] sm:$0xff] }
 0x153   : > { %v2347_v25 = vpop.f32.mrf.mxu0  ;;  %3074 = vmatpush.bf16.msra.mxu2 %v6278_v4  ;;  %v2168_v31 = vshll.u32 %v6227_v30, 16 }
 0x154   : > { %v7177_v45 = vadd.f32 %v2345_v15, %v1819_v46 }
 0x157   : > { %v1279_v0 = vpop.f32.mrf.mxu2 }
 0x158   : > { %v1386_v58 = vadd.f32 %v1279_v0, %v1008_v56  ;;  %v1713_v59 = vpop.f32.mrf.mxu3  ;;  %v2164_v56 = vshrl.u32 %v6226_v36, 16  ;;  %v6246_v0 = vld [vmem:[%s8858_s1 + $0x150] sm:$0xff]  ;;  %v2170_v36 = vrot.slane %v2168_v31, 1 }
 0x159   : > { %v1010_v50 = vpop.f32.mrf.mxu1  ;;  %2640 = vmatpush.bf16.msra.mxu1 %v6246_v0 }
 0x15a   : > { %v1820_v44 = vadd.f32 %v1713_v59, %v1386_v58  ;;  %v1011_v5 = vadd.f32 %v1010_v50, %v7082_v52  ;;  %v6317_v52 = vld [vmem:[%s8858_s1 + $0x210] sm:$0xff]  ;;  %v6541_v59 = vld [vmem:[%s6662_s30 + $0x78] sm:$0xff] }
 0x15b   : > { %v2350_v26 = vpop.f32.mrf.mxu0  ;;  %4027 = vmatpush.bf16.msra.mxu0 %v6317_v52  ;;  %v1156_v50 = vrot.slane %v6541_v59, 1 }
 0x15c   : > { %1049 = vmatmul.bf16.gmra.mxu1 %v6539_v32  ;;  %1321 = vmatmul.bf16.gmra.mxu2 %v1155_v6  ;;  %v7184_v15 = vadd.f32 %v2347_v25, %v1820_v44 }
 0x15d   : > { %1755 = vmatmul.bf16.gmra.mxu3 %v6194_v42  ;;  %v2166_v42 = vor.u32 %v2164_v56, %v2162_v18  ;;  %v6228_v18 = vld [vmem:[%s6662_s30 + $0x8c] sm:$0xff] }
 0x15e   : > { %2389 = vmatmul.bf16.gmra.mxu0 %v2163_v62 }
 0x15f   : > { %v1282_v61 = vpop.f32.mrf.mxu2  ;;  %v2171_v0 = vsel %vm506_vm0, %v2166_v42, %v2170_v36 }
 0x160   : > { %v1387_v32 = vadd.f32 %v1282_v61, %v1011_v5  ;;  %v1716_v46 = vpop.f32.mrf.mxu3  ;;  %v1157_v5 = vsel %vm1126_vm1, %v1154_v39, %v1156_v50  ;;  %v6195_v61 = vld [vmem:[%s6662_s30 + $0x7c] sm:$0xff] }
 0x161   : > { %v1012_v25 = vpop.f32.mrf.mxu1 }
 0x162   : > { %v1821_v33 = vadd.f32 %v1716_v46, %v1387_v32  ;;  %v1013_v6 = vadd.f32 %v1012_v25, %v7099_v7 }
 0x163   : > { %v2352_v29 = vpop.f32.mrf.mxu0 }
 0x164   : > { %v7200_v58 = vadd.f32 %v2350_v26, %v1821_v33 }
 0x167   : > { %v1284_v44 = vpop.f32.mrf.mxu2 }
 0x168   : > { %v1388_v62 = vadd.f32 %v1284_v44, %v1013_v6  ;;  %v1718_v4 = vpop.f32.mrf.mxu3  ;;  %v2172_v6 = vshrl.u32 %v6227_v30, 16  ;;  %v2176_v44 = vshll.u32 %v6228_v18, 16 }
 0x169   : > { %v1015_v63 = vpop.f32.mrf.mxu1 }
 0x16a   : > { %v1822_v32 = vadd.f32 %v1718_v4, %v1388_v62  ;;  %v1016_v7 = vadd.f32 %v1015_v63, %v6956_v12  ;;  %v2174_v42 = vor.u32 %v2172_v6, %v2170_v36  ;;  %v2178_v4 = vrot.slane %v2176_v44, 1 }
 0x16b   : > { %v2355_v46 = vpop.f32.mrf.mxu0  ;;  %v2180_v6 = vshrl.u32 %v6228_v18, 16 }
 0x16c   : > { %1054 = vmatmul.bf16.gmra.mxu1 %v6540_v47  ;;  %1326 = vmatmul.bf16.gmra.mxu2 %v1157_v5  ;;  %v7207_v26 = vadd.f32 %v2352_v29, %v1822_v32  ;;  %v1158_v47 = vrot.slane %v6832_v60, 1  ;;  %v2179_v30 = vsel %vm506_vm0, %v2174_v42, %v2178_v4 }
 0x16d   : > { %1760 = vmatmul.bf16.gmra.mxu3 %v6195_v61  ;;  %v2182_v42 = vor.u32 %v2180_v6, %v2178_v4 }
 0x16e   : > { %2394 = vmatmul.bf16.gmra.mxu0 %v2171_v0  ;;  %v1159_v32 = vsel %vm1126_vm1, %v1156_v50, %v1158_v47  ;;  %v6196_v0 = vld [vmem:[%s6662_s30 + $0x84] sm:$0xff] }
 0x16f   : > { %v1287_v25 = vpop.f32.mrf.mxu2 }
 0x170   : > { %v1389_v33 = vadd.f32 %v1287_v25, %v1016_v7  ;;  %v1721_v56 = vpop.f32.mrf.mxu3 }
 0x171   : > { %v1017_v31 = vpop.f32.mrf.mxu1 }
 0x172   : > { %v1823_v39 = vadd.f32 %v1721_v56, %v1389_v33  ;;  %v1018_v29 = vadd.f32 %v1017_v31, %v6969_v22  ;;  %v6229_v22 = vld [vmem:[%s6662_s30 + $0x94] sm:$0xff] }
 0x173   : > { %v2357_v52 = vpop.f32.mrf.mxu0  ;;  %v2184_v44 = vshll.u32 %v6229_v22, 16  ;;  %v2188_v6 = vshrl.u32 %v6229_v22, 16 }
 0x174   : > { %v7211_v62 = vadd.f32 %v2355_v46, %v1823_v39 }
 0x177   : > { %v1289_v12 = vpop.f32.mrf.mxu2 }
 0x178   : > { %v1390_v63 = vadd.f32 %v1289_v12, %v1018_v29  ;;  %v1723_v5 = vpop.f32.mrf.mxu3  ;;  %v2186_v12 = vrot.slane %v2184_v44, 1 }
 0x179   : > { %v1020_v61 = vpop.f32.mrf.mxu1 }
 0x17a   : > { %v1824_v7 = vadd.f32 %v1723_v5, %v1390_v63  ;;  %v1021_v60 = vadd.f32 %v1020_v61, %v6978_v37  ;;  %v2190_v22 = vor.u32 %v2188_v6, %v2186_v12 }
 0x17b   : > { %v2360_v25 = vpop.f32.mrf.mxu0 }
 0x17c   : > { %1059 = vmatmul.bf16.gmra.mxu1 %v6541_v59  ;;  %1331 = vmatmul.bf16.gmra.mxu2 %v1159_v32  ;;  %v7218_v46 = vadd.f32 %v2357_v52, %v1824_v7  ;;  %v1160_v59 = vrot.slane %v6867_v34, 1 }
 0x17d   : > { %1765 = vmatmul.bf16.gmra.mxu3 %v6196_v0  ;;  %v6197_v0 = vld [vmem:[%s6662_s30 + $0x8c] sm:$0xff] }
 0x17e   : > { %2399 = vmatmul.bf16.gmra.mxu0 %v2179_v30  ;;  %v1161_v32 = vsel %vm1126_vm1, %v1158_v47, %v1160_v59  ;;  %v2187_v30 = vsel %vm506_vm0, %v2182_v42, %v2186_v12  ;;  %v6308_v47 = vld [vmem:[%s8858_s1 + $0x1c8] sm:$0xff] }
 0x17f   : > { %v1292_v36 = vpop.f32.mrf.mxu2  ;;  %3709 = vmatpush.bf16.msra.mxu3 %v6308_v47  ;;  %v6231_v12 = vld [vmem:[%s6662_s30 + $0xa4] sm:$0xff] }
 0x180   : > { %v1391_v33 = vadd.f32 %v1292_v36, %v1021_v60  ;;  %v1726_v56 = vpop.f32.mrf.mxu3  ;;  %v6230_v60 = vld [vmem:[%s6662_s30 + $0x9c] sm:$0xff] }
 0x181   : > { %v1022_v31 = vpop.f32.mrf.mxu1  ;;  %v2192_v44 = vshll.u32 %v6230_v60, 16 }
 0x182   : > { %v1825_v50 = vadd.f32 %v1726_v56, %v1391_v33  ;;  %v1023_v52 = vadd.f32 %v1022_v31, %v6991_v27  ;;  %v6277_v27 = vld [vmem:[%s8858_s1 + $0x188] sm:$0xff] }
 0x183   : > { %v2362_v39 = vpop.f32.mrf.mxu0  ;;  %3075 = vmatpush.bf16.msra.mxu2 %v6277_v27  ;;  %v6198_v27 = vld [vmem:[%s6662_s30 + $0x94] sm:$0xff] }
 0x184   : > { %v7222_v29 = vadd.f32 %v2360_v25, %v1825_v50  ;;  %v6542_v25 = vld [vmem:[%s6662_s30 + $0x80] sm:$0xff] }
 0x187   : > { %v1294_v37 = vpop.f32.mrf.mxu2 }
 0x188   : > { %v1392_v63 = vadd.f32 %v1294_v37, %v1023_v52  ;;  %v1728_v5 = vpop.f32.mrf.mxu3  ;;  %v6245_v52 = vld [vmem:[%s8858_s1 + $0x148] sm:$0xff]  ;;  %v6543_v37 = vld [vmem:[%s6662_s30 + $0x90] sm:$0xff] }
 0x189   : > { %v1025_v61 = vpop.f32.mrf.mxu1  ;;  %2641 = vmatpush.bf16.msra.mxu1 %v6245_v52  ;;  %v2196_v52 = vshrl.u32 %v6230_v60, 16 }
 0x18a   : > { %v1826_v7 = vadd.f32 %v1728_v5, %v1392_v63  ;;  %v1026_v4 = vadd.f32 %v1025_v61, %v7000_v51  ;;  %v6316_v51 = vld [vmem:[%s8858_s1 + $0x208] sm:$0xff]  ;;  %v1162_v63 = vrot.slane %v6543_v37, 1  ;;  %v2194_v61 = vrot.slane %v2192_v44, 1 }
 0x18b   : > { %v2365_v18 = vpop.f32.mrf.mxu0  ;;  %4028 = vmatpush.bf16.msra.mxu0 %v6316_v51  ;;  %v2200_v51 = vshll.u32 %v6231_v12, 16 }
 0x18c   : > { %1064 = vmatmul.bf16.gmra.mxu1 %v6542_v25  ;;  %1336 = vmatmul.bf16.gmra.mxu2 %v1161_v32  ;;  %v7230_v34 = vadd.f32 %v2362_v39, %v1826_v7  ;;  %v1163_v25 = vsel %vm1126_vm1, %v1160_v59, %v1162_v63 }
 0x18d   : > { %1770 = vmatmul.bf16.gmra.mxu3 %v6197_v0 }
 0x18e   : > { %2404 = vmatmul.bf16.gmra.mxu0 %v2187_v30 }
 0x18f   : > { %v1297_v36 = vpop.f32.mrf.mxu2 }
 0x190   : > { %v1393_v33 = vadd.f32 %v1297_v36, %v1026_v4  ;;  %v1731_v56 = vpop.f32.mrf.mxu3  ;;  %v2195_v36 = vsel %vm506_vm0, %v2190_v22, %v2194_v61  ;;  %v6545_v22 = vld [vmem:[%s6662_s30 + $0x98] sm:$0xff] }
 0x191   : > { %v1027_v31 = vpop.f32.mrf.mxu1 }
 0x192   : > { %v1827_v50 = vadd.f32 %v1731_v56, %v1393_v33  ;;  %v1028_v5 = vadd.f32 %v1027_v31, %v7022_v2 }
 0x193   : > { %v2367_v39 = vpop.f32.mrf.mxu0 }
 0x194   : > { %v7246_v42 = vadd.f32 %v2365_v18, %v1827_v50  ;;  %v6544_v18 = vld [vmem:[%s6662_s30 + $0x88] sm:$0xff] }
 0x197   : > { %v1299_v32 = vpop.f32.mrf.mxu2 }
 0x198   : > { %v1394_v0 = vadd.f32 %v1299_v32, %v1028_v5  ;;  %v1733_v7 = vpop.f32.mrf.mxu3  ;;  %v1164_v32 = vrot.slane %v6545_v22, 1 }
 0x199   : > { %v1030_v30 = vpop.f32.mrf.mxu1 }
 0x19a   : > { %v1828_v47 = vadd.f32 %v1733_v7, %v1394_v0  ;;  %v1031_v2 = vadd.f32 %v1030_v30, %v7034_v17  ;;  %v2198_v0 = vor.u32 %v2196_v52, %v2194_v61  ;;  %v2202_v7 = vrot.slane %v2200_v51, 1  ;;  %v6232_v61 = vld [vmem:[%s6662_s30 + $0xac] sm:$0xff] }
 0x19b   : > { %v2370_v4 = vpop.f32.mrf.mxu0  ;;  %v2204_v52 = vshrl.u32 %v6231_v12, 16  ;;  %v2208_v51 = vshll.u32 %v6232_v61, 16 }
 0x19c   : > { %1069 = vmatmul.bf16.gmra.mxu1 %v6544_v18  ;;  %1341 = vmatmul.bf16.gmra.mxu2 %v1163_v25  ;;  %v7254_v33 = vadd.f32 %v2367_v39, %v1828_v47  ;;  %v1165_v47 = vsel %vm1126_vm1, %v1162_v63, %v1164_v32  ;;  %v2203_v60 = vsel %vm506_vm0, %v2198_v0, %v2202_v7 }
 0x19d   : > { %1775 = vmatmul.bf16.gmra.mxu3 %v6198_v27 }
 0x19e   : > { %2409 = vmatmul.bf16.gmra.mxu0 %v2195_v36  ;;  %v6199_v36 = vld [vmem:[%s6662_s30 + $0x9c] sm:$0xff] }
 0x19f   : > { %v1302_v56 = vpop.f32.mrf.mxu2 }
 0x1a0   : > { %v1395_v31 = vadd.f32 %v1302_v56, %v1031_v2  ;;  %v1736_v50 = vpop.f32.mrf.mxu3 }
 0x1a1   : > { %v1032_v59 = vpop.f32.mrf.mxu1 }
 0x1a2   : > { %v1829_v6 = vadd.f32 %v1736_v50, %v1395_v31  ;;  %v1033_v39 = vadd.f32 %v1032_v59, %v7047_v40 }
 0x1a3   : > { %v2372_v44 = vpop.f32.mrf.mxu0 }
 0x1a4   : > { %v7258_v5 = vadd.f32 %v2370_v4, %v1829_v6 }
 0x1a7   : > { %v1304_v17 = vpop.f32.mrf.mxu2 }
 0x1a8   : > { %v1396_v30 = vadd.f32 %v1304_v17, %v1033_v39  ;;  %v1738_v25 = vpop.f32.mrf.mxu3  ;;  %v2206_v17 = vor.u32 %v2204_v52, %v2202_v7  ;;  %v6307_v7 = vld [vmem:[%s8858_s1 + $0x1c0] sm:$0xff]  ;;  %v2212_v52 = vshrl.u32 %v6232_v61, 16 }
 0x1a9   : > { %v1035_v27 = vpop.f32.mrf.mxu1  ;;  %3710 = vmatpush.bf16.msra.mxu3 %v6307_v7  ;;  %v6201_v7 = vld [vmem:[%s6662_s30 + $0xac] sm:$0xff] }
 0x1aa   : > { %v1830_v18 = vadd.f32 %v1738_v25, %v1396_v30  ;;  %v1036_v40 = vadd.f32 %v1035_v27, %v7056_v55  ;;  %v2210_v30 = vrot.slane %v2208_v51, 1 }
 0x1ab   : > { %v2375_v2 = vpop.f32.mrf.mxu0 }
 0x1ac   : > { %1074 = vmatmul.bf16.gmra.mxu1 %v6543_v37  ;;  %1346 = vmatmul.bf16.gmra.mxu2 %v1165_v47  ;;  %v7265_v4 = vadd.f32 %v2372_v44, %v1830_v18  ;;  %v6546_v37 = vld [vmem:[%s6662_s30 + $0xa0] sm:$0xff]  ;;  %v2211_v12 = vsel %vm506_vm0, %v2206_v17, %v2210_v30 }
 0x1ad   : > { %1780 = vmatmul.bf16.gmra.mxu3 %v6199_v36  ;;  %v1166_v0 = vrot.slane %v6546_v37, 1  ;;  %v6200_v18 = vld [vmem:[%s6662_s30 + $0xa4] sm:$0xff] }
 0x1ae   : > { %2414 = vmatmul.bf16.gmra.mxu0 %v2203_v60 }
 0x1af   : > { %v1307_v56 = vpop.f32.mrf.mxu2  ;;  %v1167_v36 = vsel %vm1126_vm1, %v1164_v32, %v1166_v0 }
 0x1b0   : > { %v1397_v31 = vadd.f32 %v1307_v56, %v1036_v40  ;;  %v1741_v50 = vpop.f32.mrf.mxu3  ;;  %v6233_v56 = vld [vmem:[%s6662_s30 + $0xb4] sm:$0xff] }
 0x1b1   : > { %v1037_v59 = vpop.f32.mrf.mxu1  ;;  %v2216_v51 = vshll.u32 %v6233_v56, 16 }
 0x1b2   : > { %v1831_v63 = vadd.f32 %v1741_v50, %v1397_v31  ;;  %v1038_v44 = vadd.f32 %v1037_v59, %v7069_v3  ;;  %v6276_v3 = vld [vmem:[%s8858_s1 + $0x180] sm:$0xff] }
 0x1b3   : > { %v2377_v6 = vpop.f32.mrf.mxu0  ;;  %3076 = vmatpush.bf16.msra.mxu2 %v6276_v3  ;;  %v2218_v61 = vrot.slane %v2216_v51, 1 }
 0x1b4   : > { %v7269_v39 = vadd.f32 %v2375_v2, %v1831_v63 }
 0x1b7   : > { %v1309_v25 = vpop.f32.mrf.mxu2 }
 0x1b8   : > { %v1398_v55 = vadd.f32 %v1309_v25, %v1038_v44  ;;  %v1743_v27 = vpop.f32.mrf.mxu3  ;;  %v6244_v44 = vld [vmem:[%s8858_s1 + $0x140] sm:$0xff]  ;;  %v6547_v25 = vld [vmem:[%s6662_s30 + $0xa8] sm:$0xff] }
 0x1b9   : > { %v1040_v47 = vpop.f32.mrf.mxu1  ;;  %2642 = vmatpush.bf16.msra.mxu1 %v6244_v44  ;;  %v2220_v44 = vshrl.u32 %v6233_v56, 16 }
 0x1ba   : > { %v1832_v60 = vadd.f32 %v1743_v27, %v1398_v55  ;;  %v1041_v32 = vadd.f32 %v1040_v47, %v7078_v24  ;;  %v6315_v24 = vld [vmem:[%s8858_s1 + $0x200] sm:$0xff]  ;;  %v1168_v55 = vrot.slane %v6547_v25, 1  ;;  %v2214_v47 = vor.u32 %v2212_v52, %v2210_v30 }
 0x1bb   : > { %v2380_v40 = vpop.f32.mrf.mxu0  ;;  %4029 = vmatpush.bf16.msra.mxu0 %v6315_v24  ;;  %v6234_v30 = vld [vmem:[%s6662_s30 + $0xbc] sm:$0xff] }
 0x1bc   : > { %1079 = vmatmul.bf16.gmra.mxu1 %v6545_v22  ;;  %1351 = vmatmul.bf16.gmra.mxu2 %v1167_v36  ;;  %v7276_v2 = vadd.f32 %v2377_v6, %v1832_v60  ;;  %v1169_v3 = vsel %vm1126_vm1, %v1166_v0, %v1168_v55  ;;  %v2224_v24 = vshll.u32 %v6234_v30, 16 }
 0x1bd   : > { %1785 = vmatmul.bf16.gmra.mxu3 %v6200_v18 }
 0x1be   : > { %2419 = vmatmul.bf16.gmra.mxu0 %v2211_v12 }
 0x1bf   : > { %v1312_v31 = vpop.f32.mrf.mxu2 }
 0x1c0   : > { %v1399_v22 = vadd.f32 %v1312_v31, %v1041_v32  ;;  %v1746_v50 = vpop.f32.mrf.mxu3 }
 0x1c1   : > { %v1042_v59 = vpop.f32.mrf.mxu1 }
 0x1c2   : > { %v1833_v63 = vadd.f32 %v1746_v50, %v1399_v22  ;;  %v1043_v27 = vadd.f32 %v1042_v59, %v7097_v9  ;;  %v2219_v22 = vsel %vm506_vm0, %v2214_v47, %v2218_v61 }
 0x1c3   : > { %v2382_v6 = vpop.f32.mrf.mxu0 }
 0x1c4   : > { %v7292_v17 = vadd.f32 %v2380_v40, %v1833_v63 }
 0x1c7   : > { %v1314_v36 = vpop.f32.mrf.mxu2 }
 0x1c8   : > { %v1400_v18 = vadd.f32 %v1314_v36, %v1043_v27  ;;  %v1748_v60 = vpop.f32.mrf.mxu3  ;;  %v2222_v36 = vor.u32 %v2220_v44, %v2218_v61  ;;  %v6235_v61 = vld [vmem:[%s6662_s30 + $0xc4] sm:$0xff]  ;;  %v2228_v44 = vshrl.u32 %v6234_v30, 16 }
 0x1c9   : > { %v1045_v12 = vpop.f32.mrf.mxu1 }
 0x1ca   : > { %v1834_v32 = vadd.f32 %v1748_v60, %v1400_v18  ;;  %v1046_v9 = vadd.f32 %v1045_v12, %v6965_v19  ;;  %v2226_v18 = vrot.slane %v2224_v24, 1  ;;  %v2232_v24 = vshll.u32 %v6235_v61, 16 }
 0x1cb   : > { %v2385_v31 = vpop.f32.mrf.mxu0 }
 0x1cc   : > { %1084 = vmatmul.bf16.gmra.mxu1 %v6546_v37  ;;  %1356 = vmatmul.bf16.gmra.mxu2 %v1169_v3  ;;  %v7299_v40 = vadd.f32 %v2382_v6, %v1834_v32  ;;  %v6548_v37 = vld [vmem:[%s6662_s30 + $0xb0] sm:$0xff]  ;;  %v2227_v56 = vsel %vm506_vm0, %v2222_v36, %v2226_v18 }
 0x1cd   : > { %1790 = vmatmul.bf16.gmra.mxu3 %v6201_v7  ;;  %v1170_v47 = vrot.slane %v6548_v37, 1  ;;  %v6202_v32 = vld [vmem:[%s6662_s30 + $0xb4] sm:$0xff] }
 0x1ce   : > { %2424 = vmatmul.bf16.gmra.mxu0 %v2219_v22 }
 0x1cf   : > { %v1317_v50 = vpop.f32.mrf.mxu2  ;;  %v1171_v7 = vsel %vm1126_vm1, %v1168_v55, %v1170_v47 }
 0x1d0   : > { %v1401_v59 = vadd.f32 %v1317_v50, %v1046_v9  ;;  %v1751_v63 = vpop.f32.mrf.mxu3 }
 0x1d1   : > { %v1047_v52 = vpop.f32.mrf.mxu1 }
 0x1d2   : > { %v1835_v0 = vadd.f32 %v1751_v63, %v1401_v59  ;;  %v1048_v6 = vadd.f32 %v1047_v52, %v6974_v35 }
 0x1d3   : > { %v2387_v51 = vpop.f32.mrf.mxu0 }
 0x1d4   : > { %v7303_v27 = vadd.f32 %v2385_v31, %v1835_v0 }
 0x1d7   : > { %v1319_v19 = vpop.f32.mrf.mxu2 }
 0x1d8   : > { %v1402_v60 = vadd.f32 %v1319_v19, %v1048_v6  ;;  %v1753_v12 = vpop.f32.mrf.mxu3  ;;  %v6549_v6 = vld [vmem:[%s6662_s30 + $0xb8] sm:$0xff]  ;;  %v2230_v19 = vor.u32 %v2228_v44, %v2226_v18 }
 0x1d9   : > { %v1050_v3 = vpop.f32.mrf.mxu1 }
 0x1da   : > { %v1836_v22 = vadd.f32 %v1753_v12, %v1402_v60  ;;  %v1051_v35 = vadd.f32 %v1050_v3, %v6987_v43  ;;  %v2234_v60 = vrot.slane %v2232_v24, 1  ;;  %v1907_v12 = vld [vmem:[%s6662_s30 + $0xcc] sm:$0x1] }
 0x1db   : > { %v2390_v9 = vpop.f32.mrf.mxu0 }
 0x1dc   : > { %1089 = vmatmul.bf16.gmra.mxu1 %v6547_v25  ;;  %1361 = vmatmul.bf16.gmra.mxu2 %v1171_v7  ;;  %v7310_v31 = vadd.f32 %v2387_v51, %v1836_v22  ;;  %v1172_v51 = vrot.slane %v6549_v6, 1  ;;  %v2235_v30 = vsel %vm506_vm0, %v2230_v19, %v2234_v60  ;;  %v1174_v19 = vrot.slane %v6908_v11, 1  ;;  %v6454_v11 = vld [vmem:[%s6662_s30 + $0x18] sm:$0xff]  }
 0x1dd   : > { %1795 = vmatmul.bf16.gmra.mxu3 %v6202_v32 }
 0x1de   : > { %2429 = vmatmul.bf16.gmra.mxu0 %v2227_v56  ;;  %v1173_v22 = vsel %vm1126_vm1, %v1170_v47, %v1172_v51  ;;  %v6203_v56 = vld [vmem:[%s6662_s30 + $0xbc] sm:$0xff] }
 0x1df   : > { %v1322_v50 = vpop.f32.mrf.mxu2 }
 0x1e0   : > { %v1403_v59 = vadd.f32 %v1322_v50, %v1051_v35  ;;  %v1756_v63 = vpop.f32.mrf.mxu3 }
 0x1e1   : > { %v1052_v55 = vpop.f32.mrf.mxu1 }
 0x1e2   : > { %v1837_v52 = vadd.f32 %v1756_v63, %v1403_v59  ;;  %v1053_v36 = vadd.f32 %v1052_v55, %v6996_v49 }
 0x1e3   : > { %v2392_v0 = vpop.f32.mrf.mxu0 }
 0x1e4   : > { %v7314_v25 = vadd.f32 %v2390_v9, %v1837_v52  ;;  %v2022_v9 = vunpack.c.l.b16 %v1907_v12 }
 0x1e6   : > { %v7325_v18 = vpack.c.b16 %v2022_v9, %v2022_v9  ;;  %v6574_v9 = vld [vmem:[%s6662_s30 + $0xc] sm:$0xe] }
 0x1e7   : > { %v1324_v43 = vpop.f32.mrf.mxu2 }
 0x1e8   : > { %v1404_v3 = vadd.f32 %v1324_v43, %v1053_v36  ;;  %v1758_v7 = vpop.f32.mrf.mxu3  ;;  %v2236_v36 = vshrl.u32 %v6235_v61, 16  ;;  %v6204_v61 = vld [vmem:[%s6662_s30 + $0xc4] sm:$0xff] }
 0x1e9   : > { %v1055_v32 = vpop.f32.mrf.mxu1 }
 0x1ea   : > { %v1838_v35 = vadd.f32 %v1758_v7, %v1404_v3  ;;  %v1056_v49 = vadd.f32 %v1055_v32, %v7015_v8  ;;  %v2238_v43 = vor.u32 %v2236_v36, %v2234_v60  ;;  %v3438_v60 = vshll.u32 %v6454_v11, 16 }
 0x1eb   : > { %v2395_v50 = vpop.f32.mrf.mxu0 }
 0x1ec   : > { %1094 = vmatmul.bf16.gmra.mxu1 %v6548_v37  ;;  %1366 = vmatmul.bf16.gmra.mxu2 %v1173_v22  ;;  %v7322_v59 = vadd.f32 %v2392_v0, %v1838_v35  ;;  %v2240_v37 = vshll.u32 %v7325_v18, 16 }
 0x1ed   : > { %1800 = vmatmul.bf16.gmra.mxu3 %v6203_v56  ;;  %v1175_v56 = vsel %vm1126_vm1, %v1172_v51, %v1174_v19  ;;  %v3440_v19 = vrot.slane %v3438_v60, 1 }
 0x1ee   : > { %2434 = vmatmul.bf16.gmra.mxu0 %v2235_v30  ;;  %v2242_v12 = vrot.slane %v2240_v37, 1  ;;  %v6575_v37 = vor.u32 %v6574_v9, %v6919_v20 }
 0x1ef   : > { %v1327_v63 = vpop.f32.mrf.mxu2 }
 0x1f0   : > { %v1405_v55 = vadd.f32 %v1327_v63, %v1056_v49  ;;  %v1761_v52 = vpop.f32.mrf.mxu3  ;;  %v7341_v63 = vld [vmem:[%s6662_s30 + $0x20] sm:$0xff]  ;;  %v2514_v20 = vrot.slane %v6575_v37, 1 }
 0x1f1   : > { %v1057_v47 = vpop.f32.mrf.mxu1  ;;  %v3902_v9 = vrot.slane %v7341_v63, 1 }
 0x1f2   : > { %v1839_v44 = vadd.f32 %v1761_v52, %v1405_v55  ;;  %v1058_v8 = vadd.f32 %v1057_v47, %v7030_v13  ;;  %v6455_v55 = vld [vmem:[%s6662_s30 + $0x18] sm:$0xf0]  ;;  %v6456_v52 = vld [vmem:[%s6662_s30 + $0x18] sm:$0xe] }
 0x1f3   : > { %v2397_v24 = vpop.f32.mrf.mxu0 }
 0x1f4   : > { %v7328_v0 = vadd.f32 %v2395_v50, %v1839_v44  ;;  %v2243_v50 = vsel %vm506_vm0, %v2238_v43, %v2242_v12  ;;  %v3443_v43 = vshll.u32 %v7341_v63, 16  ;;  %v6457_v12 = vor.u32 %v6456_v52, %v6455_v55 }
 0x1f7   : > { %v1329_v3 = vpop.f32.mrf.mxu2 }
 0x1f8   : > { %v1406_v7 = vadd.f32 %v1329_v3, %v1058_v8  ;;  %v1763_v32 = vpop.f32.mrf.mxu3  ;;  %v6600_v3 = vmov 0  }
 0x1f9   : > { %v1060_v22 = vpop.f32.mrf.mxu1  ;;  %6532 = vset.pattern.permute.xlu0 %v6600_v3  ;;  %6533 = vset.pattern.permute.xlu1 %v6600_v3 }
 0x1fa   : > { %v1840_v35 = vadd.f32 %v1763_v32, %v1406_v7  ;;  %v1061_v49 = vadd.f32 %v1060_v22, %v7043_v54  ;;  %v4251_v54 = vld [vmem:[%s8860_s3] sm:$0xff]  ;;  %6534 = vset.pattern.permute.xlu2 %v6600_v3  ;;  %v6550_v32 = vld [vmem:[%s6662_s30 + $0x14] sm:$0xff] }
 0x1fb   : > { %v2400_v30 = vpop.f32.mrf.mxu0  ;;  %4301 = vperm.xlu0 %6532, %v4251_v54   ;;  %v2515_v22 = vrot.slane %v6550_v32, 1 }
 0x1fc   : > { %1099 = vmatmul.bf16.gmra.mxu1 %v6549_v6  ;;  %1371 = vmatmul.bf16.gmra.mxu2 %v1175_v56  ;;  %v7337_v13 = vadd.f32 %v2397_v24, %v1840_v35  ;;  %v3436_v6 = vshrl.u32 %v6454_v11, 16  ;;  %v3445_v35 = vrot.slane %v3443_v43, 1 }
 0x1fd   : > { %1805 = vmatmul.bf16.gmra.mxu3 %v6204_v61  ;;  %v2516_v52 = vsel %vm1126_vm1, %v2514_v20, %v2515_v22  ;;  %v3447_v20 = vshrl.u32 %v7341_v63, 16 }
 0x1fe   : > { %2439 = vmatmul.bf16.gmra.mxu0 %v2243_v50  ;;  %v3441_v56 = vor.u32 %v3440_v19, %v3436_v6  ;;  %v3901_v50 = vrot.slane %v6457_v12, 1  ;;  %v7366_v19 = vld [vmem:[%s6662_s30 + $0x28] sm:$0xff] }
 0x1ff   : > { %v1332_v51 = vpop.f32.mrf.mxu2  ;;  %v3451_v32 = vshll.u32 %v7366_v19, 16 }
 0x200   : > { %v1407_v47 = vadd.f32 %v1332_v51, %v1061_v49  ;;  %v1766_v44 = vpop.f32.mrf.mxu3  ;;  %v6252_v51 = vld [vmem:[%s6662_s30 + $0x18] sm:$0xff]  ;;  %v3903_v37 = vsel %vm1126_vm1, %v3901_v50, %v3902_v9 }
 0x201   : > { %v1062_v36 = vpop.f32.mrf.mxu1 }
 0x202   : > { %v1841_v24 = vadd.f32 %v1766_v44, %v1407_v47  ;;  %v1063_v61 = vadd.f32 %v1062_v36, %v7052_v48  ;;  %v3446_v44 = vsel %vm506_vm0, %v3441_v56, %v3445_v35  ;;  %v4252_v36 = vld [vmem:[%s8860_s3 + $0x8] sm:$0xff]  ;;  %v4253_v56 = vld [vmem:[%s8860_s3 + $0x10] sm:$0xff] }
 0x203   : > { %v2402_v8 = vpop.f32.mrf.mxu0  ;;  %4306 = vperm.xlu0 %6532, %v4252_v36   ;;  %4311 = vperm.xlu1 %6533, %v4253_v56  }
 0x204   : > { %v7350_v7 = vadd.f32 %v2400_v30, %v1841_v24 }
 0x207   : > { %v1334_v11 = vpop.f32.mrf.mxu2 }
 0x208   : > { %v1408_v60 = vadd.f32 %v1334_v11, %v1063_v61  ;;  %v1768_v49 = vpop.f32.mrf.mxu3  ;;  %v6551_v61 = vld [vmem:[%s6662_s30 + $0x1c] sm:$0xff] }
 0x209   : > { %v1065_v55 = vpop.f32.mrf.mxu1  ;;  %v2517_v50 = vrot.slane %v6551_v61, 1 }
 0x20a   : > { %v1842_v30 = vadd.f32 %v1768_v49, %v1408_v60  ;;  %v1066_v6 = vadd.f32 %v1065_v55, %v7065_v1  ;;  %v3449_v60 = vor.u32 %v3447_v20, %v3445_v35  ;;  %v3453_v49 = vrot.slane %v3451_v32, 1  ;;  %v4254_v35 = vld [vmem:[%s8860_s3 + $0x18] sm:$0xff] }
 0x20b   : > { %v2405_v47 = vpop.f32.mrf.mxu0  ;;  %4316 = vperm.xlu1 %6533, %v4254_v35  }
 0x20c   : > { %2643 = vmatmul.bf16.vlgmr.msra.gmra.mxu1 %v2516_v52  ;;  %3077 = vmatmul.bf16.vlgmr.msra.gmra.mxu2 %v6252_v51  ;;  %v7359_v48 = vadd.f32 %v2402_v8, %v1842_v30  ;;  %v3904_v51 = vrot.slane %v7366_v19, 1  ;;  %v6253_v30 = vld [vmem:[%s6662_s30 + $0x20] sm:$0xff] }
 0x20d   : > { %3711 = vmatmul.bf16.vlgmr.msra.gmra.mxu3 %v3446_v44 }
 0x20e   : > { %4030 = vmatmul.bf16.vlgmr.msra.gmra.mxu0 %v3903_v37  ;;  %v2518_v37 = vsel %vm1126_vm1, %v2515_v22, %v2517_v50  ;;  %v6286_v22 = vld [vmem:[%s6662_s30 + $0x30] sm:$0xff] }
 0x20f   : > { %v1337_v24 = vpop.f32.mrf.mxu2  ;;  %v3459_v56 = vshll.u32 %v6286_v22, 16 }
 0x210   : > { %v1409_v43 = vadd.f32 %v1337_v24, %v1066_v6  ;;  %v1771_v12 = vpop.f32.mrf.mxu3  ;;  %v3905_v24 = vsel %vm1126_vm1, %v3902_v9, %v3904_v51 }
 0x211   : > { %v1067_v54 = vpop.f32.mrf.mxu1 }
 0x212   : > { %v1843_v3 = vadd.f32 %v1771_v12, %v1409_v43  ;;  %v1068_v11 = vadd.f32 %v1067_v54, %v7074_v28 }
 0x213   : > { %v2407_v8 = vpop.f32.mrf.mxu0 }
 0x214   : > { %v7373_v1 = vadd.f32 %v2405_v47, %v1843_v3  ;;  %v3454_v47 = vsel %vm506_vm0, %v3449_v60, %v3453_v49 }
 0x217   : > { %v1339_v55 = vpop.f32.mrf.mxu2 }
 0x218   : > { %v1410_v52 = vadd.f32 %v1339_v55, %v1068_v11  ;;  %v1773_v63 = vpop.f32.mrf.mxu3  ;;  %v6552_v11 = vld [vmem:[%s6662_s30 + $0x24] sm:$0xff]  ;;  %v8913_v55 = vld [vmem:[#allocation13_spill] sm:$0xff] }
 0x219   : > { %v1070_v44 = vpop.f32.mrf.mxu1  ;;  %v2519_v60 = vrot.slane %v6552_v11, 1 }
 0x21a   : > { %v1844_v36 = vadd.f32 %v1773_v63, %v1410_v52  ;;  %v1071_v43 = vadd.f32 %v1070_v44, %v7093_v23  ;;  %v3461_v23 = vrot.slane %v3459_v56, 1 }
 0x21b   : > { %v2410_v6 = vpop.f32.mrf.mxu0  ;;  %v2520_v35 = vsel %vm1126_vm1, %v2517_v50, %v2519_v60 }
 0x21c   : > { %2648 = vmatmul.bf16.gmra.mxu1 %v2518_v37  ;;  %3082 = vmatmul.bf16.gmra.mxu2 %v6253_v30  ;;  %v7382_v28 = vadd.f32 %v2407_v8, %v1844_v36  ;;  %v3455_v8 = vshrl.u32 %v7366_v19, 16  ;;  %v3906_v30 = vrot.slane %v6286_v22, 1 }
 0x21d   : > { %3716 = vmatmul.bf16.gmra.mxu3 %v3454_v47  ;;  %v6254_v47 = vld [vmem:[%s6662_s30 + $0x28] sm:$0xff] }
 0x21e   : > { %4035 = vmatmul.bf16.gmra.mxu0 %v3905_v24  ;;  %v3457_v63 = vor.u32 %v3455_v8, %v3453_v49  ;;  %v8914_v49 = vld [vmem:[#allocation2_spill] sm:$0xff] }
 0x21f   : > { %v1342_v12 = vpop.f32.mrf.mxu2 }
 0x220   : > { %v1411_v54 = vadd.f32 %v1342_v12, %v1071_v43  ;;  %v1776_v3 = vpop.f32.mrf.mxu3  ;;  %v3907_v12 = vsel %vm1126_vm1, %v3904_v51, %v3906_v30 }
 0x221   : > { %v1072_v9 = vpop.f32.mrf.mxu1 }
 0x222   : > { %v1845_v20 = vadd.f32 %v1776_v3, %v1411_v54  ;;  %v1073_v52 = vadd.f32 %v1072_v9, %v8913_v55  ;;  %v7402_v9 = vld [vmem:[%s6662_s30 + $0x38] sm:$0xff] }
 0x223   : > { %v2412_v32 = vpop.f32.mrf.mxu0  ;;  %v3467_v51 = vshll.u32 %v7402_v9, 16 }
 0x224   : > { %v7390_v61 = vadd.f32 %v2410_v6, %v1845_v20  ;;  %v3462_v6 = vsel %vm506_vm0, %v3457_v63, %v3461_v23 }
 0x227   : > { %v1344_v44 = vpop.f32.mrf.mxu2 }
 0x228   : > { %v1412_v37 = vadd.f32 %v1344_v44, %v1073_v52  ;;  %v1778_v36 = vpop.f32.mrf.mxu3  ;;  %v3463_v52 = vshrl.u32 %v6286_v22, 16  ;;  %v6553_v44 = vld [vmem:[%s6662_s30 + $0x2c] sm:$0xff] }
 0x229   : > { %v1075_v24 = vpop.f32.mrf.mxu1 }
 0x22a   : > { %v1846_v43 = vadd.f32 %v1778_v36, %v1412_v37  ;;  %v1076_v3 = vadd.f32 %v1075_v24, %v8914_v49  ;;  %v2521_v37 = vrot.slane %v6553_v44, 1  ;;  %v8915_v36 = vld [vmem:[#allocation3_spill] sm:$0xff]  ;;  %v3465_v24 = vor.u32 %v3463_v52, %v3461_v23  ;;  %v6255_v49 = vld [vmem:[%s6662_s30 + $0x30] sm:$0xff] }
 0x22b   : > { %v2415_v19 = vpop.f32.mrf.mxu0  ;;  %v8917_v52 = vld [vmem:[#allocation4_spill] sm:$0xff] }
 0x22c   : > { %2653 = vmatmul.bf16.gmra.mxu1 %v2520_v35  ;;  %3087 = vmatmul.bf16.gmra.mxu2 %v6254_v47  ;;  %v7398_v54 = vadd.f32 %v2412_v32, %v1846_v43  ;;  %v4257_v32 = vld [vmem:[%s8860_s3 + $0x30] sm:$0xff]  ;;  %v3469_v35 = vrot.slane %v3467_v51, 1  ;;  %v3908_v43 = vrot.slane %v7402_v9, 1 }
 0x22d   : > { %3721 = vmatmul.bf16.gmra.mxu3 %v3462_v6  ;;  %4331 = vperm.xlu0 %6532, %v4257_v32   ;;  %v7427_v32 = vld [vmem:[%s6662_s30 + $0x40] sm:$0xff] }
 0x22e   : > { %4040 = vmatmul.bf16.gmra.mxu0 %v3907_v12 }
 0x22f   : > { %v1347_v20 = vpop.f32.mrf.mxu2 }
 0x230   : > { %v1413_v8 = vadd.f32 %v1347_v20, %v1076_v3  ;;  %v1781_v50 = vpop.f32.mrf.mxu3  ;;  %v2522_v20 = vsel %vm1126_vm1, %v2519_v60, %v2521_v37  ;;  %v4258_v60 = vld [vmem:[%s8860_s3 + $0x38] sm:$0xff] }
 0x231   : > { %v1077_v56 = vpop.f32.mrf.mxu1  ;;  %4336 = vperm.xlu1 %6533, %v4258_v60   ;;  %v3910_v60 = vrot.slane %v7427_v32, 1 }
 0x232   : > { %v1847_v11 = vadd.f32 %v1781_v50, %v1413_v8  ;;  %v1078_v47 = vadd.f32 %v1077_v56, %v8915_v36  ;;  %v4255_v56 = vld [vmem:[%s8860_s3 + $0x20] sm:$0xff] }
 0x233   : > { %v2417_v55 = vpop.f32.mrf.mxu0  ;;  %4321 = vperm.xlu2 %6534, %v4255_v56  }
 0x234   : > { %v7408_v63 = vadd.f32 %v2415_v19, %v1847_v11  ;;  %v3470_v19 = vsel %vm506_vm0, %v3465_v24, %v3469_v35  ;;  %v3909_v11 = vsel %vm1126_vm1, %v3906_v30, %v3908_v43 }
 0x237   : > { %v1349_v6 = vpop.f32.mrf.mxu2 }
 0x238   : > { %v1414_v12 = vadd.f32 %v1349_v6, %v1078_v47  ;;  %v1783_v22 = vpop.f32.mrf.mxu3  ;;  %v3471_v6 = vshrl.u32 %v7402_v9, 16 }
 0x239   : > { %v1080_v3 = vpop.f32.mrf.mxu1 }
 0x23a   : > { %v1848_v8 = vadd.f32 %v1783_v22, %v1414_v12  ;;  %v1081_v51 = vadd.f32 %v1080_v3, %v8917_v52  ;;  %v3475_v12 = vshll.u32 %v7427_v32, 16  ;;  %v4256_v22 = vld [vmem:[%s8860_s3 + $0x28] sm:$0xff]  ;;  %v6554_v3 = vld [vmem:[%s6662_s30 + $0x34] sm:$0xff] }
 0x23b   : > { %v2420_v50 = vpop.f32.mrf.mxu0  ;;  %4326 = vperm.xlu2 %6534, %v4256_v22  }
 0x23c   : > { %2658 = vmatmul.bf16.gmra.mxu1 %v2522_v20  ;;  %3092 = vmatmul.bf16.gmra.mxu2 %v6255_v49  ;;  %v7417_v23 = vadd.f32 %v2417_v55, %v1848_v8  ;;  %v2523_v20 = vrot.slane %v6554_v3, 1  ;;  %v8919_v8 = vld [vmem:[#allocation5_spill] sm:$0xff]  ;;  %v3477_v56 = vrot.slane %v3475_v12, 1  ;;  %v3911_v3 = vsel %vm1126_vm1, %v3908_v43, %v3910_v60 }
 0x23d   : > { %3726 = vmatmul.bf16.gmra.mxu3 %v3470_v19 }
 0x23e   : > { %8916 = vst [vmem:[#allocation13_spill] sm:$0xff] %v7417_v23  ;;  %4045 = vmatmul.bf16.gmra.mxu0 %v3909_v11  ;;  %v3473_v11 = vor.u32 %v3471_v6, %v3469_v35  ;;  %v8921_v6 = vld [vmem:[#allocation6_spill] sm:$0xff] }
 0x23f   : > { %v1352_v30 = vpop.f32.mrf.mxu2 }
 0x240   : > { %v1415_v55 = vadd.f32 %v1352_v30, %v1081_v51  ;;  %v1786_v44 = vpop.f32.mrf.mxu3  ;;  %v6256_v30 = vld [vmem:[%s6662_s30 + $0x38] sm:$0xff] }
 0x241   : > { %v1082_v36 = vpop.f32.mrf.mxu1 }
 0x242   : > { %v1849_v47 = vadd.f32 %v1786_v44, %v1415_v55  ;;  %v1083_v19 = vadd.f32 %v1082_v36, %v8919_v8  ;;  %v2524_v44 = vsel %vm1126_vm1, %v2521_v37, %v2523_v20  ;;  %v4260_v36 = vld [vmem:[%s8860_s3 + $0x48] sm:$0xff] }
 0x243   : > { %v2422_v24 = vpop.f32.mrf.mxu0  ;;  %v7450_v37 = vld [vmem:[%s6662_s30 + $0x48] sm:$0xff]  ;;  %4346 = vperm.xlu0 %6532, %v4260_v36  }
 0x244   : > { %v7434_v49 = vadd.f32 %v2420_v50, %v1849_v47  ;;  %v3478_v47 = vsel %vm506_vm0, %v3473_v11, %v3477_v56 }
 0x246   : > { %8918 = vst [vmem:[#allocation2_spill] sm:$0xff] %v7434_v49 }
 0x247   : > { %v1354_v52 = vpop.f32.mrf.mxu2 }
 0x248   : > { %v1416_v51 = vadd.f32 %v1354_v52, %v1083_v19  ;;  %v1788_v9 = vpop.f32.mrf.mxu3  ;;  %v3483_v52 = vshll.u32 %v7450_v37, 16 }
 0x249   : > { %v1085_v55 = vpop.f32.mrf.mxu1 }
 0x24a   : > { %v1850_v23 = vadd.f32 %v1788_v9, %v1416_v51  ;;  %v1086_v12 = vadd.f32 %v1085_v55, %v8921_v6  ;;  %v4261_v51 = vld [vmem:[%s8860_s3 + $0x50] sm:$0xff]  ;;  %v3485_v36 = vrot.slane %v3483_v52, 1  ;;  %v3912_v6 = vrot.slane %v7450_v37, 1 }
 0x24b   : > { %v2425_v50 = vpop.f32.mrf.mxu0  ;;  %4351 = vperm.xlu1 %6533, %v4261_v51  }
 0x24c   : > { %2663 = vmatmul.bf16.gmra.mxu1 %v2524_v44  ;;  %3097 = vmatmul.bf16.gmra.mxu2 %v6256_v30  ;;  %v7443_v35 = vadd.f32 %v2422_v24, %v1850_v23  ;;  %v3479_v24 = vshrl.u32 %v7427_v32, 16  ;;  %v6555_v30 = vld [vmem:[%s6662_s30 + $0x3c] sm:$0xff]  ;;  %v8923_v44 = vld [vmem:[#allocation7_spill] sm:$0xff] }
 0x24d   : > { %3731 = vmatmul.bf16.gmra.mxu3 %v3478_v47  ;;  %v2525_v55 = vrot.slane %v6555_v30, 1 }
 0x24e   : > { %8920 = vst [vmem:[#allocation3_spill] sm:$0xff] %v7443_v35  ;;  %4050 = vmatmul.bf16.gmra.mxu0 %v3911_v3  ;;  %v3481_v3 = vor.u32 %v3479_v24, %v3477_v56  ;;  %v8925_v24 = vld [vmem:[#allocation8_spill] sm:$0xff] }
 0x24f   : > { %v1357_v22 = vpop.f32.mrf.mxu2  ;;  %v2526_v35 = vsel %vm1126_vm1, %v2523_v20, %v2525_v55  ;;  %v7473_v20 = vld [vmem:[%s6662_s30 + $0x50] sm:$0xff] }
 0x250   : > { %v1417_v8 = vadd.f32 %v1357_v22, %v1086_v12  ;;  %v1791_v19 = vpop.f32.mrf.mxu3 }
 0x251   : > { %v1087_v43 = vpop.f32.mrf.mxu1 }
 0x252   : > { %v1851_v11 = vadd.f32 %v1791_v19, %v1417_v8  ;;  %v1088_v47 = vadd.f32 %v1087_v43, %v8923_v44  ;;  %v6257_v8 = vld [vmem:[%s6662_s30 + $0x40] sm:$0xff] }
 0x253   : > { %v2427_v23 = vpop.f32.mrf.mxu0  ;;  %v4259_v43 = vld [vmem:[%s8860_s3 + $0x40] sm:$0xff] }
 0x254   : > { %v7457_v9 = vadd.f32 %v2425_v50, %v1851_v11  ;;  %v3486_v50 = vsel %vm506_vm0, %v3481_v3, %v3485_v36  ;;  %v3913_v11 = vsel %vm1126_vm1, %v3910_v60, %v3912_v6  ;;  %4341 = vperm.xlu2 %6534, %v4259_v43   ;;  %v3491_v3 = vshll.u32 %v7473_v20, 16 }
 0x256   : > { %8922 = vst [vmem:[#allocation4_spill] sm:$0xff] %v7457_v9  ;;  %v3493_v43 = vrot.slane %v3491_v3, 1 }
 0x257   : > { %v1359_v12 = vpop.f32.mrf.mxu2 }
 0x258   : > { %v1418_v22 = vadd.f32 %v1359_v12, %v1088_v47  ;;  %v1793_v32 = vpop.f32.mrf.mxu3  ;;  %v4263_v12 = vld [vmem:[%s8860_s3 + $0x60] sm:$0xff] }
 0x259   : > { %v1090_v19 = vpop.f32.mrf.mxu1  ;;  %4361 = vperm.xlu0 %6532, %v4263_v12  }
 0x25a   : > { %v1852_v49 = vadd.f32 %v1793_v32, %v1418_v22  ;;  %v1091_v52 = vadd.f32 %v1090_v19, %v8925_v24  ;;  %v6556_v32 = vld [vmem:[%s6662_s30 + $0x44] sm:$0xff]  ;;  %v8927_v19 = vld [vmem:[#allocation9_spill] sm:$0xff]  ;;  %v3914_v24 = vrot.slane %v7473_v20, 1 }
 0x25b   : > { %v2430_v51 = vpop.f32.mrf.mxu0 }
 0x25c   : > { %2668 = vmatmul.bf16.gmra.mxu1 %v2526_v35  ;;  %3102 = vmatmul.bf16.gmra.mxu2 %v6257_v8  ;;  %v7466_v56 = vadd.f32 %v2427_v23, %v1852_v49  ;;  %v3487_v23 = vshrl.u32 %v7450_v37, 16  ;;  %v2527_v8 = vrot.slane %v6556_v32, 1 }
 0x25d   : > { %3736 = vmatmul.bf16.gmra.mxu3 %v3486_v50 }
 0x25e   : > { %8924 = vst [vmem:[#allocation5_spill] sm:$0xff] %v7466_v56  ;;  %4055 = vmatmul.bf16.gmra.mxu0 %v3913_v11  ;;  %v3489_v11 = vor.u32 %v3487_v23, %v3485_v36  ;;  %v2528_v56 = vsel %vm1126_vm1, %v2525_v55, %v2527_v8  ;;  %v8929_v23 = vld [vmem:[#allocation10_spill] sm:$0xff]  ;;  %v7496_v55 = vld [vmem:[%s6662_s30 + $0x58] sm:$0xff] }
 0x25f   : > { %v1362_v30 = vpop.f32.mrf.mxu2 }
 0x260   : > { %v1419_v44 = vadd.f32 %v1362_v30, %v1091_v52  ;;  %v1796_v47 = vpop.f32.mrf.mxu3 }
 0x261   : > { %v1092_v60 = vpop.f32.mrf.mxu1 }
 0x262   : > { %v1853_v35 = vadd.f32 %v1796_v47, %v1419_v44  ;;  %v1093_v50 = vadd.f32 %v1092_v60, %v8927_v19  ;;  %v6258_v44 = vld [vmem:[%s6662_s30 + $0x48] sm:$0xff] }
 0x263   : > { %v2432_v49 = vpop.f32.mrf.mxu0  ;;  %v4264_v60 = vld [vmem:[%s8860_s3 + $0x68] sm:$0xff] }
 0x264   : > { %v7480_v22 = vadd.f32 %v2430_v51, %v1853_v35  ;;  %v3494_v51 = vsel %vm506_vm0, %v3489_v11, %v3493_v43  ;;  %v3915_v35 = vsel %vm1126_vm1, %v3912_v6, %v3914_v24  ;;  %4366 = vperm.xlu1 %6533, %v4264_v60   ;;  %v3499_v11 = vshll.u32 %v7496_v55, 16 }
 0x266   : > { %8926 = vst [vmem:[#allocation6_spill] sm:$0xff] %v7480_v22  ;;  %v3501_v60 = vrot.slane %v3499_v11, 1 }
 0x267   : > { %v1364_v52 = vpop.f32.mrf.mxu2 }
 0x268   : > { %v1420_v30 = vadd.f32 %v1364_v52, %v1093_v50  ;;  %v1798_v37 = vpop.f32.mrf.mxu3  ;;  %v4262_v52 = vld [vmem:[%s8860_s3 + $0x58] sm:$0xff] }
 0x269   : > { %v1095_v47 = vpop.f32.mrf.mxu1  ;;  %4356 = vperm.xlu2 %6534, %v4262_v52  }
 0x26a   : > { %v1854_v9 = vadd.f32 %v1798_v37, %v1420_v30  ;;  %v1096_v3 = vadd.f32 %v1095_v47, %v8929_v23  ;;  %v6557_v37 = vld [vmem:[%s6662_s30 + $0x4c] sm:$0xff]  ;;  %v3916_v23 = vrot.slane %v7496_v55, 1 }
 0x26b   : > { %v2435_v12 = vpop.f32.mrf.mxu0  ;;  %v8931_v47 = vld [vmem:[#allocation11_spill] sm:$0xff] }
 0x26c   : > { %2673 = vmatmul.bf16.gmra.mxu1 %v2528_v56  ;;  %3107 = vmatmul.bf16.gmra.mxu2 %v6258_v44  ;;  %v7489_v36 = vadd.f32 %v2432_v49, %v1854_v9  ;;  %v3495_v49 = vshrl.u32 %v7473_v20, 16  ;;  %v2529_v44 = vrot.slane %v6557_v37, 1  ;;  %v3917_v52 = vsel %vm1126_vm1, %v3914_v24, %v3916_v23 }
 0x26d   : > { %3741 = vmatmul.bf16.gmra.mxu3 %v3494_v51 }
 0x26e   : > { %8928 = vst [vmem:[#allocation7_spill] sm:$0xff] %v7489_v36  ;;  %4060 = vmatmul.bf16.gmra.mxu0 %v3915_v35  ;;  %v3497_v35 = vor.u32 %v3495_v49, %v3493_v43  ;;  %v2530_v36 = vsel %vm1126_vm1, %v2527_v8, %v2529_v44  ;;  %v8933_v49 = vld [vmem:[#allocation12_spill] sm:$0xff]  ;;  %v7519_v8 = vld [vmem:[%s6662_s30 + $0x60] sm:$0xff] }
 0x26f   : > { %v1367_v32 = vpop.f32.mrf.mxu2 }
 0x270   : > { %v1421_v19 = vadd.f32 %v1367_v32, %v1096_v3  ;;  %v1801_v50 = vpop.f32.mrf.mxu3 }
 0x271   : > { %v1097_v6 = vpop.f32.mrf.mxu1 }
 0x272   : > { %v1855_v56 = vadd.f32 %v1801_v50, %v1421_v19  ;;  %v1098_v51 = vadd.f32 %v1097_v6, %v8931_v47  ;;  %v6259_v19 = vld [vmem:[%s6662_s30 + $0x50] sm:$0xff]  ;;  %v4266_v6 = vld [vmem:[%s8860_s3 + $0x78] sm:$0xff] }
 0x273   : > { %v2437_v9 = vpop.f32.mrf.mxu0  ;;  %4376 = vperm.xlu0 %6532, %v4266_v6  }
 0x274   : > { %v7503_v30 = vadd.f32 %v2435_v12, %v1855_v56  ;;  %v3502_v56 = vsel %vm506_vm0, %v3497_v35, %v3501_v60  ;;  %v3507_v35 = vshll.u32 %v7519_v8, 16 }
 0x276   : > { %8930 = vst [vmem:[#allocation8_spill] sm:$0xff] %v7503_v30  ;;  %v3509_v6 = vrot.slane %v3507_v35, 1 }
 0x277   : > { %v1369_v3 = vpop.f32.mrf.mxu2 }
 0x278   : > { %v1422_v32 = vadd.f32 %v1369_v3, %v1098_v51  ;;  %v1803_v20 = vpop.f32.mrf.mxu3  ;;  %v4267_v3 = vld [vmem:[%s8860_s3 + $0x80] sm:$0xff] }
 0x279   : > { %v1100_v50 = vpop.f32.mrf.mxu1  ;;  %4381 = vperm.xlu1 %6533, %v4267_v3  }
 0x27a   : > { %v1856_v22 = vadd.f32 %v1803_v20, %v1422_v32  ;;  %v1101_v11 = vadd.f32 %v1100_v50, %v8933_v49  ;;  %v6558_v20 = vld [vmem:[%s6662_s30 + $0x54] sm:$0xff]  ;;  %v8935_v50 = vld [vmem:[#allocation14_spill] sm:$0xff]  ;;  %v3918_v49 = vrot.slane %v7519_v8, 1 }
 0x27b   : > { %v2440_v12 = vpop.f32.mrf.mxu0 }
 0x27c   : > { %2678 = vmatmul.bf16.gmra.mxu1 %v2530_v36  ;;  %3112 = vmatmul.bf16.gmra.mxu2 %v6259_v19  ;;  %v7512_v43 = vadd.f32 %v2437_v9, %v1856_v22  ;;  %v3503_v9 = vshrl.u32 %v7496_v55, 16  ;;  %v2531_v19 = vrot.slane %v6558_v20, 1 }
 0x27d   : > { %3746 = vmatmul.bf16.gmra.mxu3 %v3502_v56 }
 0x27e   : > { %8932 = vst [vmem:[#allocation9_spill] sm:$0xff] %v7512_v43  ;;  %4065 = vmatmul.bf16.gmra.mxu0 %v3917_v52  ;;  %v3505_v52 = vor.u32 %v3503_v9, %v3501_v60  ;;  %v2532_v43 = vsel %vm1126_vm1, %v2529_v44, %v2531_v19  ;;  %v4265_v9 = vld [vmem:[%s8860_s3 + $0x70] sm:$0xff]  ;;  %v7542_v44 = vld [vmem:[%s6662_s30 + $0x68] sm:$0xff] }
 0x27f   : > { %v1372_v37 = vpop.f32.mrf.mxu2  ;;  %4371 = vperm.xlu2 %6534, %v4265_v9  }
 0x280   : > { %v1423_v47 = vadd.f32 %v1372_v37, %v1101_v11  ;;  %v1806_v51 = vpop.f32.mrf.mxu3  ;;  %v3510_v3 = vsel %vm506_vm0, %v3505_v52, %v3509_v6 }
 0x281   : > { %v1102_v24 = vpop.f32.mrf.mxu1 }
 0x282   : > { %v1857_v36 = vadd.f32 %v1806_v51, %v1423_v47  ;;  %v1103_v56 = vadd.f32 %v1102_v24, %v8935_v50  ;;  %v6260_v47 = vld [vmem:[%s6662_s30 + $0x58] sm:$0xff]  ;;  %v3919_v24 = vsel %vm1126_vm1, %v3916_v23, %v3918_v49 }
 0x283   : > { %v2442_v22 = vpop.f32.mrf.mxu0 }
 0x284   : > { %v7526_v32 = vadd.f32 %v2440_v12, %v1857_v36 }
 0x286   : > { %8934 = vst [vmem:[#allocation10_spill] sm:$0xff] %v7526_v32 }
 0x287   : > { %v1374_v11 = vpop.f32.mrf.mxu2 }
 0x288   : > { %v1424_v37 = vadd.f32 %v1374_v11, %v1103_v56  ;;  %v1808_v55 = vpop.f32.mrf.mxu3  ;;  %v4269_v11 = vld [vmem:[%s8860_s3 + $0x90] sm:$0xff] }
 0x289   : > { %v2644_v51 = vpop.f32.mrf.mxu1  ;;  %4391 = vperm.xlu0 %6532, %v4269_v11  }
 0x28a   : > { %v1858_v30 = vadd.f32 %v1808_v55, %v1424_v37  ;;  %v2764_v12 = vadd.f32 %v2644_v51, %v7118_v21  ;;  %v6559_v37 = vld [vmem:[%s6662_s30 + $0x5c] sm:$0xff] }
 0x28b   : > { %v4031_v36 = vpop.f32.mrf.mxu0  ;;  %v2533_v55 = vrot.slane %v6559_v37, 1 }
 0x28c   : > { %2683 = vmatmul.bf16.gmra.mxu1 %v2532_v43  ;;  %3117 = vmatmul.bf16.gmra.mxu2 %v6260_v47  ;;  %v7536_v60 = vadd.f32 %v2442_v22, %v1858_v30  ;;  %v3511_v43 = vshrl.u32 %v7519_v8, 16  ;;  %v3515_v22 = vshll.u32 %v7542_v44, 16  ;;  %v6261_v8 = vld [vmem:[%s6662_s30 + $0x60] sm:$0xff] }
 0x28d   : > { %3751 = vmatmul.bf16.gmra.mxu3 %v3510_v3 }
 0x28e   : > { %8936 = vst [vmem:[#allocation11_spill] sm:$0xff] %v7536_v60  ;;  %4070 = vmatmul.bf16.gmra.mxu0 %v3919_v24  ;;  %v3513_v47 = vor.u32 %v3511_v43, %v3509_v6  ;;  %v3517_v51 = vrot.slane %v3515_v22, 1 }
 0x28f   : > { %v3078_v21 = vpop.f32.mrf.mxu2 }
 0x290   : > { %v3198_v35 = vadd.f32 %v3078_v21, %v2764_v12  ;;  %v3712_v20 = vpop.f32.mrf.mxu3  ;;  %v3920_v12 = vrot.slane %v7542_v44, 1 }
 0x291   : > { %v2646_v50 = vpop.f32.mrf.mxu1 }
 0x292   : > { %v3832_v56 = vadd.f32 %v3712_v20, %v3198_v35  ;;  %v2765_v23 = vadd.f32 %v2646_v50, %v7126_v53  ;;  %v3518_v50 = vsel %vm506_vm0, %v3513_v47, %v3517_v51  ;;  %v3519_v47 = vshrl.u32 %v7542_v44, 16  ;;  %v6262_v44 = vld [vmem:[%s6662_s30 + $0x68] sm:$0xff] }
 0x293   : > { %v4033_v30 = vpop.f32.mrf.mxu0 }
 0x294   : > { %v7547_v52 = vadd.f32 %v4031_v36, %v3832_v56  ;;  %v2534_v36 = vsel %vm1126_vm1, %v2531_v19, %v2533_v55  ;;  %v3921_v56 = vsel %vm1126_vm1, %v3918_v49, %v3920_v12  ;;  %v7565_v19 = vld [vmem:[%s6662_s30 + $0x70] sm:$0xff] }
 0x297   : > { %v3080_v3 = vpop.f32.mrf.mxu2 }
 0x298   : > { %v3199_v53 = vadd.f32 %v3080_v3, %v2765_v23  ;;  %v3714_v24 = vpop.f32.mrf.mxu3  ;;  %v4270_v23 = vld [vmem:[%s8860_s3 + $0x98] sm:$0xff]  ;;  %v3523_v3 = vshll.u32 %v7565_v19, 16 }
 0x299   : > { %v2649_v9 = vpop.f32.mrf.mxu1  ;;  %4396 = vperm.xlu1 %6533, %v4270_v23  }
 0x29a   : > { %v3833_v21 = vadd.f32 %v3714_v24, %v3199_v53  ;;  %v2766_v35 = vadd.f32 %v2649_v9, %v7130_v38  ;;  %v4268_v24 = vld [vmem:[%s8860_s3 + $0x88] sm:$0xff] }
 0x29b   : > { %v4036_v20 = vpop.f32.mrf.mxu0  ;;  %4386 = vperm.xlu2 %6534, %v4268_v24  }
 0x29c   : > { %v7559_v6 = vadd.f32 %v4033_v30, %v3833_v21  ;;  %2688 = vmatmul.bf16.gmra.mxu1 %v2534_v36  ;;  %3122 = vmatmul.bf16.gmra.mxu2 %v6261_v8  ;;  %v6560_v8 = vld [vmem:[%s6662_s30 + $0x64] sm:$0xff]  ;;  %v3521_v36 = vor.u32 %v3519_v47, %v3517_v51  ;;  %v3525_v21 = vrot.slane %v3523_v3, 1 }
 0x29d   : > { %3756 = vmatmul.bf16.gmra.mxu3 %v3518_v50  ;;  %v2535_v9 = vrot.slane %v6560_v8, 1 }
 0x29e   : > { %4075 = vmatmul.bf16.gmra.mxu0 %v3921_v56 }
 0x29f   : > { %v3083_v38 = vpop.f32.mrf.mxu2 }
 0x2a0   : > { %v3200_v43 = vadd.f32 %v3083_v38, %v2766_v35  ;;  %v3717_v22 = vpop.f32.mrf.mxu3  ;;  %v3922_v35 = vrot.slane %v7565_v19, 1 }
 0x2a1   : > { %v2651_v11 = vpop.f32.mrf.mxu1 }
 0x2a2   : > { %v3834_v37 = vadd.f32 %v3717_v22, %v3200_v43  ;;  %v2767_v49 = vadd.f32 %v2651_v11, %v7138_v57  ;;  %v3526_v11 = vsel %vm506_vm0, %v3521_v36, %v3525_v21  ;;  %v3527_v36 = vshrl.u32 %v7565_v19, 16  ;;  %v6263_v19 = vld [vmem:[%s6662_s30 + $0x70] sm:$0xff] }
 0x2a3   : > { %v4038_v30 = vpop.f32.mrf.mxu0 }
 0x2a4   : > { %v7570_v53 = vadd.f32 %v4036_v20, %v3834_v37  ;;  %v2536_v20 = vsel %vm1126_vm1, %v2533_v55, %v2535_v9  ;;  %v3923_v37 = vsel %vm1126_vm1, %v3920_v12, %v3922_v35  ;;  %v7588_v55 = vld [vmem:[%s6662_s30 + $0x78] sm:$0xff] }
 0x2a7   : > { %v3085_v50 = vpop.f32.mrf.mxu2 }
 0x2a8   : > { %v3201_v57 = vadd.f32 %v3085_v50, %v2767_v49  ;;  %v3719_v56 = vpop.f32.mrf.mxu3  ;;  %v4272_v49 = vld [vmem:[%s8860_s3 + $0xa8] sm:$0xff]  ;;  %v3531_v50 = vshll.u32 %v7588_v55, 16 }
 0x2a9   : > { %v2654_v23 = vpop.f32.mrf.mxu1  ;;  %4406 = vperm.xlu0 %6532, %v4272_v49  }
 0x2aa   : > { %v3835_v38 = vadd.f32 %v3719_v56, %v3201_v57  ;;  %v2768_v43 = vadd.f32 %v2654_v23, %v7154_v41  ;;  %v4273_v56 = vld [vmem:[%s8860_s3 + $0xb0] sm:$0xff] }
 0x2ab   : > { %v4041_v22 = vpop.f32.mrf.mxu0  ;;  %4411 = vperm.xlu1 %6533, %v4273_v56  }
 0x2ac   : > { %v7582_v51 = vadd.f32 %v4038_v30, %v3835_v38  ;;  %2693 = vmatmul.bf16.gmra.mxu1 %v2536_v20  ;;  %3127 = vmatmul.bf16.gmra.mxu2 %v6262_v44  ;;  %v6561_v44 = vld [vmem:[%s6662_s30 + $0x6c] sm:$0xff]  ;;  %v3529_v20 = vor.u32 %v3527_v36, %v3525_v21  ;;  %v3533_v38 = vrot.slane %v3531_v50, 1 }
 0x2ad   : > { %3761 = vmatmul.bf16.gmra.mxu3 %v3526_v11  ;;  %v2537_v23 = vrot.slane %v6561_v44, 1 }
 0x2ae   : > { %4080 = vmatmul.bf16.gmra.mxu0 %v3923_v37 }
 0x2af   : > { %v3088_v41 = vpop.f32.mrf.mxu2 }
 0x2b0   : > { %v3202_v47 = vadd.f32 %v3088_v41, %v2768_v43  ;;  %v3722_v3 = vpop.f32.mrf.mxu3  ;;  %v3924_v43 = vrot.slane %v7588_v55, 1 }
 0x2b1   : > { %v2656_v24 = vpop.f32.mrf.mxu1 }
 0x2b2   : > { %v3836_v8 = vadd.f32 %v3722_v3, %v3202_v47  ;;  %v2769_v12 = vadd.f32 %v2656_v24, %v7162_v16  ;;  %v3534_v24 = vsel %vm506_vm0, %v3529_v20, %v3533_v38  ;;  %v3535_v20 = vshrl.u32 %v7588_v55, 16  ;;  %v6264_v55 = vld [vmem:[%s6662_s30 + $0x78] sm:$0xff] }
 0x2b3   : > { %v4043_v30 = vpop.f32.mrf.mxu0 }
 0x2b4   : > { %v7593_v57 = vadd.f32 %v4041_v22, %v3836_v8  ;;  %v2538_v22 = vsel %vm1126_vm1, %v2535_v9, %v2537_v23  ;;  %v3925_v8 = vsel %vm1126_vm1, %v3922_v35, %v3924_v43  ;;  %v7611_v9 = vld [vmem:[%s6662_s30 + $0x80] sm:$0xff] }
 0x2b7   : > { %v3090_v11 = vpop.f32.mrf.mxu2 }
 0x2b8   : > { %v3203_v16 = vadd.f32 %v3090_v11, %v2769_v12  ;;  %v3724_v37 = vpop.f32.mrf.mxu3  ;;  %v4271_v12 = vld [vmem:[%s8860_s3 + $0xa0] sm:$0xff]  ;;  %v3539_v11 = vshll.u32 %v7611_v9, 16 }
 0x2b9   : > { %v2659_v49 = vpop.f32.mrf.mxu1  ;;  %4401 = vperm.xlu2 %6534, %v4271_v12  }
 0x2ba   : > { %v3837_v41 = vadd.f32 %v3724_v37, %v3203_v16  ;;  %v2770_v47 = vadd.f32 %v2659_v49, %v7166_v14  ;;  %v4275_v37 = vld [vmem:[%s8860_s3 + $0xc0] sm:$0xff] }
 0x2bb   : > { %v4046_v3 = vpop.f32.mrf.mxu0  ;;  %4421 = vperm.xlu0 %6532, %v4275_v37  }
 0x2bc   : > { %v7605_v21 = vadd.f32 %v4043_v30, %v3837_v41  ;;  %2698 = vmatmul.bf16.gmra.mxu1 %v2538_v22  ;;  %3132 = vmatmul.bf16.gmra.mxu2 %v6263_v19  ;;  %v6562_v19 = vld [vmem:[%s6662_s30 + $0x74] sm:$0xff]  ;;  %v3537_v22 = vor.u32 %v3535_v20, %v3533_v38  ;;  %v3541_v41 = vrot.slane %v3539_v11, 1  ;;  %v4276_v38 = vld [vmem:[%s8860_s3 + $0xc8] sm:$0xff] }
 0x2bd   : > { %3766 = vmatmul.bf16.gmra.mxu3 %v3534_v24  ;;  %v2539_v49 = vrot.slane %v6562_v19, 1  ;;  %4426 = vperm.xlu1 %6533, %v4276_v38  }
 0x2be   : > { %4085 = vmatmul.bf16.gmra.mxu0 %v3925_v8 }
 0x2bf   : > { %v3093_v14 = vpop.f32.mrf.mxu2 }
 0x2c0   : > { %v3204_v36 = vadd.f32 %v3093_v14, %v2770_v47  ;;  %v3727_v50 = vpop.f32.mrf.mxu3  ;;  %v3926_v47 = vrot.slane %v7611_v9, 1 }
 0x2c1   : > { %v2661_v56 = vpop.f32.mrf.mxu1 }
 0x2c2   : > { %v3838_v44 = vadd.f32 %v3727_v50, %v3204_v36  ;;  %v2771_v35 = vadd.f32 %v2661_v56, %v7173_v10  ;;  %v3542_v56 = vsel %vm506_vm0, %v3537_v22, %v3541_v41 }
 0x2c3   : > { %v4048_v30 = vpop.f32.mrf.mxu0 }
 0x2c4   : > { %v7616_v16 = vadd.f32 %v4046_v3, %v3838_v44  ;;  %v2540_v3 = vsel %vm1126_vm1, %v2537_v23, %v2539_v49  ;;  %v3927_v44 = vsel %vm1126_vm1, %v3924_v43, %v3926_v47  ;;  %v4278_v43 = vld [vmem:[%s8860_s3 + $0xd8] sm:$0xff] }
 0x2c5   : > { %4436 = vperm.xlu0 %6532, %v4278_v43  }
 0x2c7   : > { %v3095_v24 = vpop.f32.mrf.mxu2 }
 0x2c8   : > { %v3205_v10 = vadd.f32 %v3095_v24, %v2771_v35  ;;  %v3729_v8 = vpop.f32.mrf.mxu3  ;;  %v7634_v35 = vld [vmem:[%s6662_s30 + $0x88] sm:$0xff]  ;;  %v3543_v24 = vshrl.u32 %v7611_v9, 16 }
 0x2c9   : > { %v2664_v12 = vpop.f32.mrf.mxu1  ;;  %v3928_v9 = vrot.slane %v7634_v35, 1 }
 0x2ca   : > { %v3839_v14 = vadd.f32 %v3729_v8, %v3205_v10  ;;  %v2772_v36 = vadd.f32 %v2664_v12, %v7177_v45  ;;  %v3547_v10 = vshll.u32 %v7634_v35, 16  ;;  %v4279_v8 = vld [vmem:[%s8860_s3 + $0xe0] sm:$0xff]  ;;  %v4274_v12 = vld [vmem:[%s8860_s3 + $0xb8] sm:$0xff] }
 0x2cb   : > { %v4051_v50 = vpop.f32.mrf.mxu0  ;;  %4416 = vperm.xlu2 %6534, %v4274_v12   ;;  %4441 = vperm.xlu1 %6533, %v4279_v8  }
 0x2cc   : > { %v7631_v20 = vadd.f32 %v4048_v30, %v3839_v14  ;;  %2703 = vmatmul.bf16.gmra.mxu1 %v2540_v3  ;;  %3137 = vmatmul.bf16.gmra.mxu2 %v6264_v55  ;;  %v6563_v3 = vld [vmem:[%s6662_s30 + $0x7c] sm:$0xff] }
 0x2cd   : > { %3771 = vmatmul.bf16.gmra.mxu3 %v3542_v56  ;;  %v2541_v14 = vrot.slane %v6563_v3, 1 }
 0x2ce   : > { %4090 = vmatmul.bf16.gmra.mxu0 %v3927_v44 }
 0x2cf   : > { %v3098_v45 = vpop.f32.mrf.mxu2 }
 0x2d0   : > { %v3206_v23 = vadd.f32 %v3098_v45, %v2772_v36  ;;  %v3732_v11 = vpop.f32.mrf.mxu3  ;;  %v3549_v36 = vrot.slane %v3547_v10, 1  ;;  %v6265_v45 = vld [vmem:[%s6662_s30 + $0x80] sm:$0xff] }
 0x2d1   : > { %v2666_v37 = vpop.f32.mrf.mxu1 }
 0x2d2   : > { %v3840_v19 = vadd.f32 %v3732_v11, %v3206_v23  ;;  %v2773_v30 = vadd.f32 %v2666_v37, %v7184_v15  ;;  %v3545_v15 = vor.u32 %v3543_v24, %v3541_v41  ;;  %v4281_v11 = vld [vmem:[%s8860_s3 + $0xf0] sm:$0xff]  ;;  %v3929_v24 = vsel %vm1126_vm1, %v3926_v47, %v3928_v9  ;;  %v4284_v47 = vld [vmem:[%s8860_s3 + $0x108] sm:$0xff] }
 0x2d3   : > { %v4053_v22 = vpop.f32.mrf.mxu0  ;;  %4451 = vperm.xlu0 %6532, %v4281_v11   ;;  %v6564_v11 = vld [vmem:[%s6662_s30 + $0x84] sm:$0xff] }
 0x2d4   : > { %v7645_v55 = vadd.f32 %v4051_v50, %v3840_v19  ;;  %v2542_v50 = vsel %vm1126_vm1, %v2539_v49, %v2541_v14  ;;  %v3550_v19 = vsel %vm506_vm0, %v3545_v15, %v3549_v36  ;;  %v7666_v49 = vld [vmem:[%s6662_s30 + $0x90] sm:$0xff] }
 0x2d7   : > { %v3100_v56 = vpop.f32.mrf.mxu2 }
 0x2d8   : > { %v3207_v44 = vadd.f32 %v3100_v56, %v2773_v30  ;;  %v3734_v38 = vpop.f32.mrf.mxu3  ;;  %v4282_v30 = vld [vmem:[%s8860_s3 + $0xf8] sm:$0xff] }
 0x2d9   : > { %v2669_v23 = vpop.f32.mrf.mxu1  ;;  %4456 = vperm.xlu1 %6533, %v4282_v30  }
 0x2da   : > { %v3841_v37 = vadd.f32 %v3734_v38, %v3207_v44  ;;  %v2774_v43 = vadd.f32 %v2669_v23, %v7200_v58  ;;  %v3551_v44 = vshrl.u32 %v7634_v35, 16  ;;  %v3555_v38 = vshll.u32 %v7666_v49, 16 }
 0x2db   : > { %v4056_v41 = vpop.f32.mrf.mxu0  ;;  %4466 = vperm.xlu0 %6532, %v4284_v47   ;;  %v3930_v35 = vrot.slane %v7666_v49, 1 }
 0x2dc   : > { %v7663_v10 = vadd.f32 %v4053_v22, %v3841_v37  ;;  %2708 = vmatmul.bf16.gmra.mxu1 %v2542_v50  ;;  %3142 = vmatmul.bf16.gmra.mxu2 %v6265_v45  ;;  %v4285_v45 = vld [vmem:[%s8860_s3 + $0x110] sm:$0xff]  ;;  %v2543_v37 = vrot.slane %v6564_v11, 1 }
 0x2dd   : > { %3776 = vmatmul.bf16.gmra.mxu3 %v3550_v19  ;;  %v4277_v50 = vld [vmem:[%s8860_s3 + $0xd0] sm:$0xff] }
 0x2de   : > { %4095 = vmatmul.bf16.gmra.mxu0 %v3929_v24  ;;  %4431 = vperm.xlu2 %6534, %v4277_v50  }
 0x2df   : > { %v3103_v58 = vpop.f32.mrf.mxu2 }
 0x2e0   : > { %v3208_v8 = vadd.f32 %v3103_v58, %v2774_v43  ;;  %v3737_v12 = vpop.f32.mrf.mxu3  ;;  %v3557_v43 = vrot.slane %v3555_v38, 1  ;;  %v6266_v58 = vld [vmem:[%s6662_s30 + $0x88] sm:$0xff] }
 0x2e1   : > { %v2671_v3 = vpop.f32.mrf.mxu1  ;;  %4471 = vperm.xlu1 %6533, %v4285_v45  }
 0x2e2   : > { %v3842_v15 = vadd.f32 %v3737_v12, %v3208_v8  ;;  %v2775_v22 = vadd.f32 %v2671_v3, %v7207_v26  ;;  %v3553_v26 = vor.u32 %v3551_v44, %v3549_v36  ;;  %v4287_v12 = vld [vmem:[%s8860_s3 + $0x120] sm:$0xff]  ;;  %v3931_v44 = vsel %vm1126_vm1, %v3928_v9, %v3930_v35 }
 0x2e3   : > { %v4058_v56 = vpop.f32.mrf.mxu0  ;;  %4481 = vperm.xlu0 %6532, %v4287_v12   ;;  %v4283_v12 = vld [vmem:[%s8860_s3 + $0x100] sm:$0xff] }
 0x2e4   : > { %v7677_v23 = vadd.f32 %v4056_v41, %v3842_v15  ;;  %v2544_v41 = vsel %vm1126_vm1, %v2541_v14, %v2543_v37  ;;  %v3558_v15 = vsel %vm506_vm0, %v3553_v26, %v3557_v43  ;;  %v7701_v14 = vld [vmem:[%s6662_s30 + $0x98] sm:$0xff] }
 0x2e7   : > { %v3105_v19 = vpop.f32.mrf.mxu2 }
 0x2e8   : > { %v3209_v24 = vadd.f32 %v3105_v19, %v2775_v22  ;;  %v3739_v30 = vpop.f32.mrf.mxu3  ;;  %v4288_v22 = vld [vmem:[%s8860_s3 + $0x128] sm:$0xff] }
 0x2e9   : > { %v2674_v8 = vpop.f32.mrf.mxu1  ;;  %4486 = vperm.xlu1 %6533, %v4288_v22  }
 0x2ea   : > { %v3843_v3 = vadd.f32 %v3739_v30, %v3209_v24  ;;  %v2776_v47 = vadd.f32 %v2674_v8, %v7211_v62  ;;  %v4280_v62 = vld [vmem:[%s8860_s3 + $0xe8] sm:$0xff]  ;;  %v3559_v30 = vshrl.u32 %v7666_v49, 16  ;;  %v4291_v8 = vld [vmem:[%s8860_s3 + $0x140] sm:$0xff]  ;;  %v3932_v49 = vrot.slane %v7701_v14, 1 }
 0x2eb   : > { %v4061_v36 = vpop.f32.mrf.mxu0  ;;  %4446 = vperm.xlu2 %6534, %v4280_v62  }
 0x2ec   : > { %v7695_v38 = vadd.f32 %v4058_v56, %v3843_v3  ;;  %2713 = vmatmul.bf16.gmra.mxu1 %v2544_v41  ;;  %3147 = vmatmul.bf16.gmra.mxu2 %v6266_v58  ;;  %v4290_v56 = vld [vmem:[%s8860_s3 + $0x138] sm:$0xff]  ;;  %v3563_v58 = vshll.u32 %v7701_v14, 16  ;;  %v6565_v3 = vld [vmem:[%s6662_s30 + $0x8c] sm:$0xff] }
 0x2ed   : > { %3781 = vmatmul.bf16.gmra.mxu3 %v3558_v15  ;;  %4496 = vperm.xlu0 %6532, %v4290_v56  }
 0x2ee   : > { %4100 = vmatmul.bf16.gmra.mxu0 %v3931_v44  ;;  %v3565_v15 = vrot.slane %v3563_v58, 1 }
 0x2ef   : > { %v3108_v9 = vpop.f32.mrf.mxu2 }
 0x2f0   : > { %v3210_v45 = vadd.f32 %v3108_v9, %v2776_v47  ;;  %v3742_v50 = vpop.f32.mrf.mxu3  ;;  %v2545_v47 = vrot.slane %v6565_v3, 1  ;;  %v6267_v9 = vld [vmem:[%s6662_s30 + $0x90] sm:$0xff] }
 0x2f1   : > { %v2676_v11 = vpop.f32.mrf.mxu1  ;;  %4501 = vperm.xlu1 %6533, %v4291_v8  }
 0x2f2   : > { %v3844_v26 = vadd.f32 %v3742_v50, %v3210_v45  ;;  %v2777_v19 = vadd.f32 %v2676_v11, %v7218_v46  ;;  %v3561_v46 = vor.u32 %v3559_v30, %v3557_v43  ;;  %v4293_v50 = vld [vmem:[%s8860_s3 + $0x150] sm:$0xff]  ;;  %v3933_v30 = vsel %vm1126_vm1, %v3930_v35, %v3932_v49 }
 0x2f3   : > { %v4063_v24 = vpop.f32.mrf.mxu0  ;;  %4461 = vperm.xlu2 %6534, %v4283_v12  }
 0x2f4   : > { %v7712_v41 = vadd.f32 %v4061_v36, %v3844_v26  ;;  %v2546_v36 = vsel %vm1126_vm1, %v2543_v37, %v2545_v47  ;;  %v3566_v26 = vsel %vm506_vm0, %v3561_v46, %v3565_v15  ;;  %v7736_v37 = vld [vmem:[%s6662_s30 + $0xa0] sm:$0xff] }
 0x2f5   : > { %4511 = vperm.xlu0 %6532, %v4293_v50   ;;  %v4289_v50 = vld [vmem:[%s8860_s3 + $0x130] sm:$0xff] }
 0x2f7   : > { %v3110_v44 = vpop.f32.mrf.mxu2 }
 0x2f8   : > { %v3211_v22 = vadd.f32 %v3110_v44, %v2777_v19  ;;  %v3744_v62 = vpop.f32.mrf.mxu3  ;;  %v4294_v19 = vld [vmem:[%s8860_s3 + $0x158] sm:$0xff] }
 0x2f9   : > { %v2679_v45 = vpop.f32.mrf.mxu1  ;;  %4516 = vperm.xlu1 %6533, %v4294_v19  }
 0x2fa   : > { %v3845_v11 = vadd.f32 %v3744_v62, %v3211_v22  ;;  %v2778_v43 = vadd.f32 %v2679_v45, %v7222_v29  ;;  %v4286_v29 = vld [vmem:[%s8860_s3 + $0x118] sm:$0xff]  ;;  %v3567_v62 = vshrl.u32 %v7701_v14, 16  ;;  %v4297_v45 = vld [vmem:[%s8860_s3 + $0x170] sm:$0xff]  ;;  %v3934_v14 = vrot.slane %v7736_v37, 1 }
 0x2fb   : > { %v4066_v56 = vpop.f32.mrf.mxu0  ;;  %4476 = vperm.xlu2 %6534, %v4286_v29  }
 0x2fc   : > { %v7730_v58 = vadd.f32 %v4063_v24, %v3845_v11  ;;  %2718 = vmatmul.bf16.gmra.mxu1 %v2546_v36  ;;  %3152 = vmatmul.bf16.gmra.mxu2 %v6267_v9  ;;  %v4296_v24 = vld [vmem:[%s8860_s3 + $0x168] sm:$0xff]  ;;  %v3571_v9 = vshll.u32 %v7736_v37, 16  ;;  %v6566_v11 = vld [vmem:[%s6662_s30 + $0x94] sm:$0xff] }
 0x2fd   : > { %3786 = vmatmul.bf16.gmra.mxu3 %v3566_v26  ;;  %4526 = vperm.xlu0 %6532, %v4296_v24  }
 0x2fe   : > { %4105 = vmatmul.bf16.gmra.mxu0 %v3933_v30  ;;  %v3573_v26 = vrot.slane %v3571_v9, 1 }
 0x2ff   : > { %v3113_v35 = vpop.f32.mrf.mxu2 }
 0x300   : > { %v3212_v8 = vadd.f32 %v3113_v35, %v2778_v43  ;;  %v3747_v12 = vpop.f32.mrf.mxu3  ;;  %v2547_v43 = vrot.slane %v6566_v11, 1  ;;  %v6268_v35 = vld [vmem:[%s6662_s30 + $0x98] sm:$0xff] }
 0x301   : > { %v2681_v3 = vpop.f32.mrf.mxu1  ;;  %4531 = vperm.xlu1 %6533, %v4297_v45  }
 0x302   : > { %v3846_v46 = vadd.f32 %v3747_v12, %v3212_v8  ;;  %v2779_v44 = vadd.f32 %v2681_v3, %v7230_v34  ;;  %v3569_v34 = vor.u32 %v3567_v62, %v3565_v15  ;;  %v3935_v15 = vsel %vm1126_vm1, %v3932_v49, %v3934_v14 }
 0x303   : > { %v4068_v22 = vpop.f32.mrf.mxu0  ;;  %4491 = vperm.xlu2 %6534, %v4289_v50  }
 0x304   : > { %v7747_v36 = vadd.f32 %v4066_v56, %v3846_v46  ;;  %v2548_v56 = vsel %vm1126_vm1, %v2545_v47, %v2547_v43  ;;  %v3574_v46 = vsel %vm506_vm0, %v3569_v34, %v3573_v26  ;;  %v7765_v47 = vld [vmem:[%s6662_s30 + $0xa8] sm:$0xff]  ;;  %v3575_v34 = vshrl.u32 %v7736_v37, 16  ;;  %v6269_v37 = vld [vmem:[%s6662_s30 + $0xa0] sm:$0xff] }
 0x307   : > { %v3115_v30 = vpop.f32.mrf.mxu2 }
 0x308   : > { %v3213_v19 = vadd.f32 %v3115_v30, %v2779_v44  ;;  %v3749_v29 = vpop.f32.mrf.mxu3  ;;  %v4292_v44 = vld [vmem:[%s8860_s3 + $0x148] sm:$0xff]  ;;  %v3579_v30 = vshll.u32 %v7765_v47, 16 }
 0x309   : > { %v2684_v8 = vpop.f32.mrf.mxu1 }
 0x30a   : > { %v3847_v12 = vadd.f32 %v3749_v29, %v3213_v19  ;;  %v2780_v3 = vadd.f32 %v2684_v8, %v7246_v42  ;;  %v4295_v29 = vld [vmem:[%s8860_s3 + $0x160] sm:$0xff] }
 0x30b   : > { %v4071_v24 = vpop.f32.mrf.mxu0  ;;  %4506 = vperm.xlu2 %6534, %v4292_v44  }
 0x30c   : > { %v7759_v62 = vadd.f32 %v4068_v22, %v3847_v12  ;;  %2723 = vmatmul.bf16.gmra.mxu1 %v2548_v56  ;;  %3157 = vmatmul.bf16.gmra.mxu2 %v6268_v35  ;;  %v6567_v35 = vld [vmem:[%s6662_s30 + $0x9c] sm:$0xff]  ;;  %v3577_v56 = vor.u32 %v3575_v34, %v3573_v26  ;;  %v3581_v12 = vrot.slane %v3579_v30, 1 }
 0x30d   : > { %3791 = vmatmul.bf16.gmra.mxu3 %v3574_v46  ;;  %v2549_v8 = vrot.slane %v6567_v35, 1 }
 0x30e   : > { %4110 = vmatmul.bf16.gmra.mxu0 %v3935_v15 }
 0x30f   : > { %v3118_v42 = vpop.f32.mrf.mxu2 }
 0x310   : > { %v3214_v9 = vadd.f32 %v3118_v42, %v2780_v3  ;;  %v3752_v45 = vpop.f32.mrf.mxu3  ;;  %v3936_v3 = vrot.slane %v7765_v47, 1 }
 0x311   : > { %v2686_v50 = vpop.f32.mrf.mxu1 }
 0x312   : > { %v3848_v11 = vadd.f32 %v3752_v45, %v3214_v9  ;;  %v2781_v49 = vadd.f32 %v2686_v50, %v7254_v33  ;;  %v3582_v50 = vsel %vm506_vm0, %v3577_v56, %v3581_v12  ;;  %v3937_v26 = vsel %vm1126_vm1, %v3934_v14, %v3936_v3 }
 0x313   : > { %v4073_v22 = vpop.f32.mrf.mxu0  ;;  %4521 = vperm.xlu2 %6534, %v4295_v29   ;;  %v3583_v56 = vshrl.u32 %v7765_v47, 16 }
 0x314   : > { %v7770_v19 = vadd.f32 %v4071_v24, %v3848_v11  ;;  %v2550_v24 = vsel %vm1126_vm1, %v2547_v43, %v2549_v8  ;;  %v6302_v43 = vld [vmem:[%s6662_s30 + $0xb0] sm:$0xff] }
 0x317   : > { %v3120_v46 = vpop.f32.mrf.mxu2 }
 0x318   : > { %v3215_v33 = vadd.f32 %v3120_v46, %v2781_v49  ;;  %v3754_v15 = vpop.f32.mrf.mxu3  ;;  %v4298_v49 = vld [vmem:[%s8860_s3 + $0x178] sm:$0xff]  ;;  %v3587_v46 = vshll.u32 %v6302_v43, 16 }
 0x319   : > { %v2689_v44 = vpop.f32.mrf.mxu1 }
 0x31a   : > { %v3849_v42 = vadd.f32 %v3754_v15, %v3215_v33  ;;  %v2782_v9 = vadd.f32 %v2689_v44, %v7258_v5  ;;  %v6568_v15 = vld [vmem:[%s6662_s30 + $0xa4] sm:$0xff]  ;;  %v3585_v44 = vor.u32 %v3583_v56, %v3581_v12  ;;  %v6303_v12 = vld [vmem:[%s6662_s30 + $0xb8] sm:$0xff] }
 0x31b   : > { %v4076_v45 = vpop.f32.mrf.mxu0  ;;  %4536 = vperm.xlu2 %6534, %v4298_v49   ;;  %v6270_v49 = vld [vmem:[%s6662_s30 + $0xa8] sm:$0xff] }
 0x31c   : > { %v7782_v11 = vadd.f32 %v4073_v22, %v3849_v42  ;;  %2728 = vmatmul.bf16.gmra.mxu1 %v2550_v24  ;;  %3162 = vmatmul.bf16.gmra.mxu2 %v6269_v37  ;;  %v2551_v37 = vrot.slane %v6568_v15, 1  ;;  %v3589_v24 = vrot.slane %v3587_v46, 1  ;;  %v3938_v42 = vrot.slane %v6302_v43, 1 }
 0x31d   : > { %3796 = vmatmul.bf16.gmra.mxu3 %v3582_v50 }
 0x31e   : > { %4115 = vmatmul.bf16.gmra.mxu0 %v3937_v26 }
 0x31f   : > { %v3123_v34 = vpop.f32.mrf.mxu2 }
 0x320   : > { %v3216_v5 = vadd.f32 %v3123_v34, %v2782_v9  ;;  %v3757_v30 = vpop.f32.mrf.mxu3 }
 0x321   : > { %v2691_v29 = vpop.f32.mrf.mxu1 }
 0x322   : > { %v3850_v35 = vadd.f32 %v3757_v30, %v3216_v5  ;;  %v2783_v14 = vadd.f32 %v2691_v29, %v7265_v4  ;;  %v2552_v5 = vsel %vm1126_vm1, %v2549_v8, %v2551_v37  ;;  %v3939_v29 = vsel %vm1126_vm1, %v3936_v3, %v3938_v42 }
 0x323   : > { %v4078_v22 = vpop.f32.mrf.mxu0 }
 0x324   : > { %v7790_v33 = vadd.f32 %v4076_v45, %v3850_v35  ;;  %v3590_v45 = vsel %vm506_vm0, %v3585_v44, %v3589_v24  ;;  %v3591_v44 = vshrl.u32 %v6302_v43, 16 }
 0x327   : > { %v3125_v50 = vpop.f32.mrf.mxu2 }
 0x328   : > { %v3217_v9 = vadd.f32 %v3125_v50, %v2783_v14  ;;  %v3759_v26 = vpop.f32.mrf.mxu3 }
 0x329   : > { %v2694_v34 = vpop.f32.mrf.mxu1 }
 0x32a   : > { %v3851_v4 = vadd.f32 %v3759_v26, %v3217_v9  ;;  %v2784_v30 = vadd.f32 %v2694_v34, %v7269_v39  ;;  %v3595_v9 = vshll.u32 %v6303_v12, 16  ;;  %v3593_v34 = vor.u32 %v3591_v44, %v3589_v24  ;;  %v6304_v24 = vld [vmem:[%s6662_s30 + $0xc0] sm:$0xff] }
 0x32b   : > { %v4081_v47 = vpop.f32.mrf.mxu0 }
 0x32c   : > { %v7798_v35 = vadd.f32 %v4078_v22, %v3851_v4  ;;  %2733 = vmatmul.bf16.gmra.mxu1 %v2552_v5  ;;  %3167 = vmatmul.bf16.gmra.mxu2 %v6270_v49  ;;  %v6569_v22 = vld [vmem:[%s6662_s30 + $0xac] sm:$0xff]  ;;  %v3597_v49 = vrot.slane %v3595_v9, 1  ;;  %v3940_v5 = vrot.slane %v6303_v12, 1 }
 0x32d   : > { %3801 = vmatmul.bf16.gmra.mxu3 %v3590_v45  ;;  %v2553_v26 = vrot.slane %v6569_v22, 1 }
 0x32e   : > { %4120 = vmatmul.bf16.gmra.mxu0 %v3939_v29  ;;  %v6271_v29 = vld [vmem:[%s6662_s30 + $0xb0] sm:$0xff] }
 0x32f   : > { %v3128_v14 = vpop.f32.mrf.mxu2 }
 0x330   : > { %v3218_v56 = vadd.f32 %v3128_v14, %v2784_v30  ;;  %v3762_v46 = vpop.f32.mrf.mxu3 }
 0x331   : > { %v2696_v8 = vpop.f32.mrf.mxu1 }
 0x332   : > { %v3852_v15 = vadd.f32 %v3762_v46, %v3218_v56  ;;  %v2785_v39 = vadd.f32 %v2696_v8, %v7276_v2  ;;  %v2554_v56 = vsel %vm1126_vm1, %v2551_v37, %v2553_v26  ;;  %v3941_v8 = vsel %vm1126_vm1, %v3938_v42, %v3940_v5 }
 0x333   : > { %v4083_v50 = vpop.f32.mrf.mxu0 }
 0x334   : > { %v7802_v3 = vadd.f32 %v4081_v47, %v3852_v15  ;;  %v3598_v47 = vsel %vm506_vm0, %v3593_v34, %v3597_v49  ;;  %v3599_v34 = vshrl.u32 %v6303_v12, 16 }
 0x337   : > { %v3130_v4 = vpop.f32.mrf.mxu2 }
 0x338   : > { %v3219_v45 = vadd.f32 %v3130_v4, %v2785_v39  ;;  %v3764_v30 = vpop.f32.mrf.mxu3 }
 0x339   : > { %v2699_v14 = vpop.f32.mrf.mxu1 }
 0x33a   : > { %v3853_v46 = vadd.f32 %v3764_v30, %v3219_v45  ;;  %v2786_v2 = vadd.f32 %v2699_v14, %v7292_v17  ;;  %v3603_v45 = vshll.u32 %v6304_v24, 16  ;;  %v3601_v14 = vor.u32 %v3599_v34, %v3597_v49  ;;  %v6305_v49 = vld [vmem:[%s6662_s30 + $0xc8] sm:$0xff] }
 0x33b   : > { %v4086_v43 = vpop.f32.mrf.mxu0 }
 0x33c   : > { %v7810_v15 = vadd.f32 %v4083_v50, %v3853_v46  ;;  %2738 = vmatmul.bf16.gmra.mxu1 %v2554_v56  ;;  %3172 = vmatmul.bf16.gmra.mxu2 %v6271_v29  ;;  %v6570_v50 = vld [vmem:[%s6662_s30 + $0xb4] sm:$0xff]  ;;  %v3605_v29 = vrot.slane %v3603_v45, 1  ;;  %v3942_v56 = vrot.slane %v6304_v24, 1 }
 0x33d   : > { %3806 = vmatmul.bf16.gmra.mxu3 %v3598_v47  ;;  %v2555_v30 = vrot.slane %v6570_v50, 1 }
 0x33e   : > { %4125 = vmatmul.bf16.gmra.mxu0 %v3941_v8  ;;  %v6272_v8 = vld [vmem:[%s6662_s30 + $0xb8] sm:$0xff] }
 0x33f   : > { %v3133_v39 = vpop.f32.mrf.mxu2 }
 0x340   : > { %v3220_v44 = vadd.f32 %v3133_v39, %v2786_v2  ;;  %v3767_v9 = vpop.f32.mrf.mxu3 }
 0x341   : > { %v2701_v37 = vpop.f32.mrf.mxu1 }
 0x342   : > { %v3854_v22 = vadd.f32 %v3767_v9, %v3220_v44  ;;  %v2787_v17 = vadd.f32 %v2701_v37, %v7299_v40  ;;  %v2556_v44 = vsel %vm1126_vm1, %v2553_v26, %v2555_v30  ;;  %v3943_v37 = vsel %vm1126_vm1, %v3940_v5, %v3942_v56 }
 0x343   : > { %v4088_v4 = vpop.f32.mrf.mxu0 }
 0x344   : > { %v7814_v42 = vadd.f32 %v4086_v43, %v3854_v22  ;;  %v3606_v43 = vsel %vm506_vm0, %v3601_v14, %v3605_v29  ;;  %v3607_v14 = vshrl.u32 %v6304_v24, 16 }
 0x347   : > { %v3135_v46 = vpop.f32.mrf.mxu2 }
 0x348   : > { %v3221_v47 = vadd.f32 %v3135_v46, %v2787_v17  ;;  %v3769_v2 = vpop.f32.mrf.mxu3 }
 0x349   : > { %v2704_v39 = vpop.f32.mrf.mxu1 }
 0x34a   : > { %v3855_v9 = vadd.f32 %v3769_v2, %v3221_v47  ;;  %v2788_v40 = vadd.f32 %v2704_v39, %v7303_v27  ;;  %v3611_v47 = vshll.u32 %v6305_v49, 16  ;;  %v3609_v39 = vor.u32 %v3607_v14, %v3605_v29  ;;  %v7837_v29 = vld [vmem:[%s6662_s30 + $0xd0] sm:$0xff] }
 0x34b   : > { %v4091_v12 = vpop.f32.mrf.mxu0 }
 0x34c   : > { %v7822_v22 = vadd.f32 %v4088_v4, %v3855_v9  ;;  %2743 = vmatmul.bf16.gmra.mxu1 %v2556_v44  ;;  %3177 = vmatmul.bf16.gmra.mxu2 %v6272_v8  ;;  %v6571_v4 = vld [vmem:[%s6662_s30 + $0xbc] sm:$0xff]  ;;  %v3613_v8 = vrot.slane %v3611_v47, 1  ;;  %v3944_v44 = vrot.slane %v6305_v49, 1 }
 0x34d   : > { %3811 = vmatmul.bf16.gmra.mxu3 %v3606_v43  ;;  %v2557_v2 = vrot.slane %v6571_v4, 1  ;;  %v3619_v4 = vshll.u32 %v7837_v29, 16 }
 0x34e   : > { %4130 = vmatmul.bf16.gmra.mxu0 %v3943_v37  ;;  %v6273_v37 = vld [vmem:[%s6662_s30 + $0xc0] sm:$0xff] }
 0x34f   : > { %v3138_v17 = vpop.f32.mrf.mxu2 }
 0x350   : > { %v3222_v34 = vadd.f32 %v3138_v17, %v2788_v40  ;;  %v3772_v45 = vpop.f32.mrf.mxu3 }
 0x351   : > { %v2706_v26 = vpop.f32.mrf.mxu1 }
 0x352   : > { %v3856_v50 = vadd.f32 %v3772_v45, %v3222_v34  ;;  %v2789_v27 = vadd.f32 %v2706_v26, %v7310_v31  ;;  %v2558_v34 = vsel %vm1126_vm1, %v2555_v30, %v2557_v2  ;;  %v3945_v26 = vsel %vm1126_vm1, %v3942_v56, %v3944_v44 }
 0x353   : > { %v4093_v46 = vpop.f32.mrf.mxu0 }
 0x354   : > { %v7826_v5 = vadd.f32 %v4091_v12, %v3856_v50  ;;  %v3614_v12 = vsel %vm506_vm0, %v3609_v39, %v3613_v8 }
 0x357   : > { %v3140_v9 = vpop.f32.mrf.mxu2 }
 0x358   : > { %v3223_v43 = vadd.f32 %v3140_v9, %v2789_v27  ;;  %v3774_v40 = vpop.f32.mrf.mxu3 }
 0x359   : > { %v2709_v17 = vpop.f32.mrf.mxu1 }
 0x35a   : > { %v3857_v45 = vadd.f32 %v3774_v40, %v3223_v43  ;;  %v2790_v31 = vadd.f32 %v2709_v17, %v7314_v25  ;;  %v3615_v25 = vshrl.u32 %v6305_v49, 16  ;;  %v6572_v43 = vld [vmem:[%s6662_s30 + $0xc4] sm:$0xff]  ;;  %v3621_v17 = vrot.slane %v3619_v4, 1 }
 0x35b   : > { %v4096_v24 = vpop.f32.mrf.mxu0  ;;  %v2559_v40 = vrot.slane %v6572_v43, 1 }
 0x35c   : > { %v7834_v50 = vadd.f32 %v4093_v46, %v3857_v45  ;;  %2748 = vmatmul.bf16.gmra.mxu1 %v2558_v34  ;;  %3182 = vmatmul.bf16.gmra.mxu2 %v6273_v37  ;;  %v3617_v37 = vor.u32 %v3615_v25, %v3613_v8  ;;  %v3946_v34 = vrot.slane %v7837_v29, 1 }
 0x35d   : > { %3816 = vmatmul.bf16.gmra.mxu3 %v3614_v12  ;;  %v2560_v60 = vsel %vm1126_vm1, %v2557_v2, %v2559_v40 }
 0x35e   : > { %4135 = vmatmul.bf16.gmra.mxu0 %v3945_v26 }
 0x35f   : > { %v3143_v27 = vpop.f32.mrf.mxu2 }
 0x360   : > { %v3224_v30 = vadd.f32 %v3143_v27, %v2790_v31  ;;  %v3777_v14 = vpop.f32.mrf.mxu3  ;;  %v3294_v31 = vld [vmem:[%s6662_s30 + $0xd8] sm:$0x1]  ;;  %v6274_v27 = vld [vmem:[%s6662_s30 + $0xc8] sm:$0xff] }
 0x361   : > { %v2711_v47 = vpop.f32.mrf.mxu1  ;;  %v3409_v8 = vunpack.c.l.b16 %v3294_v31  ;;  %v7855_v31 = vpop.permute.xlu0 %4301 }
 0x362   : > { %v3858_v39 = vadd.f32 %v3777_v14, %v3224_v30  ;;  %v2791_v56 = vadd.f32 %v2711_v47, %v7322_v59  ;;  %v3622_v30 = vsel %vm506_vm0, %v3617_v37, %v3621_v17  ;;  %v3947_v47 = vsel %vm1126_vm1, %v3944_v44, %v3946_v34 }
 0x363   : > { %v4098_v46 = vpop.f32.mrf.mxu0  ;;  %v3434_v4 = vpack.c.b16 %v3409_v8, %v3409_v8  ;;  %v6275_v8 = vld [vmem:[%s6662_s30 + $0xd0] sm:$0xff] }
 0x364   : > { %v7841_v9 = vadd.f32 %v4096_v24, %v3858_v39 }
 0x365   : > { %v3627_v44 = vshll.u32 %v3434_v4, 16 }
 0x367   : > { %v3145_v45 = vpop.f32.mrf.mxu2 }
 0x368   : > { %v3225_v12 = vadd.f32 %v3145_v45, %v2791_v56  ;;  %v3779_v26 = vpop.f32.mrf.mxu3 }
 0x369   : > { %v2714_v49 = vpop.f32.mrf.mxu1 }
 0x36a   : > { %v3859_v59 = vadd.f32 %v3779_v26, %v3225_v12  ;;  %v2792_v24 = vadd.f32 %v2714_v49, %v7328_v0  ;;  %v3623_v12 = vshrl.u32 %v7837_v29, 16  ;;  %v2561_v26 = vrot.slane %v7325_v18, 1 }
 0x36b   : > { %v4101_v14 = vpop.f32.mrf.mxu0  ;;  %v3629_v49 = vrot.slane %v3627_v44, 1 }
 0x36c   : > { %v7851_v25 = vadd.f32 %v4098_v46, %v3859_v59  ;;  %2753 = vmatmul.bf16.gmra.mxu1 %v2560_v60  ;;  %3187 = vmatmul.bf16.gmra.mxu2 %v6274_v27  ;;  %v7857_v46 = vpop.permute.xlu1 %4311  ;;  %v3625_v27 = vor.u32 %v3623_v12, %v3621_v17  ;;  %v2562_v29 = vsel %vm1126_vm1, %v2559_v40, %v2561_v26 }
 0x36d   : > { %3821 = vmatmul.bf16.gmra.mxu3 %v3622_v30  ;;  %v3948_v30 = vrot.slane %v3434_v4, 1  ;;  %v4307_v4 = vpop.permute.xlu0 %4306 }
 0x36e   : > { %4140 = vmatmul.bf16.gmra.mxu0 %v3947_v47 }
 0x36f   : > { %v3148_v39 = vpop.f32.mrf.mxu2  ;;  %v3949_v18 = vsel %vm1126_vm1, %v3946_v34, %v3948_v30 }
 0x370   : > { %v3226_v56 = vadd.f32 %v3148_v39, %v2792_v24  ;;  %v3782_v43 = vpop.f32.mrf.mxu3  ;;  %v7862_v24 = vpop.permute.xlu2 %4321 }
 0x371   : > { %v2716_v2 = vpop.f32.mrf.mxu1 }
 0x372   : > { %v3860_v45 = vadd.f32 %v3782_v43, %v3226_v56  ;;  %v2793_v37 = vadd.f32 %v2716_v2, %v7337_v13 }
 0x373   : > { %v4103_v0 = vpop.f32.mrf.mxu0 }
 0x374   : > { %v7859_v60 = vadd.f32 %v4101_v14, %v3860_v45  ;;  %v3630_v14 = vsel %vm506_vm0, %v3625_v27, %v3629_v49  ;;  %v4317_v45 = vpop.permute.xlu1 %4316 }
 0x375   : > { %v7876_v34 = vpop.permute.xlu0 %4331 }
 0x377   : > { %v3150_v59 = vpop.f32.mrf.mxu2 }
 0x378   : > { %v3227_v47 = vadd.f32 %v3150_v59, %v2793_v37  ;;  %v3784_v13 = vpop.f32.mrf.mxu3  ;;  %v7871_v26 = vpop.permute.xlu2 %4326 }
 0x379   : > { %v2719_v39 = vpop.f32.mrf.mxu1 }
 0x37a   : > { %v3861_v56 = vadd.f32 %v3784_v13, %v3227_v47  ;;  %v2794_v43 = vadd.f32 %v2719_v39, %v7350_v7 }
 0x37b   : > { %v4106_v2 = vpop.f32.mrf.mxu0 }
 0x37c   : > { %v7869_v17 = vadd.f32 %v4103_v0, %v3861_v56  ;;  %2758 = vmatmul.bf16.gmra.mxu1 %v2562_v29  ;;  %3192 = vmatmul.bf16.gmra.mxu2 %v6275_v8  ;;  %v7878_v0 = vpop.permute.xlu1 %4336 }
 0x37d   : > { %3826 = vmatmul.bf16.gmra.mxu3 %v3630_v14 }
 0x37e   : > { %4145 = vmatmul.bf16.gmra.mxu0 %v3949_v18 }
 0x37f   : > { %v3153_v37 = vpop.f32.mrf.mxu2 }
 0x380   : > { %v3228_v12 = vadd.f32 %v3153_v37, %v2794_v43  ;;  %v3787_v44 = vpop.f32.mrf.mxu3  ;;  %v7880_v39 = vpop.permute.xlu2 %4341 }
 0x381   : > { %v2721_v40 = vpop.f32.mrf.mxu1 }
 0x382   : > { %v3862_v7 = vadd.f32 %v3787_v44, %v3228_v12  ;;  %v2795_v59 = vadd.f32 %v2721_v40, %v7359_v48  ;;  %v7885_v48 = vpop.permute.xlu0 %4346 }
 0x383   : > { %v4108_v27 = vpop.f32.mrf.mxu0 }
 0x384   : > { %v7874_v49 = vadd.f32 %v4106_v2, %v3862_v7  ;;  %v7887_v2 = vpop.permute.xlu1 %4351 }
 0x386   : > { %8937 = vst [vmem:[#allocation12_spill] sm:$0xff] %v7874_v49 }
 0x387   : > { %v3155_v30 = vpop.f32.mrf.mxu2 }
 0x388   : > { %v3229_v47 = vadd.f32 %v3155_v30, %v2795_v59  ;;  %v3789_v13 = vpop.f32.mrf.mxu3  ;;  %v7889_v40 = vpop.permute.xlu2 %4356 }
 0x389   : > { %v2724_v8 = vpop.f32.mrf.mxu1 }
 0x38a   : > { %v3863_v29 = vadd.f32 %v3789_v13, %v3229_v47  ;;  %v2796_v56 = vadd.f32 %v2724_v8, %v7373_v1  ;;  %v7897_v1 = vld [vmem:[%s8859_s2] ss:$0 sm:$0xff] }
 0x38b   : > { %v4111_v43 = vpop.f32.mrf.mxu0  ;;  %v7905_v8 = vadd.f32 %v7897_v1, %v7559_v6 }
 0x38c   : > { %v7883_v14 = vadd.f32 %v4108_v27, %v3863_v29  ;;  %v7899_v27 = vpop.permute.xlu0 %4361  ;;  %v7901_v13 = vpop.permute.xlu1 %4366 }
 0x38d   : > { %8940 = vst [vmem:[#allocation16_spill] sm:$0xff] %v7905_v8  ;;  %v4540_v6 = vmul.f32 %v4307_v4, %v7905_v8 }
 0x38e   : > { %8938 = vst [vmem:[#allocation14_spill] sm:$0xff] %v7883_v14 }
 0x38f   : > { %v3158_v18 = vpop.f32.mrf.mxu2  ;;  %v4641_v4 = vmul.f32 %v4540_v6, %v4540_v6 }
 0x390   : > { %v3230_v37 = vadd.f32 %v3158_v18, %v2796_v56  ;;  %v3792_v12 = vpop.f32.mrf.mxu3 }
 0x391   : > { %v2726_v44 = vpop.f32.mrf.mxu1 }
 0x392   : > { %v3864_v7 = vadd.f32 %v3792_v12, %v3230_v37  ;;  %v2797_v59 = vadd.f32 %v2726_v44, %v7382_v28  ;;  %v7909_v28 = vadd.f32 %v7897_v1, %v7547_v52  ;;  %v7915_v12 = vpop.permute.xlu2 %4371 }
 0x393   : > { %v4113_v30 = vpop.f32.mrf.mxu0 }
 0x394   : > { %v7892_v47 = vadd.f32 %v4111_v43, %v3864_v7  ;;  %8941 = vst [vmem:[#allocation17_spill] sm:$0xff] %v7909_v28  ;;  %v7913_v43 = vadd.f32 %v7897_v1, %v7570_v53  ;;  %v4539_v52 = vmul.f32 %v7855_v31, %v7909_v28 }
 0x396   : > { %8939 = vst [vmem:[#allocation15_spill] sm:$0xff] %v7892_v47  ;;  %v4541_v53 = vmul.f32 %v7857_v46, %v7913_v43  ;;  %v4640_v8 = vmul.f32 %v4539_v52, %v4539_v52 }
 0x397   : > { %v3160_v29 = vpop.f32.mrf.mxu2  ;;  %8942 = vst [vmem:[#allocation18_spill] sm:$0xff] %v7913_v43  ;;  %v7946_v43 = vadd.f32 %v7897_v1, %v7616_v16 }
 0x398   : > { %v3231_v56 = vadd.f32 %v3160_v29, %v2797_v59  ;;  %v3794_v18 = vpop.f32.mrf.mxu3  ;;  %v7921_v59 = vadd.f32 %v7897_v1, %v7582_v51  ;;  %v4642_v46 = vmul.f32 %v4541_v53, %v4541_v53  ;;  %v4688_v14 = vadd.f32 %v4641_v4, %v4640_v8 }
 0x399   : > { %v2729_v37 = vpop.f32.mrf.mxu1 }
 0x39a   : > { %v3865_v44 = vadd.f32 %v3794_v18, %v3231_v56  ;;  %v2798_v7 = vadd.f32 %v2729_v37, %v7390_v61  ;;  %8943 = vst [vmem:[#allocation19_spill] sm:$0xff] %v7921_v59  ;;  %v7931_v56 = vadd.f32 %v7897_v1, %v7593_v57  ;;  %v7933_v61 = vpop.permute.xlu0 %4376  ;;  %v7935_v18 = vpop.permute.xlu1 %4381  ;;  %v4542_v51 = vmul.f32 %v4317_v45, %v7921_v59 }
 0x39b   : > { %v4116_v32 = vpop.f32.mrf.mxu0  ;;  %v7948_v47 = vpop.permute.xlu2 %4386  ;;  %v4689_v49 = vadd.f32 %v4688_v14, %v4642_v46  ;;  %v7973_v14 = vadd.f32 %v7897_v1, %v7663_v10 }
 0x39c   : > { %v7923_v29 = vadd.f32 %v4113_v30, %v3865_v44  ;;  %8945 = vst [vmem:[#allocation21_spill] sm:$0xff] %v7931_v56  ;;  %v7940_v30 = vadd.f32 %v7897_v1, %v7605_v21  ;;  %v4543_v57 = vmul.f32 %v7862_v24, %v7931_v56  ;;  %v7955_v24 = vadd.f32 %v7897_v1, %v7631_v20 }
 0x39e   : > { %8944 = vst [vmem:[#allocation20_spill] sm:$0xff] %v7923_v29  ;;  %v4587_v29 = vadd.f32 %v4540_v6, %v4539_v52  ;;  %v4644_v6 = vmul.f32 %v4543_v57, %v4543_v57  ;;  %v4545_v52 = vmul.f32 %v7876_v34, %v7946_v43 }
 0x39f   : > { %v3163_v37 = vpop.f32.mrf.mxu2 }
 0x3a0   : > { %v3232_v31 = vadd.f32 %v3163_v37, %v2798_v7  ;;  %v3797_v44 = vpop.f32.mrf.mxu3  ;;  %v4643_v7 = vmul.f32 %v4542_v51, %v4542_v51  ;;  %v4544_v37 = vmul.f32 %v7871_v26, %v7940_v30  ;;  %v4588_v56 = vadd.f32 %v4587_v29, %v4541_v53 }
 0x3a1   : > { %v2731_v28 = vpop.f32.mrf.mxu1 }
 0x3a2   : > { %v3866_v45 = vadd.f32 %v3797_v44, %v3232_v31  ;;  %v2799_v21 = vadd.f32 %v2731_v28, %v7398_v54  ;;  %v7963_v54 = vadd.f32 %v7897_v1, %v7645_v55  ;;  %v7965_v8 = vpop.permute.xlu0 %4391  ;;  %v7967_v28 = vpop.permute.xlu1 %4396  ;;  %v4589_v26 = vadd.f32 %v4588_v56, %v4542_v51 }
 0x3a3   : > { %v4118_v59 = vpop.f32.mrf.mxu0  ;;  %v4690_v4 = vadd.f32 %v4689_v49, %v4643_v7  ;;  %v4645_v20 = vmul.f32 %v4544_v37, %v4544_v37  ;;  %v4646_v44 = vmul.f32 %v4545_v52, %v4545_v52  ;;  %v7979_v49 = vadd.f32 %v7897_v1, %v7677_v23  ;;  %v7981_v56 = vpop.permute.xlu2 %4401 }
 0x3a4   : > { %v7957_v16 = vadd.f32 %v4116_v32, %v3866_v45  ;;  %8946 = vst [vmem:[#allocation22_spill] sm:$0xff] %v7963_v54  ;;  %v4546_v32 = vmul.f32 %v7878_v0, %v7955_v24  ;;  %v4590_v31 = vadd.f32 %v4589_v26, %v4543_v57  ;;  %v4547_v46 = vmul.f32 %v7880_v39, %v7963_v54 }
 0x3a5   : > { %v4691_v55 = vadd.f32 %v4690_v4, %v4644_v6  ;;  %v4548_v57 = vmul.f32 %v7885_v48, %v7973_v14  ;;  %v7988_v39 = vadd.f32 %v7897_v1, %v7695_v38 }
 0x3a6   : > { %v4591_v7 = vadd.f32 %v4590_v31, %v4544_v37  ;;  %v4648_v4 = vmul.f32 %v4547_v46, %v4547_v46  ;;  %v8000_v37 = vadd.f32 %v7897_v1, %v7712_v41 }
 0x3a7   : > { %v3165_v29 = vpop.f32.mrf.mxu2  ;;  %v4649_v38 = vmul.f32 %v4548_v57, %v4548_v57 }
 0x3a8   : > { %v3233_v34 = vadd.f32 %v3165_v29, %v2799_v21  ;;  %v3799_v53 = vpop.f32.mrf.mxu3  ;;  %v4692_v21 = vadd.f32 %v4691_v55, %v4645_v20  ;;  %v4647_v29 = vmul.f32 %v4546_v32, %v4546_v32  ;;  %v4592_v23 = vadd.f32 %v4591_v7, %v4545_v52 }
 0x3a9   : > { %v2734_v45 = vpop.f32.mrf.mxu1  ;;  %v8006_v52 = vadd.f32 %v7897_v1, %v7730_v58  ;;  %v4551_v41 = vmul.f32 %v7899_v27, %v8000_v37 }
 0x3aa   : > { %v3867_v0 = vadd.f32 %v3799_v53, %v3233_v34  ;;  %v2800_v10 = vadd.f32 %v2734_v45, %v7408_v63  ;;  %v4693_v26 = vadd.f32 %v4692_v21, %v4646_v44  ;;  %v7992_v54 = vpop.permute.xlu0 %4406  ;;  %v7994_v34 = vpop.permute.xlu1 %4411  ;;  %v4549_v63 = vmul.f32 %v7887_v2, %v7979_v49 }
 0x3ab   : > { %v4121_v51 = vpop.f32.mrf.mxu0  ;;  %v4593_v48 = vadd.f32 %v4592_v23, %v4546_v32  ;;  %v8014_v32 = vadd.f32 %v7897_v1, %v7747_v36  ;;  %v8016_v7 = vpop.permute.xlu2 %4416  ;;  %v8024_v23 = vadd.f32 %v7897_v1, %v7759_v62 }
 0x3ac   : > { %v7990_v6 = vadd.f32 %v4118_v59, %v3867_v0  ;;  %v4694_v20 = vadd.f32 %v4693_v26, %v4647_v29  ;;  %v4550_v59 = vmul.f32 %v7889_v40, %v7988_v39  ;;  %v4650_v0 = vmul.f32 %v4549_v63, %v4549_v63 }
 0x3ad   : > { %v4594_v44 = vadd.f32 %v4593_v48, %v4547_v46  ;;  %v4552_v46 = vmul.f32 %v7901_v13, %v8006_v52 }
 0x3ae   : > { %v4695_v45 = vadd.f32 %v4694_v20, %v4648_v4  ;;  %v4651_v29 = vmul.f32 %v4550_v59, %v4550_v59  ;;  %v4652_v20 = vmul.f32 %v4551_v41, %v4551_v41 }
 0x3af   : > { %v3168_v53 = vpop.f32.mrf.mxu2  ;;  %v4595_v58 = vadd.f32 %v4594_v44, %v4548_v57  ;;  %v4553_v57 = vmul.f32 %v7915_v12, %v8014_v32 }
 0x3b0   : > { %v3234_v31 = vadd.f32 %v3168_v53, %v2800_v10  ;;  %v3802_v55 = vpop.f32.mrf.mxu3  ;;  %v4696_v10 = vadd.f32 %v4695_v45, %v4649_v38  ;;  %v8036_v38 = vadd.f32 %v7897_v1, %v7770_v19 }
 0x3b1   : > { %v8008_v2 = vpop.f32.mrf.mxu1  ;;  %v4596_v26 = vadd.f32 %v4595_v58, %v4549_v63  ;;  %v4554_v63 = vmul.f32 %v7933_v61, %v8024_v23  ;;  %v4654_v19 = vmul.f32 %v4553_v57, %v4553_v57 }
 0x3b2   : > { %v3868_v40 = vadd.f32 %v3802_v55, %v3234_v31  ;;  %v8028_v36 = vpop.permute.xlu0 %4421  ;;  %v8030_v4 = vpop.permute.xlu1 %4426  ;;  %v4697_v48 = vadd.f32 %v4696_v10, %v4650_v0  ;;  %v8044_v31 = vadd.f32 %v7897_v1, %v7782_v11  ;;  %v8054_v0 = vadd.f32 %v7897_v1, %v7790_v33 }
 0x3b3   : > { %v8018_v21 = vpop.f32.mrf.mxu0  ;;  %v4597_v13 = vadd.f32 %v4596_v26, %v4550_v59  ;;  %v4555_v59 = vmul.f32 %v7935_v18, %v8036_v38  ;;  %v4655_v10 = vmul.f32 %v4554_v63, %v4554_v63 }
 0x3b4   : > { %v8026_v27 = vadd.f32 %v4121_v51, %v3868_v40  ;;  %v4698_v62 = vadd.f32 %v4697_v48, %v4651_v29  ;;  %v4653_v51 = vmul.f32 %v4552_v46, %v4552_v46  ;;  %8947 = vst [vmem:[#allocation23_spill] sm:$0xff] %v8054_v0  ;;  %v8056_v40 = vpop.permute.xlu2 %4431  ;;  %v8064_v29 = vadd.f32 %v7897_v1, %v7798_v35 }
 0x3b5   : > { %v4598_v44 = vadd.f32 %v4597_v13, %v4551_v41  ;;  %v4556_v41 = vmul.f32 %v7948_v47, %v8044_v31  ;;  %v4557_v33 = vmul.f32 %v7965_v8, %v8054_v0  ;;  %v8070_v13 = vadd.f32 %v7897_v1, %v7802_v3  ;;  %v8963_v0 = vld [vmem:[#allocation15_spill] sm:$0xff] }
 0x3b6   : > { %v4699_v45 = vadd.f32 %v4698_v62, %v4652_v20  ;;  %8948 = vst [vmem:[#allocation24_spill] sm:$0xff] %v8064_v29  ;;  %v4656_v20 = vmul.f32 %v4555_v59, %v4555_v59  ;;  %v4558_v35 = vmul.f32 %v7967_v28, %v8064_v29 }
 0x3b7   : > { %v8038_v53 = vpop.f32.mrf.mxu2  ;;  %v4599_v11 = vadd.f32 %v4598_v44, %v4552_v46  ;;  %8949 = vst [vmem:[#allocation25_spill] sm:$0xff] %v8070_v13  ;;  %v4657_v44 = vmul.f32 %v4556_v41, %v4556_v41 }
 0x3b8   : > { %v8046_v55 = vpop.f32.mrf.mxu3  ;;  %v4700_v58 = vadd.f32 %v4699_v45, %v4653_v51 }
 0x3b9   : > { %v8048_v12 = vpop.f32.mrf.mxu1  ;;  %v4600_v26 = vadd.f32 %v4599_v11, %v4553_v57  ;;  %v8080_v57 = vadd.f32 %v7897_v1, %v7810_v15  ;;  %v4559_v11 = vmul.f32 %v7981_v56, %v8070_v13  ;;  %v4659_v15 = vmul.f32 %v4558_v35, %v4558_v35 }
 0x3ba   : > { %v4437_v18 = vpop.permute.xlu0 %4436  ;;  %v4701_v48 = vadd.f32 %v4700_v58, %v4654_v19  ;;  %v8072_v62 = vpop.permute.xlu1 %4441  ;;  %v8090_v58 = vadd.f32 %v7897_v1, %v7814_v42  ;;  %v8104_v13 = vadd.f32 %v7897_v1, %v7826_v5 }
 0x3bb   : > { %v8058_v61 = vpop.f32.mrf.mxu0  ;;  %v4601_v46 = vadd.f32 %v4600_v26, %v4554_v63  ;;  %8950 = vst [vmem:[#allocation26_spill] sm:$0xff] %v8080_v57  ;;  %v4658_v63 = vmul.f32 %v4557_v33, %v4557_v33  ;;  %v4660_v56 = vmul.f32 %v4559_v11, %v4559_v11 }
 0x3bc   : > { %v4702_v47 = vadd.f32 %v4701_v48, %v4655_v10  ;;  %8951 = vst [vmem:[#allocation27_spill] sm:$0xff] %v8090_v58  ;;  %v4560_v48 = vmul.f32 %v7992_v54, %v8080_v57  ;;  %v4561_v42 = vmul.f32 %v7994_v34, %v8090_v58 }
 0x3bd   : > { %v4602_v8 = vadd.f32 %v4601_v46, %v4555_v59  ;;  %v8098_v59 = vadd.f32 %v7897_v1, %v7822_v22  ;;  %8953 = vst [vmem:[#allocation29_spill] sm:$0xff] %v8104_v13 }
 0x3be   : > { %v4703_v3 = vadd.f32 %v4702_v47, %v4656_v20  ;;  %v4447_v20 = vpop.permute.xlu2 %4446  ;;  %v4662_v58 = vmul.f32 %v4561_v42, %v4561_v42 }
 0x3bf   : > { %v8074_v51 = vpop.f32.mrf.mxu2  ;;  %v4603_v28 = vadd.f32 %v4602_v8, %v4556_v41  ;;  %8952 = vst [vmem:[#allocation28_spill] sm:$0xff] %v8098_v59  ;;  %v4562_v22 = vmul.f32 %v8016_v7, %v8098_v59 }
 0x3c0   : > { %v8082_v45 = vpop.f32.mrf.mxu3  ;;  %v4704_v26 = vadd.f32 %v4703_v3, %v4657_v44  ;;  %v4661_v3 = vmul.f32 %v4560_v48, %v4560_v48 }
 0x3c1   : > { %v8084_v19 = vpop.f32.mrf.mxu1  ;;  %v4604_v46 = vadd.f32 %v4603_v28, %v4557_v33  ;;  %v8112_v33 = vadd.f32 %v7897_v1, %v7834_v50  ;;  %v4663_v50 = vmul.f32 %v4562_v22, %v4562_v22 }
 0x3c2   : > { %v4705_v47 = vadd.f32 %v4704_v26, %v4658_v63  ;;  %v4452_v44 = vpop.permute.xlu0 %4451  ;;  %v4457_v28 = vpop.permute.xlu1 %4456 }
 0x3c3   : > { %v8092_v10 = vpop.f32.mrf.mxu0  ;;  %v4605_v41 = vadd.f32 %v4604_v46, %v4558_v35  ;;  %8954 = vst [vmem:[#allocation30_spill] sm:$0xff] %v8112_v33  ;;  %v4563_v35 = vmul.f32 %v8028_v36, %v8104_v13  ;;  %v4564_v59 = vmul.f32 %v8030_v4, %v8112_v33  ;;  %v8134_v13 = vadd.f32 %v7897_v1, %v7859_v60 }
 0x3c4   : > { %v4706_v54 = vadd.f32 %v4705_v47, %v4659_v15  ;;  %v8120_v15 = vadd.f32 %v7897_v1, %v7841_v9 }
 0x3c5   : > { %v4606_v34 = vadd.f32 %v4605_v41, %v4559_v11  ;;  %v8128_v11 = vadd.f32 %v7897_v1, %v7851_v25  ;;  %8957 = vst [vmem:[#allocation33_spill] sm:$0xff] %v8134_v13  ;;  %v8139_v25 = vadd.f32 %v7897_v1, %v7869_v17  ;;  %v4567_v60 = vmul.f32 %v8072_v62, %v8134_v13  ;;  %v8959_v17 = vld [vmem:[#allocation13_spill] sm:$0xff] }
 0x3c6   : > { %v4707_v5 = vadd.f32 %v4706_v54, %v4660_v56  ;;  %8955 = vst [vmem:[#allocation31_spill] sm:$0xff] %v8120_v15  ;;  %v4664_v54 = vmul.f32 %v4563_v35, %v4563_v35  ;;  %v4565_v36 = vmul.f32 %v8056_v40, %v8120_v15  ;;  %v4462_v9 = vpop.permute.xlu2 %4461 }
 0x3c7   : > { %v8106_v8 = vpop.f32.mrf.mxu2  ;;  %v4607_v7 = vadd.f32 %v4606_v34, %v4560_v48  ;;  %8956 = vst [vmem:[#allocation32_spill] sm:$0xff] %v8128_v11  ;;  %v4566_v4 = vmul.f32 %v4437_v18, %v8128_v11  ;;  %v2801_v11 = vadd.f32 %v8008_v2, %v8959_v17  ;;  %v8164_v2 = vadd.f32 %v7897_v1, %v8963_v0 }
 0x3c8   : > { %v8114_v63 = vpop.f32.mrf.mxu3  ;;  %v4708_v47 = vadd.f32 %v4707_v5, %v4661_v3  ;;  %v4665_v5 = vmul.f32 %v4564_v59, %v4564_v59  ;;  %v4666_v15 = vmul.f32 %v4565_v36, %v4565_v36 }
 0x3c9   : > { %v2744_v26 = vpop.f32.mrf.mxu1  ;;  %v4608_v56 = vadd.f32 %v4607_v7, %v4561_v42  ;;  %v3235_v13 = vadd.f32 %v8038_v53, %v2801_v11 }
 0x3ca   : > { %v4709_v41 = vadd.f32 %v4708_v47, %v4662_v58  ;;  %v4467_v7 = vpop.permute.xlu0 %4466 }
 0x3cb   : > { %v8122_v46 = vpop.f32.mrf.mxu0  ;;  %v4609_v48 = vadd.f32 %v4608_v56, %v4562_v22  ;;  %v8958_v22 = vld [vmem:[#allocation12_spill] sm:$0xff]  ;;  %v3869_v0 = vadd.f32 %v8046_v55, %v3235_v13  ;;  %v8967_v55 = vld [vmem:[#allocation5_spill] sm:$0xff] }
 0x3cc   : > { %v4710_v34 = vadd.f32 %v4709_v41, %v4663_v50  ;;  %v8147_v50 = vadd.f32 %v7897_v1, %v8958_v22  ;;  %v4472_v41 = vpop.permute.xlu1 %4471  ;;  %v8962_v22 = vld [vmem:[#allocation2_spill] sm:$0xff] }
 0x3cd   : > { %v4610_v42 = vadd.f32 %v4609_v48, %v4563_v35  ;;  %v4667_v35 = vmul.f32 %v4566_v4, %v4566_v4  ;;  %v4568_v48 = vmul.f32 %v4447_v20, %v8139_v25  ;;  %v2802_v57 = vadd.f32 %v8048_v12, %v8962_v22 }
 0x3ce   : > { %v4711_v47 = vadd.f32 %v4710_v34, %v4664_v54  ;;  %v8960_v54 = vld [vmem:[#allocation14_spill] sm:$0xff]  ;;  %v4477_v53 = vpop.permute.xlu2 %4476 }
 0x3cf   : > { %v3178_v3 = vpop.f32.mrf.mxu2  ;;  %v4611_v18 = vadd.f32 %v4610_v42, %v4564_v59  ;;  %v8156_v34 = vadd.f32 %v7897_v1, %v8960_v54  ;;  %v4668_v59 = vmul.f32 %v4567_v60, %v4567_v60  ;;  %v4569_v42 = vmul.f32 %v4452_v44, %v8147_v50  ;;  %v8966_v54 = vld [vmem:[#allocation4_spill] sm:$0xff] }
 0x3d0   : > { %v8141_v58 = vpop.f32.mrf.mxu3  ;;  %v4712_v33 = vadd.f32 %v4711_v47, %v4665_v5  ;;  %v3236_v20 = vadd.f32 %v8074_v51, %v2802_v57  ;;  %v8964_v47 = vld [vmem:[#allocation3_spill] sm:$0xff]  ;;  %v4669_v11 = vmul.f32 %v4568_v48, %v4568_v48  ;;  %v2804_v51 = vadd.f32 %v2744_v26, %v8966_v54 }
 0x3d1   : > { %v2746_v40 = vpop.f32.mrf.mxu1  ;;  %8961 = vst [vmem:[#allocation12_spill] sm:$0xff] %v8156_v34  ;;  %v4612_v62 = vadd.f32 %v4611_v18, %v4565_v36  ;;  %v2803_v17 = vadd.f32 %v8084_v19, %v8964_v47  ;;  %v4570_v12 = vmul.f32 %v4457_v28, %v8156_v34  ;;  %v4670_v22 = vmul.f32 %v4569_v42, %v4569_v42 }
 0x3d2   : > { %v4713_v29 = vadd.f32 %v4712_v33, %v4666_v15  ;;  %v8965_v33 = vld [vmem:[#allocation20_spill] sm:$0xff]  ;;  %v4482_v47 = vpop.permute.xlu0 %4481  ;;  %v8180_v28 = vadd.f32 %v7897_v1, %v7957_v16  ;;  %v3238_v34 = vadd.f32 %v3178_v3, %v2804_v51  ;;  %v2805_v13 = vadd.f32 %v2746_v40, %v8967_v55 }
 0x3d3   : > { %v8149_v56 = vpop.f32.mrf.mxu0  ;;  %v4613_v5 = vadd.f32 %v4612_v62, %v4566_v4  ;;  %v8172_v15 = vadd.f32 %v7897_v1, %v8965_v33  ;;  %v3237_v4 = vadd.f32 %v8106_v8, %v2803_v17  ;;  %v3870_v33 = vadd.f32 %v8082_v45, %v3236_v20  ;;  %v8968_v20 = vld [vmem:[#allocation6_spill] sm:$0xff] }
 0x3d4   : > { %v4714_v18 = vadd.f32 %v4713_v29, %v4667_v35  ;;  %v4571_v29 = vmul.f32 %v4462_v9, %v8164_v2  ;;  %v4671_v26 = vmul.f32 %v4570_v12, %v4570_v12  ;;  %v8187_v9 = vadd.f32 %v7897_v1, %v7990_v6 }
 0x3d5   : > { %v4614_v62 = vadd.f32 %v4613_v5, %v4567_v60  ;;  %v4572_v60 = vmul.f32 %v4467_v7, %v8172_v15  ;;  %v4188_v5 = vadd.f32 %v8018_v21, %v3869_v0  ;;  %v3871_v16 = vadd.f32 %v8114_v63, %v3237_v4 }
 0x3d6   : > { %v4715_v19 = vadd.f32 %v4714_v18, %v4668_v59  ;;  %v4487_v59 = vpop.permute.xlu1 %4486  ;;  %v4672_v3 = vmul.f32 %v4571_v29, %v4571_v29  ;;  %v8195_v7 = vadd.f32 %v7897_v1, %v8026_v27  ;;  %v3872_v6 = vadd.f32 %v8141_v58, %v3238_v34 }
 0x3d7   : > { %v3180_v36 = vpop.f32.mrf.mxu2  ;;  %v4615_v8 = vadd.f32 %v4614_v62, %v4568_v48  ;;  %v4573_v48 = vmul.f32 %v4472_v41, %v8180_v28  ;;  %v4673_v63 = vmul.f32 %v4572_v60, %v4572_v60  ;;  %v4574_v4 = vmul.f32 %v4477_v53, %v8187_v9 }
 0x3d8   : > { %v3814_v44 = vpop.f32.mrf.mxu3  ;;  %v4716_v17 = vadd.f32 %v4715_v19, %v4669_v11  ;;  %v3239_v18 = vadd.f32 %v3180_v36, %v2805_v13  ;;  %v4189_v11 = vadd.f32 %v8058_v61, %v3870_v33  ;;  %v4190_v41 = vadd.f32 %v8092_v10, %v3871_v16  ;;  %v4492_v19 = vpop.permute.xlu2 %4491 }
 0x3d9   : > { %v2749_v57 = vpop.f32.mrf.mxu1  ;;  %v4616_v54 = vadd.f32 %v4615_v8, %v4569_v42  ;;  %v4674_v33 = vmul.f32 %v4573_v48, %v4573_v48  ;;  %v4575_v58 = vmul.f32 %v4482_v47, %v8195_v7  ;;  %v8969_v47 = vld [vmem:[#allocation7_spill] sm:$0xff] }
 0x3da   : > { %v4717_v45 = vadd.f32 %v4716_v17, %v4670_v22  ;;  %v2806_v40 = vadd.f32 %v2749_v57, %v8968_v20  ;;  %v8201_v57 = vadd.f32 %v7897_v1, %v4188_v5  ;;  %v3873_v62 = vadd.f32 %v3814_v44, %v3239_v18  ;;  %v4497_v17 = vpop.permute.xlu0 %4496 }
 0x3db   : > { %v4136_v35 = vpop.f32.mrf.mxu0  ;;  %v4617_v21 = vadd.f32 %v4616_v54, %v4570_v12  ;;  %v8206_v34 = vadd.f32 %v7897_v1, %v4189_v11  ;;  %v4191_v12 = vadd.f32 %v8122_v46, %v3872_v6  ;;  %v8211_v44 = vadd.f32 %v7897_v1, %v4190_v41 }
 0x3dc   : > { %v4718_v0 = vadd.f32 %v4717_v45, %v4671_v26  ;;  %v4675_v26 = vmul.f32 %v4574_v4, %v4574_v4  ;;  %v4576_v10 = vmul.f32 %v4487_v59, %v8201_v57  ;;  %v4676_v45 = vmul.f32 %v4575_v58, %v4575_v58 }
 0x3dd   : > { %v4618_v22 = vadd.f32 %v4617_v21, %v4571_v29  ;;  %v4192_v29 = vadd.f32 %v8149_v56, %v3873_v62  ;;  %v4577_v46 = vmul.f32 %v4492_v19, %v8206_v34  ;;  %v4578_v56 = vmul.f32 %v4497_v17, %v8211_v44 }
 0x3de   : > { %v4719_v61 = vadd.f32 %v4718_v0, %v4672_v3  ;;  %v4502_v18 = vpop.permute.xlu1 %4501 }
 0x3df   : > { %v3183_v51 = vpop.f32.mrf.mxu2  ;;  %v4619_v53 = vadd.f32 %v4618_v22, %v4572_v60  ;;  %v8217_v60 = vadd.f32 %v7897_v1, %v4191_v12  ;;  %v4679_v22 = vmul.f32 %v4578_v56, %v4578_v56 }
 0x3e0   : > { %v3240_v36 = vadd.f32 %v3183_v51, %v2806_v40  ;;  %v3817_v42 = vpop.f32.mrf.mxu3  ;;  %v4720_v13 = vadd.f32 %v4719_v61, %v4673_v63  ;;  %v4677_v51 = vmul.f32 %v4576_v10, %v4576_v10  ;;  %v4507_v62 = vpop.permute.xlu2 %4506 }
 0x3e1   : > { %v2751_v27 = vpop.f32.mrf.mxu1  ;;  %v4620_v5 = vadd.f32 %v4619_v53, %v4573_v48  ;;  %v8221_v48 = vadd.f32 %v7897_v1, %v4192_v29  ;;  %v4579_v41 = vmul.f32 %v4502_v18, %v8217_v60 }
 0x3e2   : > { %v3874_v8 = vadd.f32 %v3817_v42, %v3240_v36  ;;  %v2807_v16 = vadd.f32 %v2751_v27, %v8969_v47  ;;  %v4721_v54 = vadd.f32 %v4720_v13, %v4674_v33  ;;  %v4678_v42 = vmul.f32 %v4577_v46, %v4577_v46 }
 0x3e3   : > { %v4138_v55 = vpop.f32.mrf.mxu0  ;;  %v4621_v20 = vadd.f32 %v4620_v5, %v4574_v4  ;;  %v4580_v61 = vmul.f32 %v4507_v62, %v8221_v48 }
 0x3e4   : > { %v4193_v40 = vadd.f32 %v4136_v35, %v3874_v8  ;;  %v4722_v6 = vadd.f32 %v4721_v54, %v4675_v26  ;;  %v4512_v8 = vpop.permute.xlu0 %4511  ;;  %v4680_v26 = vmul.f32 %v4579_v41, %v4579_v41 }
 0x3e5   : > { %v4622_v0 = vadd.f32 %v4621_v20, %v4575_v58  ;;  %v8970_v58 = vld [vmem:[#allocation8_spill] sm:$0xff]  ;;  %v4681_v54 = vmul.f32 %v4580_v61, %v4580_v61 }
 0x3e6   : > { %v4723_v36 = vadd.f32 %v4722_v6, %v4676_v45  ;;  %v8225_v35 = vadd.f32 %v7897_v1, %v4193_v40 }
 0x3e7   : > { %v3185_v3 = vpop.f32.mrf.mxu2  ;;  %v4623_v27 = vadd.f32 %v4622_v0, %v4576_v10 }
 0x3e8   : > { %v3241_v59 = vadd.f32 %v3185_v3, %v2807_v16  ;;  %v3819_v11 = vpop.f32.mrf.mxu3  ;;  %v4724_v19 = vadd.f32 %v4723_v36, %v4677_v51  ;;  %v4581_v5 = vmul.f32 %v4512_v8, %v8225_v35  ;;  %v4517_v16 = vpop.permute.xlu1 %4516  ;;  %v8971_v36 = vld [vmem:[#allocation9_spill] sm:$0xff] }
 0x3e9   : > { %v2754_v21 = vpop.f32.mrf.mxu1  ;;  %v4624_v12 = vadd.f32 %v4623_v27, %v4577_v46 }
 0x3ea   : > { %v3875_v63 = vadd.f32 %v3819_v11, %v3241_v59  ;;  %v2808_v13 = vadd.f32 %v2754_v21, %v8970_v58  ;;  %v4725_v17 = vadd.f32 %v4724_v19, %v4678_v42  ;;  %v4682_v11 = vmul.f32 %v4581_v5, %v4581_v5  ;;  %v4522_v21 = vpop.permute.xlu2 %4521 }
 0x3eb   : > { %v4141_v33 = vpop.f32.mrf.mxu0  ;;  %v4625_v10 = vadd.f32 %v4624_v12, %v4578_v56 }
 0x3ec   : > { %v4194_v4 = vadd.f32 %v4138_v55, %v3875_v63  ;;  %v4726_v18 = vadd.f32 %v4725_v17, %v4679_v22 }
 0x3ed   : > { %v4626_v3 = vadd.f32 %v4625_v10, %v4579_v41  ;;  %v8972_v10 = vld [vmem:[#allocation10_spill] sm:$0xff] }
 0x3ee   : > { %v8229_v53 = vadd.f32 %v7897_v1, %v4194_v4  ;;  %v4727_v40 = vadd.f32 %v4726_v18, %v4680_v26 }
 0x3ef   : > { %v3188_v29 = vpop.f32.mrf.mxu2  ;;  %v4627_v59 = vadd.f32 %v4626_v3, %v4580_v61 }
 0x3f0   : > { %v3242_v47 = vadd.f32 %v3188_v29, %v2808_v13  ;;  %v3822_v55 = vpop.f32.mrf.mxu3  ;;  %v4582_v46 = vmul.f32 %v4517_v16, %v8229_v53  ;;  %v4728_v51 = vadd.f32 %v4727_v40, %v4681_v54 }
 0x3f1   : > { %v2756_v45 = vpop.f32.mrf.mxu1  ;;  %v4628_v0 = vadd.f32 %v4627_v59, %v4581_v5 }
 0x3f2   : > { %v3876_v20 = vadd.f32 %v3822_v55, %v3242_v47  ;;  %v4683_v56 = vmul.f32 %v4582_v46, %v4582_v46  ;;  %v2809_v42 = vadd.f32 %v2756_v45, %v8971_v36  ;;  %v4729_v4 = vadd.f32 %v4728_v51, %v4682_v11  ;;  %v4527_v47 = vpop.permute.xlu0 %4526  ;;  %v8973_v51 = vld [vmem:[#allocation11_spill] sm:$0xff] }
 0x3f3   : > { %v4143_v62 = vpop.f32.mrf.mxu0  ;;  %v4629_v41 = vadd.f32 %v4628_v0, %v4582_v46  ;;  %v4532_v0 = vpop.permute.xlu1 %4531 }
 0x3f4   : > { %v4195_v6 = vadd.f32 %v4141_v33, %v3876_v20  ;;  %v4730_v58 = vadd.f32 %v4729_v4, %v4683_v56 }
 0x3f6   : > { %v8235_v63 = vadd.f32 %v7897_v1, %v4195_v6 }
 0x3f7   : > { %v3190_v27 = vpop.f32.mrf.mxu2 }
 0x3f8   : > { %v4583_v19 = vmul.f32 %v4522_v21, %v8235_v63  ;;  %v3243_v22 = vadd.f32 %v3190_v27, %v2809_v42  ;;  %v3824_v12 = vpop.f32.mrf.mxu3 }
 0x3f9   : > { %v2759_v61 = vpop.f32.mrf.mxu1 }
 0x3fa   : > { %v4630_v33 = vadd.f32 %v4629_v41, %v4583_v19  ;;  %v4684_v13 = vmul.f32 %v4583_v19, %v4583_v19  ;;  %v3877_v8 = vadd.f32 %v3824_v12, %v3243_v22  ;;  %v2810_v5 = vadd.f32 %v2759_v61, %v8972_v10 }
 0x3fb   : > { %v4146_v45 = vpop.f32.mrf.mxu0 }
 0x3fc   : > { %v4731_v17 = vadd.f32 %v4730_v58, %v4684_v13  ;;  %v4196_v26 = vadd.f32 %v4143_v62, %v3877_v8  ;;  %v4537_v58 = vpop.permute.xlu2 %4536 }
 0x3fe   : > { %v8240_v29 = vadd.f32 %v7897_v1, %v4196_v26 }
 0x3ff   : > { %v3193_v55 = vpop.f32.mrf.mxu2 }
 0x400   : > { %v4584_v16 = vmul.f32 %v4527_v47, %v8240_v29  ;;  %v3244_v18 = vadd.f32 %v3193_v55, %v2810_v5  ;;  %v3827_v54 = vpop.f32.mrf.mxu3 }
 0x401   : > { %v2761_v40 = vpop.f32.mrf.mxu1 }
 0x402   : > { %v4631_v3 = vadd.f32 %v4630_v33, %v4584_v16  ;;  %v4685_v46 = vmul.f32 %v4584_v16, %v4584_v16  ;;  %v3878_v20 = vadd.f32 %v3827_v54, %v3244_v18  ;;  %v2811_v21 = vadd.f32 %v2761_v40, %v8973_v51 }
 0x403   : > { %v4148_v19 = vpop.f32.mrf.mxu0 }
 0x404   : > { %v4732_v59 = vadd.f32 %v4731_v17, %v4685_v46  ;;  %v4197_v11 = vadd.f32 %v4146_v45, %v3878_v20 }
 0x406   : > { %v8245_v6 = vadd.f32 %v7897_v1, %v4197_v11 }
 0x407   : > { %v3195_v56 = vpop.f32.mrf.mxu2 }
 0x408   : > { %v4585_v36 = vmul.f32 %v4532_v0, %v8245_v6  ;;  %v3245_v42 = vadd.f32 %v3195_v56, %v2811_v21  ;;  %v3829_v62 = vpop.f32.mrf.mxu3 }
 0x40a   : > { %v4632_v27 = vadd.f32 %v4631_v3, %v4585_v36  ;;  %v4686_v4 = vmul.f32 %v4585_v36, %v4585_v36  ;;  %v3879_v41 = vadd.f32 %v3829_v62, %v3245_v42 }
 0x40c   : > { %v4733_v22 = vadd.f32 %v4732_v59, %v4686_v4  ;;  %v4198_v12 = vadd.f32 %v4148_v19, %v3879_v41  ;;  %v8975_v41 = vld [vmem:[#allocation16_spill] sm:$0xff] }
 0x40e   : > { %v8250_v61 = vadd.f32 %v7897_v1, %v4198_v12 }
 0x410   : > { %v4586_v33 = vmul.f32 %v4537_v58, %v8250_v61 }
 0x412   : > { %v4633_v13 = vadd.f32 %v4632_v27, %v4586_v33  ;;  %v4687_v8 = vmul.f32 %v4586_v33, %v4586_v33  ;;  %v8974_v27 = vld [vmem:[#allocation17_spill] sm:$0xff]  ;;  %v8977_v33 = vld [vmem:[#allocation19_spill] sm:$0xff] }
 0x414   : > { %v4634_v17 = vrot.slane %v4633_v13, 4  ;;  %v4734_v26 = vadd.f32 %v4733_v22, %v4687_v8  ;;  %v8976_v22 = vld [vmem:[#allocation18_spill] sm:$0xff]  ;;  %v8978_v8 = vld [vmem:[#allocation21_spill] sm:$0xff] }
 0x416   : > { %v4635_v10 = vadd.f32 %v4634_v17, %v4633_v13  ;;  %v4735_v5 = vrot.slane %v4734_v26, 4 }
 0x418   : > { %v4636_v47 = vrot.slane %v4635_v10, 2  ;;  %v4736_v55 = vadd.f32 %v4735_v5, %v4734_v26 }
 0x41a   : > { %v4637_v16 = vadd.f32 %v4636_v47, %v4635_v10  ;;  %v4737_v18 = vrot.slane %v4736_v55, 2  ;;  %v8979_v47 = vld [vmem:[#allocation22_spill] sm:$0xff] }
 0x41c   : > { %v4638_v54 = vrot.slane %v4637_v16, 1  ;;  %v4738_v45 = vadd.f32 %v4737_v18, %v4736_v55 }
 0x41e   : > { %v4639_v3 = vadd.f32 %v4638_v54, %v4637_v16  ;;  %v4739_v46 = vrot.slane %v4738_v45, 1 }
 0x420   : > { %v4740_v20 = vadd.f32 %v4739_v46, %v4738_v45  ;;  %v8253_v1 = vmul.f32 0.00390625, %v4639_v3 }
 0x422   : > { %v4742_v40 = vmul.f32 0.00390625, %v4740_v20  ;;  %v4743_v59 = vmul.f32 %v8253_v1, %v8253_v1  ;;  %v4788_v51 = vsub.f32 %v8229_v53, %v8253_v1  ;;  %v4789_v21 = vsub.f32 %v8235_v63, %v8253_v1 }
 0x423   : > { %v4745_v4 = vsub.f32 %v8974_v27, %v8253_v1  ;;  %v4746_v19 = vsub.f32 %v8975_v41, %v8253_v1  ;;  %v4747_v12 = vsub.f32 %v8976_v22, %v8253_v1  ;;  %v4748_v13 = vsub.f32 %v8977_v33, %v8253_v1  ;;  %v8987_v33 = vld [vmem:[#allocation30_spill] sm:$0xff] }
 0x424   : > { %v4744_v11 = vsub.f32 %v4742_v40, %v4743_v59  ;;  %v4749_v17 = vsub.f32 %v8978_v8, %v8253_v1  ;;  %v4750_v26 = vsub.f32 %v7940_v30, %v8253_v1  ;;  %v4751_v10 = vsub.f32 %v7946_v43, %v8253_v1 }
 0x425   : > { %v4752_v5 = vsub.f32 %v7955_v24, %v8253_v1  ;;  %v4753_v55 = vsub.f32 %v8979_v47, %v8253_v1  ;;  %v4754_v16 = vsub.f32 %v7973_v14, %v8253_v1  ;;  %v4755_v54 = vsub.f32 %v7979_v49, %v8253_v1  ;;  %v8988_v47 = vld [vmem:[#allocation31_spill] sm:$0xff] }
 0x426   : > { %v4793_v42 = vmax.f32 %v4744_v11, 0.0  ;;  %v4756_v45 = vsub.f32 %v7988_v39, %v8253_v1  ;;  %v4757_v30 = vsub.f32 %v8000_v37, %v8253_v1  ;;  %v4758_v43 = vsub.f32 %v8006_v52, %v8253_v1  ;;  %v8980_v39 = vld [vmem:[#allocation23_spill] sm:$0xff]  ;;  %v8981_v37 = vld [vmem:[#allocation24_spill] sm:$0xff]  ;;  %v8982_v52 = vld [vmem:[#allocation25_spill] sm:$0xff] }
 0x427   : > { %v4759_v24 = vsub.f32 %v8014_v32, %v8253_v1  ;;  %v4760_v3 = vsub.f32 %v8024_v23, %v8253_v1  ;;  %v4761_v14 = vsub.f32 %v8036_v38, %v8253_v1  ;;  %v4762_v49 = vsub.f32 %v8044_v31, %v8253_v1  ;;  %v8983_v32 = vld [vmem:[#allocation26_spill] sm:$0xff]  ;;  %v8984_v23 = vld [vmem:[#allocation27_spill] sm:$0xff]  ;;  %v8985_v38 = vld [vmem:[#allocation28_spill] sm:$0xff] }
 0x428   : > { %v4794_v62 = vadd.f32 1e-05, %v4793_v42  ;;  %v4763_v20 = vsub.f32 %v8980_v39, %v8253_v1  ;;  %v4764_v40 = vsub.f32 %v8981_v37, %v8253_v1  ;;  %v4765_v59 = vsub.f32 %v8982_v52, %v8253_v1  ;;  %v8986_v31 = vld [vmem:[#allocation29_spill] sm:$0xff]  ;;  %v8989_v39 = vld [vmem:[#allocation32_spill] sm:$0xff] }
 0x429   : > { %v4766_v11 = vsub.f32 %v8983_v32, %v8253_v1  ;;  %v4767_v42 = vsub.f32 %v8984_v23, %v8253_v1  ;;  %v4768_v27 = vsub.f32 %v8985_v38, %v8253_v1  ;;  %v4769_v22 = vsub.f32 %v8986_v31, %v8253_v1  ;;  %v8990_v52 = vld [vmem:[#allocation33_spill] sm:$0xff]  ;;  %v8991_v31 = vld [vmem:[#allocation12_spill] sm:$0xff] }
 0x42a   : > { %6536 = vrsqrt.f32 %v4794_v62  ;;  %v4770_v8 = vsub.f32 %v8987_v33, %v8253_v1  ;;  %v4772_v37 = vsub.f32 %v8989_v39, %v8253_v1  ;;  %v4773_v32 = vsub.f32 %v8990_v52, %v8253_v1 }
 0x42b   : > { %v4774_v23 = vsub.f32 %v8139_v25, %v8253_v1  ;;  %v4776_v33 = vsub.f32 %v8991_v31, %v8253_v1  ;;  %v4778_v39 = vsub.f32 %v8172_v15, %v8253_v1  ;;  %v4779_v52 = vsub.f32 %v8180_v28, %v8253_v1 }
 0x42c   : > { %v4780_v25 = vsub.f32 %v8187_v9, %v8253_v1  ;;  %vm4801_vm3 = vweird.f32 %v4794_v62  ;;  %v4782_v31 = vsub.f32 %v8201_v57, %v8253_v1  ;;  %v4784_v15 = vsub.f32 %v8211_v44, %v8253_v1 }
 0x42d   : > { %v4785_v28 = vsub.f32 %v8217_v60, %v8253_v1  ;;  %v4786_v9 = vsub.f32 %v8221_v48, %v8253_v1  ;;  %v9004_v53 = vsub.f32 %v8250_v61, %v8253_v1 }
 0x430   : > { %v6537_v58 = vpop.eup %6536 }
 0x431   : > { %v4796_v18 = vmul.f32 %v6537_v58, %v4794_v62  ;;  %vm4802_vm2 = vweird.f32 %v6537_v58  ;;  %v4787_v62 = vsub.f32 %v8225_v35, %v8253_v1 }
 0x432   : > { %vm4803_vm4 = vmor %vm4801_vm3, %vm4802_vm2 }
 0x433   : > { %v4797_v46 = vmul.f32 %v6537_v58, %v4796_v18  ;;  %v4771_v18 = vsub.f32 %v8988_v47, %v8253_v1  ;;  %v4777_v47 = vsub.f32 %v8164_v2, %v8253_v1  ;;  %v4783_v2 = vsub.f32 %v8206_v34, %v8253_v1 }
 0x435   : > { %v4798_v41 = vmul.f32 0.5, %v4797_v46  ;;  %v4775_v46 = vsub.f32 %v8147_v50, %v8253_v1  ;;  %v4781_v50 = vsub.f32 %v8195_v7, %v8253_v1 }
 0x437   : > { %v4799_v38 = vsub.f32 1.5, %v4798_v41 }
 0x439   : > { %v4800_v41 = vmul.f32 %v6537_v58, %v4799_v38 }
 0x43b   : > { %v4804_v7 = vsel %vm4803_vm4, %v6537_v58, %v4800_v41  ;;  %v9003_v41 = vsub.f32 %v8245_v6, %v8253_v1 }
 0x43c   : > { %v8353_v38 = vmul.f32 %v4804_v7, %v4745_v4  ;;  %v8355_v57 = vmul.f32 %v4804_v7, %v4746_v19  ;;  %v8357_v36 = vmul.f32 %v4804_v7, %v4747_v12  ;;  %v8359_v34 = vmul.f32 %v4804_v7, %v4748_v13 }
 0x43d   : > { %v8361_v44 = vmul.f32 %v4804_v7, %v4749_v17  ;;  %v8363_v56 = vmul.f32 %v4804_v7, %v4750_v26  ;;  %v8365_v60 = vmul.f32 %v4804_v7, %v4751_v10  ;;  %v8367_v0 = vmul.f32 %v4804_v7, %v4752_v5 }
 0x43e   : > { %v8369_v48 = vmul.f32 %v4804_v7, %v4753_v55  ;;  %v8371_v35 = vmul.f32 %v4804_v7, %v4754_v16  ;;  %v8373_v4 = vmul.f32 %v4804_v7, %v4755_v54  ;;  %v8375_v19 = vmul.f32 %v4804_v7, %v4756_v45 }
 0x43f   : > { %v8377_v12 = vmul.f32 %v4804_v7, %v4757_v30  ;;  %v8379_v58 = vmul.f32 %v4804_v7, %v4758_v43  ;;  %v8381_v13 = vmul.f32 %v4804_v7, %v4759_v24  ;;  %v8383_v17 = vmul.f32 %v4804_v7, %v4760_v3 }
 0x440   : > { %v8385_v26 = vmul.f32 %v4804_v7, %v4761_v14  ;;  %v8387_v10 = vmul.f32 %v4804_v7, %v4762_v49  ;;  %v8389_v5 = vmul.f32 %v4804_v7, %v4763_v20  ;;  %v8391_v55 = vmul.f32 %v4804_v7, %v4764_v40 }
 0x441   : > { %v8393_v16 = vmul.f32 %v4804_v7, %v4765_v59  ;;  %v8395_v54 = vmul.f32 %v4804_v7, %v4766_v11  ;;  %v8397_v45 = vmul.f32 %v4804_v7, %v4767_v42  ;;  %v8399_v30 = vmul.f32 %v4804_v7, %v4768_v27 }
 0x442   : > { %v8401_v43 = vmul.f32 %v4804_v7, %v4769_v22  ;;  %v8403_v24 = vmul.f32 %v4804_v7, %v4770_v8  ;;  %v8405_v3 = vmul.f32 %v4804_v7, %v4771_v18  ;;  %v8407_v14 = vmul.f32 %v4804_v7, %v4772_v37 }
 0x443   : > { %8992 = vst [vmem:[#allocation13_spill] sm:$0xff] %v8393_v16  ;;  %v8409_v49 = vmul.f32 %v4804_v7, %v4773_v32  ;;  %v8411_v20 = vmul.f32 %v4804_v7, %v4774_v23  ;;  %v8413_v40 = vmul.f32 %v4804_v7, %v4775_v46  ;;  %v8415_v59 = vmul.f32 %v4804_v7, %v4776_v33 }
 0x444   : > { %8993 = vst [vmem:[#allocation14_spill] sm:$0xff] %v8399_v30  ;;  %v8417_v11 = vmul.f32 %v4804_v7, %v4777_v47  ;;  %v8419_v42 = vmul.f32 %v4804_v7, %v4778_v39  ;;  %v8421_v27 = vmul.f32 %v4804_v7, %v4779_v52  ;;  %v8423_v22 = vmul.f32 %v4804_v7, %v4780_v25 }
 0x445   : > { %8994 = vst [vmem:[#allocation2_spill] sm:$0xff] %v8405_v3  ;;  %v8425_v8 = vmul.f32 %v4804_v7, %v4781_v50  ;;  %v8427_v18 = vmul.f32 %v4804_v7, %v4782_v31  ;;  %v8429_v37 = vmul.f32 %v4804_v7, %v4783_v2  ;;  %v8431_v32 = vmul.f32 %v4804_v7, %v4784_v15 }
 0x446   : > { %8995 = vst [vmem:[#allocation15_spill] sm:$0xff] %v8411_v20  ;;  %v8433_v23 = vmul.f32 %v4804_v7, %v4785_v28  ;;  %v8435_v46 = vmul.f32 %v4804_v7, %v4786_v9  ;;  %v8437_v33 = vmul.f32 %v4804_v7, %v4787_v62  ;;  %v8442_v47 = vmul.f32 %v4804_v7, %v4788_v51 }
 0x447   : > { %8996 = vst [vmem:[#allocation3_spill] sm:$0xff] %v8423_v22  ;;  %v8447_v39 = vmul.f32 %v4804_v7, %v4789_v21  ;;  %v9002_v52 = vsub.f32 %v8240_v29, %v8253_v1  ;;  %v8457_v50 = vmul.f32 %v4804_v7, %v9003_v41  ;;  %v8462_v51 = vmul.f32 %v4804_v7, %v9004_v53 }
 0x448   : > { %8997 = vst [vmem:[#allocation20_spill] sm:$0xff] %v8425_v8  ;;  %vm4853_vm5 = vcmp.ge.f32.partialorder %v8353_v38, 0.0  ;;  %vm4854_vm6 = vcmp.ge.f32.partialorder %v8355_v57, 0.0  ;;  %vm4855_vm7 = vcmp.ge.f32.partialorder %v8357_v36, 0.0  ;;  %vm4856_vm8 = vcmp.ge.f32.partialorder %v8359_v34, 0.0 }
 0x449   : > { %8998 = vst [vmem:[#allocation4_spill] sm:$0xff] %v8427_v18  ;;  %v8452_v25 = vmul.f32 %v4804_v7, %v9002_v52  ;;  %vm4857_vm9 = vcmp.ge.f32.partialorder %v8361_v44, 0.0  ;;  %vm4858_vm10 = vcmp.ge.f32.partialorder %v8363_v56, 0.0  ;;  %vm4859_vm11 = vcmp.ge.f32.partialorder %v8365_v60, 0.0 }
 0x44a   : > { %8999 = vst [vmem:[#allocation5_spill] sm:$0xff] %v8429_v37  ;;  %vm4860_vm12 = vcmp.ge.f32.partialorder %v8367_v0, 0.0  ;;  %vm4861_vm13 = vcmp.ge.f32.partialorder %v8369_v48, 0.0  ;;  %vm4862_vm14 = vcmp.ge.f32.partialorder %v8371_v35, 0.0  ;;  %v4901_v63 = vmul.f32 0.2, %v8353_v38 }
 0x44b   : > { %9000 = vst [vmem:[#allocation6_spill] sm:$0xff] %v8433_v23  ;;  %v4902_v29 = vmul.f32 0.2, %v8355_v57  ;;  %v4903_v6 = vmul.f32 0.2, %v8357_v36  ;;  %vm4863_vm15 = vcmp.ge.f32.partialorder %v8373_v4, 0.0 }
 0x44c   : > { %9001 = vst [vmem:[#allocation7_spill] sm:$0xff] %v8435_v46  ;;  %v4904_v61 = vmul.f32 0.2, %v8359_v34  ;;  %v4905_v1 = vmul.f32 0.2, %v8361_v44  ;;  %vm4864_vm0 = vcmp.ge.f32.partialorder %v8375_v19, 0.0  ;;  %v8488_v28 = vsel %vm4853_vm5, %v8353_v38, %v4901_v63 }
 0x44d   : > { %v4906_v21 = vmul.f32 0.2, %v8363_v56  ;;  %v4907_v31 = vmul.f32 0.2, %v8365_v60  ;;  %v4908_v2 = vmul.f32 0.2, %v8367_v0  ;;  %v8503_v52 = vsel %vm4854_vm6, %v8355_v57, %v4902_v29 }
 0x44e   : > { %v4909_v15 = vmul.f32 0.2, %v8369_v48  ;;  %9005 = vst [vmem:[#allocation8_spill] sm:$0xff] %v8488_v28  ;;  %vm4865_vm1 = vcmp.ge.f32.partialorder %v8377_v12, 0.0  ;;  %v8492_v9 = vmul.f32 0.2, %v8371_v35  ;;  %v8518_v63 = vsel %vm4855_vm7, %v8357_v36, %v4903_v6 }
 0x44f   : > { %v8495_v62 = vmul.f32 0.2, %v8373_v4  ;;  %v8498_v7 = vmul.f32 0.2, %v8375_v19  ;;  %9006 = vst [vmem:[#allocation9_spill] sm:$0xff] %v8503_v52  ;;  %vm4866_vm2 = vcmp.ge.f32.partialorder %v8379_v58, 0.0  ;;  %v8536_v36 = vsel %vm4856_vm8, %v8359_v34, %v4904_v61 }
 0x450   : > { %v8507_v38 = vmul.f32 0.2, %v8377_v12  ;;  %v8510_v41 = vmul.f32 0.2, %v8379_v58  ;;  %v8513_v53 = vmul.f32 0.2, %v8381_v13  ;;  %v8554_v34 = vsel %vm4857_vm9, %v8361_v44, %v4905_v1 }
 0x451   : > { %9007 = vst [vmem:[#allocation10_spill] sm:$0xff] %v8518_v63  ;;  %vm4867_vm3 = vcmp.ge.f32.partialorder %v8381_v13, 0.0  ;;  %v8525_v57 = vmul.f32 0.2, %v8383_v17  ;;  %v8528_v29 = vmul.f32 0.2, %v8385_v26  ;;  %v8572_v44 = vsel %vm4858_vm10, %v8363_v56, %v4906_v21 }
 0x452   : > { %v8531_v52 = vmul.f32 0.2, %v8387_v10  ;;  %9008 = vst [vmem:[#allocation11_spill] sm:$0xff] %v8536_v36  ;;  %vm4871_vm7 = vcmp.ge.f32.partialorder %v8389_v5, 0.0  ;;  %v8543_v6 = vmul.f32 0.2, %v8389_v5 }
 0x453   : > { %v8546_v63 = vmul.f32 0.2, %v8391_v55  ;;  %v8549_v28 = vmul.f32 0.2, %v8393_v16  ;;  %9009 = vst [vmem:[#allocation17_spill] sm:$0xff] %v8554_v34  ;;  %vm4875_vm8 = vcmp.ge.f32.partialorder %v8397_v45, 0.0 }
 0x454   : > { %v8561_v61 = vmul.f32 0.2, %v8395_v54  ;;  %v8564_v36 = vmul.f32 0.2, %v8397_v45  ;;  %v8567_v16 = vmul.f32 0.2, %v8399_v30 }
 0x455   : > { %9011 = vst [vmem:[#allocation18_spill] sm:$0xff] %v8572_v44  ;;  %vm4882_vm6 = vcmp.ge.f32.partialorder %v8411_v20, 0.0  ;;  %v4925_v1 = vmul.f32 0.2, %v8401_v43  ;;  %v4926_v34 = vmul.f32 0.2, %v8403_v24 }
 0x456   : > { %9010 = vst [vmem:[#allocation16_spill] sm:$0xff] %v8567_v16  ;;  %v4927_v30 = vmul.f32 0.2, %v8405_v3  ;;  %v8584_v16 = vsel %vm4859_vm11, %v8365_v60, %v4907_v31  ;;  %vm4886_vm5 = vcmp.ge.f32.partialorder %v8419_v42, 0.0  ;;  %v4928_v56 = vmul.f32 0.2, %v8407_v14 }
 0x457   : > { %9012 = vst [vmem:[#allocation19_spill] sm:$0xff] %v8584_v16  ;;  %v4929_v21 = vmul.f32 0.2, %v8409_v49  ;;  %v4930_v44 = vmul.f32 0.2, %v8411_v20  ;;  %v8596_v3 = vsel %vm4860_vm12, %v8367_v0, %v4908_v2  ;;  %vm4890_vm4 = vcmp.ge.f32.partialorder %v8427_v18, 0.0 }
 0x458   : > { %9013 = vst [vmem:[#allocation21_spill] sm:$0xff] %v8596_v3  ;;  %v4931_v60 = vmul.f32 0.2, %v8413_v40  ;;  %v4932_v31 = vmul.f32 0.2, %v8415_v59  ;;  %v8608_v20 = vsel %vm4861_vm13, %v8369_v48, %v4909_v15  ;;  %vm4891_vm12 = vcmp.ge.f32.partialorder %v8429_v37, 0.0 }
 0x459   : > { %v4933_v16 = vmul.f32 0.2, %v8417_v11  ;;  %9014 = vst [vmem:[#allocation22_spill] sm:$0xff] %v8608_v20  ;;  %v4934_v0 = vmul.f32 0.2, %v8419_v42  ;;  %v8621_v48 = vsel %vm4862_vm14, %v8371_v35, %v8492_v9  ;;  %vm4895_vm13 = vcmp.ge.f32.partialorder %v8437_v33, 0.0 }
 0x45a   : > { %v4935_v2 = vmul.f32 0.2, %v8421_v27  ;;  %v4936_v3 = vmul.f32 0.2, %v8423_v22  ;;  %9015 = vst [vmem:[#allocation23_spill] sm:$0xff] %v8621_v48  ;;  %vm4897_vm10 = vcmp.ge.f32.partialorder %v8447_v39, 0.0  ;;  %v8634_v35 = vsel %vm4863_vm15, %v8373_v4, %v8495_v62 }
 0x45b   : > { %vm4898_vm9 = vcmp.ge.f32.partialorder %v8452_v25, 0.0  ;;  %v4937_v15 = vmul.f32 0.2, %v8425_v8  ;;  %v4938_v20 = vmul.f32 0.2, %v8427_v18  ;;  %9016 = vst [vmem:[#allocation24_spill] sm:$0xff] %v8634_v35  ;;  %v8654_v35 = vsel %vm4865_vm1, %v8377_v12, %v8507_v38 }
 0x45c   : > { %v4939_v22 = vmul.f32 0.2, %v8429_v37  ;;  %vm4899_vm14 = vcmp.ge.f32.partialorder %v8457_v50, 0.0  ;;  %vm4900_vm11 = vcmp.ge.f32.partialorder %v8462_v51, 0.0  ;;  %v4940_v9 = vmul.f32 0.2, %v8431_v32 }
 0x45d   : > { %v4941_v48 = vmul.f32 0.2, %v8433_v23  ;;  %v4942_v8 = vmul.f32 0.2, %v8435_v46  ;;  %v8645_v37 = vsel %vm4864_vm0, %v8375_v19, %v8498_v7  ;;  %v4943_v18 = vmul.f32 0.2, %v8437_v33 }
 0x45e   : > { %9017 = vst [vmem:[#allocation25_spill] sm:$0xff] %v8645_v37  ;;  %v4944_v4 = vmul.f32 0.2, %v8442_v47  ;;  %v4945_v62 = vmul.f32 0.2, %v8447_v39  ;;  %v8663_v7 = vsel %vm4866_vm2, %v8379_v58, %v8510_v41  ;;  %v8669_v37 = vsel %vm4867_vm3, %v8381_v13, %v8513_v53 }
 0x45f   : > { %v4946_v46 = vmul.f32 0.2, %v8452_v25  ;;  %v4947_v23 = vmul.f32 0.2, %v8457_v50  ;;  %v4948_v19 = vmul.f32 0.2, %v8462_v51  ;;  %v8693_v13 = vsel %vm4871_vm7, %v8389_v5, %v8543_v6 }
 0x460   : > { %vm9018_vm15 = vcmp.ge.f32.partialorder %v8383_v17, 0.0  ;;  %vm9019_vm0 = vcmp.ge.f32.partialorder %v8385_v26, 0.0  ;;  %vm9020_vm1 = vcmp.ge.f32.partialorder %v8387_v10, 0.0  ;;  %vm9021_vm2 = vcmp.ge.f32.partialorder %v8391_v55, 0.0 }
 0x461   : > { %v8675_v12 = vsel %vm9018_vm15, %v8383_v17, %v8525_v57  ;;  %v8681_v38 = vsel %vm9019_vm0, %v8385_v26, %v8528_v29  ;;  %v8687_v58 = vsel %vm9020_vm1, %v8387_v10, %v8531_v52  ;;  %v8699_v17 = vsel %vm9021_vm2, %v8391_v55, %v8546_v63  ;;  %v9022_v26 = vld [vmem:[#allocation13_spill] sm:$0xff]  ;;  %v9025_v55 = vld [vmem:[#allocation16_spill] sm:$0xff]  ;;  %v9026_v52 = vld [vmem:[#allocation14_spill] sm:$0xff] }
 0x462   : > { %vm9023_vm3 = vcmp.ge.f32.partialorder %v9022_v26, 0.0  ;;  %vm9024_vm15 = vcmp.ge.f32.partialorder %v8395_v54, 0.0  ;;  %v8717_v5 = vsel %vm4875_vm8, %v8397_v45, %v8564_v36  ;;  %vm9027_vm7 = vcmp.ge.f32.partialorder %v9026_v52, 0.0  ;;  %v9030_v63 = vld [vmem:[#allocation2_spill] sm:$0xff]  ;;  %v9034_v36 = vld [vmem:[#allocation15_spill] sm:$0xff] }
 0x463   : > { %v8705_v41 = vsel %vm9023_vm3, %v9022_v26, %v8549_v28  ;;  %v8711_v10 = vsel %vm9024_vm15, %v8395_v54, %v8561_v61  ;;  %v4972_v53 = vsel %vm9027_vm7, %v9026_v52, %v9025_v55  ;;  %vm9028_vm0 = vcmp.ge.f32.partialorder %v8401_v43, 0.0  ;;  %v9041_v61 = vld [vmem:[#allocation20_spill] sm:$0xff]  ;;  %v9060_v26 = vld [vmem:[#allocation23_spill] sm:$0xff] }
 0x464   : > { %v4973_v28 = vsel %vm9028_vm0, %v8401_v43, %v4925_v1  ;;  %vm9029_vm1 = vcmp.ge.f32.partialorder %v8403_v24, 0.0  ;;  %vm9031_vm2 = vcmp.ge.f32.partialorder %v9030_v63, 0.0  ;;  %vm9032_vm8 = vcmp.ge.f32.partialorder %v8407_v14, 0.0  ;;  %v9046_v1 = vld [vmem:[#allocation6_spill] sm:$0xff] }
 0x465   : > { %v4974_v54 = vsel %vm9029_vm1, %v8403_v24, %v4926_v34  ;;  %v4975_v57 = vsel %vm9031_vm2, %v9030_v63, %v4927_v30  ;;  %v4976_v45 = vsel %vm9032_vm8, %v8407_v14, %v4928_v56  ;;  %vm9033_vm3 = vcmp.ge.f32.partialorder %v8409_v49, 0.0  ;;  %v9039_v34 = vld [vmem:[#allocation3_spill] sm:$0xff]  ;;  %v9062_v55 = vld [vmem:[#allocation25_spill] sm:$0xff] }
 0x466   : > { %v4977_v29 = vsel %vm9033_vm3, %v8409_v49, %v4929_v21  ;;  %v4978_v43 = vsel %vm4882_vm6, %v9034_v36, %v4930_v44  ;;  %vm9035_vm15 = vcmp.ge.f32.partialorder %v8413_v40, 0.0  ;;  %vm9036_vm7 = vcmp.ge.f32.partialorder %v8415_v59, 0.0  ;;  %v9043_v44 = vld [vmem:[#allocation4_spill] sm:$0xff]  ;;  %v9048_v56 = vld [vmem:[#allocation7_spill] sm:$0xff] }
 0x467   : > { %v4979_v24 = vsel %vm9035_vm15, %v8413_v40, %v4931_v60  ;;  %v4980_v30 = vsel %vm9036_vm7, %v8415_v59, %v4932_v31  ;;  %vm9037_vm0 = vcmp.ge.f32.partialorder %v8417_v11, 0.0  ;;  %v4982_v49 = vsel %vm4886_vm5, %v8419_v42, %v4934_v0  ;;  %v9052_v31 = vld [vmem:[#allocation9_spill] sm:$0xff]  ;;  %v9053_v0 = vld [vmem:[#allocation10_spill] sm:$0xff] }
 0x468   : > { %v4981_v14 = vsel %vm9037_vm0, %v8417_v11, %v4933_v16  ;;  %vm9038_vm1 = vcmp.ge.f32.partialorder %v8421_v27, 0.0  ;;  %vm9040_vm6 = vcmp.ge.f32.partialorder %v9039_v34, 0.0  ;;  %vm9042_vm2 = vcmp.ge.f32.partialorder %v9041_v61, 0.0  ;;  %v9044_v11 = vld [vmem:[#allocation5_spill] sm:$0xff] }
 0x469   : > { %v4983_v6 = vsel %vm9038_vm1, %v8421_v27, %v4935_v2  ;;  %v4984_v40 = vsel %vm9040_vm6, %v9039_v34, %v4936_v3  ;;  %v4985_v59 = vsel %vm9042_vm2, %v9041_v61, %v4937_v15  ;;  %v4986_v16 = vsel %vm4890_vm4, %v9043_v44, %v4938_v20  ;;  %v9054_v2 = vld [vmem:[#allocation11_spill] sm:$0xff]  ;;  %v9056_v15 = vld [vmem:[#allocation18_spill] sm:$0xff] }
 0x46a   : > { %v4987_v42 = vsel %vm4891_vm12, %v9044_v11, %v4939_v22  ;;  %vm9045_vm5 = vcmp.ge.f32.partialorder %v8431_v32, 0.0  ;;  %vm9047_vm8 = vcmp.ge.f32.partialorder %v9046_v1, 0.0  ;;  %vm9049_vm3 = vcmp.ge.f32.partialorder %v9048_v56, 0.0 }
 0x46b   : > { %v4988_v27 = vsel %vm9045_vm5, %v8431_v32, %v4940_v9  ;;  %v4989_v3 = vsel %vm9047_vm8, %v9046_v1, %v4941_v48  ;;  %v4990_v21 = vsel %vm9049_vm3, %v9048_v56, %v4942_v8  ;;  %v4991_v20 = vsel %vm4895_vm13, %v8437_v33, %v4943_v18  ;;  %v9051_v33 = vld [vmem:[#allocation8_spill] sm:$0xff] }
 0x46c   : > { %vm9050_vm4 = vcmp.ge.f32.partialorder %v8442_v47, 0.0  ;;  %v4993_v32 = vsel %vm4897_vm10, %v8447_v39, %v4945_v62  ;;  %v4994_v8 = vsel %vm4898_vm9, %v8452_v25, %v4946_v46  ;;  %v4995_v60 = vsel %vm4899_vm14, %v8457_v50, %v4947_v23  ;;  %v9055_v39 = vld [vmem:[#allocation17_spill] sm:$0xff]  ;;  %v9059_v62 = vld [vmem:[#allocation22_spill] sm:$0xff]  ;;  %v9061_v50 = vld [vmem:[#allocation24_spill] sm:$0xff] }
 0x46d   : > { %v4992_v22 = vsel %vm9050_vm4, %v8442_v47, %v4944_v4  ;;  %v4996_v18 = vsel %vm4900_vm11, %v8462_v51, %v4948_v19  ;;  %v6334_v47 = vpack.c.bf16 %v9052_v31, %v9051_v33  ;;  %v6339_v48 = vpack.c.bf16 %v9054_v2, %v9053_v0  ;;  %v9057_v4 = vld [vmem:[#allocation19_spill] sm:$0xff]  ;;  %v9058_v46 = vld [vmem:[#allocation21_spill] sm:$0xff] }
 0x46e   : > { %v6344_v9 = vpack.c.bf16 %v9056_v15, %v9055_v39  ;;  %v6349_v25 = vpack.c.bf16 %v9058_v46, %v9057_v4  ;;  %v6354_v23 = vpack.c.bf16 %v9060_v26, %v9059_v62  ;;  %v6359_v52 = vpack.c.bf16 %v9062_v55, %v9061_v50 }
 0x46f   : > { %6335 = vst [vmem:[%s8781_s9] sm:$0xff] %v6334_v47   ;;  %v6364_v51 = vpack.c.bf16 %v8663_v7, %v8654_v35  ;;  %v6369_v19 = vpack.c.bf16 %v8675_v12, %v8669_v37  ;;  %v6374_v63 = vpack.c.bf16 %v8687_v58, %v8681_v38  ;;  %v6379_v36 = vpack.c.bf16 %v8699_v17, %v8693_v13 }
 0x470   : > { %6458 = vst [vmem:[%s8781_s9 + $0x8] sm:$0xff] %v6339_v48   ;;  %v6384_v34 = vpack.c.bf16 %v8711_v10, %v8705_v41  ;;  %v6389_v61 = vpack.c.bf16 %v4972_v53, %v8717_v5  ;;  %v6394_v44 = vpack.c.bf16 %v4974_v54, %v4973_v28  ;;  %v6399_v35 = vpack.c.bf16 %v4976_v45, %v4975_v57 }
 0x471   : > { %6459 = vst [vmem:[%s8781_s9 + $0x10] sm:$0xff] %v6344_v9   ;;  %v6404_v37 = vpack.c.bf16 %v4978_v43, %v4977_v29  ;;  %v6409_v7 = vpack.c.bf16 %v4980_v30, %v4979_v24  ;;  %v6414_v12 = vpack.c.bf16 %v4982_v49, %v4981_v14  ;;  %v6419_v38 = vpack.c.bf16 %v4984_v40, %v4983_v6 }
 0x472   : > { %6460 = vst [vmem:[%s8781_s9 + $0x18] sm:$0xff] %v6349_v25   ;;  %v6424_v58 = vpack.c.bf16 %v4986_v16, %v4985_v59  ;;  %v6429_v13 = vpack.c.bf16 %v4988_v27, %v4987_v42  ;;  %v6434_v17 = vpack.c.bf16 %v4990_v21, %v4989_v3  ;;  %v6439_v41 = vpack.c.bf16 %v4992_v22, %v4991_v20 }
 0x473   : > { %6461 = vst [vmem:[%s8781_s9 + $0x20] sm:$0xff] %v6354_v23   ;;  %v6444_v10 = vpack.c.bf16 %v4994_v8, %v4993_v32  ;;  %v6449_v5 = vpack.c.bf16 %v4996_v18, %v4995_v60 }
 0x474   : > { %6462 = vst [vmem:[%s8781_s9 + $0x28] sm:$0xff] %v6359_v52  }
 0x475   : > { %6463 = vst [vmem:[%s8781_s9 + $0x30] sm:$0xff] %v6364_v51  }
 0x476   : > { %6464 = vst [vmem:[%s8781_s9 + $0x38] sm:$0xff] %v6369_v19  }
 0x477   : > { %6465 = vst [vmem:[%s8781_s9 + $0x40] sm:$0xff] %v6374_v63  }
 0x478   : > { %6466 = vst [vmem:[%s8781_s9 + $0x48] sm:$0xff] %v6379_v36  }
 0x479   : > { %6467 = vst [vmem:[%s8781_s9 + $0x50] sm:$0xff] %v6384_v34  }
 0x47a   : > { %6468 = vst [vmem:[%s8781_s9 + $0x58] sm:$0xff] %v6389_v61  }
 0x47b   : > { %6469 = vst [vmem:[%s8781_s9 + $0x60] sm:$0xff] %v6394_v44  }
 0x47c   : > { %6470 = vst [vmem:[%s8781_s9 + $0x68] sm:$0xff] %v6399_v35  }
 0x47d   : > { %6471 = vst [vmem:[%s8781_s9 + $0x70] sm:$0xff] %v6404_v37  }
 0x47e   : > { %6472 = vst [vmem:[%s8781_s9 + $0x78] sm:$0xff] %v6409_v7  }
 0x47f   : > { %6473 = vst [vmem:[%s8781_s9 + $0x80] sm:$0xff] %v6414_v12  }
 0x480   : > { %6474 = vst [vmem:[%s8781_s9 + $0x88] sm:$0xff] %v6419_v38  }
 0x481   : > { %6475 = vst [vmem:[%s8781_s9 + $0x90] sm:$0xff] %v6424_v58  }
 0x482   : > { %6476 = vst [vmem:[%s8781_s9 + $0x98] sm:$0xff] %v6429_v13  }
 0x483   : > { %6477 = vst [vmem:[%s8781_s9 + $0xa0] sm:$0xff] %v6434_v17  }
 0x484   : > { %6478 = vst [vmem:[%s8781_s9 + $0xa8] sm:$0xff] %v6439_v41  }
 0x485   : > { %6479 = vst [vmem:[%s8781_s9 + $0xb0] sm:$0xff] %v6444_v10  }
 0x486   : > { %6480 = vst [vmem:[%s8781_s9 + $0xb8] sm:$0xff] %v6449_v5  }
 0x487 PF: > { %s14_s17 = sadd.s32 1, %s6598_s17   ;;  %s9063_s15 = smov %s6594_s16 }
 0x488   : > { %p11_p5 = scmp.ge.s32.totalorder %s14_s17, 4   ;;  %s9064_s16 = smov %s9066_s18 }
 0x48a   :  { %13 = sbr.rel (!%p11_p5) target bundleno = 2 (0x2), region = 83 }

</bundles_post_ra>
